<compile_context>
chip_gen: v5e
topology: v5e:2x2
jax: 0.10.0
libtpu: 0.0.40
codegen_flags: <defaults>
</compile_context>

<pallas_src>
import functools

import jax
import jax.numpy as jnp
from jax.experimental import pallas as pl
from jax.experimental.pallas import tpu as pltpu


def _router_kernel(x_ref, w_ref, depth_ref, cnt_ref, psum_ref, lsesq_ref,
                   *, num_experts, num_tokens, block_rows):
    step = pl.program_id(0)

    x = x_ref[...]                                                # (tm, d_model)
    logits = jnp.dot(x, w_ref[...],
                     preferred_element_type=jnp.float32)          # (tm, E_pad) f32
    e_pad = logits.shape[-1]

    # Mask lane padding so softmax / argmax / logsumexp only see real experts.
    lane = jax.lax.broadcasted_iota(jnp.int32, logits.shape, 1)
    logits = jnp.where(lane < num_experts, logits, jnp.float32(-1e30))

    # Numerically-stable softmax + logsumexp.  Reciprocal goes to the EUP slot.
    m = jnp.max(logits, axis=-1, keepdims=True)                   # (tm, 1)
    e = jnp.exp(logits - m)                                       # (tm, E_pad)
    s = jnp.sum(e, axis=-1, keepdims=True)                        # (tm, 1)
    inv_s = pl.reciprocal(s, approx=True)
    probs = e * inv_s                                             # (tm, E_pad)
    lse = m + jnp.log(s)                                          # (tm, 1)

    # argmax with first-occurrence tie-break (matches torch.argmax).
    # (Degenerate case: if every real logit <= -1e30, a padded lane could win.)
    is_max = logits >= m
    sel = jnp.min(jnp.where(is_max, lane, e_pad),
                  axis=-1, keepdims=True)                         # (tm, 1) int32
    one_hot = (lane == sel).astype(jnp.float32)                   # (tm, E_pad)

    # Lane-dense depths: contract expert ids (1, E_pad) with one_hot over the expert
    # axis on the MXU -> (1, tm) row, i.e. depth_row[0, i] = sel_i + 1.
    expert_id = (jax.lax.broadcasted_iota(jnp.int32, (1, e_pad), 1) + 1
                 ).astype(jnp.float32)
    depth_row = jax.lax.dot_general(expert_id, one_hot, (((1,), (1,)), ((), ())),
                                    preferred_element_type=jnp.float32)  # (1, tm)
    depth_ref[...] = depth_row.astype(depth_ref.dtype)

    # Row validity (ragged last block), folded into the stats through the matmul LHS.
    lane_row = jax.lax.broadcasted_iota(jnp.int32, (1, block_rows), 1)
    valid_row = ((step * block_rows + lane_row) < num_tokens
                 ).astype(jnp.float32)                            # (1, tm)
    row_col = jax.lax.broadcasted_iota(jnp.int32, (block_rows, 1), 0)
    valid_col = ((step * block_rows + row_col) < num_tokens
                 ).astype(jnp.float32)                            # (tm, 1)

    # Per-block partial statistics (summed in the wrapper).  The two sublane
    # reductions ride on the MXU; lse^2 is a cheap masked sublane reduce.
    cnt_ref[...] = jnp.dot(valid_row, one_hot,
                           preferred_element_type=jnp.float32)    # (1, E_pad)
    psum_ref[...] = jnp.dot(valid_row, probs,
                            preferred_element_type=jnp.float32)   # (1, E_pad)
    lsesq_ref[...] = jnp.sum(valid_col * (lse * lse),
                             axis=0, keepdims=True)               # (1, 1)


def _pick_block_rows(m_tokens, d_model, e_pad, itemsize, budget_bytes):
    """Largest row tile whose estimated VMEM footprint fits the budget."""
    tm = 128
    for cand in (2048, 1024, 512, 256, 128):
        footprint = (2 * cand * d_model * itemsize          # double-buffered x tile
                     + 7 * cand * e_pad * 4                 # f32 temporaries
                     + 2 * d_model * e_pad * max(itemsize, 4)  # router weight buffers
                     + 8 * cand * 4)                         # depth rows / misc
        if footprint <= budget_bytes:
            tm = cand
            break
    # Don't use a block taller than the (sublane-rounded) token count.
    m_rounded = max(8, ((m_tokens + 7) // 8) * 8)
    return min(tm, m_rounded)


def token_choice_router(x, w, *, num_experts,
                        z_loss_coef=0.001, balance_loss_coef=0.01,
                        vmem_budget_bytes=40 * 1024 * 1024):
    """x: (batch, seq, d_model); w: (d_model, num_experts) (pre-transposed Linear)."""
    batch, seq, d_model = x.shape
    M = batch * seq
    E = num_experts
    e_pad = ((E + 127) // 128) * 128                    # lane-dense expert width

    # Keep activations/weights in the incoming activation dtype (bf16 stays bf16:
    # halves the dominant HBM read).  Matmul accumulates in f32 regardless.
    w_pad = jnp.pad(w.astype(x.dtype), ((0, 0), (0, e_pad - E)))

    itemsize = jnp.dtype(x.dtype).itemsize
    tm = _pick_block_rows(M, d_model, e_pad, itemsize, vmem_budget_bytes)
    num_blocks = int(pl.cdiv(M, tm))
    m_pad = num_blocks * tm

    x2d = x.reshape(M, d_model)
    if m_pad != M:
        # Zero-pad ragged tail so padded rows compute well-defined (masked-out) stats.
        x2d = jnp.pad(x2d, ((0, m_pad - M), (0, 0)))

    kernel = functools.partial(_router_kernel,
                               num_experts=E, num_tokens=M, block_rows=tm)

    def run(single_buffer_w):
        w_spec_kwargs = {}
        if single_buffer_w:
            # Constant index_map -> W is fetched once; single-buffer it so the dead
            # second buffer does not eat VMEM (matters for large d_model on v7x).
            w_spec_kwargs = dict(pipeline_mode=pl.Buffered(1))
        return pl.pallas_call(
            kernel,
            out_shape=(
                jax.ShapeDtypeStruct((num_blocks, tm), jnp.int32),      # depths rows
                jax.ShapeDtypeStruct((num_blocks, e_pad), jnp.float32),  # expert counts
                jax.ShapeDtypeStruct((num_blocks, e_pad), jnp.float32),  # prob sums
                jax.ShapeDtypeStruct((num_blocks, 1), jnp.float32),      # sum lse^2
            ),
            grid_spec=pltpu.PrefetchScalarGridSpec(
                num_scalar_prefetch=0,
                grid=(num_blocks,),
                in_specs=[
                    pl.BlockSpec((tm, d_model), lambda i: (i, 0)),        # token tile
                    pl.BlockSpec((d_model, e_pad), lambda i: (0, 0),
                                 **w_spec_kwargs),                        # resident W
                ],
                out_specs=[
                    pl.BlockSpec((1, tm), lambda i: (i, 0)),
                    pl.BlockSpec((1, e_pad), lambda i: (i, 0)),
                    pl.BlockSpec((1, e_pad), lambda i: (i, 0)),
                    pl.BlockSpec((1, 1), lambda i: (i, 0)),
                ],
            ),
            compiler_params=pltpu.CompilerParams(
                # Every grid step writes disjoint output blocks -> fully parallel
                # (shards across both TensorCores on v7x).
                dimension_semantics=("parallel",),
                vmem_limit_bytes=48 * 1024 * 1024,
            ),
            cost_estimate=pl.CostEstimate(
                flops=2 * m_pad * d_model * e_pad + 6 * m_pad * e_pad,
                transcendentals=m_pad * e_pad + m_pad,
                bytes_accessed=(m_pad * d_model + d_model * e_pad) * itemsize
                               + num_blocks * (tm * 4 + 2 * e_pad * 4 + 4),
            ),
        )(x2d, w_pad)

    try:
        depth_blocks, cnt_blocks, psum_blocks, lsesq_blocks = run(True)
    except Exception:
        # pl.Buffered(1) unsupported on this jax version -> default double buffering.
        depth_blocks, cnt_blocks, psum_blocks, lsesq_blocks = run(False)

    depths = depth_blocks.reshape(-1)[:M].reshape(batch, seq)

    # Tiny cross-block reduction + aux-loss formula in plain JAX.
    counts = jnp.sum(cnt_blocks, axis=0)[:E]
    psums = jnp.sum(psum_blocks, axis=0)[:E]
    lse_sq = jnp.sum(lsesq_blocks)

    inv_n = jnp.float32(1.0 / M)
    z_loss = lse_sq * inv_n
    balance = jnp.float32(E) * jnp.sum((counts * inv_n) * (psums * inv_n))
    aux = jnp.float32(z_loss_coef) * z_loss + jnp.float32(balance_loss_coef) * balance
    return depths, aux


def _reference(x, w, num_experts, z_coef, b_coef):
    b, s, d = x.shape
    xf = x.reshape(-1, d)
    logits = xf @ w
    probs = jax.nn.softmax(logits, axis=-1)
    sel = jnp.argmax(probs, axis=-1)
    depths = (sel + 1).reshape(b, s).astype(jnp.int32)
    lse = jax.scipy.special.logsumexp(logits, axis=-1)
    z_loss = jnp.mean(lse ** 2)
    counts = jnp.sum(jax.nn.one_hot(sel, num_experts, dtype=jnp.float32), axis=0)
    load_balance = counts / xf.shape[0]
    mean_probs = probs.mean(axis=0)
    balance = num_experts * jnp.sum(load_balance * mean_probs)
    return depths, z_coef * z_loss + b_coef * balance


if __name__ == "__main__":
    batch, seq, d_model, num_experts = 2, 256, 128, 8
    z_coef, b_coef = 0.001, 0.01

    key = jax.random.PRNGKey(0)
    kx, kw = jax.random.split(key)
    x = jax.random.normal(kx, (batch, seq, d_model), dtype=jnp.float32)
    # PyTorch nn.Linear stores weight as (num_experts, d_model); we keep the
    # equivalent pre-transposed (d_model, num_experts) layout.
    bound = float(1.0 / (d_model ** 0.5))
    w = jax.random.uniform(kw, (d_model, num_experts), jnp.float32, -bound, bound)

    depths, aux = token_choice_router(
        x, w, num_experts=num_experts,
        z_loss_coef=z_coef, balance_loss_coef=b_coef)
    jax.block_until_ready((depths, aux))

    ref_depths, ref_aux = _reference(x, w, num_experts, z_coef, b_coef)

    assert depths.shape == (batch, seq)
    # Depths must match exactly except where the top-2 logits are within float
    # noise of each other (tie-break order is then reassociation-dependent).
    logits = x.reshape(-1, d_model) @ w
    top2 = jnp.sort(logits, axis=-1)[:, -2:]
    clear = (top2[:, 1] - top2[:, 0]) > 1e-3
    match = depths.reshape(-1) == ref_depths.reshape(-1)
    assert bool(jnp.all(jnp.logical_or(~clear, match))), "depth mismatch vs reference"
    assert jnp.allclose(aux, ref_aux, atol=5e-5, rtol=1e-4), "aux loss mismatch vs reference"

    # bf16 smoke test: activations stay bf16 inside the kernel (no upcast).
    xb = x.astype(jnp.bfloat16)
    depths_b, aux_b = token_choice_router(
        xb, w, num_experts=num_experts,
        z_loss_coef=z_coef, balance_loss_coef=b_coef)
    jax.block_until_ready((depths_b, aux_b))
    assert depths_b.shape == (batch, seq)
    assert bool(jnp.all((depths_b >= 1) & (depths_b <= num_experts)))
    assert bool(jnp.isfinite(aux_b))

    print("KERNEL_OK")
</pallas_src>

<mosaic_0001>
module attributes {stable_mosaic.version = 11 : i64} {
  func.func @_router_kernel(%arg0: i32, %arg1: memref<512x128xf32, #tpu.memory_space<vmem>>, %arg2: memref<128x128xf32, #tpu.memory_space<vmem>>, %arg3: memref<1x512xi32, #tpu.memory_space<vmem>>, %arg4: memref<1x128xf32, #tpu.memory_space<vmem>>, %arg5: memref<1x128xf32, #tpu.memory_space<vmem>>, %arg6: memref<1x1xf32, #tpu.memory_space<vmem>>) attributes {dimension_semantics = [#tpu.dimension_semantics<parallel>], iteration_bounds = array<i64: 1>, scalar_prefetch = 0 : i64, scratch_operands = 0 : i64, tpu.core_type = #tpu.core_type<tc>, window_params = [{transform_indices = @transform_0, window_bounds = array<i64: 512, 128>}, {pipeline_mode = #tpu.pipeline_mode<synchronous>, transform_indices = @transform_1, window_bounds = array<i64: 128, 128>}, {transform_indices = @transform_2, window_bounds = array<i64: 1, 512>}, {transform_indices = @transform_3, window_bounds = array<i64: 1, 128>}, {transform_indices = @transform_4, window_bounds = array<i64: 1, 128>}, {transform_indices = @transform_5, window_bounds = array<i64: 1, 1>}]} {
    %c0 = arith.constant 0 : index
    %c0_0 = arith.constant 0 : index
    %0 = vector.load %arg1[%c0, %c0_0] : memref<512x128xf32, #tpu.memory_space<vmem>>, vector<512x128xf32>
    %c0_1 = arith.constant 0 : index
    %c0_2 = arith.constant 0 : index
    %1 = vector.load %arg2[%c0_1, %c0_2] : memref<128x128xf32, #tpu.memory_space<vmem>>, vector<128x128xf32>
    %cst = arith.constant dense<0.000000e+00> : vector<512x128xf32>
    %2 = tpu.matmul %0, %1, %cst {dimension_numbers = #tpu.dot_dimension_numbers<[1], [0], [0], [1], [0, 0, 1, 1], [], []>} : vector<512x128xf32>, vector<128x128xf32>, vector<512x128xf32> -> vector<512x128xf32>
    %3 = tpu.iota {dimensions = array<i32: 1>} : vector<512x128xi32>
    %c8_i32 = arith.constant 8 : i32
    %4 = vector.broadcast %c8_i32 : i32 to vector<512x128xi32>
    %5 = arith.cmpi slt, %3, %4 : vector<512x128xi32>
    %cst_3 = arith.constant -1.000000e+30 : f32
    %6 = vector.broadcast %cst_3 : f32 to vector<512x128xf32>
    %7 = arith.select %5, %2, %6 : vector<512x128xi1>, vector<512x128xf32>
    %cst_4 = arith.constant dense<0xFF800000> : vector<512xf32>
    %8 = vector.multi_reduction <maximumf>, %7, %cst_4 [1] : vector<512x128xf32> to vector<512xf32>
    %9 = vector.shape_cast %8 : vector<512xf32> to vector<512x1xf32>
    %10 = vector.broadcast %9 : vector<512x1xf32> to vector<512x128xf32>
    %11 = arith.subf %7, %10 : vector<512x128xf32>
    %12 = math.exp %11 : vector<512x128xf32>
    %cst_5 = arith.constant dense<0.000000e+00> : vector<512xf32>
    %13 = vector.multi_reduction <add>, %12, %cst_5 [1] : vector<512x128xf32> to vector<512xf32>
    %14 = vector.shape_cast %13 : vector<512xf32> to vector<512x1xf32>
    %15 = tpu.reciprocal %14 {approx = true} : vector<512x1xf32> -> vector<512x1xf32>
    %16 = vector.broadcast %15 : vector<512x1xf32> to vector<512x128xf32>
    %17 = arith.mulf %12, %16 : vector<512x128xf32>
    %18 = math.log %14 : vector<512x1xf32>
    %19 = arith.addf %9, %18 : vector<512x1xf32>
    %20 = vector.broadcast %9 : vector<512x1xf32> to vector<512x128xf32>
    %21 = arith.cmpf oge, %7, %20 : vector<512x128xf32>
    %c128_i32 = arith.constant 128 : i32
    %22 = vector.broadcast %c128_i32 : i32 to vector<512x128xi32>
    %23 = arith.select %21, %3, %22 : vector<512x128xi1>, vector<512x128xi32>
    %cst_6 = arith.constant dense<2147483647> : vector<512xi32>
    %24 = vector.multi_reduction <minsi>, %23, %cst_6 [1] : vector<512x128xi32> to vector<512xi32>
    %25 = vector.shape_cast %24 : vector<512xi32> to vector<512x1xi32>
    %26 = vector.broadcast %25 : vector<512x1xi32> to vector<512x128xi32>
    %27 = arith.cmpi eq, %3, %26 : vector<512x128xi32>
    %28 = arith.extui %27 : vector<512x128xi1> to vector<512x128xi32>
    %29 = arith.sitofp %28 : vector<512x128xi32> to vector<512x128xf32>
    %30 = tpu.iota {dimensions = array<i32: 1>} : vector<1x128xi32>
    %c1_i32 = arith.constant 1 : i32
    %31 = vector.broadcast %c1_i32 : i32 to vector<1x128xi32>
    %32 = arith.addi %30, %31 : vector<1x128xi32>
    %33 = arith.sitofp %32 : vector<1x128xi32> to vector<1x128xf32>
    %cst_7 = arith.constant dense<0.000000e+00> : vector<1x512xf32>
    %34 = tpu.matmul %33, %29, %cst_7 {dimension_numbers = #tpu.dot_dimension_numbers<[1], [1], [0], [0], [0, 0, 1, 0], [], []>} : vector<1x128xf32>, vector<512x128xf32>, vector<1x512xf32> -> vector<1x512xf32>
    %35 = arith.fptosi %34 : vector<1x512xf32> to vector<1x512xi32>
    %c0_8 = arith.constant 0 : index
    %c0_9 = arith.constant 0 : index
    %36 = vector.load %arg3[%c0_8, %c0_9] : memref<1x512xi32, #tpu.memory_space<vmem>>, vector<1x512xi32>
    tpu.vector_store %arg3[%c0_8, %c0_9], %35 {strides = array<i32>} : memref<1x512xi32, #tpu.memory_space<vmem>>, vector<1x512xi32>,
    %37 = tpu.iota {dimensions = array<i32: 1>} : vector<1x512xi32>
    %c512_i32 = arith.constant 512 : i32
    %38 = arith.muli %arg0, %c512_i32 : i32
    %39 = vector.broadcast %38 : i32 to vector<1x512xi32>
    %40 = arith.addi %39, %37 : vector<1x512xi32>
    %c512_i32_10 = arith.constant 512 : i32
    %41 = vector.broadcast %c512_i32_10 : i32 to vector<1x512xi32>
    %42 = arith.cmpi slt, %40, %41 : vector<1x512xi32>
    %43 = arith.extui %42 : vector<1x512xi1> to vector<1x512xi32>
    %44 = arith.sitofp %43 : vector<1x512xi32> to vector<1x512xf32>
    %45 = tpu.iota {dimensions = array<i32: 0>} : vector<512x1xi32>
    %c512_i32_11 = arith.constant 512 : i32
    %46 = arith.muli %arg0, %c512_i32_11 : i32
    %47 = vector.broadcast %46 : i32 to vector<512x1xi32>
    %48 = arith.addi %47, %45 : vector<512x1xi32>
    %c512_i32_12 = arith.constant 512 : i32
    %49 = vector.broadcast %c512_i32_12 : i32 to vector<512x1xi32>
    %50 = arith.cmpi slt, %48, %49 : vector<512x1xi32>
    %51 = arith.extui %50 : vector<512x1xi1> to vector<512x1xi32>
    %52 = arith.sitofp %51 : vector<512x1xi32> to vector<512x1xf32>
    %cst_13 = arith.constant dense<0.000000e+00> : vector<1x128xf32>
    %53 = tpu.matmul %44, %29, %cst_13 {dimension_numbers = #tpu.dot_dimension_numbers<[1], [0], [0], [1], [0, 0, 1, 1], [], []>} : vector<1x512xf32>, vector<512x128xf32>, vector<1x128xf32> -> vector<1x128xf32>
    %c0_14 = arith.constant 0 : index
    %c0_15 = arith.constant 0 : index
    %54 = vector.load %arg4[%c0_14, %c0_15] : memref<1x128xf32, #tpu.memory_space<vmem>>, vector<1x128xf32>
    tpu.vector_store %arg4[%c0_14, %c0_15], %53 {strides = array<i32>} : memref<1x128xf32, #tpu.memory_space<vmem>>, vector<1x128xf32>,
    %cst_16 = arith.constant dense<0.000000e+00> : vector<1x128xf32>
    %55 = tpu.matmul %44, %17, %cst_16 {dimension_numbers = #tpu.dot_dimension_numbers<[1], [0], [0], [1], [0, 0, 1, 1], [], []>} : vector<1x512xf32>, vector<512x128xf32>, vector<1x128xf32> -> vector<1x128xf32>
    %c0_17 = arith.constant 0 : index
    %c0_18 = arith.constant 0 : index
    %56 = vector.load %arg5[%c0_17, %c0_18] : memref<1x128xf32, #tpu.memory_space<vmem>>, vector<1x128xf32>
    tpu.vector_store %arg5[%c0_17, %c0_18], %55 {strides = array<i32>} : memref<1x128xf32, #tpu.memory_space<vmem>>, vector<1x128xf32>,
    %57 = arith.mulf %19, %19 : vector<512x1xf32>
    %58 = arith.mulf %52, %57 : vector<512x1xf32>
    %cst_19 = arith.constant dense<0.000000e+00> : vector<1xf32>
    %59 = vector.multi_reduction <add>, %58, %cst_19 [0] : vector<512x1xf32> to vector<1xf32>
    %60 = vector.shape_cast %59 : vector<1xf32> to vector<1x1xf32>
    %c0_20 = arith.constant 0 : index
    %c0_21 = arith.constant 0 : index
    %61 = vector.load %arg6[%c0_20, %c0_21] : memref<1x1xf32, #tpu.memory_space<vmem>>, vector<1x1xf32>
    tpu.vector_store %arg6[%c0_20, %c0_21], %60 {strides = array<i32>} : memref<1x1xf32, #tpu.memory_space<vmem>>, vector<1x1xf32>,
    return
  }
  func.func @transform_0(%arg0: i32) -> (i32, i32) {
    %c0_i32 = arith.constant 0 : i32
    %c0_i32_0 = arith.constant 0 : i32
    return %arg0, %c0_i32 : i32, i32
  }
  func.func @transform_1(%arg0: i32) -> (i32, i32) {
    %c0_i32 = arith.constant 0 : i32
    %c0_i32_0 = arith.constant 0 : i32
    %c0_i32_1 = arith.constant 0 : i32
    return %c0_i32, %c0_i32_0 : i32, i32
  }
  func.func @transform_2(%arg0: i32) -> (i32, i32) {
    %c0_i32 = arith.constant 0 : i32
    %c0_i32_0 = arith.constant 0 : i32
    return %arg0, %c0_i32 : i32, i32
  }
  func.func @transform_3(%arg0: i32) -> (i32, i32) {
    %c0_i32 = arith.constant 0 : i32
    %c0_i32_0 = arith.constant 0 : i32
    return %arg0, %c0_i32 : i32, i32
  }
  func.func @transform_4(%arg0: i32) -> (i32, i32) {
    %c0_i32 = arith.constant 0 : i32
    %c0_i32_0 = arith.constant 0 : i32
    return %arg0, %c0_i32 : i32, i32
  }
  func.func @transform_5(%arg0: i32) -> (i32, i32) {
    %c0_i32 = arith.constant 0 : i32
    %c0_i32_0 = arith.constant 0 : i32
    return %arg0, %c0_i32 : i32, i32
  }
}

module attributes {stable_mosaic.version = 11 : i64} {
  func.func @_router_kernel(%arg0: i32, %arg1: memref<512x128xf32, #tpu.memory_space<vmem>>, %arg2: memref<128x128xf32, #tpu.memory_space<vmem>>, %arg3: memref<1x512xi32, #tpu.memory_space<vmem>>, %arg4: memref<1x128xf32, #tpu.memory_space<vmem>>, %arg5: memref<1x128xf32, #tpu.memory_space<vmem>>, %arg6: memref<1x1xf32, #tpu.memory_space<vmem>>) attributes {dimension_semantics = [#tpu.dimension_semantics<parallel>], iteration_bounds = array<i64: 1>, scalar_prefetch = 0 : i64, scratch_operands = 0 : i64, tpu.core_type = #tpu.core_type<tc>, window_params = [{transform_indices = @transform_0, window_bounds = array<i64: 512, 128>}, {pipeline_mode = #tpu.pipeline_mode<synchronous>, transform_indices = @transform_1, window_bounds = array<i64: 128, 128>}, {transform_indices = @transform_2, window_bounds = array<i64: 1, 512>}, {transform_indices = @transform_3, window_bounds = array<i64: 1, 128>}, {transform_indices = @transform_4, window_bounds = array<i64: 1, 128>}, {transform_indices = @transform_5, window_bounds = array<i64: 1, 1>}]} {
    %c0 = arith.constant 0 : index
    %c0_0 = arith.constant 0 : index
    %0 = vector.load %arg1[%c0, %c0_0] : memref<512x128xf32, #tpu.memory_space<vmem>>, vector<512x128xf32>
    %c0_1 = arith.constant 0 : index
    %c0_2 = arith.constant 0 : index
    %1 = vector.load %arg2[%c0_1, %c0_2] : memref<128x128xf32, #tpu.memory_space<vmem>>, vector<128x128xf32>
    %cst = arith.constant dense<0.000000e+00> : vector<512x128xf32>
    %2 = tpu.matmul %0, %1, %cst {dimension_numbers = #tpu.dot_dimension_numbers<[1], [0], [0], [1], [0, 0, 1, 1], [], []>} : vector<512x128xf32>, vector<128x128xf32>, vector<512x128xf32> -> vector<512x128xf32>
    %3 = tpu.iota {dimensions = array<i32: 1>} : vector<512x128xi32>
    %c8_i32 = arith.constant 8 : i32
    %4 = vector.broadcast %c8_i32 : i32 to vector<512x128xi32>
    %5 = arith.cmpi slt, %3, %4 : vector<512x128xi32>
    %cst_3 = arith.constant -1.000000e+30 : f32
    %6 = vector.broadcast %cst_3 : f32 to vector<512x128xf32>
    %7 = arith.select %5, %2, %6 : vector<512x128xi1>, vector<512x128xf32>
    %cst_4 = arith.constant dense<0xFF800000> : vector<512xf32>
    %8 = vector.multi_reduction <maximumf>, %7, %cst_4 [1] : vector<512x128xf32> to vector<512xf32>
    %9 = vector.shape_cast %8 : vector<512xf32> to vector<512x1xf32>
    %10 = vector.broadcast %9 : vector<512x1xf32> to vector<512x128xf32>
    %11 = arith.subf %7, %10 : vector<512x128xf32>
    %12 = math.exp %11 : vector<512x128xf32>
    %cst_5 = arith.constant dense<0.000000e+00> : vector<512xf32>
    %13 = vector.multi_reduction <add>, %12, %cst_5 [1] : vector<512x128xf32> to vector<512xf32>
    %14 = vector.shape_cast %13 : vector<512xf32> to vector<512x1xf32>
    %15 = tpu.reciprocal %14 {approx = true} : vector<512x1xf32> -> vector<512x1xf32>
    %16 = vector.broadcast %15 : vector<512x1xf32> to vector<512x128xf32>
    %17 = arith.mulf %12, %16 : vector<512x128xf32>
    %18 = math.log %14 : vector<512x1xf32>
    %19 = arith.addf %9, %18 : vector<512x1xf32>
    %20 = vector.broadcast %9 : vector<512x1xf32> to vector<512x128xf32>
    %21 = arith.cmpf oge, %7, %20 : vector<512x128xf32>
    %c128_i32 = arith.constant 128 : i32
    %22 = vector.broadcast %c128_i32 : i32 to vector<512x128xi32>
    %23 = arith.select %21, %3, %22 : vector<512x128xi1>, vector<512x128xi32>
    %cst_6 = arith.constant dense<2147483647> : vector<512xi32>
    %24 = vector.multi_reduction <minsi>, %23, %cst_6 [1] : vector<512x128xi32> to vector<512xi32>
    %25 = vector.shape_cast %24 : vector<512xi32> to vector<512x1xi32>
    %26 = vector.broadcast %25 : vector<512x1xi32> to vector<512x128xi32>
    %27 = arith.cmpi eq, %3, %26 : vector<512x128xi32>
    %28 = arith.extui %27 : vector<512x128xi1> to vector<512x128xi32>
    %29 = arith.sitofp %28 : vector<512x128xi32> to vector<512x128xf32>
    %30 = tpu.iota {dimensions = array<i32: 1>} : vector<1x128xi32>
    %c1_i32 = arith.constant 1 : i32
    %31 = vector.broadcast %c1_i32 : i32 to vector<1x128xi32>
    %32 = arith.addi %30, %31 : vector<1x128xi32>
    %33 = arith.sitofp %32 : vector<1x128xi32> to vector<1x128xf32>
    %cst_7 = arith.constant dense<0.000000e+00> : vector<1x512xf32>
    %34 = tpu.matmul %33, %29, %cst_7 {dimension_numbers = #tpu.dot_dimension_numbers<[1], [1], [0], [0], [0, 0, 1, 0], [], []>} : vector<1x128xf32>, vector<512x128xf32>, vector<1x512xf32> -> vector<1x512xf32>
    %35 = arith.fptosi %34 : vector<1x512xf32> to vector<1x512xi32>
    %c0_8 = arith.constant 0 : index
    %c0_9 = arith.constant 0 : index
    %36 = vector.load %arg3[%c0_8, %c0_9] : memref<1x512xi32, #tpu.memory_space<vmem>>, vector<1x512xi32>
    tpu.vector_store %arg3[%c0_8, %c0_9], %35 {strides = array<i32>} : memref<1x512xi32, #tpu.memory_space<vmem>>, vector<1x512xi32>,
    %37 = tpu.iota {dimensions = array<i32: 1>} : vector<1x512xi32>
    %c512_i32 = arith.constant 512 : i32
    %38 = arith.muli %arg0, %c512_i32 : i32
    %39 = vector.broadcast %38 : i32 to vector<1x512xi32>
    %40 = arith.addi %39, %37 : vector<1x512xi32>
    %c512_i32_10 = arith.constant 512 : i32
    %41 = vector.broadcast %c512_i32_10 : i32 to vector<1x512xi32>
    %42 = arith.cmpi slt, %40, %41 : vector<1x512xi32>
    %43 = arith.extui %42 : vector<1x512xi1> to vector<1x512xi32>
    %44 = arith.sitofp %43 : vector<1x512xi32> to vector<1x512xf32>
    %45 = tpu.iota {dimensions = array<i32: 0>} : vector<512x1xi32>
    %c512_i32_11 = arith.constant 512 : i32
    %46 = arith.muli %arg0, %c512_i32_11 : i32
    %47 = vector.broadcast %46 : i32 to vector<512x1xi32>
    %48 = arith.addi %47, %45 : vector<512x1xi32>
    %c512_i32_12 = arith.constant 512 : i32
    %49 = vector.broadcast %c512_i32_12 : i32 to vector<512x1xi32>
    %50 = arith.cmpi slt, %48, %49 : vector<512x1xi32>
    %51 = arith.extui %50 : vector<512x1xi1> to vector<512x1xi32>
    %52 = arith.sitofp %51 : vector<512x1xi32> to vector<512x1xf32>
    %cst_13 = arith.constant dense<0.000000e+00> : vector<1x128xf32>
    %53 = tpu.matmul %44, %29, %cst_13 {dimension_numbers = #tpu.dot_dimension_numbers<[1], [0], [0], [1], [0, 0, 1, 1], [], []>} : vector<1x512xf32>, vector<512x128xf32>, vector<1x128xf32> -> vector<1x128xf32>
    %c0_14 = arith.constant 0 : index
    %c0_15 = arith.constant 0 : index
    %54 = vector.load %arg4[%c0_14, %c0_15] : memref<1x128xf32, #tpu.memory_space<vmem>>, vector<1x128xf32>
    tpu.vector_store %arg4[%c0_14, %c0_15], %53 {strides = array<i32>} : memref<1x128xf32, #tpu.memory_space<vmem>>, vector<1x128xf32>,
    %cst_16 = arith.constant dense<0.000000e+00> : vector<1x128xf32>
    %55 = tpu.matmul %44, %17, %cst_16 {dimension_numbers = #tpu.dot_dimension_numbers<[1], [0], [0], [1], [0, 0, 1, 1], [], []>} : vector<1x512xf32>, vector<512x128xf32>, vector<1x128xf32> -> vector<1x128xf32>
    %c0_17 = arith.constant 0 : index
    %c0_18 = arith.constant 0 : index
    %56 = vector.load %arg5[%c0_17, %c0_18] : memref<1x128xf32, #tpu.memory_space<vmem>>, vector<1x128xf32>
    tpu.vector_store %arg5[%c0_17, %c0_18], %55 {strides = array<i32>} : memref<1x128xf32, #tpu.memory_space<vmem>>, vector<1x128xf32>,
    %57 = arith.mulf %19, %19 : vector<512x1xf32>
    %58 = arith.mulf %52, %57 : vector<512x1xf32>
    %cst_19 = arith.constant dense<0.000000e+00> : vector<1xf32>
    %59 = vector.multi_reduction <add>, %58, %cst_19 [0] : vector<512x1xf32> to vector<1xf32>
    %60 = vector.shape_cast %59 : vector<1xf32> to vector<1x1xf32>
    %c0_20 = arith.constant 0 : index
    %c0_21 = arith.constant 0 : index
    %61 = vector.load %arg6[%c0_20, %c0_21] : memref<1x1xf32, #tpu.memory_space<vmem>>, vector<1x1xf32>
    tpu.vector_store %arg6[%c0_20, %c0_21], %60 {strides = array<i32>} : memref<1x1xf32, #tpu.memory_space<vmem>>, vector<1x1xf32>,
    return
  }
  func.func @transform_0(%arg0: i32) -> (i32, i32) {
    %c0_i32 = arith.constant 0 : i32
    %c0_i32_0 = arith.constant 0 : i32
    return %arg0, %c0_i32 : i32, i32
  }
  func.func @transform_1(%arg0: i32) -> (i32, i32) {
    %c0_i32 = arith.constant 0 : i32
    %c0_i32_0 = arith.constant 0 : i32
    %c0_i32_1 = arith.constant 0 : i32
    return %c0_i32, %c0_i32_0 : i32, i32
  }
  func.func @transform_2(%arg0: i32) -> (i32, i32) {
    %c0_i32 = arith.constant 0 : i32
    %c0_i32_0 = arith.constant 0 : i32
    return %arg0, %c0_i32 : i32, i32
  }
  func.func @transform_3(%arg0: i32) -> (i32, i32) {
    %c0_i32 = arith.constant 0 : i32
    %c0_i32_0 = arith.constant 0 : i32
    return %arg0, %c0_i32 : i32, i32
  }
  func.func @transform_4(%arg0: i32) -> (i32, i32) {
    %c0_i32 = arith.constant 0 : i32
    %c0_i32_0 = arith.constant 0 : i32
    return %arg0, %c0_i32 : i32, i32
  }
  func.func @transform_5(%arg0: i32) -> (i32, i32) {
    %c0_i32 = arith.constant 0 : i32
    %c0_i32_0 = arith.constant 0 : i32
    return %arg0, %c0_i32 : i32, i32
  }
}

</mosaic_0001>

<bundles_post_ra>
// kernel: tpu_custom_call.1
= control target key start
LH: loop header
LB: loop body
LE: loop exit
PB: predicated region body
PF: predicated region fallthrough
CT: control target
= control target key end

     0   :  { %11 = vsyncpa [#allocation3], 0  ;;  %s7277_s0 = inlined_call_operand.hbm [shape: f32[512,128], index: 0, kind: input, shape index: {}]   ;;  %s7278_s1 = inlined_call_operand.hbm [shape: f32[128,128], index: 1, kind: input, shape index: {}]   ;;  %s7279_s2 = inlined_call_operand.hbm [shape: s32[1,512], index: 2, kind: output, shape index: {0}]   ;;  %s7280_s3 = inlined_call_operand.hbm [shape: f32[1,128], index: 3, kind: output, shape index: {1}]   ;;  %s7281_s4 = inlined_call_operand.hbm [shape: f32[1,128], index: 4, kind: output, shape index: {2}]   ;;  %s7282_s5 = inlined_call_operand.hbm [shape: f32[1,1], index: 5, kind: output, shape index: {3}]  }
   0x1   :  { %12 = vsyncpa [#allocation6], 0 }
   0x2   :  { %13 = vsyncpa [#allocation4], 0 }
   0x3   :  { %14 = vsyncpa [#allocation9], 0 }
   0x4   :  { %15 = vsyncpa [#allocation12], 0  ;;  %s20_s20 = sshll.u32 %s7277_s0, 4  ;;  %s4065_s21 = smov [#allocation2]   ;;  %s21_s20 = int_to_ptr.hbm [resolvable:$true] %s20_s20 }
   0x5   :  { %s22_s22 = sshll.u32 %s4065_s21, 4  ;;  %s33_s25 = sshll.u32 %s7278_s1, 4  ;;  %s23_s22 = int_to_ptr.vmem [resolvable:$true] %s22_s22  ;;  %s34_s25 = int_to_ptr.hbm [resolvable:$true] %s33_s25 }
   0x6   :  { %s4066_s26 = smov 128   ;;  %s4067_s27 = smov 8  }
   0x7   :  { %28 = dma.hbm_to_vmem [thread:$0]  %s21_s20, 8192, %s23_s22, [#allocation3], %s4066_s26, %s4066_s26, %s4067_s27  }
   0x8   :  { %s4068_s28 = smov [#allocation5]  }
   0x9   :  { %s35_s29 = sshll.u32 %s4068_s28, 4  ;;  %s36_s29 = int_to_ptr.vmem [resolvable:$true] %s35_s29 }
   0xa   :  { %41 = dma.hbm_to_vmem [thread:$0]  %s34_s25, 2048, %s36_s29, [#allocation6], %s4066_s26, %s4066_s26, %s4067_s27  }
   0xb   :  { %4055 = dma.done.wait [#allocation3], 8192  }
   0xc   :  { %4056 = vsyncadd [#allocation3], 4294959104 }
   0xd   :  { %4057 = dma.done.wait [#allocation6], 2048  }
   0xe   :  { %4058 = vsyncadd [#allocation6], 4294965248  ;;  %v129_v0 = vld [vmem:[#allocation5 + $0x78] sm:$0xff]  ;;  %v128_v1 = vld [vmem:[#allocation5 + $0x70] sm:$0xff]  ;;  %s4070_s0 = smov [#allocation11]   ;;  %s3233_s7 = sshll.u32 %s7282_s5, 4  ;;  %s3234_s7 = int_to_ptr.hbm [resolvable:$true] %s3233_s7 }
   0xf   :  { %130 = vmatpush.msra.mxu0 %v129_v0  ;;  %3450 = vmatpush.msra.mxu1 %v129_v0  ;;  %v127_v2 = vld [vmem:[#allocation5 + $0x68] sm:$0xff]  ;;  %v126_v3 = vld [vmem:[#allocation5 + $0x60] sm:$0xff]  ;;  %v125_v4 = vld [vmem:[#allocation5 + $0x58] sm:$0xff]  ;;  %s3231_s1 = sshll.u32 %s4070_s0, 4  ;;  %s4071_s5 = smov [#allocation7]   ;;  %s3232_s1 = int_to_ptr.vmem [resolvable:$true] %s3231_s1 }
  0x10   :  { %3451 = vmatpush.msra.mxu2 %v129_v0  ;;  %3452 = vmatpush.msra.mxu3 %v129_v0  ;;  %v124_v5 = vld [vmem:[#allocation5 + $0x50] sm:$0xff]  ;;  %v123_v6 = vld [vmem:[#allocation5 + $0x48] sm:$0xff]  ;;  %v122_v7 = vld [vmem:[#allocation5 + $0x40] sm:$0xff]  ;;  %s3198_s8 = sshll.u32 %s4071_s5, 4  ;;  %s3200_s11 = sshll.u32 %s7279_s2, 4  ;;  %s3199_s8 = int_to_ptr.vmem [resolvable:$true] %s3198_s8  ;;  %s3201_s11 = int_to_ptr.hbm [resolvable:$true] %s3200_s11 }
  0x11   :  { %131 = vmatpush.msra.mxu0 %v128_v1  ;;  %3453 = vmatpush.msra.mxu1 %v128_v1  ;;  %v121_v8 = vld [vmem:[#allocation5 + $0x38] sm:$0xff]  ;;  %v120_v9 = vld [vmem:[#allocation5 + $0x30] sm:$0xff]  ;;  %v119_v10 = vld [vmem:[#allocation5 + $0x28] sm:$0xff]  ;;  %s4072_s12 = smov [#allocation8]   ;;  %s3211_s15 = sshll.u32 %s7280_s3, 4  ;;  %s3212_s15 = int_to_ptr.hbm [resolvable:$true] %s3211_s15 }
  0x12   :  { %3454 = vmatpush.msra.mxu2 %v128_v1  ;;  %3455 = vmatpush.msra.mxu3 %v128_v1  ;;  %v118_v11 = vld [vmem:[#allocation5 + $0x20] sm:$0xff]  ;;  %v117_v12 = vld [vmem:[#allocation5 + $0x18] sm:$0xff]  ;;  %v116_v13 = vld [vmem:[#allocation5 + $0x10] sm:$0xff]  ;;  %s3209_s13 = sshll.u32 %s4072_s12, 4  ;;  %s4073_s16 = smov [#allocation10]   ;;  %s3210_s13 = int_to_ptr.vmem [resolvable:$true] %s3209_s13 }
  0x13   :  { %132 = vmatpush.msra.mxu0 %v127_v2  ;;  %3456 = vmatpush.msra.mxu1 %v127_v2  ;;  %v115_v14 = vld [vmem:[#allocation5 + $0x8] sm:$0xff]  ;;  %v114_v15 = vld [vmem:[#allocation5] sm:$0xff]  ;;  %v80_v21 = vld [vmem:[#allocation2 + $0xf0] sm:$0xff]  ;;  %s3220_s17 = sshll.u32 %s4073_s16, 4  ;;  %s3222_s20 = sshll.u32 %s7281_s4, 4  ;;  %s3221_s17 = int_to_ptr.vmem [resolvable:$true] %s3220_s17  ;;  %s3223_s20 = int_to_ptr.hbm [resolvable:$true] %s3222_s20 }
  0x14   :  { %3457 = vmatpush.msra.mxu2 %v127_v2  ;;  %3458 = vmatpush.msra.mxu3 %v127_v2  ;;  %v50_v16 = vld [vmem:[#allocation2] sm:$0xff]  ;;  %v79_v17 = vld [vmem:[#allocation2 + $0xe8] sm:$0xff]  ;;  %v92_v22 = vld [vmem:[#allocation2 + $0x150] sm:$0xff]  ;;  %v7283_v2 = vlaneseq }
  0x15   :  { %133 = vmatpush.msra.mxu0 %v126_v3  ;;  %3459 = vmatpush.msra.mxu1 %v126_v3  ;;  %v91_v18 = vld [vmem:[#allocation2 + $0x148] sm:$0xff]  ;;  %v106_v19 = vld [vmem:[#allocation2 + $0x1c0] sm:$0xff]  ;;  %v52_v24 = vld [vmem:[#allocation2 + $0x10] sm:$0xff] }
  0x16   :  { %3460 = vmatpush.msra.mxu2 %v126_v3  ;;  %3461 = vmatpush.msra.mxu3 %v126_v3  ;;  %v51_v20 = vld [vmem:[#allocation2 + $0x8] sm:$0xff]  ;;  %v81_v25 = vld [vmem:[#allocation2 + $0xf8] sm:$0xff]  ;;  %v108_v27 = vld [vmem:[#allocation2 + $0x1d0] sm:$0xff] }
  0x17   :  { %134 = vmatpush.msra.mxu0 %v125_v4  ;;  %3462 = vmatpush.msra.mxu1 %v125_v4  ;;  %v107_v23 = vld [vmem:[#allocation2 + $0x1c8] sm:$0xff]  ;;  %v93_v26 = vld [vmem:[#allocation2 + $0x158] sm:$0xff]  ;;  %v82_v28 = vld [vmem:[#allocation2 + $0x100] sm:$0xff] }
  0x18   :  { %3463 = vmatpush.msra.mxu2 %v125_v4  ;;  %3464 = vmatpush.msra.mxu3 %v125_v4  ;;  %v53_v29 = vld [vmem:[#allocation2 + $0x18] sm:$0xff]  ;;  %v94_v30 = vld [vmem:[#allocation2 + $0x160] sm:$0xff]  ;;  %v83_v32 = vld [vmem:[#allocation2 + $0x108] sm:$0xff]  ;;  %v4111_v4 = vand.u32 127, %v7283_v2 }
  0x19   :  { %135 = vmatpush.msra.mxu0 %v124_v5  ;;  %3465 = vmatpush.msra.mxu1 %v124_v5  ;;  %v109_v31 = vld [vmem:[#allocation2 + $0x1d8] sm:$0xff]  ;;  %v54_v33 = vld [vmem:[#allocation2 + $0x20] sm:$0xff]  ;;  %v95_v34 = vld [vmem:[#allocation2 + $0x168] sm:$0xff] }
  0x1a   :  { %3466 = vmatpush.msra.mxu2 %v124_v5  ;;  %3467 = vmatpush.msra.mxu3 %v124_v5  ;;  %v110_v35 = vld [vmem:[#allocation2 + $0x1e0] sm:$0xff]  ;;  %v55_v36 = vld [vmem:[#allocation2 + $0x28] sm:$0xff]  ;;  %v84_v37 = vld [vmem:[#allocation2 + $0x110] sm:$0xff]  ;;  %vm341_vm0 = vcmp.lt.s32.totalorder %v4111_v4, 8 }
  0x1b   :  { %136 = vmatpush.msra.mxu0 %v123_v6  ;;  %3468 = vmatpush.msra.mxu1 %v123_v6  ;;  %v96_v38 = vld [vmem:[#allocation2 + $0x170] sm:$0xff]  ;;  %v111_v39 = vld [vmem:[#allocation2 + $0x1e8] sm:$0xff]  ;;  %v85_v41 = vld [vmem:[#allocation2 + $0x118] sm:$0xff] }
  0x1c   :  { %3469 = vmatpush.msra.mxu2 %v123_v6  ;;  %3470 = vmatpush.msra.mxu3 %v123_v6  ;;  %v56_v40 = vld [vmem:[#allocation2 + $0x30] sm:$0xff]  ;;  %v97_v42 = vld [vmem:[#allocation2 + $0x178] sm:$0xff]  ;;  %v86_v45 = vld [vmem:[#allocation2 + $0x120] sm:$0xff] }
  0x1d   :  { %137 = vmatpush.msra.mxu0 %v122_v7  ;;  %3471 = vmatpush.msra.mxu1 %v122_v7  ;;  %v112_v43 = vld [vmem:[#allocation2 + $0x1f0] sm:$0xff]  ;;  %v57_v44 = vld [vmem:[#allocation2 + $0x38] sm:$0xff]  ;;  %v98_v46 = vld [vmem:[#allocation2 + $0x180] sm:$0xff] }
  0x1e   :  { %3472 = vmatpush.msra.mxu2 %v122_v7  ;;  %3473 = vmatpush.msra.mxu3 %v122_v7  ;;  %v113_v47 = vld [vmem:[#allocation2 + $0x1f8] sm:$0xff]  ;;  %v58_v48 = vld [vmem:[#allocation2 + $0x40] sm:$0xff]  ;;  %v87_v49 = vld [vmem:[#allocation2 + $0x128] sm:$0xff] }
  0x1f   :  { %138 = vmatpush.msra.mxu0 %v121_v8  ;;  %3474 = vmatpush.msra.mxu1 %v121_v8  ;;  %v99_v50 = vld [vmem:[#allocation2 + $0x188] sm:$0xff]  ;;  %v88_v52 = vld [vmem:[#allocation2 + $0x130] sm:$0xff]  ;;  %v89_v55 = vld [vmem:[#allocation2 + $0x138] sm:$0xff] }
  0x20   :  { %3475 = vmatpush.msra.mxu2 %v121_v8  ;;  %3476 = vmatpush.msra.mxu3 %v121_v8  ;;  %v59_v51 = vld [vmem:[#allocation2 + $0x48] sm:$0xff]  ;;  %v100_v53 = vld [vmem:[#allocation2 + $0x190] sm:$0xff]  ;;  %v101_v56 = vld [vmem:[#allocation2 + $0x198] sm:$0xff] }
  0x21   :  { %139 = vmatpush.msra.mxu0 %v120_v9  ;;  %3477 = vmatpush.msra.mxu1 %v120_v9  ;;  %v60_v54 = vld [vmem:[#allocation2 + $0x50] sm:$0xff]  ;;  %v61_v57 = vld [vmem:[#allocation2 + $0x58] sm:$0xff]  ;;  %v90_v58 = vld [vmem:[#allocation2 + $0x140] sm:$0xff] }
  0x22   :  { %3478 = vmatpush.msra.mxu2 %v120_v9  ;;  %3479 = vmatpush.msra.mxu3 %v120_v9  ;;  %v102_v59 = vld [vmem:[#allocation2 + $0x1a0] sm:$0xff]  ;;  %v103_v61 = vld [vmem:[#allocation2 + $0x1a8] sm:$0xff]  ;;  %v104_v63 = vld [vmem:[#allocation2 + $0x1b0] sm:$0xff] }
  0x23   :  { %140 = vmatpush.msra.mxu0 %v119_v10  ;;  %3480 = vmatpush.msra.mxu1 %v119_v10  ;;  %v62_v60 = vld [vmem:[#allocation2 + $0x60] sm:$0xff]  ;;  %v63_v62 = vld [vmem:[#allocation2 + $0x68] sm:$0xff]  ;;  %v64_v0 = vld [vmem:[#allocation2 + $0x70] sm:$0xff] }
  0x24   :  { %3481 = vmatpush.msra.mxu2 %v119_v10  ;;  %3482 = vmatpush.msra.mxu3 %v119_v10  ;;  %v105_v1 = vld [vmem:[#allocation2 + $0x1b8] sm:$0xff]  ;;  %v66_v9 = vld [vmem:[#allocation2 + $0x80] sm:$0xff] }
  0x25   :  { %141 = vmatpush.msra.mxu0 %v118_v11  ;;  %3483 = vmatpush.msra.mxu1 %v118_v11  ;;  %v65_v3 = vld [vmem:[#allocation2 + $0x78] sm:$0xff] }
  0x26   :  { %3484 = vmatpush.msra.mxu2 %v118_v11  ;;  %3485 = vmatpush.msra.mxu3 %v118_v11 }
  0x27   :  { %142 = vmatpush.msra.mxu0 %v117_v12  ;;  %3486 = vmatpush.msra.mxu1 %v117_v12 }
  0x28   :  { %3487 = vmatpush.msra.mxu2 %v117_v12  ;;  %3488 = vmatpush.msra.mxu3 %v117_v12 }
  0x29   :  { %143 = vmatpush.msra.mxu0 %v116_v13  ;;  %3489 = vmatpush.msra.mxu1 %v116_v13 }
  0x2a   :  { %3490 = vmatpush.msra.mxu2 %v116_v13  ;;  %3491 = vmatpush.msra.mxu3 %v116_v13 }
  0x2b   :  { %144 = vmatpush.msra.mxu0 %v115_v14  ;;  %3492 = vmatpush.msra.mxu1 %v115_v14 }
  0x2c   :  { %3493 = vmatpush.msra.mxu2 %v115_v14  ;;  %3494 = vmatpush.msra.mxu3 %v115_v14 }
  0x2d   :  { %145 = vmatpush.msra.mxu0 %v114_v15  ;;  %3495 = vmatpush.msra.mxu1 %v114_v15 }
  0x2e   :  { %146 = vmatmul.f32.vlgmr.msra.gmra.mxu0 %v50_v16  ;;  %233 = vmatmul.f32.vlgmr.msra.gmra.mxu1 %v79_v17  ;;  %v67_v16 = vld [vmem:[#allocation2 + $0x88] sm:$0xff] }
  0x2f   :  { %3496 = vmatpush.msra.mxu2 %v114_v15  ;;  %3497 = vmatpush.msra.mxu3 %v114_v15 }
  0x30   :  { %269 = vmatmul.f32.vlgmr.msra.gmra.mxu2 %v91_v18  ;;  %314 = vmatmul.f32.vlgmr.msra.gmra.mxu3 %v106_v19 }
  0x36   :  { %149 = vmatmul.f32.gmra.mxu0 %v51_v20  ;;  %236 = vmatmul.f32.gmra.mxu1 %v80_v21 }
  0x38   :  { %272 = vmatmul.f32.gmra.mxu2 %v92_v22  ;;  %317 = vmatmul.f32.gmra.mxu3 %v107_v23 }
  0x3e   :  { %152 = vmatmul.f32.gmra.mxu0 %v52_v24  ;;  %239 = vmatmul.f32.gmra.mxu1 %v81_v25 }
  0x40   :  { %275 = vmatmul.f32.gmra.mxu2 %v93_v26  ;;  %320 = vmatmul.f32.gmra.mxu3 %v108_v27 }
  0x46   :  { %242 = vmatmul.f32.gmra.mxu1 %v82_v28  ;;  %155 = vmatmul.f32.gmra.mxu0 %v53_v29 }
  0x48   :  { %278 = vmatmul.f32.gmra.mxu2 %v94_v30  ;;  %323 = vmatmul.f32.gmra.mxu3 %v109_v31 }
  0x4e   :  { %245 = vmatmul.f32.gmra.mxu1 %v83_v32  ;;  %158 = vmatmul.f32.gmra.mxu0 %v54_v33 }
  0x50   :  { %281 = vmatmul.f32.gmra.mxu2 %v95_v34  ;;  %326 = vmatmul.f32.gmra.mxu3 %v110_v35 }
  0x56   :  { %161 = vmatmul.f32.gmra.mxu0 %v55_v36  ;;  %248 = vmatmul.f32.gmra.mxu1 %v84_v37  ;;  %v68_v36 = vld [vmem:[#allocation2 + $0x90] sm:$0xff] }
  0x58   :  { %284 = vmatmul.f32.gmra.mxu2 %v96_v38  ;;  %329 = vmatmul.f32.gmra.mxu3 %v111_v39 }
  0x5e   :  { %164 = vmatmul.f32.gmra.mxu0 %v56_v40  ;;  %251 = vmatmul.f32.gmra.mxu1 %v85_v41 }
  0x60   :  { %287 = vmatmul.f32.gmra.mxu2 %v97_v42  ;;  %332 = vmatmul.f32.gmra.mxu3 %v112_v43 }
  0x66   :  { %167 = vmatmul.f32.gmra.mxu0 %v57_v44  ;;  %254 = vmatmul.f32.gmra.mxu1 %v86_v45 }
  0x68   :  { %290 = vmatmul.f32.gmra.mxu2 %v98_v46  ;;  %335 = vmatmul.f32.gmra.mxu3 %v113_v47 }
  0x6e   :  { %170 = vmatmul.f32.gmra.mxu0 %v58_v48  ;;  %257 = vmatmul.f32.gmra.mxu1 %v87_v49 }
  0x70   :  { %293 = vmatmul.f32.gmra.mxu2 %v99_v50  ;;  %v69_v50 = vld [vmem:[#allocation2 + $0x98] sm:$0xff] }
  0x76   :  { %173 = vmatmul.f32.gmra.mxu0 %v59_v51  ;;  %260 = vmatmul.f32.gmra.mxu1 %v88_v52 }
  0x78   :  { %296 = vmatmul.f32.gmra.mxu2 %v100_v53 }
  0x7e   :  { %176 = vmatmul.f32.gmra.mxu0 %v60_v54  ;;  %263 = vmatmul.f32.gmra.mxu1 %v89_v55 }
  0x80   :  { %299 = vmatmul.f32.gmra.mxu2 %v101_v56 }
  0x86   :  { %179 = vmatmul.f32.gmra.mxu0 %v61_v57  ;;  %266 = vmatmul.f32.gmra.mxu1 %v90_v58  ;;  %v70_v58 = vld [vmem:[#allocation2 + $0xa0] sm:$0xff] }
  0x88   :  { %302 = vmatmul.f32.gmra.mxu2 %v102_v59 }
  0x8e   :  { %182 = vmatmul.f32.gmra.mxu0 %v62_v60 }
  0x90   :  { %305 = vmatmul.f32.gmra.mxu2 %v103_v61 }
  0x96   :  { %185 = vmatmul.f32.gmra.mxu0 %v63_v62 }
  0x98   :  { %308 = vmatmul.f32.gmra.mxu2 %v104_v63 }
  0x9e   :  { %188 = vmatmul.f32.gmra.mxu0 %v64_v0 }
  0xa0   :  { %311 = vmatmul.f32.gmra.mxu2 %v105_v1 }
  0xa6   :  { %191 = vmatmul.f32.gmra.mxu0 %v65_v3 }
  0xab   :  { %v147_v5 = vpop.f32.mrf.mxu0  ;;  %v234_v6 = vpop.f32.mrf.mxu1 }
  0xac   :  { %v4116_v7 = vsel %vm341_vm0, %v234_v6, -1e+30  ;;  %v4120_v8 = vsel %vm341_vm0, %v147_v5, -1e+30 }
  0xad   :  { %464 = vmax.xlane.f32.xlu2 %v4116_v7  ;;  %406 = vmax.xlane.f32.xlu0 %v4120_v8 }
  0xae   :  { %194 = vmatmul.f32.gmra.mxu0 %v66_v9 }
  0xb3   :  { %v150_v10 = vpop.f32.mrf.mxu0  ;;  %v237_v11 = vpop.f32.mrf.mxu1 }
  0xb4   :  { %v270_v12 = vpop.f32.mrf.mxu2  ;;  %v4126_v13 = vsel %vm341_vm0, %v150_v10, -1e+30  ;;  %v315_v14 = vpop.f32.mrf.mxu3  ;;  %v4136_v17 = vsel %vm341_vm0, %v237_v11, -1e+30 }
  0xb5   :  { %v4130_v15 = vsel %vm341_vm0, %v270_v12, -1e+30  ;;  %408 = vmax.xlane.f32.xlu0 %v4126_v13  ;;  %v4140_v20 = vsel %vm341_vm0, %v315_v14, -1e+30 }
  0xb6   :  { %488 = vmax.xlane.f32.xlu2 %v4130_v15  ;;  %197 = vmatmul.f32.gmra.mxu0 %v67_v16  ;;  %7737 = vst [vmem:[#allocation18_spill] sm:$0xff] %v4140_v20 }
  0xbb   :  { %v153_v18 = vpop.f32.mrf.mxu0  ;;  %v240_v19 = vpop.f32.mrf.mxu1 }
  0xbc   :  { %v273_v21 = vpop.f32.mrf.mxu2  ;;  %v4144_v22 = vsel %vm341_vm0, %v153_v18, -1e+30  ;;  %v318_v23 = vpop.f32.mrf.mxu3  ;;  %v4151_v24 = vsel %vm341_vm0, %v240_v19, -1e+30 }
  0xbd   :  { %466 = vmax.xlane.f32.xlu0 %v4136_v17  ;;  %410 = vmax.xlane.f32.xlu1 %v4144_v22  ;;  %v4155_v25 = vsel %vm341_vm0, %v273_v21, -1e+30  ;;  %v4170_v32 = vsel %vm341_vm0, %v318_v23, -1e+30 }
  0xbe   :  { %518 = vmax.xlane.f32.xlu2 %v4140_v20  ;;  %7739 = vst [vmem:[#allocation20_spill] sm:$0xff] %v4170_v32  ;;  %200 = vmatmul.f32.gmra.mxu0 %v68_v36 }
  0xc3   :  { %v243_v26 = vpop.f32.mrf.mxu1  ;;  %v156_v27 = vpop.f32.mrf.mxu0 }
  0xc4   :  { %v4159_v28 = vsel %vm341_vm0, %v243_v26, -1e+30  ;;  %v276_v29 = vpop.f32.mrf.mxu2  ;;  %v321_v30 = vpop.f32.mrf.mxu3  ;;  %v4204_v48 = vsel %vm341_vm0, %v156_v27, -1e+30 }
  0xc5   :  { %7738 = vst [vmem:[#allocation19_spill] sm:$0xff] %v4159_v28  ;;  %490 = vmax.xlane.f32.xlu0 %v4155_v25  ;;  %468 = vmax.xlane.f32.xlu1 %v4151_v24  ;;  %v4166_v31 = vsel %vm341_vm0, %v276_v29, -1e+30  ;;  %v4181_v39 = vsel %vm341_vm0, %v321_v30, -1e+30 }
  0xc6   :  { %470 = vmax.xlane.f32.xlu2 %v4159_v28  ;;  %7740 = vst [vmem:[#allocation21_spill] sm:$0xff] %v4181_v39  ;;  %203 = vmatmul.f32.gmra.mxu0 %v69_v50 }
  0xcb   :  { %v159_v33 = vpop.f32.mrf.mxu0  ;;  %v246_v37 = vpop.f32.mrf.mxu1 }
  0xcc   :  { %v279_v34 = vpop.f32.mrf.mxu2  ;;  %v324_v38 = vpop.f32.mrf.mxu3  ;;  %v4185_v40 = vsel %vm341_vm0, %v246_v37, -1e+30  ;;  %v4200_v45 = vsel %vm341_vm0, %v159_v33, -1e+30 }
  0xcd   :  { %v4174_v35 = vsel %vm341_vm0, %v279_v34, -1e+30  ;;  %520 = vmax.xlane.f32.xlu0 %v4170_v32  ;;  %492 = vmax.xlane.f32.xlu1 %v4166_v31  ;;  %7741 = vst [vmem:[#allocation22_spill] sm:$0xff] %v4185_v40  ;;  %v4189_v41 = vsel %vm341_vm0, %v324_v38, -1e+30 }
  0xce   :  { %494 = vmax.xlane.f32.xlu2 %v4174_v35  ;;  %7742 = vst [vmem:[#allocation23_spill] sm:$0xff] %v4189_v41  ;;  %206 = vmatmul.f32.gmra.mxu0 %v70_v58 }
  0xd3   :  { %v162_v42 = vpop.f32.mrf.mxu0  ;;  %v249_v46 = vpop.f32.mrf.mxu1 }
  0xd4   :  { %v282_v43 = vpop.f32.mrf.mxu2  ;;  %v327_v51 = vpop.f32.mrf.mxu3  ;;  %v4211_v52 = vsel %vm341_vm0, %v249_v46, -1e+30  ;;  %v4219_v54 = vsel %vm341_vm0, %v162_v42, -1e+30 }
  0xd5   :  { %472 = vmax.xlane.f32.xlu0 %v4185_v40  ;;  %522 = vmax.xlane.f32.xlu1 %v4181_v39  ;;  %v4196_v44 = vsel %vm341_vm0, %v282_v43, -1e+30  ;;  %7743 = vst [vmem:[#allocation24_spill] sm:$0xff] %v4211_v52  ;;  %v4215_v53 = vsel %vm341_vm0, %v327_v51, -1e+30  ;;  %v71_v43 = vld [vmem:[#allocation2 + $0xa8] sm:$0xff] }
  0xd6   :  { %524 = vmax.xlane.f32.xlu2 %v4189_v41  ;;  %209 = vmatmul.f32.gmra.mxu0 %v71_v43 }
  0xdb   :  { %v165_v47 = vpop.f32.mrf.mxu0  ;;  %v252_v57 = vpop.f32.mrf.mxu1 }
  0xdc   :  { %v285_v49 = vpop.f32.mrf.mxu2  ;;  %v4226_v59 = vsel %vm341_vm0, %v165_v47, -1e+30  ;;  %v4234_v61 = vsel %vm341_vm0, %v252_v57, -1e+30  ;;  %v330_v62 = vpop.f32.mrf.mxu3 }
  0xdd   :  { %496 = vmax.xlane.f32.xlu0 %v4196_v44  ;;  %412 = vmax.xlane.f32.xlu1 %v4204_v48  ;;  %v4230_v60 = vsel %vm341_vm0, %v285_v49, -1e+30  ;;  %7744 = vst [vmem:[#allocation25_spill] sm:$0xff] %v4234_v61  ;;  %v4245_v5 = vsel %vm341_vm0, %v330_v62, -1e+30 }
  0xde   :  { %414 = vmax.xlane.f32.xlu2 %v4200_v45 }
  0xe3   :  { %v168_v55 = vpop.f32.mrf.mxu0  ;;  %v255_v1 = vpop.f32.mrf.mxu1 }
  0xe4   :  { %v288_v56 = vpop.f32.mrf.mxu2  ;;  %v4241_v3 = vsel %vm341_vm0, %v255_v1, -1e+30  ;;  %v333_v11 = vpop.f32.mrf.mxu3  ;;  %v4264_v18 = vsel %vm341_vm0, %v168_v55, -1e+30  ;;  %v72_v55 = vld [vmem:[#allocation2 + $0xb0] sm:$0xff]  ;;  %v73_v1 = vld [vmem:[#allocation2 + $0xb8] sm:$0xff] }
  0xe5   :  { %526 = vmax.xlane.f32.xlu0 %v4215_v53  ;;  %474 = vmax.xlane.f32.xlu1 %v4211_v52  ;;  %7745 = vst [vmem:[#allocation26_spill] sm:$0xff] %v4241_v3  ;;  %v4249_v6 = vsel %vm341_vm0, %v288_v56, -1e+30  ;;  %v4260_v16 = vsel %vm341_vm0, %v333_v11, -1e+30 }
  0xe6   :  { %416 = vmax.xlane.f32.xlu2 %v4219_v54  ;;  %212 = vmatmul.f32.gmra.mxu0 %v72_v55 }
  0xeb   :  { %v171_v63 = vpop.f32.mrf.mxu0  ;;  %v258_v12 = vpop.f32.mrf.mxu1 }
  0xec   :  { %v291_v0 = vpop.f32.mrf.mxu2  ;;  %v336_v23 = vpop.f32.mrf.mxu3  ;;  %v4271_v26 = vsel %vm341_vm0, %v258_v12, -1e+30  ;;  %v4279_v30 = vsel %vm341_vm0, %v171_v63, -1e+30 }
  0xed   :  { %498 = vmax.xlane.f32.xlu1 %v4230_v60  ;;  %418 = vmax.xlane.f32.xlu0 %v4226_v59  ;;  %v4256_v14 = vsel %vm341_vm0, %v291_v0, -1e+30  ;;  %v4275_v27 = vsel %vm341_vm0, %v336_v23, -1e+30 }
  0xee   :  { %476 = vmax.xlane.f32.xlu2 %v4234_v61  ;;  %7746 = vst [vmem:[#allocation27_spill] sm:$0xff] %v4256_v14  ;;  %215 = vmatmul.f32.gmra.mxu0 %v73_v1 }
  0xf3   :  { %v174_v9 = vpop.f32.mrf.mxu0  ;;  %v261_v29 = vpop.f32.mrf.mxu1 }
  0xf4   :  { %v294_v10 = vpop.f32.mrf.mxu2  ;;  %v4286_v36 = vsel %vm341_vm0, %v261_v29, -1e+30  ;;  %v4290_v37 = vsel %vm341_vm0, %v174_v9, -1e+30 }
  0xf5   :  { %528 = vmax.xlane.f32.xlu1 %v4245_v5  ;;  %478 = vmax.xlane.f32.xlu0 %v4241_v3  ;;  %v4294_v38 = vsel %vm341_vm0, %v294_v10, -1e+30 }
  0xf6   :  { %500 = vmax.xlane.f32.xlu2 %v4249_v6  ;;  %7747 = vst [vmem:[#allocation28_spill] sm:$0xff] %v4294_v38 }
  0xfb   :  { %v177_v19 = vpop.f32.mrf.mxu0  ;;  %v264_v42 = vpop.f32.mrf.mxu1 }
  0xfc   :  { %v297_v21 = vpop.f32.mrf.mxu2  ;;  %v4301_v49 = vsel %vm341_vm0, %v264_v42, -1e+30  ;;  %v4305_v50 = vsel %vm341_vm0, %v177_v19, -1e+30 }
  0xfd   :  { %502 = vmax.xlane.f32.xlu0 %v4256_v14  ;;  %420 = vmax.xlane.f32.xlu1 %v4264_v18  ;;  %v4309_v51 = vsel %vm341_vm0, %v297_v21, -1e+30 }
  0xfe   :  { %530 = vmax.xlane.f32.xlu2 %v4260_v16  ;;  %7748 = vst [vmem:[#allocation29_spill] sm:$0xff] %v4309_v51 }
 0x103   :  { %v180_v33 = vpop.f32.mrf.mxu0  ;;  %v267_v56 = vpop.f32.mrf.mxu1 }
 0x104   :  { %v300_v34 = vpop.f32.mrf.mxu2  ;;  %v4316_v57 = vsel %vm341_vm0, %v267_v56, -1e+30  ;;  %v4324_v0 = vsel %vm341_vm0, %v180_v33, -1e+30 }
 0x105   :  { %532 = vmax.xlane.f32.xlu0 %v4275_v27  ;;  %480 = vmax.xlane.f32.xlu1 %v4271_v26  ;;  %v4320_v63 = vsel %vm341_vm0, %v300_v34, -1e+30  ;;  %7750 = vst [vmem:[#allocation31_spill] sm:$0xff] %v4324_v0 }
 0x106   :  { %422 = vmax.xlane.f32.xlu2 %v4279_v30  ;;  %7749 = vst [vmem:[#allocation30_spill] sm:$0xff] %v4320_v63 }
 0x10b   :  { %v183_v46 = vpop.f32.mrf.mxu0 }
 0x10c   :  { %v303_v47 = vpop.f32.mrf.mxu2  ;;  %v4339_v12 = vsel %vm341_vm0, %v183_v46, -1e+30 }
 0x10d   :  { %504 = vmax.xlane.f32.xlu1 %v4294_v38  ;;  %424 = vmax.xlane.f32.xlu0 %v4290_v37  ;;  %7754 = vst [vmem:[#allocation35_spill] sm:$0xff] %v4339_v12  ;;  %v4343_v19 = vsel %vm341_vm0, %v303_v47, -1e+30 }
 0x10e   :  { %482 = vmax.xlane.f32.xlu2 %v4286_v36  ;;  %7755 = vst [vmem:[#allocation36_spill] sm:$0xff] %v4343_v19 }
 0x113   :  { %v186_v58 = vpop.f32.mrf.mxu0 }
 0x114   :  { %v306_v62 = vpop.f32.mrf.mxu2  ;;  %v4364_v43 = vsel %vm341_vm0, %v186_v58, -1e+30 }
 0x115   :  { %484 = vmax.xlane.f32.xlu0 %v4301_v49  ;;  %426 = vmax.xlane.f32.xlu1 %v4305_v50  ;;  %v4335_v11 = vsel %vm341_vm0, %v306_v62, -1e+30 }
 0x116   :  { %506 = vmax.xlane.f32.xlu2 %v4309_v51  ;;  %7753 = vst [vmem:[#allocation34_spill] sm:$0xff] %v4335_v11 }
 0x11b   :  { %v189_v21 = vpop.f32.mrf.mxu0 }
 0x11c   :  { %v309_v23 = vpop.f32.mrf.mxu2  ;;  %v4360_v42 = vsel %vm341_vm0, %v189_v21, -1e+30 }
 0x11d   :  { %508 = vmax.xlane.f32.xlu0 %v4320_v63  ;;  %486 = vmax.xlane.f32.xlu1 %v4316_v57  ;;  %v4354_v34 = vsel %vm341_vm0, %v309_v23, -1e+30  ;;  %7759 = vst [vmem:[#allocation40_spill] sm:$0xff] %v4360_v42 }
 0x11e   :  { %428 = vmax.xlane.f32.xlu2 %v4324_v0  ;;  %7758 = vst [vmem:[#allocation39_spill] sm:$0xff] %v4354_v34 }
 0x120   :  { %v4329_v9 = vpop.xlane.xlu2 %464  ;;  %v4331_v10 = vpop.xlane.xlu0 %406 }
 0x121   :  { %7751 = vst [vmem:[#allocation32_spill] sm:$0xff] %v4329_v9  ;;  %vm1174_vm1 = vcmp.ge.f32.partialorder %v4120_v8, %v4331_v10  ;;  %v563_v47 = vsub.f32 %v4116_v7, %v4329_v9  ;;  %vm1203_vm2 = vcmp.ge.f32.partialorder %v4116_v7, %v4329_v9  ;;  %v534_v7 = vsub.f32 %v4120_v8, %v4331_v10 }
 0x122   :  { %7752 = vst [vmem:[#allocation33_spill] sm:$0xff] %v4331_v10  ;;  %v4369_v46 = vsel %vm1174_vm1, %v4111_v4, 128 }
 0x123   :  { %7760 = vst [vmem:[#allocation41_spill] sm:$0xff] %v4369_v46  ;;  %v192_v55 = vpop.f32.mrf.mxu0  ;;  %v1303_v58 = vshra.s32 %v4369_v46, 16  ;;  %v656_v23 = vmul.f32 1.442695, %v563_v47  ;;  %v4396_v46 = vsel %vm1203_vm2, %v4111_v4, 128 }
 0x124   :  { %v312_v56 = vpop.f32.mrf.mxu2  ;;  %v4385_v2 = vsel %vm341_vm0, %v192_v55, -1e+30  ;;  %7767 = vst [vmem:[#allocation48_spill] sm:$0xff] %v4396_v46  ;;  %v598_v10 = vmul.f32 1.442695, %v534_v7 }
 0x125   :  { %510 = vmax.xlane.f32.xlu1 %v4343_v19  ;;  %430 = vmax.xlane.f32.xlu0 %v4339_v12  ;;  %7764 = vst [vmem:[#allocation45_spill] sm:$0xff] %v4385_v2  ;;  %3527 = vpow2.f32 %v656_v23 }
 0x126   :  { %512 = vmax.xlane.f32.xlu2 %v4335_v11  ;;  %v4393_v11 = vcvt.s32.f32 %v1303_v58  ;;  %3529 = vpow2.f32 %v598_v10 }
 0x128   :  { %v4348_v29 = vpop.xlane.xlu0 %408  ;;  %7766 = vst [vmem:[#allocation47_spill] sm:$0xff] %v4393_v11 }
 0x129   :  { %7756 = vst [vmem:[#allocation37_spill] sm:$0xff] %v4348_v29  ;;  %v4350_v33 = vpop.xlane.xlu2 %488  ;;  %vm1175_vm6 = vcmp.ge.f32.partialorder %v4126_v13, %v4348_v29 }
 0x12a   :  { %7757 = vst [vmem:[#allocation38_spill] sm:$0xff] %v4350_v33  ;;  %vm1215_vm3 = vcmp.ge.f32.partialorder %v4130_v15, %v4350_v33  ;;  %v575_v55 = vsub.f32 %v4130_v15, %v4350_v33 }
 0x12b   :  { %v4403_v47 = vsel %vm1215_vm3, %v4111_v4, 128  ;;  %v4420_v15 = vpop.eup %3527 }
 0x12c   :  { %7768 = vst [vmem:[#allocation49_spill] sm:$0xff] %v4403_v47  ;;  %v1877_v8 = vshra.s32 %v4403_v47, 16 }
 0x12d   :  { %514 = vmax.xlane.f32.xlu0 %v4354_v34  ;;  %432 = vmax.xlane.f32.xlu1 %v4364_v43  ;;  %v4389_v34 = vsel %vm341_vm0, %v312_v56, -1e+30  ;;  %v1709_v56 = vshra.s32 %v4396_v46, 16  ;;  %7773 = vst [vmem:[#allocation54_spill] sm:$0xff] %v4420_v15  ;;  %v4441_v46 = vpop.eup %3529 }
 0x12e   :  { %434 = vmax.xlane.f32.xlu2 %v4360_v42  ;;  %7765 = vst [vmem:[#allocation46_spill] sm:$0xff] %v4389_v34  ;;  %v4422_v23 = vcvt.s32.f32 %v1877_v8 }
 0x12f   :  { %v4418_v12 = vcvt.s32.f32 %v1709_v56  ;;  %v535_v56 = vsub.f32 %v4126_v13, %v4348_v29  ;;  %7779 = vst [vmem:[#allocation60_spill] sm:$0xff] %v4441_v46 }
 0x130   :  { %v4374_v62 = vpop.xlane.xlu0 %466  ;;  %v4376_v1 = vpop.xlane.xlu1 %410  ;;  %7774 = vst [vmem:[#allocation55_spill] sm:$0xff] %v4422_v23 }
 0x131   :  { %7761 = vst [vmem:[#allocation42_spill] sm:$0xff] %v4374_v62  ;;  %v4379_v21 = vpop.xlane.xlu2 %518  ;;  %vm1204_vm4 = vcmp.ge.f32.partialorder %v4136_v17, %v4374_v62  ;;  %vm1176_vm5 = vcmp.ge.f32.partialorder %v4144_v22, %v4376_v1  ;;  %v564_v13 = vsub.f32 %v4136_v17, %v4374_v62 }
 0x132   :  { %7762 = vst [vmem:[#allocation43_spill] sm:$0xff] %v4376_v1  ;;  %v4427_v33 = vsel %vm1204_vm4, %v4111_v4, 128  ;;  %v590_v7 = vsub.f32 %v4140_v20, %v4379_v21  ;;  %v600_v20 = vmul.f32 1.442695, %v535_v56 }
 0x133   :  { %7763 = vst [vmem:[#allocation44_spill] sm:$0xff] %v4379_v21  ;;  %v1723_v10 = vshra.s32 %v4427_v33, 16  ;;  %v658_v17 = vmul.f32 1.442695, %v564_v13 }
 0x134   :  { %7772 = vst [vmem:[#allocation53_spill] sm:$0xff] %v4418_v12 }
 0x135   :  { %516 = vmax.xlane.f32.xlu1 %v4389_v34  ;;  %436 = vmax.xlane.f32.xlu0 %v4385_v2  ;;  %v680_v2 = vmul.f32 1.442695, %v575_v55  ;;  %7775 = vst [vmem:[#allocation56_spill] sm:$0xff] %v4427_v33  ;;  %v74_v55 = vld [vmem:[#allocation2 + $0xc0] sm:$0xff] }
 0x136   :  { %1306 = vmin.xlane.f32.xlu2 %v4393_v11  ;;  %218 = vmatmul.f32.gmra.mxu0 %v74_v55  ;;  %v195_v55 = vpop.f32.mrf.mxu0 }
 0x137   :  { %3531 = vpow2.f32 %v680_v2  ;;  %v4445_v2 = vcvt.s32.f32 %v1723_v10  ;;  %v4462_v10 = vsel %vm341_vm0, %v195_v55, -1e+30  ;;  %v76_v55 = vld [vmem:[#allocation2 + $0xd0] sm:$0xff] }
 0x138   :  { %v4409_v58 = vpop.xlane.xlu0 %490  ;;  %v4411_v9 = vpop.xlane.xlu1 %468  ;;  %7785 = vst [vmem:[#allocation66_spill] sm:$0xff] %v4462_v10 }
 0x139   :  { %7769 = vst [vmem:[#allocation50_spill] sm:$0xff] %v4409_v58  ;;  %v4414_v34 = vpop.xlane.xlu2 %470  ;;  %vm1205_vm7 = vcmp.ge.f32.partialorder %v4151_v24, %v4411_v9  ;;  %vm1216_vm8 = vcmp.ge.f32.partialorder %v4155_v25, %v4409_v58 }
 0x13a   :  { %7770 = vst [vmem:[#allocation51_spill] sm:$0xff] %v4411_v9 }
 0x13b   :  { %7771 = vst [vmem:[#allocation52_spill] sm:$0xff] %v4414_v34 }
 0x13c   :  { %7781 = vst [vmem:[#allocation62_spill] sm:$0xff] %v4445_v2 }
 0x13d   :  { %1712 = vmin.xlane.f32.xlu1 %v4418_v12  ;;  %784 = vadd.xlane.f32.xlu0 %v4420_v15  ;;  %v710_v12 = vmul.f32 1.442695, %v590_v7  ;;  %v4443_v21 = vpop.eup %3531 }
 0x13e   :  { %1880 = vmin.xlane.f32.xlu2 %v4422_v23  ;;  %7780 = vst [vmem:[#allocation61_spill] sm:$0xff] %v4443_v21  ;;  %v75_v23 = vld [vmem:[#allocation2 + $0xc8] sm:$0xff]  ;;  %v198_v29 = vpop.f32.mrf.mxu0 }
 0x13f   :  { %3533 = vpow2.f32 %v710_v12  ;;  %221 = vmatmul.f32.gmra.mxu0 %v75_v23  ;;  %v4470_v23 = vsel %vm1175_vm6, %v4111_v4, 128  ;;  %v4493_v62 = vsel %vm341_vm0, %v198_v29, -1e+30 }
 0x140   :  { %v4434_v8 = vpop.xlane.xlu0 %520  ;;  %v4436_v47 = vpop.xlane.xlu1 %492  ;;  %3535 = vpow2.f32 %v600_v20  ;;  %v4467_v20 = vsel %vm1176_vm5, %v4111_v4, 128  ;;  %7788 = vst [vmem:[#allocation69_spill] sm:$0xff] %v4470_v23  ;;  %v1317_v11 = vshra.s32 %v4470_v23, 16 }
 0x141   :  { %7776 = vst [vmem:[#allocation57_spill] sm:$0xff] %v4434_v8  ;;  %v4439_v15 = vpop.xlane.xlu2 %494  ;;  %3537 = vpow2.f32 %v658_v17  ;;  %v4523_v17 = vsel %vm1216_vm8, %v4111_v4, 128  ;;  %vm1217_vm10 = vcmp.ge.f32.partialorder %v4166_v31, %v4436_v47 }
 0x142   :  { %7777 = vst [vmem:[#allocation58_spill] sm:$0xff] %v4436_v47  ;;  %vm1218_vm11 = vcmp.ge.f32.partialorder %v4174_v35, %v4439_v15 }
 0x143   :  { %7778 = vst [vmem:[#allocation59_spill] sm:$0xff] %v4439_v15 }
 0x144   :  { %7787 = vst [vmem:[#allocation68_spill] sm:$0xff] %v4467_v20 }
 0x145   :  { %726 = vadd.xlane.f32.xlu1 %v4441_v46  ;;  %808 = vadd.xlane.f32.xlu0 %v4443_v21  ;;  %v4464_v12 = vpop.eup %3533  ;;  %v565_v46 = vsub.f32 %v4151_v24, %v4411_v9  ;;  %7793 = vst [vmem:[#allocation74_spill] sm:$0xff] %v4493_v62  ;;  %v536_v24 = vsub.f32 %v4144_v22, %v4376_v1  ;;  %v1891_v1 = vshra.s32 %v4523_v17, 16 }
 0x146   :  { %1726 = vmin.xlane.f32.xlu2 %v4445_v2  ;;  %7786 = vst [vmem:[#allocation67_spill] sm:$0xff] %v4464_v12  ;;  %v4472_v21 = vpop.eup %3535  ;;  %v1331_v2 = vshra.s32 %v4467_v20, 16  ;;  %v4497_v20 = vcvt.s32.f32 %v1317_v11 }
 0x147   :  { %7789 = vst [vmem:[#allocation70_spill] sm:$0xff] %v4472_v21  ;;  %224 = vmatmul.f32.gmra.mxu0 %v76_v55  ;;  %v4500_v55 = vsel %vm1205_vm7, %v4111_v4, 128  ;;  %v602_v13 = vmul.f32 1.442695, %v536_v24  ;;  %v4520_v9 = vpop.eup %3537  ;;  %v576_v24 = vsub.f32 %v4155_v25, %v4409_v58  ;;  %v4545_v0 = vcvt.s32.f32 %v1891_v1 }
 0x148   :  { %v4450_v33 = vpop.xlane.xlu0 %472  ;;  %v4452_v7 = vpop.xlane.xlu1 %522  ;;  %v4495_v63 = vcvt.s32.f32 %v1331_v2  ;;  %7795 = vst [vmem:[#allocation76_spill] sm:$0xff] %v4497_v20  ;;  %v1737_v29 = vshra.s32 %v4500_v55, 16 }
 0x149   :  { %7782 = vst [vmem:[#allocation63_spill] sm:$0xff] %v4450_v33  ;;  %v4454_v56 = vpop.xlane.xlu2 %524 }
 0x14a   :  { %7783 = vst [vmem:[#allocation64_spill] sm:$0xff] %v4452_v7  ;;  %v4518_v22 = vcvt.s32.f32 %v1737_v29  ;;  %v577_v29 = vsub.f32 %v4166_v31, %v4436_v47 }
 0x14b   :  { %7784 = vst [vmem:[#allocation65_spill] sm:$0xff] %v4454_v56 }
 0x14c   :  { %7794 = vst [vmem:[#allocation75_spill] sm:$0xff] %v4495_v63  ;;  %v684_v23 = vmul.f32 1.442695, %v577_v29  ;;  %v201_v29 = vpop.f32.mrf.mxu0 }
 0x14d   :  { %838 = vadd.xlane.f32.xlu0 %v4464_v12  ;;  %438 = vmax.xlane.f32.xlu1 %v4462_v10  ;;  %7796 = vst [vmem:[#allocation77_spill] sm:$0xff] %v4500_v55 }
 0x14e   :  { %728 = vadd.xlane.f32.xlu2 %v4472_v21  ;;  %v660_v21 = vmul.f32 1.442695, %v565_v46  ;;  %7800 = vst [vmem:[#allocation81_spill] sm:$0xff] %v4518_v22 }
 0x14f   :  { %7801 = vst [vmem:[#allocation82_spill] sm:$0xff] %v4520_v9 }
 0x150   :  { %v4483_v42 = vpop.xlane.xlu0 %496  ;;  %v4485_v12 = vpop.xlane.xlu1 %412  ;;  %3539 = vpow2.f32 %v660_v21  ;;  %7802 = vst [vmem:[#allocation83_spill] sm:$0xff] %v4523_v17 }
 0x151   :  { %7790 = vst [vmem:[#allocation71_spill] sm:$0xff] %v4483_v42  ;;  %v4487_v10 = vpop.xlane.xlu2 %414  ;;  %vm1177_vm9 = vcmp.ge.f32.partialorder %v4204_v48, %v4485_v12  ;;  %3541 = vpow2.f32 %v602_v13  ;;  %v537_v31 = vsub.f32 %v4204_v48, %v4485_v12  ;;  %vm1219_vm14 = vcmp.ge.f32.partialorder %v4196_v44, %v4483_v42 }
 0x152   :  { %7791 = vst [vmem:[#allocation72_spill] sm:$0xff] %v4485_v12  ;;  %v4530_v55 = vsel %vm1177_vm9, %v4111_v4, 128  ;;  %vm1178_vm12 = vcmp.ge.f32.partialorder %v4200_v45, %v4487_v10 }
 0x153   :  { %7792 = vst [vmem:[#allocation73_spill] sm:$0xff] %v4487_v10 }
 0x154   :  { %7804 = vst [vmem:[#allocation85_spill] sm:$0xff] %v4530_v55 }
 0x155   :  { %1334 = vmin.xlane.f32.xlu0 %v4495_v63  ;;  %1320 = vmin.xlane.f32.xlu1 %v4497_v20  ;;  %v682_v20 = vmul.f32 1.442695, %v576_v24  ;;  %7808 = vst [vmem:[#allocation89_spill] sm:$0xff] %v4545_v0  ;;  %v592_v24 = vsub.f32 %v4181_v39, %v4452_v7  ;;  %v579_v39 = vsub.f32 %v4196_v44, %v4483_v42 }
 0x156   :  { %440 = vmax.xlane.f32.xlu2 %v4493_v62  ;;  %v4525_v21 = vpop.eup %3539 }
 0x157   :  { %7803 = vst [vmem:[#allocation84_spill] sm:$0xff] %v4525_v21  ;;  %v4547_v25 = vpop.eup %3541  ;;  %3543 = vpow2.f32 %v682_v20  ;;  %v714_v20 = vmul.f32 1.442695, %v592_v24  ;;  %v688_v44 = vmul.f32 1.442695, %v579_v39 }
 0x158   :  { %v4508_v46 = vpop.xlane.xlu0 %526  ;;  %v4510_v11 = vpop.xlane.xlu1 %474  ;;  %7809 = vst [vmem:[#allocation90_spill] sm:$0xff] %v4547_v25  ;;  %3545 = vpow2.f32 %v684_v23 }
 0x159   :  { %7797 = vst [vmem:[#allocation78_spill] sm:$0xff] %v4508_v46  ;;  %v4512_v2 = vpop.xlane.xlu2 %416  ;;  %vm1234_vm15 = vcmp.ge.f32.partialorder %v4215_v53, %v4508_v46  ;;  %v594_v39 = vsub.f32 %v4215_v53, %v4508_v46 }
 0x15a   :  { %7798 = vst [vmem:[#allocation79_spill] sm:$0xff] %v4510_v11  ;;  %vm1179_vm1 = vcmp.ge.f32.partialorder %v4219_v54, %v4512_v2 }
 0x15b   :  { %7799 = vst [vmem:[#allocation80_spill] sm:$0xff] %v4512_v2 }
 0x15d   :  { %1740 = vmin.xlane.f32.xlu0 %v4518_v22  ;;  %786 = vadd.xlane.f32.xlu1 %v4520_v9  ;;  %v1345_v9 = vshra.s32 %v4530_v55, 16  ;;  %v4570_v17 = vpop.eup %3543  ;;  %v566_v55 = vsub.f32 %v4159_v28, %v4414_v34  ;;  %v604_v34 = vmul.f32 1.442695, %v537_v31 }
 0x15e   :  { %788 = vadd.xlane.f32.xlu2 %v4525_v21  ;;  %v591_v21 = vsub.f32 %v4170_v32, %v4434_v8  ;;  %7815 = vst [vmem:[#allocation96_spill] sm:$0xff] %v4570_v17  ;;  %v4575_v23 = vpop.eup %3545 }
 0x15f   :  { %v4549_v13 = vcvt.s32.f32 %v1345_v9  ;;  %7817 = vst [vmem:[#allocation98_spill] sm:$0xff] %v4575_v23  ;;  %v662_v28 = vmul.f32 1.442695, %v566_v55 }
 0x160   :  { %v4538_v63 = vpop.xlane.xlu1 %498  ;;  %v4540_v62 = vpop.xlane.xlu0 %418 }
 0x161   :  { %7805 = vst [vmem:[#allocation86_spill] sm:$0xff] %v4538_v63  ;;  %v4543_v22 = vpop.xlane.xlu2 %476  ;;  %vm1180_vm13 = vcmp.ge.f32.partialorder %v4226_v59, %v4540_v62  ;;  %vm1220_vm3 = vcmp.ge.f32.partialorder %v4230_v60, %v4538_v63 }
 0x162   :  { %7806 = vst [vmem:[#allocation87_spill] sm:$0xff] %v4540_v62 }
 0x163   :  { %7807 = vst [vmem:[#allocation88_spill] sm:$0xff] %v4543_v22 }
 0x164   :  { %7810 = vst [vmem:[#allocation91_spill] sm:$0xff] %v4549_v13 }
 0x165   :  { %730 = vadd.xlane.f32.xlu0 %v4547_v25  ;;  %1894 = vmin.xlane.f32.xlu1 %v4545_v0  ;;  %v712_v25 = vmul.f32 1.442695, %v591_v21  ;;  %v4568_v0 = vsel %vm341_vm0, %v201_v29, -1e+30  ;;  %v538_v21 = vsub.f32 %v4200_v45, %v4487_v10  ;;  %v567_v45 = vsub.f32 %v4185_v40, %v4450_v33 }
 0x166   :  { %1348 = vmin.xlane.f32.xlu2 %v4549_v13  ;;  %7814 = vst [vmem:[#allocation95_spill] sm:$0xff] %v4568_v0  ;;  %v4573_v13 = vsel %vm1217_vm10, %v4111_v4, 128 }
 0x167   :  { %7816 = vst [vmem:[#allocation97_spill] sm:$0xff] %v4573_v13  ;;  %3547 = vpow2.f32 %v712_v25  ;;  %v1905_v24 = vshra.s32 %v4573_v13, 16 }
 0x168   :  { %v4558_v1 = vpop.xlane.xlu1 %528  ;;  %v4560_v58 = vpop.xlane.xlu0 %478  ;;  %3549 = vpow2.f32 %v714_v20 }
 0x169   :  { %7811 = vst [vmem:[#allocation92_spill] sm:$0xff] %v4558_v1  ;;  %v4562_v9 = vpop.xlane.xlu2 %500  ;;  %v4593_v32 = vcvt.s32.f32 %v1905_v24  ;;  %v204_v20 = vpop.f32.mrf.mxu0  ;;  %3551 = vpow2.f32 %v662_v28  ;;  %vm1235_vm4 = vcmp.ge.f32.partialorder %v4245_v5, %v4558_v1 }
 0x16a   :  { %7812 = vst [vmem:[#allocation93_spill] sm:$0xff] %v4560_v58  ;;  %3553 = vpow2.f32 %v604_v34  ;;  %v77_v34 = vld [vmem:[#allocation2 + $0xd8] sm:$0xff]  ;;  %vm1221_vm5 = vcmp.ge.f32.partialorder %v4249_v6, %v4562_v9 }
 0x16b   :  { %7813 = vst [vmem:[#allocation94_spill] sm:$0xff] %v4562_v9  ;;  %227 = vmatmul.f32.gmra.mxu0 %v77_v34 }
 0x16c   :  { %7821 = vst [vmem:[#allocation102_spill] sm:$0xff] %v4593_v32 }
 0x16d   :  { %810 = vadd.xlane.f32.xlu1 %v4570_v17  ;;  %442 = vmax.xlane.f32.xlu0 %v4568_v0  ;;  %v606_v0 = vmul.f32 1.442695, %v538_v21  ;;  %v4595_v48 = vpop.eup %3547 }
 0x16e   :  { %812 = vadd.xlane.f32.xlu2 %v4575_v23  ;;  %7822 = vst [vmem:[#allocation103_spill] sm:$0xff] %v4595_v48  ;;  %v4597_v25 = vpop.eup %3549  ;;  %v4615_v23 = vsel %vm1218_vm11, %v4111_v4, 128 }
 0x16f   :  { %7823 = vst [vmem:[#allocation104_spill] sm:$0xff] %v4597_v25  ;;  %3555 = vpow2.f32 %v606_v0  ;;  %v4610_v24 = vpop.eup %3551  ;;  %v578_v0 = vsub.f32 %v4174_v35, %v4439_v15  ;;  %v1919_v13 = vshra.s32 %v4615_v23, 16 }
 0x170   :  { %v4587_v29 = vpop.xlane.xlu0 %502  ;;  %v4589_v47 = vpop.xlane.xlu1 %420  ;;  %7827 = vst [vmem:[#allocation108_spill] sm:$0xff] %v4610_v24 }
 0x171   :  { %7818 = vst [vmem:[#allocation99_spill] sm:$0xff] %v4587_v29  ;;  %v4591_v17 = vpop.xlane.xlu2 %530  ;;  %v686_v35 = vmul.f32 1.442695, %v578_v0  ;;  %v4643_v34 = vcvt.s32.f32 %v1919_v13  ;;  %vm1181_vm6 = vcmp.ge.f32.partialorder %v4264_v18, %v4589_v47 }
 0x172   :  { %7819 = vst [vmem:[#allocation100_spill] sm:$0xff] %v4589_v47  ;;  %vm1236_vm2 = vcmp.ge.f32.partialorder %v4260_v16, %v4591_v17 }
 0x173   :  { %7820 = vst [vmem:[#allocation101_spill] sm:$0xff] %v4591_v17  ;;  %3557 = vpow2.f32 %v686_v35 }
 0x174   :  { %7829 = vst [vmem:[#allocation110_spill] sm:$0xff] %v4615_v23  ;;  %v4646_v23 = vsel %vm1178_vm12, %v4111_v4, 128 }
 0x175   :  { %840 = vadd.xlane.f32.xlu1 %v4595_v48  ;;  %1908 = vmin.xlane.f32.xlu0 %v4593_v32  ;;  %v4612_v48 = vpop.eup %3553  ;;  %v207_v32 = vpop.f32.mrf.mxu0  ;;  %7835 = vst [vmem:[#allocation116_spill] sm:$0xff] %v4643_v34  ;;  %v1359_v13 = vshra.s32 %v4646_v23, 16 }
 0x176   :  { %842 = vadd.xlane.f32.xlu2 %v4597_v25  ;;  %7828 = vst [vmem:[#allocation109_spill] sm:$0xff] %v4612_v48  ;;  %v4617_v28 = vpop.eup %3555  ;;  %v568_v25 = vsub.f32 %v4211_v52, %v4510_v11  ;;  %v4641_v15 = vsel %vm341_vm0, %v207_v32, -1e+30  ;;  %v593_v52 = vsub.f32 %v4189_v41, %v4454_v56  ;;  %v78_v32 = vld [vmem:[#allocation2 + $0xe0] sm:$0xff] }
 0x177   :  { %7830 = vst [vmem:[#allocation111_spill] sm:$0xff] %v4617_v28  ;;  %230 = vmatmul.f32.gmra.mxu0 %v78_v32  ;;  %v4664_v40 = vcvt.s32.f32 %v1359_v13 }
 0x178   :  { %v4602_v55 = vpop.xlane.xlu0 %532  ;;  %v4604_v31 = vpop.xlane.xlu1 %480  ;;  %7834 = vst [vmem:[#allocation115_spill] sm:$0xff] %v4641_v15  ;;  %v716_v0 = vmul.f32 1.442695, %v593_v52  ;;  %v580_v52 = vsub.f32 %v4230_v60, %v4538_v63 }
 0x179   :  { %7824 = vst [vmem:[#allocation105_spill] sm:$0xff] %v4602_v55  ;;  %v4606_v21 = vpop.xlane.xlu2 %422  ;;  %v4666_v33 = vpop.eup %3557  ;;  %v571_v60 = vsub.f32 %v4271_v26, %v4604_v31  ;;  %vm1237_vm8 = vcmp.ge.f32.partialorder %v4275_v27, %v4602_v55 }
 0x17a   :  { %7825 = vst [vmem:[#allocation106_spill] sm:$0xff] %v4604_v31  ;;  %vm1182_vm10 = vcmp.ge.f32.partialorder %v4279_v30, %v4606_v21 }
 0x17b   :  { %7826 = vst [vmem:[#allocation107_spill] sm:$0xff] %v4606_v21 }
 0x17c   :  { %7836 = vst [vmem:[#allocation117_spill] sm:$0xff] %v4646_v23 }
 0x17d   :  { %732 = vadd.xlane.f32.xlu1 %v4612_v48  ;;  %790 = vadd.xlane.f32.xlu0 %v4610_v24  ;;  %v4637_v24 = vsel %vm341_vm0, %v204_v20, -1e+30  ;;  %7840 = vst [vmem:[#allocation121_spill] sm:$0xff] %v4664_v40  ;;  %v210_v53 = vpop.f32.mrf.mxu0 }
 0x17e   :  { %734 = vadd.xlane.f32.xlu2 %v4617_v28  ;;  %7833 = vst [vmem:[#allocation114_spill] sm:$0xff] %v4637_v24  ;;  %v666_v28 = vmul.f32 1.442695, %v568_v25 }
 0x17f   :  { %7841 = vst [vmem:[#allocation122_spill] sm:$0xff] %v4666_v33 }
 0x180   :  { %v4627_v12 = vpop.xlane.xlu1 %504  ;;  %v4629_v8 = vpop.xlane.xlu0 %424  ;;  %3559 = vpow2.f32 %v666_v28  ;;  %v4673_v28 = vsel %vm1180_vm13, %v4111_v4, 128 }
 0x181   :  { %7831 = vst [vmem:[#allocation112_spill] sm:$0xff] %v4627_v12  ;;  %v4631_v48 = vpop.xlane.xlu2 %482  ;;  %3561 = vpow2.f32 %v716_v0  ;;  %v1387_v13 = vshra.s32 %v4673_v28, 16  ;;  %vm1183_vm7 = vcmp.ge.f32.partialorder %v4290_v37, %v4629_v8 }
 0x182   :  { %7832 = vst [vmem:[#allocation113_spill] sm:$0xff] %v4631_v48 }
 0x183   :  { %7843 = vst [vmem:[#allocation124_spill] sm:$0xff] %v4673_v28  ;;  %v4699_v28 = vsel %vm1234_vm15, %v4111_v4, 128 }
 0x184   :  { %7851 = vst [vmem:[#allocation132_spill] sm:$0xff] %v4699_v28  ;;  %v2143_v7 = vshra.s32 %v4699_v28, 16 }
 0x185   :  { %1922 = vmin.xlane.f32.xlu0 %v4643_v34  ;;  %444 = vmax.xlane.f32.xlu1 %v4637_v24  ;;  %v664_v34 = vmul.f32 1.442695, %v567_v45 }
 0x186   :  { %446 = vmax.xlane.f32.xlu2 %v4641_v15  ;;  %v4668_v35 = vpop.eup %3559  ;;  %v4696_v15 = vsel %vm1219_vm14, %v4111_v4, 128 }
 0x187   :  { %7842 = vst [vmem:[#allocation123_spill] sm:$0xff] %v4668_v35  ;;  %3563 = vpow2.f32 %v664_v34  ;;  %v4689_v0 = vpop.eup %3561  ;;  %v690_v34 = vmul.f32 1.442695, %v580_v52  ;;  %v595_v52 = vsub.f32 %v4245_v5, %v4558_v1  ;;  %v569_v5 = vsub.f32 %v4234_v61, %v4543_v22 }
 0x188   :  { %v4656_v25 = vpop.xlane.xlu0 %484  ;;  %v4658_v20 = vpop.xlane.xlu1 %426  ;;  %7847 = vst [vmem:[#allocation128_spill] sm:$0xff] %v4689_v0 }
 0x189   :  { %7837 = vst [vmem:[#allocation118_spill] sm:$0xff] %v4656_v25  ;;  %v4660_v11 = vpop.xlane.xlu2 %506  ;;  %3565 = vpow2.f32 %v690_v34  ;;  %v539_v34 = vsub.f32 %v4219_v54, %v4512_v2  ;;  %v718_v54 = vmul.f32 1.442695, %v594_v39  ;;  %v541_v39 = vsub.f32 %v4264_v18, %v4589_v47 }
 0x18a   :  { %7838 = vst [vmem:[#allocation119_spill] sm:$0xff] %v4658_v20  ;;  %3567 = vpow2.f32 %v688_v44  ;;  %v4857_v18 = vsel %vm1183_vm7, %v4111_v4, 128  ;;  %vm1184_vm9 = vcmp.ge.f32.partialorder %v4305_v50, %v4658_v20 }
 0x18b   :  { %7839 = vst [vmem:[#allocation120_spill] sm:$0xff] %v4660_v11  ;;  %v608_v23 = vmul.f32 1.442695, %v539_v34  ;;  %v540_v34 = vsub.f32 %v4226_v59, %v4540_v62 }
 0x18c   :  { %7850 = vst [vmem:[#allocation131_spill] sm:$0xff] %v4696_v15 }
 0x18d   :  { %814 = vadd.xlane.f32.xlu0 %v4666_v33  ;;  %1362 = vmin.xlane.f32.xlu1 %v4664_v40  ;;  %v4693_v33 = vcvt.s32.f32 %v1387_v13  ;;  %v1933_v13 = vshra.s32 %v4696_v15, 16  ;;  %v4723_v15 = vsel %vm1179_vm1, %v4111_v4, 128 }
 0x18e   :  { %794 = vadd.xlane.f32.xlu2 %v4668_v35  ;;  %v4691_v35 = vpop.eup %3563  ;;  %7857 = vst [vmem:[#allocation138_spill] sm:$0xff] %v4723_v15 }
 0x18f   :  { %7848 = vst [vmem:[#allocation129_spill] sm:$0xff] %v4691_v35  ;;  %v4718_v42 = vcvt.s32.f32 %v1933_v13  ;;  %v4725_v28 = vpop.eup %3565 }
 0x190   :  { %v4678_v45 = vpop.xlane.xlu0 %508  ;;  %v4680_v32 = vpop.xlane.xlu1 %486  ;;  %7849 = vst [vmem:[#allocation130_spill] sm:$0xff] %v4693_v33 }
 0x191   :  { %7844 = vst [vmem:[#allocation125_spill] sm:$0xff] %v4678_v45  ;;  %v4683_v10 = vpop.xlane.xlu2 %428  ;;  %v4745_v46 = vpop.eup %3567  ;;  %vm1214_vm12 = vcmp.ge.f32.partialorder %v4316_v57, %v4680_v32 }
 0x192   :  { %7845 = vst [vmem:[#allocation126_spill] sm:$0xff] %v4680_v32 }
 0x193   :  { %7846 = vst [vmem:[#allocation127_spill] sm:$0xff] %v4683_v10 }
 0x194   :  { %7855 = vst [vmem:[#allocation136_spill] sm:$0xff] %v4718_v42 }
 0x195   :  { %844 = vadd.xlane.f32.xlu0 %v4689_v0  ;;  %792 = vadd.xlane.f32.xlu1 %v4691_v35  ;;  %v720_v35 = vmul.f32 1.442695, %v595_v52  ;;  %7858 = vst [vmem:[#allocation139_spill] sm:$0xff] %v4725_v28 }
 0x196   :  { %1390 = vmin.xlane.f32.xlu2 %v4693_v33  ;;  %v4720_v33 = vcvt.s32.f32 %v2143_v7  ;;  %v1373_v7 = vshra.s32 %v4723_v15, 16  ;;  %7863 = vst [vmem:[#allocation144_spill] sm:$0xff] %v4745_v46 }
 0x197   :  { %3569 = vpow2.f32 %v720_v35  ;;  %v4752_v35 = vsel %vm1236_vm2, %v4111_v4, 128 }
 0x198   :  { %v4710_v40 = vpop.xlane.xlu1 %510  ;;  %v4712_v24 = vpop.xlane.xlu0 %430  ;;  %7856 = vst [vmem:[#allocation137_spill] sm:$0xff] %v4720_v33  ;;  %3571 = vpow2.f32 %v608_v23  ;;  %v610_v23 = vmul.f32 1.442695, %v540_v34 }
 0x199   :  { %7852 = vst [vmem:[#allocation133_spill] sm:$0xff] %v4710_v40  ;;  %v4714_v0 = vpop.xlane.xlu2 %512  ;;  %3573 = vpow2.f32 %v718_v54  ;;  %v213_v54 = vpop.f32.mrf.mxu0 }
 0x19a   :  { %7853 = vst [vmem:[#allocation134_spill] sm:$0xff] %v4712_v24  ;;  %3575 = vpow2.f32 %v610_v23 }
 0x19b   :  { %7854 = vst [vmem:[#allocation135_spill] sm:$0xff] %v4714_v0 }
 0x19c   :  { %7865 = vst [vmem:[#allocation146_spill] sm:$0xff] %v4752_v35 }
 0x19d   :  { %1936 = vmin.xlane.f32.xlu0 %v4718_v42  ;;  %2146 = vmin.xlane.f32.xlu1 %v4720_v33  ;;  %v4743_v33 = vcvt.s32.f32 %v1373_v7  ;;  %v4747_v44 = vpop.eup %3569  ;;  %v2171_v42 = vshra.s32 %v4752_v35, 16 }
 0x19e   :  { %818 = vadd.xlane.f32.xlu2 %v4725_v28  ;;  %7864 = vst [vmem:[#allocation145_spill] sm:$0xff] %v4747_v44  ;;  %v4766_v2 = vpop.eup %3571 }
 0x19f   :  { %7862 = vst [vmem:[#allocation143_spill] sm:$0xff] %v4743_v33  ;;  %v4768_v15 = vpop.eup %3573  ;;  %v4770_v59 = vcvt.s32.f32 %v2171_v42  ;;  %v4785_v42 = vsel %vm341_vm0, %v210_v53, -1e+30 }
 0x1a0   :  { %v4735_v52 = vpop.xlane.xlu0 %514  ;;  %v4737_v13 = vpop.xlane.xlu1 %432  ;;  %7869 = vst [vmem:[#allocation150_spill] sm:$0xff] %v4766_v2 }
 0x1a1   :  { %7859 = vst [vmem:[#allocation140_spill] sm:$0xff] %v4735_v52  ;;  %v4739_v41 = vpop.xlane.xlu2 %434  ;;  %vm1187_vm11 = vcmp.ge.f32.partialorder %v4364_v43, %v4737_v13 }
 0x1a2   :  { %7860 = vst [vmem:[#allocation141_spill] sm:$0xff] %v4737_v13 }
 0x1a3   :  { %7861 = vst [vmem:[#allocation142_spill] sm:$0xff] %v4739_v41 }
 0x1a4   :  { %7870 = vst [vmem:[#allocation151_spill] sm:$0xff] %v4768_v15 }
 0x1a5   :  { %1376 = vmin.xlane.f32.xlu0 %v4743_v33  ;;  %816 = vadd.xlane.f32.xlu1 %v4745_v46  ;;  %v612_v33 = vmul.f32 1.442695, %v541_v39  ;;  %7871 = vst [vmem:[#allocation152_spill] sm:$0xff] %v4770_v59  ;;  %v4787_v39 = vpop.eup %3575 }
 0x1a6   :  { %848 = vadd.xlane.f32.xlu2 %v4747_v44  ;;  %7875 = vst [vmem:[#allocation156_spill] sm:$0xff] %v4787_v39 }
 0x1a7   :  { %3577 = vpow2.f32 %v612_v33  ;;  %v216_v33 = vpop.f32.mrf.mxu0 }
 0x1a8   :  { %v4759_v7 = vpop.xlane.xlu1 %516  ;;  %v4761_v28 = vpop.xlane.xlu0 %436 }
 0x1a9   :  { %7866 = vst [vmem:[#allocation147_spill] sm:$0xff] %v4759_v7  ;;  %v4764_v46 = vpop.xlane.xlu2 %1306 }
 0x1aa   :  { %7867 = vst [vmem:[#allocation148_spill] sm:$0xff] %v4761_v28 }
 0x1ab   :  { %7868 = vst [vmem:[#allocation149_spill] sm:$0xff] %v4764_v46 }
 0x1ad   :  { %736 = vadd.xlane.f32.xlu0 %v4766_v2  ;;  %846 = vadd.xlane.f32.xlu1 %v4768_v15  ;;  %v4790_v15 = vsel %vm1220_vm3, %v4111_v4, 128  ;;  %v4792_v23 = vpop.eup %3577  ;;  %vm1213_vm3 = vcmp.ge.f32.partialorder %v4301_v49, %v4656_v25 }
 0x1ae   :  { %2174 = vmin.xlane.f32.xlu2 %v4770_v59  ;;  %7876 = vst [vmem:[#allocation157_spill] sm:$0xff] %v4790_v15  ;;  %v1947_v53 = vshra.s32 %v4790_v15, 16  ;;  %v4816_v59 = vsel %vm341_vm0, %v216_v33, -1e+30  ;;  %v4824_v15 = vsel %vm1221_vm5, %v4111_v4, 128 }
 0x1af   :  { %7877 = vst [vmem:[#allocation158_spill] sm:$0xff] %v4792_v23 }
 0x1b0   :  { %v4775_v44 = vpop.xlane.xlu1 %1712  ;;  %v4777_v35 = vpop.xlane.xlu0 %784  ;;  %7881 = vst [vmem:[#allocation162_spill] sm:$0xff] %v4816_v59 }
 0x1b1   :  { %7872 = vst [vmem:[#allocation153_spill] sm:$0xff] %v4775_v44  ;;  %v4779_v34 = vpop.xlane.xlu2 %1880 }
 0x1b2   :  { %7873 = vst [vmem:[#allocation154_spill] sm:$0xff] %v4777_v35 }
 0x1b3   :  { %7874 = vst [vmem:[#allocation155_spill] sm:$0xff] %v4779_v34  ;;  %v4818_v34 = vcvt.s32.f32 %v1947_v53 }
 0x1b4   :  { %7884 = vst [vmem:[#allocation165_spill] sm:$0xff] %v4824_v15 }
 0x1b5   :  { %738 = vadd.xlane.f32.xlu1 %v4787_v39  ;;  %448 = vmax.xlane.f32.xlu0 %v4785_v42  ;;  %v4812_v39 = vsel %vm341_vm0, %v213_v54, -1e+30  ;;  %7882 = vst [vmem:[#allocation163_spill] sm:$0xff] %v4818_v34 }
 0x1b6   :  { %740 = vadd.xlane.f32.xlu2 %v4792_v23  ;;  %v672_v23 = vmul.f32 1.442695, %v571_v60  ;;  %v1961_v60 = vshra.s32 %v4824_v15, 16 }
 0x1b8   :  { %v4800_v2 = vpop.xlane.xlu1 %726  ;;  %v4802_v63 = vpop.xlane.xlu0 %808  ;;  %3579 = vpow2.f32 %v672_v23  ;;  %v4845_v61 = vcvt.s32.f32 %v1961_v60 }
 0x1b9   :  { %7878 = vst [vmem:[#allocation159_spill] sm:$0xff] %v4800_v2  ;;  %v4804_v35 = vpop.xlane.xlu2 %1726 }
 0x1ba   :  { %7879 = vst [vmem:[#allocation160_spill] sm:$0xff] %v4802_v63  ;;  %v4821_v63 = vsel %vm1235_vm4, %v4111_v4, 128 }
 0x1bb   :  { %7880 = vst [vmem:[#allocation161_spill] sm:$0xff] %v4804_v35  ;;  %v2157_v54 = vshra.s32 %v4821_v63, 16 }
 0x1bc   :  { %7883 = vst [vmem:[#allocation164_spill] sm:$0xff] %v4821_v63  ;;  %v4848_v63 = vsel %vm1181_vm6, %v4111_v4, 128 }
 0x1bd   :  { %1950 = vmin.xlane.f32.xlu0 %v4818_v34  ;;  %450 = vmax.xlane.f32.xlu1 %v4812_v39  ;;  %v668_v34 = vmul.f32 1.442695, %v569_v5  ;;  %v4843_v44 = vcvt.s32.f32 %v2157_v54  ;;  %7889 = vst [vmem:[#allocation170_spill] sm:$0xff] %v4845_v61  ;;  %v570_v5 = vsub.f32 %v4241_v3, %v4560_v58  ;;  %v583_v54 = vsub.f32 %v4294_v38, %v4627_v12 }
 0x1be   :  { %452 = vmax.xlane.f32.xlu2 %v4816_v59  ;;  %v4850_v23 = vpop.eup %3579  ;;  %v1401_v60 = vshra.s32 %v4848_v63, 16  ;;  %v596_v38 = vsub.f32 %v4260_v16, %v4591_v17  ;;  %v4895_v16 = vpop.f32.mrf.mxu0  ;;  %v544_v17 = vsub.f32 %v4305_v50, %v4658_v20  ;;  %v4931_v58 = vsel %vm1182_vm10, %v4111_v4, 128 }
 0x1bf   :  { %7888 = vst [vmem:[#allocation169_spill] sm:$0xff] %v4843_v44  ;;  %3581 = vpow2.f32 %v668_v34  ;;  %v670_v47 = vmul.f32 1.442695, %v570_v5  ;;  %vm1212_vm10 = vcmp.ge.f32.partialorder %v4286_v36, %v4631_v48 }
 0x1c0   :  { %v4833_v33 = vpop.xlane.xlu0 %838  ;;  %v4835_v53 = vpop.xlane.xlu1 %438  ;;  %7890 = vst [vmem:[#allocation171_spill] sm:$0xff] %v4850_v23  ;;  %v4872_v3 = vcvt.s32.f32 %v1401_v60 }
 0x1c1   :  { %7885 = vst [vmem:[#allocation166_spill] sm:$0xff] %v4833_v33  ;;  %v4837_v1 = vpop.xlane.xlu2 %728  ;;  %v581_v33 = vsub.f32 %v4249_v6, %v4562_v9  ;;  %v1429_v9 = vshra.s32 %v4857_v18, 16 }
 0x1c2   :  { %7886 = vst [vmem:[#allocation167_spill] sm:$0xff] %v4835_v53 }
 0x1c3   :  { %7887 = vst [vmem:[#allocation168_spill] sm:$0xff] %v4837_v1  ;;  %v4876_v34 = vcvt.s32.f32 %v1429_v9  ;;  %v722_v9 = vmul.f32 1.442695, %v596_v38  ;;  %v4907_v38 = vsel %vm1184_vm9, %v4111_v4, 128 }
 0x1c5   :  { %2160 = vmin.xlane.f32.xlu0 %v4843_v44  ;;  %1964 = vmin.xlane.f32.xlu1 %v4845_v61  ;;  %v692_v44 = vmul.f32 1.442695, %v581_v33  ;;  %v696_v61 = vmul.f32 1.442695, %v583_v54 }
 0x1c6   :  { %800 = vadd.xlane.f32.xlu2 %v4850_v23  ;;  %v4874_v23 = vpop.eup %3581  ;;  %v222_v20 = vpop.f32.mrf.mxu0 }
 0x1c7   :  { %7893 = vst [vmem:[#allocation174_spill] sm:$0xff] %v4874_v23  ;;  %3583 = vpow2.f32 %v692_v44 }
 0x1c8   :  { %v4865_v22 = vpop.xlane.xlu0 %1334  ;;  %v4867_v6 = vpop.xlane.xlu1 %1320  ;;  %3585 = vpow2.f32 %v670_v47 }
 0x1c9   :  { %7891 = vst [vmem:[#allocation172_spill] sm:$0xff] %v4865_v22  ;;  %v4870_v59 = vpop.xlane.xlu2 %440  ;;  %3587 = vpow2.f32 %v696_v61  ;;  %v4900_v61 = vsel %vm1237_vm8, %v4111_v4, 128 }
 0x1ca   :  { %7892 = vst [vmem:[#allocation173_spill] sm:$0xff] %v4867_v6  ;;  %3589 = vpow2.f32 %v722_v9 }
 0x1cd   :  { %796 = vadd.xlane.f32.xlu0 %v4874_v23  ;;  %1404 = vmin.xlane.f32.xlu1 %v4872_v3  ;;  %v4893_v44 = vpop.eup %3583  ;;  %v582_v23 = vsub.f32 %v4256_v14, %v4587_v29  ;;  %v618_v29 = vmul.f32 1.442695, %v544_v17  ;;  %v597_v17 = vsub.f32 %v4275_v27, %v4602_v55  ;;  %v574_v27 = vsub.f32 %v4316_v57, %v4680_v32  ;;  %v7930_v57 = vld [vmem:[#allocation30_spill] sm:$0xff] }
 0x1ce   :  { %1432 = vmin.xlane.f32.xlu2 %v4876_v34  ;;  %7897 = vst [vmem:[#allocation178_spill] sm:$0xff] %v4893_v44  ;;  %v4897_v60 = vpop.eup %3585 }
 0x1cf   :  { %7898 = vst [vmem:[#allocation179_spill] sm:$0xff] %v4897_v60  ;;  %v4902_v47 = vpop.eup %3587  ;;  %v694_v14 = vmul.f32 1.442695, %v582_v23  ;;  %v1415_v23 = vshra.s32 %v4931_v58, 16 }
 0x1d0   :  { %v4883_v33 = vpop.xlane.xlu0 %1740  ;;  %v4885_v5 = vpop.xlane.xlu1 %786  ;;  %7899 = vst [vmem:[#allocation180_spill] sm:$0xff] %v4902_v47 }
 0x1d1   :  { %7894 = vst [vmem:[#allocation175_spill] sm:$0xff] %v4883_v33  ;;  %v4887_v54 = vpop.xlane.xlu2 %788  ;;  %v4926_v9 = vpop.eup %3589  ;;  %3591 = vpow2.f32 %v694_v14  ;;  %v543_v14 = vsub.f32 %v4290_v37, %v4629_v8 }
 0x1d2   :  { %7895 = vst [vmem:[#allocation176_spill] sm:$0xff] %v4885_v5  ;;  %3593 = vpow2.f32 %v618_v29 }
 0x1d3   :  { %7896 = vst [vmem:[#allocation177_spill] sm:$0xff] %v4887_v54  ;;  %v2185_v54 = vshra.s32 %v4900_v61, 16  ;;  %v616_v55 = vmul.f32 1.442695, %v543_v14  ;;  %v586_v14 = vsub.f32 %v4343_v19, %v4710_v40 }
 0x1d4   :  { %7903 = vst [vmem:[#allocation184_spill] sm:$0xff] %v4926_v9 }
 0x1d5   :  { %820 = vadd.xlane.f32.xlu0 %v4893_v44  ;;  %798 = vadd.xlane.f32.xlu1 %v4897_v60  ;;  %v1443_v60 = vshra.s32 %v4907_v38, 16 }
 0x1d6   :  { %824 = vadd.xlane.f32.xlu2 %v4902_v47  ;;  %v4924_v47 = vcvt.s32.f32 %v2185_v54 }
 0x1d7   :  { %v4928_v50 = vcvt.s32.f32 %v1443_v60  ;;  %v4949_v62 = vpop.eup %3591 }
 0x1d8   :  { %v4915_v5 = vpop.xlane.xlu0 %730  ;;  %v4917_v12 = vpop.xlane.xlu1 %1894  ;;  %7906 = vst [vmem:[#allocation187_spill] sm:$0xff] %v4949_v62 }
 0x1d9   :  { %7900 = vst [vmem:[#allocation181_spill] sm:$0xff] %v4915_v5  ;;  %v4920_v44 = vpop.xlane.xlu2 %1348  ;;  %v4951_v15 = vpop.eup %3593 }
 0x1da   :  { %7901 = vst [vmem:[#allocation182_spill] sm:$0xff] %v4917_v12  ;;  %v542_v12 = vsub.f32 %v4279_v30, %v4606_v21  ;;  %v4947_v21 = vcvt.s32.f32 %v1415_v23 }
 0x1db   :  { %7902 = vst [vmem:[#allocation183_spill] sm:$0xff] %v4920_v44 }
 0x1dc   :  { %v614_v33 = vmul.f32 1.442695, %v542_v12  ;;  %7907 = vst [vmem:[#allocation188_spill] sm:$0xff] %v4951_v15  ;;  %v225_v12 = vpop.f32.mrf.mxu0 }
 0x1dd   :  { %850 = vadd.xlane.f32.xlu0 %v4926_v9  ;;  %2188 = vmin.xlane.f32.xlu1 %v4924_v47  ;;  %v724_v9 = vmul.f32 1.442695, %v597_v17  ;;  %v4970_v37 = vsel %vm341_vm0, %v225_v12, -1e+30 }
 0x1de   :  { %1446 = vmin.xlane.f32.xlu2 %v4928_v50  ;;  %3595 = vpow2.f32 %v614_v33  ;;  %v678_v33 = vmul.f32 1.442695, %v574_v27  ;;  %7912 = vst [vmem:[#allocation193_spill] sm:$0xff] %v4970_v37 }
 0x1df   :  { %3597 = vpow2.f32 %v724_v9  ;;  %v572_v9 = vsub.f32 %v4286_v36, %v4631_v48 }
 0x1e0   :  { %v4941_v54 = vpop.xlane.xlu1 %810  ;;  %v4943_v60 = vpop.xlane.xlu0 %442  ;;  %3599 = vpow2.f32 %v616_v55 }
 0x1e1   :  { %7904 = vst [vmem:[#allocation185_spill] sm:$0xff] %v4941_v54  ;;  %v4945_v30 = vpop.xlane.xlu2 %812  ;;  %3601 = vpow2.f32 %v678_v33  ;;  %v584_v33 = vsub.f32 %v4309_v51, %v4660_v11  ;;  %v5015_v51 = vsel %vm341_vm0, %v222_v20, -1e+30 }
 0x1e2   :  { %7905 = vst [vmem:[#allocation186_spill] sm:$0xff] %v4945_v30 }
 0x1e3   :  { %v698_v54 = vmul.f32 1.442695, %v584_v33  ;;  %7922 = vst [vmem:[#allocation203_spill] sm:$0xff] %v5015_v51 }
 0x1e4   :  { %v4966_v30 = vpop.eup %3595 }
 0x1e5   :  { %1418 = vmin.xlane.f32.xlu0 %v4947_v21  ;;  %822 = vadd.xlane.f32.xlu1 %v4949_v62  ;;  %7911 = vst [vmem:[#allocation192_spill] sm:$0xff] %v4966_v30  ;;  %v4972_v62 = vpop.eup %3597 }
 0x1e6   :  { %746 = vadd.xlane.f32.xlu2 %v4951_v15  ;;  %7913 = vst [vmem:[#allocation194_spill] sm:$0xff] %v4972_v62 }
 0x1e8   :  { %v4960_v29 = vpop.xlane.xlu1 %840  ;;  %v4962_v17 = vpop.xlane.xlu0 %1908 }
 0x1e9   :  { %7908 = vst [vmem:[#allocation189_spill] sm:$0xff] %v4960_v29  ;;  %v4964_v23 = vpop.xlane.xlu2 %842  ;;  %v4987_v29 = vpop.eup %3599 }
 0x1ea   :  { %7909 = vst [vmem:[#allocation190_spill] sm:$0xff] %v4962_v17  ;;  %v4994_v55 = vpop.eup %3601 }
 0x1eb   :  { %7910 = vst [vmem:[#allocation191_spill] sm:$0xff] %v4964_v23  ;;  %v674_v23 = vmul.f32 1.442695, %v572_v9  ;;  %v573_v9 = vsub.f32 %v4301_v49, %v4656_v25  ;;  %v7986_v25 = vld [vmem:[#allocation68_spill] sm:$0xff] }
 0x1ec   :  { %7917 = vst [vmem:[#allocation198_spill] sm:$0xff] %v4987_v29 }
 0x1ed   :  { %742 = vadd.xlane.f32.xlu0 %v4966_v30  ;;  %852 = vadd.xlane.f32.xlu1 %v4972_v62  ;;  %v702_v30 = vmul.f32 1.442695, %v586_v14  ;;  %v4992_v62 = vsel %vm341_vm0, %v4895_v16, -1e+30  ;;  %7919 = vst [vmem:[#allocation200_spill] sm:$0xff] %v4994_v55  ;;  %3603 = vpow2.f32 %v674_v23  ;;  %v547_v23 = vsub.f32 %v4364_v43, %v4737_v13 }
 0x1ee   :  { %458 = vmax.xlane.f32.xlu2 %v4970_v37  ;;  %7918 = vst [vmem:[#allocation199_spill] sm:$0xff] %v4992_v62  ;;  %v676_v17 = vmul.f32 1.442695, %v573_v9 }
 0x1ef   :  { %3605 = vpow2.f32 %v702_v30  ;;  %v5022_v30 = vsel %vm1187_vm11, %v4111_v4, 128 }
 0x1f0   :  { %v4981_v27 = vpop.xlane.xlu1 %732  ;;  %v4983_v12 = vpop.xlane.xlu0 %790  ;;  %3607 = vpow2.f32 %v698_v54  ;;  %v1485_v9 = vshra.s32 %v5022_v30, 16  ;;  %v7927_v54 = vld [vmem:[#allocation31_spill] sm:$0xff] }
 0x1f1   :  { %7914 = vst [vmem:[#allocation195_spill] sm:$0xff] %v4981_v27  ;;  %v4985_v15 = vpop.xlane.xlu2 %734  ;;  %3609 = vpow2.f32 %v676_v17  ;;  %vm1185_vm13 = vcmp.ge.f32.partialorder %v7927_v54, %v4683_v10  ;;  %v624_v17 = vmul.f32 1.442695, %v547_v23  ;;  %v585_v23 = vsub.f32 %v7930_v57, %v4678_v45 }
 0x1f2   :  { %7915 = vst [vmem:[#allocation196_spill] sm:$0xff] %v4983_v12  ;;  %v5042_v43 = vcvt.s32.f32 %v1485_v9  ;;  %v5048_v19 = vsel %vm1185_vm13, %v4111_v4, 128 }
 0x1f3   :  { %7916 = vst [vmem:[#allocation197_spill] sm:$0xff] %v4985_v15  ;;  %v1457_v32 = vshra.s32 %v5048_v19, 16  ;;  %3611 = vpow2.f32 %v624_v17 }
 0x1f5   :  { %744 = vadd.xlane.f32.xlu1 %v4987_v29  ;;  %454 = vmax.xlane.f32.xlu0 %v4992_v62  ;;  %v5011_v29 = vpop.eup %3603  ;;  %v5069_v57 = vcvt.s32.f32 %v1457_v32 }
 0x1f6   :  { %806 = vadd.xlane.f32.xlu2 %v4994_v55  ;;  %7921 = vst [vmem:[#allocation202_spill] sm:$0xff] %v5011_v29  ;;  %v5017_v55 = vpop.eup %3605 }
 0x1f7   :  { %7923 = vst [vmem:[#allocation204_spill] sm:$0xff] %v5017_v55 }
 0x1f8   :  { %v5003_v14 = vpop.xlane.xlu0 %1922  ;;  %v5005_v16 = vpop.xlane.xlu1 %444  ;;  %7936 = vst [vmem:[#allocation212_spill] sm:$0xff] %v5069_v57 }
 0x1f9   :  { %7920 = vst [vmem:[#allocation201_spill] sm:$0xff] %v5003_v14  ;;  %v5007_v12 = vpop.xlane.xlu2 %446 }
 0x1fd   :  { %802 = vadd.xlane.f32.xlu0 %v5011_v29  ;;  %456 = vmax.xlane.f32.xlu1 %v5015_v51  ;;  %v5038_v29 = vpop.eup %3607 }
 0x1fe   :  { %830 = vadd.xlane.f32.xlu2 %v5017_v55  ;;  %7928 = vst [vmem:[#allocation31_spill] sm:$0xff] %v5038_v29  ;;  %v5040_v55 = vpop.eup %3609 }
 0x1ff   :  { %7929 = vst [vmem:[#allocation208_spill] sm:$0xff] %v5040_v55  ;;  %v5071_v45 = vpop.eup %3611 }
 0x200   :  { %v5027_v33 = vpop.xlane.xlu0 %814  ;;  %v5029_v20 = vpop.xlane.xlu1 %1362  ;;  %7937 = vst [vmem:[#allocation213_spill] sm:$0xff] %v5071_v45 }
 0x201   :  { %7924 = vst [vmem:[#allocation205_spill] sm:$0xff] %v5027_v33  ;;  %v5032_v11 = vpop.xlane.xlu2 %794  ;;  %v5045_v33 = vsel %vm1214_vm12, %v4111_v4, 128 }
 0x202   :  { %7925 = vst [vmem:[#allocation206_spill] sm:$0xff] %v5029_v20  ;;  %v1863_v9 = vshra.s32 %v5045_v33, 16 }
 0x203   :  { %7926 = vst [vmem:[#allocation207_spill] sm:$0xff] %v5032_v11  ;;  %v545_v11 = vsub.f32 %v7927_v54, %v4683_v10 }
 0x204   :  { %v5067_v10 = vcvt.s32.f32 %v1863_v9 }
 0x205   :  { %826 = vadd.xlane.f32.xlu0 %v5038_v29  ;;  %804 = vadd.xlane.f32.xlu1 %v5040_v55  ;;  %v620_v13 = vmul.f32 1.442695, %v545_v11  ;;  %v700_v29 = vmul.f32 1.442695, %v585_v23  ;;  %v7934_v55 = vld [vmem:[#allocation40_spill] sm:$0xff]  ;;  %v7939_v11 = vld [vmem:[#allocation35_spill] sm:$0xff] }
 0x206   :  { %1488 = vmin.xlane.f32.xlu2 %v5042_v43  ;;  %vm1188_vm14 = vcmp.ge.f32.partialorder %v7934_v55, %v4739_v41  ;;  %7935 = vst [vmem:[#allocation40_spill] sm:$0xff] %v5067_v10  ;;  %v546_v23 = vsub.f32 %v7939_v11, %v4712_v24  ;;  %vm1186_vm1 = vcmp.ge.f32.partialorder %v7939_v11, %v4712_v24  ;;  %v7956_v11 = vld [vmem:[#allocation39_spill] sm:$0xff] }
 0x207   :  { %3613 = vpow2.f32 %v620_v13  ;;  %v5076_v17 = vsel %vm1188_vm14, %v4111_v4, 128  ;;  %v7943_v13 = vld [vmem:[#allocation45_spill] sm:$0xff] }
 0x208   :  { %v5059_v40 = vpop.xlane.xlu0 %844  ;;  %v5061_v14 = vpop.xlane.xlu1 %792  ;;  %7938 = vst [vmem:[#allocation214_spill] sm:$0xff] %v5076_v17  ;;  %3615 = vpow2.f32 %v700_v29  ;;  %v622_v37 = vmul.f32 1.442695, %v546_v23  ;;  %vm1189_vm15 = vcmp.ge.f32.partialorder %v7943_v13, %v4761_v28  ;;  %v7948_v23 = vld [vmem:[#allocation46_spill] sm:$0xff] }
 0x209   :  { %7931 = vst [vmem:[#allocation209_spill] sm:$0xff] %v5059_v40  ;;  %v5063_v54 = vpop.xlane.xlu2 %1390  ;;  %v1499_v40 = vshra.s32 %v5076_v17, 16  ;;  %v228_v29 = vpop.f32.mrf.mxu0 }
 0x20a   :  { %7932 = vst [vmem:[#allocation210_spill] sm:$0xff] %v5061_v14  ;;  %3617 = vpow2.f32 %v622_v37 }
 0x20b   :  { %7933 = vst [vmem:[#allocation211_spill] sm:$0xff] %v5063_v54  ;;  %v5094_v62 = vcvt.s32.f32 %v1499_v40 }
 0x20d   :  { %1866 = vmin.xlane.f32.xlu0 %v5067_v10  ;;  %1460 = vmin.xlane.f32.xlu1 %v5069_v57  ;;  %v5090_v57 = vpop.eup %3613  ;;  %7946 = vst [vmem:[#allocation218_spill] sm:$0xff] %v5094_v62 }
 0x20e   :  { %752 = vadd.xlane.f32.xlu2 %v5071_v45  ;;  %7944 = vst [vmem:[#allocation45_spill] sm:$0xff] %v5090_v57  ;;  %v5092_v10 = vpop.eup %3615  ;;  %v5099_v45 = vsel %vm1189_vm15, %v4111_v4, 128 }
 0x20f   :  { %7945 = vst [vmem:[#allocation217_spill] sm:$0xff] %v5092_v10  ;;  %v1513_v40 = vshra.s32 %v5099_v45, 16 }
 0x210   :  { %v5081_v9 = vpop.xlane.xlu0 %1936  ;;  %v5083_v32 = vpop.xlane.xlu1 %2146  ;;  %7947 = vst [vmem:[#allocation219_spill] sm:$0xff] %v5099_v45 }
 0x211   :  { %7940 = vst [vmem:[#allocation35_spill] sm:$0xff] %v5081_v9  ;;  %v5086_v14 = vpop.xlane.xlu2 %818  ;;  %v5117_v37 = vpop.eup %3617 }
 0x212   :  { %7941 = vst [vmem:[#allocation215_spill] sm:$0xff] %v5083_v32 }
 0x213   :  { %7942 = vst [vmem:[#allocation216_spill] sm:$0xff] %v5086_v14  ;;  %v589_v14 = vsub.f32 %v7948_v23, %v4759_v7  ;;  %v5122_v23 = vsel %vm1186_vm1, %v4111_v4, 128  ;;  %vm1211_vm1 = vcmp.ge.f32.partialorder %v4271_v26, %v4604_v31 }
 0x214   :  { %7952 = vst [vmem:[#allocation223_spill] sm:$0xff] %v5117_v37  ;;  %v5331_v26 = vsel %vm1211_vm1, %v4111_v4, 128 }
 0x215   :  { %748 = vadd.xlane.f32.xlu0 %v5090_v57  ;;  %828 = vadd.xlane.f32.xlu1 %v5092_v10  ;;  %v5115_v10 = vsel %vm341_vm0, %v228_v29, -1e+30  ;;  %v708_v57 = vmul.f32 1.442695, %v589_v14  ;;  %7954 = vst [vmem:[#allocation225_spill] sm:$0xff] %v5122_v23  ;;  %v231_v14 = vpop.f32.mrf.mxu0  ;;  %v1471_v29 = vshra.s32 %v5122_v23, 16 }
 0x216   :  { %1502 = vmin.xlane.f32.xlu2 %v5094_v62  ;;  %v5119_v62 = vcvt.s32.f32 %v1513_v40 }
 0x217   :  { %3619 = vpow2.f32 %v708_v57  ;;  %v548_v57 = vsub.f32 %v7934_v55, %v4739_v41  ;;  %v7968_v55 = vld [vmem:[#allocation76_spill] sm:$0xff]  ;;  %v7982_v41 = vld [vmem:[#allocation47_spill] sm:$0xff] }
 0x218   :  { %v5104_v32 = vpop.xlane.xlu0 %1376  ;;  %v5106_v17 = vpop.xlane.xlu1 %816  ;;  %7953 = vst [vmem:[#allocation224_spill] sm:$0xff] %v5119_v62  ;;  %vm1322_vm2 = vcmp.eq.f32.partialorder %v7968_v55, %v4867_v6  ;;  %vm1308_vm4 = vcmp.eq.f32.partialorder %v7982_v41, %v4764_v46  ;;  %v1330_v41 = vand.u32 65535, %v7986_v25  ;;  %v7987_v46 = vld [vmem:[#allocation74_spill] sm:$0xff] }
 0x219   :  { %7949 = vst [vmem:[#allocation220_spill] sm:$0xff] %v5104_v32  ;;  %v5109_v9 = vpop.xlane.xlu2 %848 }
 0x21a   :  { %7950 = vst [vmem:[#allocation221_spill] sm:$0xff] %v5106_v17  ;;  %v7955_v17 = vld [vmem:[#allocation34_spill] sm:$0xff] }
 0x21b   :  { %7951 = vst [vmem:[#allocation222_spill] sm:$0xff] %v5109_v9  ;;  %v587_v45 = vsub.f32 %v7955_v17, %v4714_v0  ;;  %v588_v9 = vsub.f32 %v7956_v11, %v4735_v52  ;;  %v5142_v0 = vcvt.s32.f32 %v1471_v29 }
 0x21d   :  { %750 = vadd.xlane.f32.xlu1 %v5117_v37  ;;  %460 = vmax.xlane.f32.xlu0 %v5115_v10  ;;  %v704_v24 = vmul.f32 1.442695, %v587_v45  ;;  %v706_v17 = vmul.f32 1.442695, %v588_v9  ;;  %v5140_v37 = vsel %vm341_vm0, %v231_v14, -1e+30  ;;  %v5144_v11 = vpop.eup %3619 }
 0x21e   :  { %1516 = vmin.xlane.f32.xlu2 %v5119_v62  ;;  %7960 = vst [vmem:[#allocation229_spill] sm:$0xff] %v5142_v0  ;;  %v7962_v45 = vld [vmem:[#allocation66_spill] sm:$0xff]  ;;  %v7963_v14 = vld [vmem:[#allocation69_spill] sm:$0xff] }
 0x21f   :  { %7961 = vst [vmem:[#allocation230_spill] sm:$0xff] %v5144_v11  ;;  %3621 = vpow2.f32 %v704_v24  ;;  %v550_v9 = vsub.f32 %v7962_v45, %v4835_v53  ;;  %v626_v24 = vmul.f32 1.442695, %v548_v57 }
 0x220   :  { %v5132_v40 = vpop.xlane.xlu0 %736  ;;  %v5134_v7 = vpop.xlane.xlu1 %846  ;;  %3623 = vpow2.f32 %v706_v17 }
 0x221   :  { %7957 = vst [vmem:[#allocation226_spill] sm:$0xff] %v5132_v40  ;;  %v5136_v51 = vpop.xlane.xlu2 %2174  ;;  %v630_v17 = vmul.f32 1.442695, %v550_v9  ;;  %3625 = vpow2.f32 %v626_v24  ;;  %v7978_v24 = vld [vmem:[#allocation117_spill] sm:$0xff] }
 0x222   :  { %7958 = vst [vmem:[#allocation227_spill] sm:$0xff] %v5134_v7  ;;  %v1316_v7 = vand.u32 65535, %v7963_v14 }
 0x223   :  { %7959 = vst [vmem:[#allocation228_spill] sm:$0xff] %v5136_v51  ;;  %3627 = vpow2.f32 %v630_v17  ;;  %v1358_v17 = vand.u32 65535, %v7978_v24 }
 0x224   :  { %v1318_v62 = vcvt.s32.f32 %v1316_v7 }
 0x225   :  { %1474 = vmin.xlane.f32.xlu0 %v5142_v0  ;;  %462 = vmax.xlane.f32.xlu1 %v5140_v37  ;;  %v7967_v0 = vld [vmem:[#allocation23_spill] sm:$0xff] }
 0x226   :  { %836 = vadd.xlane.f32.xlu2 %v5144_v11  ;;  %vm1233_vm0 = vcmp.ge.f32.partialorder %v7967_v0, %v4454_v56  ;;  %v5164_v11 = vpop.eup %3621  ;;  %v1323_v53 = vsel %vm1322_vm2, %v1318_v62, inf  ;;  %v549_v0 = vsub.f32 %v7943_v13, %v4761_v28  ;;  %v7979_v56 = vld [vmem:[#allocation114_spill] sm:$0xff] }
 0x227   :  { %7969 = vst [vmem:[#allocation23_spill] sm:$0xff] %v5164_v11  ;;  %v5166_v45 = vpop.eup %3623  ;;  %v5169_v14 = vsel %vm1233_vm0, %v4111_v4, 128 }
 0x228   :  { %v5154_v29 = vpop.xlane.xlu1 %738  ;;  %v5156_v51 = vpop.xlane.xlu0 %448  ;;  %7970 = vst [vmem:[#allocation76_spill] sm:$0xff] %v5166_v45  ;;  %v2129_v57 = vshra.s32 %v5169_v14, 16  ;;  %v628_v6 = vmul.f32 1.442695, %v549_v0  ;;  %v553_v0 = vsub.f32 %v7979_v56, %v5005_v16 }
 0x229   :  { %7964 = vst [vmem:[#allocation69_spill] sm:$0xff] %v5154_v29  ;;  %v5158_v23 = vpop.xlane.xlu2 %740  ;;  %vm1195_vm14 = vcmp.ge.f32.partialorder %v4785_v42, %v5156_v51 }
 0x22a   :  { %7965 = vst [vmem:[#allocation231_spill] sm:$0xff] %v5156_v51  ;;  %v5182_v62 = vcvt.s32.f32 %v2129_v57  ;;  %3629 = vpow2.f32 %v628_v6  ;;  %v636_v24 = vmul.f32 1.442695, %v553_v0 }
 0x22b   :  { %7966 = vst [vmem:[#allocation232_spill] sm:$0xff] %v5158_v23 }
 0x22c   :  { %7971 = vst [vmem:[#allocation233_spill] sm:$0xff] %v5169_v14  ;;  %v1428_v14 = vand.u32 65535, %v4857_v18  ;;  %3631 = vpow2.f32 %v636_v24  ;;  %v1332_v24 = vcvt.s32.f32 %v1330_v41 }
 0x22d   :  { %832 = vadd.xlane.f32.xlu0 %v5164_v11  ;;  %834 = vadd.xlane.f32.xlu1 %v5166_v45  ;;  %7974 = vst [vmem:[#allocation236_spill] sm:$0xff] %v5182_v62  ;;  %v5184_v11 = vpop.eup %3625 }
 0x22e   :  { %1324 = vmin.xlane.f32.xlu2 %v1323_v53  ;;  %7975 = vst [vmem:[#allocation237_spill] sm:$0xff] %v5184_v11  ;;  %v5186_v45 = vpop.eup %3627  ;;  %v7977_v53 = vld [vmem:[#allocation41_spill] sm:$0xff]  ;;  %v1430_v25 = vcvt.s32.f32 %v1428_v14 }
 0x22f   :  { %7976 = vst [vmem:[#allocation238_spill] sm:$0xff] %v5186_v45  ;;  %v1302_v13 = vand.u32 65535, %v7977_v53  ;;  %v7983_v53 = vld [vmem:[#allocation121_spill] sm:$0xff] }
 0x230   :  { %v5176_v9 = vpop.xlane.xlu0 %1950  ;;  %v5178_v7 = vpop.xlane.xlu1 %450  ;;  %vm1364_vm5 = vcmp.eq.f32.partialorder %v7983_v53, %v5029_v20  ;;  %v551_v53 = vsub.f32 %v7987_v46, %v4870_v59  ;;  %v7991_v20 = vld [vmem:[#allocation21_spill] sm:$0xff] }
 0x231   :  { %7972 = vst [vmem:[#allocation234_spill] sm:$0xff] %v5178_v7  ;;  %v5180_v55 = vpop.xlane.xlu2 %452  ;;  %v1304_v6 = vcvt.s32.f32 %v1302_v13  ;;  %v5207_v52 = vpop.eup %3629  ;;  %vm1196_vm2 = vcmp.ge.f32.partialorder %v4812_v39, %v5178_v7 }
 0x232   :  { %7973 = vst [vmem:[#allocation235_spill] sm:$0xff] %v5180_v55 }
 0x233   :  { %7984 = vst [vmem:[#allocation114_spill] sm:$0xff] %v5207_v52 }
 0x235   :  { %754 = vadd.xlane.f32.xlu0 %v5184_v11  ;;  %2132 = vmin.xlane.f32.xlu1 %v5182_v62  ;;  %v1309_v62 = vsel %vm1308_vm4, %v1304_v6, inf  ;;  %v7990_v6 = vld [vmem:[#allocation64_spill] sm:$0xff] }
 0x236   :  { %758 = vadd.xlane.f32.xlu2 %v5186_v45  ;;  %v1360_v45 = vcvt.s32.f32 %v1358_v17  ;;  %vm1232_vm6 = vcmp.ge.f32.partialorder %v7991_v20, %v7990_v6  ;;  %v5239_v6 = vpop.eup %3631 }
 0x237   :  { %v5237_v20 = vsel %vm1232_vm6, %v4111_v4, 128 }
 0x238   :  { %v5195_v57 = vpop.xlane.xlu0 %2160  ;;  %v5197_v28 = vpop.xlane.xlu1 %1964  ;;  %v1365_v49 = vsel %vm1364_vm5, %v1360_v45, inf  ;;  %v7993_v45 = vld [vmem:[#allocation75_spill] sm:$0xff]  ;;  %v2115_v41 = vshra.s32 %v5237_v20, 16 }
 0x239   :  { %7980 = vst [vmem:[#allocation41_spill] sm:$0xff] %v5195_v57  ;;  %v5201_v11 = vpop.xlane.xlu2 %800  ;;  %v5210_v57 = vsel %vm1213_vm3, %v4111_v4, 128  ;;  %vm1336_vm7 = vcmp.eq.f32.partialorder %v7993_v45, %v4865_v22 }
 0x23a   :  { %7981 = vst [vmem:[#allocation117_spill] sm:$0xff] %v5201_v11  ;;  %v1849_v13 = vshra.s32 %v5210_v57, 16 }
 0x23b   :  { %7985 = vst [vmem:[#allocation47_spill] sm:$0xff] %v5210_v57  ;;  %v1337_v57 = vsel %vm1336_vm7, %v1332_v24, inf  ;;  %v5256_v24 = vcvt.s32.f32 %v2115_v41 }
 0x23c   :  { %v5232_v11 = vcvt.s32.f32 %v1849_v13  ;;  %7997 = vst [vmem:[#allocation75_spill] sm:$0xff] %v5239_v6 }
 0x23d   :  { %1310 = vmin.xlane.f32.xlu0 %v1309_v62  ;;  %756 = vadd.xlane.f32.xlu1 %v5207_v52  ;;  %v7994_v62 = vld [vmem:[#allocation57_spill] sm:$0xff]  ;;  %v7995_v52 = vld [vmem:[#allocation20_spill] sm:$0xff] }
 0x23e   :  { %1366 = vmin.xlane.f32.xlu2 %v1365_v49  ;;  %vm1231_vm8 = vcmp.ge.f32.partialorder %v7995_v52, %v7994_v62  ;;  %v632_v49 = vmul.f32 1.442695, %v551_v53  ;;  %v2184_v62 = vand.u32 65535, %v4900_v61 }
 0x23f   :  { %v5243_v52 = vsel %vm1231_vm8, %v4111_v4, 128 }
 0x240   :  { %v5218_v17 = vpop.xlane.xlu0 %796  ;;  %v5220_v0 = vpop.xlane.xlu1 %1404  ;;  %3633 = vpow2.f32 %v632_v49  ;;  %v2101_v45 = vshra.s32 %v5243_v52, 16  ;;  %v8003_v49 = vld [vmem:[#allocation85_spill] sm:$0xff] }
 0x241   :  { %7988 = vst [vmem:[#allocation121_spill] sm:$0xff] %v5218_v17  ;;  %v5224_v18 = vpop.xlane.xlu2 %1432  ;;  %3635 = vlog2.f32 %v4837_v1  ;;  %vm1406_vm3 = vcmp.eq.f32.partialorder %v4872_v3, %v5220_v0 }
 0x242   :  { %7989 = vst [vmem:[#allocation68_spill] sm:$0xff] %v5220_v0  ;;  %vm1434_vm9 = vcmp.eq.f32.partialorder %v4876_v34, %v5224_v18  ;;  %v7998_v34 = vld [vmem:[#allocation95_spill] sm:$0xff] }
 0x243   :  { %7992 = vst [vmem:[#allocation74_spill] sm:$0xff] %v5224_v18  ;;  %v5234_v17 = vsel %vm1434_vm9, %v1430_v25, inf  ;;  %v552_v14 = vsub.f32 %v7998_v34, %v4943_v60  ;;  %v1344_v18 = vand.u32 65535, %v8003_v49  ;;  %v2186_v49 = vcvt.s32.f32 %v2184_v62 }
 0x244   :  { %7996 = vst [vmem:[#allocation21_spill] sm:$0xff] %v5234_v17 }
 0x245   :  { %1852 = vmin.xlane.f32.xlu0 %v5232_v11  ;;  %1338 = vmin.xlane.f32.xlu1 %v1337_v57  ;;  %v634_v57 = vmul.f32 1.442695, %v552_v14  ;;  %v8004_v14 = vld [vmem:[#allocation56_spill] sm:$0xff] }
 0x246   :  { %764 = vadd.xlane.f32.xlu2 %v5239_v6  ;;  %v5258_v22 = vpop.eup %3633  ;;  %v5262_v6 = vcvt.s32.f32 %v2101_v45  ;;  %v1722_v41 = vand.u32 65535, %v8004_v14  ;;  %v8008_v14 = vld [vmem:[#allocation62_spill] sm:$0xff] }
 0x247   :  { %8002 = vst [vmem:[#allocation240_spill] sm:$0xff] %v5258_v22  ;;  %3637 = vpow2.f32 %v634_v57  ;;  %vm1728_vm12 = vcmp.eq.f32.partialorder %v8008_v14, %v4804_v35  ;;  %v8019_v35 = vld [vmem:[#allocation43_spill] sm:$0xff] }
 0x248   :  { %v5249_v53 = vpop.xlane.xlu0 %820  ;;  %v5251_v13 = vpop.xlane.xlu1 %798  ;;  %3639 = vlog2.f32 %v4800_v2  ;;  %v1724_v62 = vcvt.s32.f32 %v1722_v41 }
 0x249   :  { %7999 = vst [vmem:[#allocation20_spill] sm:$0xff] %v5249_v53  ;;  %v5254_v25 = vpop.xlane.xlu2 %824  ;;  %v1442_v53 = vand.u32 65535, %v4907_v38  ;;  %3641 = vlog2.f32 %v4915_v5  ;;  %v1346_v38 = vcvt.s32.f32 %v1344_v18 }
 0x24a   :  { %8000 = vst [vmem:[#allocation95_spill] sm:$0xff] %v5251_v13  ;;  %3643 = vlog2.f32 %v4981_v27  ;;  %v1729_v27 = vsel %vm1728_vm12, %v1724_v62, inf }
 0x24b   :  { %8001 = vst [vmem:[#allocation239_spill] sm:$0xff] %v5254_v25  ;;  %v1444_v1 = vcvt.s32.f32 %v1442_v53  ;;  %3645 = vlog2.f32 %v4985_v15 }
 0x24c   :  { %3647 = vlog2.f32 %v5132_v40 }
 0x24d   :  { %760 = vadd.xlane.f32.xlu0 %v5258_v22  ;;  %2118 = vmin.xlane.f32.xlu1 %v5256_v24  ;;  %v8009_v22 = vld [vmem:[#allocation91_spill] sm:$0xff]  ;;  %3649 = vlog2.f32 %v5154_v29 }
 0x24e   :  { %2104 = vmin.xlane.f32.xlu2 %v5262_v6  ;;  %vm1350_vm13 = vcmp.eq.f32.partialorder %v8009_v22, %v4920_v44  ;;  %v5301_v22 = vsel %vm1212_vm10, %v4111_v4, 128  ;;  %v8013_v44 = vld [vmem:[#allocation115_spill] sm:$0xff] }
 0x24f   :  { %v1351_v14 = vsel %vm1350_vm13, %v1346_v38, inf  ;;  %v554_v38 = vsub.f32 %v8013_v44, %v5007_v12  ;;  %v1835_v36 = vshra.s32 %v5301_v22, 16  ;;  %vm1194_vm7 = vcmp.ge.f32.partialorder %v8013_v44, %v5007_v12 }
 0x250   :  { %v5274_v61 = vpop.xlane.xlu0 %850  ;;  %v5276_v45 = vpop.xlane.xlu1 %2188 }
 0x251   :  { %8005 = vst [vmem:[#allocation85_spill] sm:$0xff] %v5274_v61  ;;  %vm2190_vm11 = vcmp.eq.f32.partialorder %v4924_v47, %v5276_v45  ;;  %v5280_v57 = vpop.xlane.xlu2 %1446  ;;  %v3636_v47 = vpop.eup %3635  ;;  %v638_v15 = vmul.f32 1.442695, %v554_v38 }
 0x252   :  { %8006 = vst [vmem:[#allocation56_spill] sm:$0xff] %v5276_v45  ;;  %vm1448_vm15 = vcmp.eq.f32.partialorder %v4928_v50, %v5280_v57  ;;  %v5291_v18 = vsel %vm2190_vm11, %v2186_v49, inf  ;;  %v5295_v2 = vpop.eup %3637  ;;  %v5305_v50 = vsel %vm1195_vm14, %v4111_v4, 128  ;;  %v8017_v45 = vld [vmem:[#allocation37_spill] sm:$0xff]  ;;  %vm1193_vm11 = vcmp.ge.f32.partialorder %v7979_v56, %v5005_v16 }
 0x253   :  { %8007 = vst [vmem:[#allocation241_spill] sm:$0xff] %v5280_v57  ;;  %v5293_v5 = vsel %vm1448_vm15, %v1444_v1, inf  ;;  %v3640_v53 = vpop.eup %3639  ;;  %v8012_v1 = vld [vmem:[#allocation138_spill] sm:$0xff]  ;;  %v985_v57 = vmul.f32 0.6931472, %v3636_v47  ;;  %v8016_v47 = vld [vmem:[#allocation143_spill] sm:$0xff]  ;;  %3651 = vpow2.f32 %v638_v15 }
 0x254   :  { %8010 = vst [vmem:[#allocation62_spill] sm:$0xff] %v5293_v5  ;;  %v3642_v41 = vpop.eup %3641  ;;  %v1372_v49 = vand.u32 65535, %v8012_v1  ;;  %v983_v1 = vmul.f32 0.6931472, %v3640_v53  ;;  %vm1378_vm0 = vcmp.eq.f32.partialorder %v8016_v47, %v5104_v32  ;;  %3653 = vlog2.f32 %v5158_v23  ;;  %v8026_v23 = vld [vmem:[#allocation80_spill] sm:$0xff] }
 0x255   :  { %8011 = vst [vmem:[#allocation91_spill] sm:$0xff] %v5295_v2  ;;  %1352 = vmin.xlane.f32.xlu0 %v1351_v14  ;;  %762 = vadd.xlane.f32.xlu1 %v5295_v2  ;;  %v3644_v61 = vpop.eup %3643  ;;  %v1597_v2 = vshra.s32 %v5305_v50, 16  ;;  %v987_v25 = vmul.f32 0.6931472, %v3642_v41  ;;  %v1111_v48 = vadd.f32 %v985_v57, %v8017_v45  ;;  %v8018_v41 = vld [vmem:[#allocation33_spill] sm:$0xff]  ;;  %v1400_v45 = vand.u32 65535, %v4848_v63 }
 0x256   :  { %1730 = vmin.xlane.f32.xlu2 %v1729_v27  ;;  %v1374_v40 = vcvt.s32.f32 %v1372_v49  ;;  %v989_v13 = vmul.f32 0.6931472, %v3644_v61  ;;  %v3646_v53 = vpop.eup %3645  ;;  %v1110_v31 = vadd.f32 %v983_v1, %v8018_v41  ;;  %v8020_v61 = vld [vmem:[#allocation72_spill] sm:$0xff]  ;;  %v1821_v57 = vshra.s32 %v5331_v26, 16 }
 0x257   :  { %v5328_v5 = vcvt.s32.f32 %v1597_v2  ;;  %v1112_v47 = vadd.f32 %v987_v25, %v8019_v35  ;;  %v3648_v49 = vpop.eup %3647  ;;  %v2995_v2 = vmul.f32 %v1111_v48, %v1111_v48  ;;  %v1402_v15 = vcvt.s32.f32 %v1400_v45 }
 0x258   :  { %v5313_v62 = vpop.xlane.xlu0 %1418  ;;  %v5315_v14 = vpop.xlane.xlu1 %822  ;;  %v1379_v17 = vsel %vm1378_vm0, %v1374_v40, inf  ;;  %v1113_v40 = vadd.f32 %v989_v13, %v8020_v61  ;;  %v993_v41 = vmul.f32 0.6931472, %v3648_v49  ;;  %v5352_v61 = vcvt.s32.f32 %v1821_v57  ;;  %v8029_v57 = vld [vmem:[#allocation165_spill] sm:$0xff] }
 0x259   :  { %8014 = vst [vmem:[#allocation138_spill] sm:$0xff] %v5315_v14  ;;  %v5320_v27 = vpop.xlane.xlu2 %746  ;;  %v5326_v14 = vcvt.s32.f32 %v1835_v36  ;;  %v3650_v38 = vpop.eup %3649  ;;  %v991_v36 = vmul.f32 0.6931472, %v3646_v53  ;;  %v2996_v25 = vmul.f32 %v1112_v47, %v1112_v47  ;;  %v5361_v45 = vsel %vm1196_vm2, %v4111_v4, 128 }
 0x25a   :  { %8015 = vst [vmem:[#allocation115_spill] sm:$0xff] %v5320_v27  ;;  %v2997_v13 = vmul.f32 %v1113_v40, %v1113_v40  ;;  %v995_v53 = vmul.f32 0.6931472, %v3650_v38  ;;  %v5354_v29 = vpop.eup %3651  ;;  %v1115_v32 = vadd.f32 %v993_v41, %v8026_v23  ;;  %v1960_v38 = vand.u32 65535, %v8029_v57  ;;  %v8033_v57 = vld [vmem:[#allocation130_spill] sm:$0xff] }
 0x25b   :  { %8024 = vst [vmem:[#allocation43_spill] sm:$0xff] %v5354_v29  ;;  %v3654_v3 = vpop.eup %3653  ;;  %v556_v41 = vsub.f32 %v4812_v39, %v5178_v7  ;;  %vm1392_vm4 = vcmp.eq.f32.partialorder %v8033_v57, %v5063_v54  ;;  %vm1420_vm10 = vcmp.eq.f32.partialorder %v4947_v21, %v5313_v62  ;;  %v1862_v21 = vand.u32 65535, %v5045_v33 }
 0x25c   :  { %8027 = vst [vmem:[#allocation72_spill] sm:$0xff] %v5361_v45  ;;  %v5450_v56 = vsel %vm1193_vm11, %v4111_v4, 128 }
 0x25d   :  { %1838 = vmin.xlane.f32.xlu0 %v5326_v14  ;;  %1380 = vmin.xlane.f32.xlu1 %v1379_v17  ;;  %v2994_v17 = vmul.f32 %v1110_v31, %v1110_v31  ;;  %v8025_v31 = vld [vmem:[#allocation73_spill] sm:$0xff]  ;;  %v642_v0 = vmul.f32 1.442695, %v556_v41 }
 0x25e   :  { %1600 = vmin.xlane.f32.xlu2 %v5328_v5  ;;  %v1114_v47 = vadd.f32 %v991_v36, %v8025_v31  ;;  %v8030_v36 = vld [vmem:[#allocation87_spill] sm:$0xff] }
 0x25f   :  { %v3122_v48 = vadd.f32 %v2995_v2, %v2994_v17  ;;  %v8028_v2 = vld [vmem:[#allocation124_spill] sm:$0xff]  ;;  %v555_v17 = vsub.f32 %v4785_v42, %v5156_v51  ;;  %v2999_v42 = vmul.f32 %v1115_v32, %v1115_v32 }
 0x260   :  { %v5341_v1 = vpop.xlane.xlu0 %742  ;;  %v5343_v35 = vpop.xlane.xlu1 %852  ;;  %v1386_v40 = vand.u32 65535, %v8028_v2  ;;  %v1611_v2 = vshra.s32 %v5361_v45, 16 }
 0x261   :  { %8021 = vst [vmem:[#allocation143_spill] sm:$0xff] %v5341_v1  ;;  %v5345_v63 = vpop.xlane.xlu2 %458  ;;  %3655 = vlog2.f32 %v5341_v1  ;;  %v3123_v49 = vadd.f32 %v3122_v48, %v2996_v25  ;;  %v1116_v25 = vadd.f32 %v995_v53, %v8030_v36  ;;  %v2998_v48 = vmul.f32 %v1114_v47, %v1114_v47  ;;  %v8035_v53 = vld [vmem:[#allocation170_spill] sm:$0xff] }
 0x262   :  { %8022 = vst [vmem:[#allocation37_spill] sm:$0xff] %v5343_v35  ;;  %v1407_v35 = vsel %vm1406_vm3, %v1402_v15, inf  ;;  %3657 = vlog2.f32 %v5320_v27  ;;  %v997_v1 = vmul.f32 0.6931472, %v3654_v3  ;;  %vm1966_vm5 = vcmp.eq.f32.partialorder %v8035_v53, %v5197_v28 }
 0x263   :  { %8023 = vst [vmem:[#allocation33_spill] sm:$0xff] %v5345_v63  ;;  %v3124_v23 = vadd.f32 %v3123_v49, %v2997_v13  ;;  %v640_v39 = vmul.f32 1.442695, %v555_v17  ;;  %v1388_v47 = vcvt.s32.f32 %v1386_v40  ;;  %v1962_v49 = vcvt.s32.f32 %v1960_v38  ;;  %v8038_v17 = vld [vmem:[#allocation77_spill] sm:$0xff] }
 0x264   :  { %v3000_v27 = vmul.f32 %v1116_v25, %v1116_v25  ;;  %v5383_v51 = vcvt.s32.f32 %v1611_v2  ;;  %v1736_v53 = vand.u32 65535, %v8038_v17  ;;  %v8042_v2 = vld [vmem:[#allocation81_spill] sm:$0xff] }
 0x265   :  { %766 = vadd.xlane.f32.xlu0 %v5354_v29  ;;  %1824 = vmin.xlane.f32.xlu1 %v5352_v61  ;;  %v3125_v36 = vadd.f32 %v3124_v23, %v2998_v48  ;;  %v1393_v57 = vsel %vm1392_vm4, %v1388_v47, inf  ;;  %v1967_v32 = vsel %vm1966_vm5, %v1962_v49, inf  ;;  %v8041_v48 = vld [vmem:[#allocation175_spill] sm:$0xff] }
 0x266   :  { %1408 = vmin.xlane.f32.xlu2 %v1407_v35  ;;  %vm1742_vm6 = vcmp.eq.f32.partialorder %v8042_v2, %v8041_v48 }
 0x267   :  { %v3656_v15 = vpop.eup %3655  ;;  %v3126_v3 = vadd.f32 %v3125_v36, %v2999_v42 }
 0x268   :  { %v5371_v31 = vpop.xlane.xlu1 %744  ;;  %v5373_v29 = vpop.xlane.xlu0 %454  ;;  %v999_v35 = vmul.f32 0.6931472, %v3656_v15  ;;  %v8036_v15 = vld [vmem:[#allocation100_spill] sm:$0xff] }
 0x269   :  { %8031 = vst [vmem:[#allocation73_spill] sm:$0xff] %v5371_v31  ;;  %v5378_v13 = vpop.xlane.xlu2 %806  ;;  %3659 = vlog2.f32 %v5371_v31  ;;  %v3658_v7 = vpop.eup %3657  ;;  %v1117_v54 = vadd.f32 %v997_v1, %v8036_v15  ;;  %v3127_v40 = vadd.f32 %v3126_v3, %v3000_v27  ;;  %v8044_v27 = vld [vmem:[#allocation162_spill] sm:$0xff] }
 0x26a   :  { %8032 = vst [vmem:[#allocation80_spill] sm:$0xff] %v5373_v29  ;;  %3661 = vpow2.f32 %v640_v39  ;;  %v1003_v38 = vmul.f32 0.6931472, %v3658_v7  ;;  %vm1197_vm8 = vcmp.ge.f32.partialorder %v8044_v27, %v5180_v55  ;;  %v1738_v7 = vcvt.s32.f32 %v1736_v53  ;;  %v8045_v39 = vld [vmem:[#allocation119_spill] sm:$0xff] }
 0x26b   :  { %8034 = vst [vmem:[#allocation124_spill] sm:$0xff] %v5378_v13  ;;  %v8037_v13 = vld [vmem:[#allocation107_spill] sm:$0xff]  ;;  %3663 = vpow2.f32 %v642_v0  ;;  %v3001_v1 = vmul.f32 %v1117_v54, %v1117_v54  ;;  %v1484_v54 = vand.u32 65535, %v5022_v30  ;;  %v5413_v15 = vsel %vm1197_vm8, %v4111_v4, 128  ;;  %v8049_v30 = vld [vmem:[#allocation44_spill] sm:$0xff] }
 0x26c   :  { %v1118_v45 = vadd.f32 %v999_v35, %v8037_v13  ;;  %v1120_v47 = vadd.f32 %v1003_v38, %v8045_v39  ;;  %v557_v17 = vsub.f32 %v8044_v27, %v5180_v55 }
 0x26d   :  { %1394 = vmin.xlane.f32.xlu0 %v1393_v57  ;;  %1968 = vmin.xlane.f32.xlu1 %v1967_v32  ;;  %v3128_v0 = vadd.f32 %v3127_v40, %v3001_v1  ;;  %v1743_v57 = vsel %vm1742_vm6, %v1738_v7, inf  ;;  %v5406_v32 = vsel %vm1194_vm7, %v4111_v4, 128  ;;  %v1486_v27 = vcvt.s32.f32 %v1484_v54 }
 0x26e   :  { %1614 = vmin.xlane.f32.xlu2 %v5383_v51  ;;  %v3002_v42 = vmul.f32 %v1118_v45, %v1118_v45  ;;  %8047 = vst [vmem:[#allocation100_spill] sm:$0xff] %v5406_v32  ;;  %v3004_v53 = vmul.f32 %v1120_v47, %v1120_v47  ;;  %v1583_v38 = vshra.s32 %v5406_v32, 16  ;;  %v644_v7 = vmul.f32 1.442695, %v557_v17 }
 0x26f   :  { %v3660_v23 = vpop.eup %3659  ;;  %v1569_v17 = vshra.s32 %v5450_v56, 16  ;;  %vm1192_vm6 = vcmp.ge.f32.partialorder %v7998_v34, %v4943_v60  ;;  %v8091_v34 = vld [vmem:[#allocation157_spill] sm:$0xff] }
 0x270   :  { %v5389_v25 = vpop.xlane.xlu0 %802  ;;  %v5391_v41 = vpop.xlane.xlu1 %456  ;;  %v1001_v35 = vmul.f32 0.6931472, %v3660_v23  ;;  %v3129_v45 = vadd.f32 %v3128_v0, %v3002_v42  ;;  %v8050_v23 = vld [vmem:[#allocation18_spill] sm:$0xff]  ;;  %v1625_v42 = vshra.s32 %v5413_v15, 16  ;;  %v5437_v39 = vcvt.s32.f32 %v1583_v38  ;;  %v8060_v38 = vld [vmem:[#allocation93_spill] sm:$0xff] }
 0x271   :  { %8039 = vst [vmem:[#allocation165_spill] sm:$0xff] %v5389_v25  ;;  %v5397_v13 = vpop.xlane.xlu2 %830  ;;  %v5403_v36 = vpop.eup %3661  ;;  %vm1230_vm9 = vcmp.ge.f32.partialorder %v8050_v23, %v8049_v30  ;;  %3665 = vpow2.f32 %v644_v7  ;;  %v8061_v23 = vld [vmem:[#allocation26_spill] sm:$0xff]  ;;  %v8064_v7 = vld [vmem:[#allocation212_spill] sm:$0xff]  ;;  %v5482_v31 = vcvt.s32.f32 %v1569_v17 }
 0x272   :  { %8040 = vst [vmem:[#allocation87_spill] sm:$0xff] %v5391_v41  ;;  %v1119_v49 = vadd.f32 %v1001_v35, %v4629_v8  ;;  %v5408_v44 = vpop.eup %3663  ;;  %v1414_v8 = vand.u32 65535, %v4931_v58  ;;  %v5440_v47 = vsel %vm1230_vm9, %v4111_v4, 128  ;;  %v5446_v54 = vcvt.s32.f32 %v1625_v42  ;;  %v8062_v42 = vld [vmem:[#allocation199_spill] sm:$0xff] }
 0x273   :  { %8043 = vst [vmem:[#allocation130_spill] sm:$0xff] %v5397_v13  ;;  %vm1210_vm13 = vcmp.ge.f32.partialorder %v8061_v23, %v8060_v38  ;;  %vm1198_vm14 = vcmp.ge.f32.partialorder %v8062_v42, %v5373_v29  ;;  %v8077_v38 = vld [vmem:[#allocation25_spill] sm:$0xff] }
 0x274   :  { %8046 = vst [vmem:[#allocation170_spill] sm:$0xff] %v5403_v36  ;;  %v3003_v3 = vmul.f32 %v1119_v49, %v1119_v49  ;;  %v1416_v0 = vcvt.s32.f32 %v1414_v8  ;;  %v2087_v8 = vshra.s32 %v5440_v47, 16  ;;  %v5480_v23 = vsel %vm1198_vm14, %v4111_v4, 128 }
 0x275   :  { %8048 = vst [vmem:[#allocation107_spill] sm:$0xff] %v5408_v44  ;;  %1744 = vmin.xlane.f32.xlu0 %v1743_v57  ;;  %768 = vadd.xlane.f32.xlu1 %v5403_v36  ;;  %v1456_v57 = vand.u32 65535, %v5048_v19  ;;  %vm1191_vm14 = vcmp.ge.f32.partialorder %v7987_v46, %v4870_v59 }
 0x276   :  { %770 = vadd.xlane.f32.xlu2 %v5408_v44  ;;  %v3130_v40 = vadd.f32 %v3129_v45, %v3003_v3  ;;  %8054 = vst [vmem:[#allocation162_spill] sm:$0xff] %v5437_v39  ;;  %v1421_v45 = vsel %vm1420_vm10, %v1416_v0, inf  ;;  %v5664_v46 = vsel %vm1191_vm14, %v4111_v4, 128 }
 0x277   :  { %8055 = vst [vmem:[#allocation119_spill] sm:$0xff] %v5440_v47  ;;  %v5477_v44 = vpop.eup %3665 }
 0x278   :  { %v5422_v2 = vpop.xlane.xlu0 %826  ;;  %v5424_v1 = vpop.xlane.xlu1 %804  ;;  %v5431_v35 = vadd.f32 %v3130_v40, %v3004_v53  ;;  %8056 = vst [vmem:[#allocation18_spill] sm:$0xff] %v5450_v56  ;;  %v1458_v53 = vcvt.s32.f32 %v1456_v57  ;;  %v1864_v40 = vcvt.s32.f32 %v1862_v21  ;;  %v5475_v21 = vcvt.s32.f32 %v2087_v8 }
 0x279   :  { %8051 = vst [vmem:[#allocation77_spill] sm:$0xff] %v5422_v2  ;;  %v5429_v58 = vpop.xlane.xlu2 %1488  ;;  %v1639_v8 = vshra.s32 %v5480_v23, 16 }
 0x27a   :  { %8052 = vst [vmem:[#allocation175_spill] sm:$0xff] %v5424_v1  ;;  %vm1490_vm12 = vcmp.eq.f32.partialorder %v5042_v43, %v5429_v58  ;;  %v8057_v43 = vld [vmem:[#allocation203_spill] sm:$0xff] }
 0x27b   :  { %8053 = vst [vmem:[#allocation81_spill] sm:$0xff] %v5429_v58  ;;  %v5442_v49 = vsel %vm1490_vm12, %v1486_v27, inf  ;;  %v559_v3 = vsub.f32 %v8057_v43, %v5391_v41  ;;  %v8063_v27 = vld [vmem:[#allocation40_spill] sm:$0xff]  ;;  %vm1199_vm0 = vcmp.ge.f32.partialorder %v8057_v43, %v5391_v41 }
 0x27c   :  { %8066 = vst [vmem:[#allocation199_spill] sm:$0xff] %v5475_v21  ;;  %v5510_v30 = vsel %vm1199_vm0, %v4111_v4, 128  ;;  %v8076_v58 = vld [vmem:[#allocation88_spill] sm:$0xff] }
 0x27d   :  { %1586 = vmin.xlane.f32.xlu0 %v5437_v39  ;;  %1422 = vmin.xlane.f32.xlu1 %v1421_v45  ;;  %v648_v57 = vmul.f32 1.442695, %v559_v3  ;;  %8067 = vst [vmem:[#allocation40_spill] sm:$0xff] %v5477_v44  ;;  %vm1209_vm3 = vcmp.ge.f32.partialorder %v8077_v38, %v8076_v58  ;;  %v8081_v38 = vld [vmem:[#allocation48_spill] sm:$0xff] }
 0x27e   :  { %1628 = vmin.xlane.f32.xlu2 %v5446_v54  ;;  %8068 = vst [vmem:[#allocation212_spill] sm:$0xff] %v5482_v31 }
 0x27f   :  { %3667 = vpow2.f32 %v648_v57 }
 0x280   :  { %v5456_v33 = vpop.xlane.xlu0 %1866  ;;  %v5458_v19 = vpop.xlane.xlu1 %1460 }
 0x281   :  { %8058 = vst [vmem:[#allocation203_spill] sm:$0xff] %v5456_v33  ;;  %vm1868_vm15 = vcmp.eq.f32.partialorder %v8063_v27, %v5456_v33  ;;  %vm1462_vm1 = vcmp.eq.f32.partialorder %v8064_v7, %v5458_v19  ;;  %v5469_v0 = vpop.xlane.xlu2 %752  ;;  %v5485_v27 = vsel %vm1210_vm13, %v4111_v4, 128  ;;  %v558_v7 = vsub.f32 %v8062_v42, %v5373_v29 }
 0x282   :  { %8059 = vst [vmem:[#allocation242_spill] sm:$0xff] %v5458_v19  ;;  %v5471_v45 = vsel %vm1462_vm1, %v1458_v53, inf  ;;  %v5473_v36 = vsel %vm1868_vm15, %v1864_v40, inf  ;;  %v1807_v3 = vshra.s32 %v5485_v27, 16  ;;  %v5507_v33 = vcvt.s32.f32 %v1639_v8 }
 0x283   :  { %8065 = vst [vmem:[#allocation26_spill] sm:$0xff] %v5469_v0  ;;  %v646_v40 = vmul.f32 1.442695, %v558_v7 }
 0x284   :  { %v5505_v57 = vcvt.s32.f32 %v1807_v3  ;;  %v1653_v3 = vshra.s32 %v5510_v30, 16 }
 0x285   :  { %772 = vadd.xlane.f32.xlu0 %v5477_v44  ;;  %2090 = vmin.xlane.f32.xlu1 %v5475_v21  ;;  %v8072_v44 = vld [vmem:[#allocation193_spill] sm:$0xff]  ;;  %v5512_v19 = vpop.eup %3667  ;;  %v8087_v21 = vld [vmem:[#allocation134_spill] sm:$0xff] }
 0x286   :  { %1572 = vmin.xlane.f32.xlu2 %v5482_v31  ;;  %vm1200_vm2 = vcmp.ge.f32.partialorder %v8072_v44, %v5345_v63  ;;  %8073 = vst [vmem:[#allocation193_spill] sm:$0xff] %v5512_v19  ;;  %v560_v43 = vsub.f32 %v8072_v44, %v5345_v63  ;;  %v5537_v25 = vcvt.s32.f32 %v1653_v3 }
 0x287   :  { %v5515_v7 = vsel %vm1200_vm2, %v4111_v4, 128 }
 0x288   :  { %v5494_v53 = vpop.xlane.xlu0 %748  ;;  %v5496_v17 = vpop.xlane.xlu1 %828  ;;  %v650_v44 = vmul.f32 1.442695, %v560_v43  ;;  %v1708_v43 = vand.u32 65535, %v8081_v38  ;;  %v8084_v38 = vld [vmem:[#allocation153_spill] sm:$0xff] }
 0x289   :  { %8069 = vst [vmem:[#allocation243_spill] sm:$0xff] %v5494_v53  ;;  %v5500_v42 = vpop.xlane.xlu2 %1502  ;;  %3669 = vlog2.f32 %v5494_v53 }
 0x28a   :  { %8070 = vst [vmem:[#allocation244_spill] sm:$0xff] %v5496_v17  ;;  %3671 = vpow2.f32 %v646_v40  ;;  %v1667_v40 = vshra.s32 %v5515_v7, 16 }
 0x28b   :  { %8071 = vst [vmem:[#allocation245_spill] sm:$0xff] %v5500_v42  ;;  %3673 = vlog2.f32 %v5469_v0 }
 0x28c   :  { %v5539_v63 = vcvt.s32.f32 %v1667_v40 }
 0x28d   :  { %1810 = vmin.xlane.f32.xlu0 %v5505_v57  ;;  %1642 = vmin.xlane.f32.xlu1 %v5507_v33 }
 0x28e   :  { %776 = vadd.xlane.f32.xlu2 %v5512_v19  ;;  %v8079_v19 = vld [vmem:[#allocation127_spill] sm:$0xff] }
 0x28f   :  { %v3670_v8 = vpop.eup %3669 }
 0x290   :  { %v5524_v53 = vpop.xlane.xlu1 %750  ;;  %v5526_v13 = vpop.xlane.xlu0 %460  ;;  %v1005_v17 = vmul.f32 0.6931472, %v3670_v8  ;;  %v5544_v8 = vsel %vm1209_vm3, %v4111_v4, 128 }
 0x291   :  { %8074 = vst [vmem:[#allocation246_spill] sm:$0xff] %v5524_v53  ;;  %v5529_v2 = vpop.xlane.xlu2 %1516  ;;  %3675 = vlog2.f32 %v5524_v53  ;;  %v5534_v0 = vpop.eup %3671  ;;  %vm1201_vm4 = vcmp.ge.f32.partialorder %v5115_v10, %v5526_v13 }
 0x292   :  { %8075 = vst [vmem:[#allocation247_spill] sm:$0xff] %v5526_v13  ;;  %v1121_v1 = vadd.f32 %v1005_v17, %v8079_v19  ;;  %v3674_v31 = vpop.eup %3673  ;;  %3677 = vpow2.f32 %v650_v44  ;;  %v8085_v44 = vld [vmem:[#allocation53_spill] sm:$0xff] }
 0x293   :  { %8078 = vst [vmem:[#allocation25_spill] sm:$0xff] %v5534_v0  ;;  %v1009_v53 = vmul.f32 0.6931472, %v3674_v31  ;;  %vm1714_vm5 = vcmp.eq.f32.partialorder %v8085_v44, %v8084_v38  ;;  %v1710_v31 = vcvt.s32.f32 %v1708_v43  ;;  %v5573_v44 = vsel %vm1192_vm6, %v4111_v4, 128 }
 0x294   :  { %v3005_v41 = vmul.f32 %v1121_v1, %v1121_v1  ;;  %8080 = vst [vmem:[#allocation127_spill] sm:$0xff] %v5544_v8  ;;  %v1793_v1 = vshra.s32 %v5544_v8, 16  ;;  %v1946_v43 = vand.u32 65535, %v8091_v34  ;;  %v8095_v34 = vld [vmem:[#allocation46_spill] sm:$0xff] }
 0x295   :  { %1656 = vmin.xlane.f32.xlu0 %v5537_v25  ;;  %774 = vadd.xlane.f32.xlu1 %v5534_v0  ;;  %v1715_v55 = vsel %vm1714_vm5, %v1710_v31, inf }
 0x296   :  { %1670 = vmin.xlane.f32.xlu2 %v5539_v63  ;;  %v3132_v19 = vadd.f32 %v5431_v35, %v3005_v41  ;;  %v8086_v41 = vld [vmem:[#allocation141_spill] sm:$0xff]  ;;  %v5569_v39 = vcvt.s32.f32 %v1793_v1 }
 0x297   :  { %v3676_v17 = vpop.eup %3675  ;;  %v1123_v35 = vadd.f32 %v1009_v53, %v8086_v41  ;;  %8090 = vst [vmem:[#allocation141_spill] sm:$0xff] %v5573_v44  ;;  %v1555_v41 = vshra.s32 %v5573_v44, 16 }
 0x298   :  { %v5549_v3 = vpop.xlane.xlu0 %1474  ;;  %v5551_v40 = vpop.xlane.xlu1 %462  ;;  %v1007_v58 = vmul.f32 0.6931472, %v3676_v17  ;;  %v5567_v17 = vsel %vm1201_vm4, %v4111_v4, 128  ;;  %8089 = vst [vmem:[#allocation53_spill] sm:$0xff] %v5569_v39 }
 0x299   :  { %8082 = vst [vmem:[#allocation48_spill] sm:$0xff] %v5551_v40  ;;  %v5556_v0 = vpop.xlane.xlu2 %836  ;;  %v5564_v29 = vpop.eup %3677  ;;  %v562_v1 = vsub.f32 %v5140_v37, %v5551_v40  ;;  %vm1202_vm9 = vcmp.ge.f32.partialorder %v5140_v37, %v5551_v40 }
 0x29a   :  { %8083 = vst [vmem:[#allocation248_spill] sm:$0xff] %v5556_v0  ;;  %v1122_v56 = vadd.f32 %v1007_v58, %v8087_v21  ;;  %v561_v58 = vsub.f32 %v5115_v10, %v5526_v13  ;;  %v3007_v21 = vmul.f32 %v1123_v35, %v1123_v35  ;;  %v8097_v10 = vld [vmem:[#allocation163_spill] sm:$0xff]  ;;  %v1948_v35 = vcvt.s32.f32 %v1946_v43 }
 0x29b   :  { %8088 = vst [vmem:[#allocation153_spill] sm:$0xff] %v5564_v29  ;;  %vm1952_vm8 = vcmp.eq.f32.partialorder %v8097_v10, %v5176_v9  ;;  %v5625_v10 = vsel %vm1202_vm9, %v4111_v4, 128 }
 0x29c   :  { %v3006_v0 = vmul.f32 %v1122_v56, %v1122_v56  ;;  %v1681_v56 = vshra.s32 %v5567_v17, 16  ;;  %v1953_v44 = vsel %vm1952_vm8, %v1948_v35, inf  ;;  %8109 = vst [vmem:[#allocation252_spill] sm:$0xff] %v5625_v10 }
 0x29d   :  { %778 = vadd.xlane.f32.xlu0 %v5564_v29  ;;  %1716 = vmin.xlane.f32.xlu1 %v1715_v55  ;;  %v8094_v29 = vld [vmem:[#allocation147_spill] sm:$0xff] }
 0x29e   :  { %1796 = vmin.xlane.f32.xlu2 %v5569_v39  ;;  %v3133_v53 = vadd.f32 %v3132_v19, %v3006_v0  ;;  %vm1229_vm7 = vcmp.ge.f32.partialorder %v8095_v34, %v8094_v29  ;;  %v652_v19 = vmul.f32 1.442695, %v561_v58  ;;  %v654_v39 = vmul.f32 1.442695, %v562_v1  ;;  %v8119_v29 = vld [vmem:[#allocation136_spill] sm:$0xff] }
 0x29f   :  { %v5595_v13 = vcvt.s32.f32 %v1681_v56  ;;  %v5601_v47 = vsel %vm1229_vm7, %v4111_v4, 128  ;;  %v8105_v56 = vld [vmem:[#allocation79_spill] sm:$0xff] }
 0x2a0   :  { %v5582_v31 = vpop.xlane.xlu0 %832  ;;  %v5584_v55 = vpop.xlane.xlu1 %834  ;;  %v5593_v0 = vadd.f32 %v3133_v53, %v3007_v21  ;;  %3679 = vpow2.f32 %v652_v19  ;;  %v2073_v43 = vshra.s32 %v5601_v47, 16  ;;  %v8112_v19 = vld [vmem:[#allocation131_spill] sm:$0xff] }
 0x2a1   :  { %8092 = vst [vmem:[#allocation134_spill] sm:$0xff] %v5582_v31  ;;  %v5589_v32 = vpop.xlane.xlu2 %1324  ;;  %v8098_v31 = vld [vmem:[#allocation233_spill] sm:$0xff]  ;;  %3681 = vpow2.f32 %v654_v39  ;;  %v1932_v35 = vand.u32 65535, %v8112_v19 }
 0x2a2   :  { %8093 = vst [vmem:[#allocation157_spill] sm:$0xff] %v5584_v55  ;;  %v2128_v8 = vand.u32 65535, %v8098_v31  ;;  %v5598_v55 = vcvt.s32.f32 %v1555_v41  ;;  %v8106_v31 = vld [vmem:[#allocation24_spill] sm:$0xff]  ;;  %v5620_v39 = vcvt.s32.f32 %v2073_v43  ;;  %v1695_v43 = vshra.s32 %v5625_v10, 16 }
 0x2a3   :  { %8096 = vst [vmem:[#allocation46_spill] sm:$0xff] %v5589_v32  ;;  %vm1208_vm11 = vcmp.ge.f32.partialorder %v8106_v31, %v8105_v56  ;;  %v8118_v32 = vld [vmem:[#allocation35_spill] sm:$0xff] }
 0x2a4   :  { %8099 = vst [vmem:[#allocation163_spill] sm:$0xff] %v5598_v55  ;;  %v2130_v53 = vcvt.s32.f32 %v2128_v8  ;;  %v5633_v8 = vsel %vm1208_vm11, %v4111_v4, 128  ;;  %vm1938_vm13 = vcmp.eq.f32.partialorder %v8119_v29, %v8118_v32  ;;  %v8124_v29 = vld [vmem:[#allocation142_spill] sm:$0xff] }
 0x2a5   :  { %8100 = vst [vmem:[#allocation233_spill] sm:$0xff] %v5601_v47  ;;  %1954 = vmin.xlane.f32.xlu0 %v1953_v44  ;;  %1684 = vmin.xlane.f32.xlu1 %v5595_v13  ;;  %v8104_v44 = vld [vmem:[#allocation236_spill] sm:$0xff]  ;;  %v1779_v31 = vshra.s32 %v5633_v8, 16 }
 0x2a6   :  { %1558 = vmin.xlane.f32.xlu2 %v5598_v55  ;;  %8107 = vst [vmem:[#allocation236_spill] sm:$0xff] %v5620_v39  ;;  %v5622_v34 = vpop.eup %3679 }
 0x2a7   :  { %8108 = vst [vmem:[#allocation24_spill] sm:$0xff] %v5622_v34  ;;  %v5628_v37 = vpop.eup %3681 }
 0x2a8   :  { %v5606_v58 = vpop.xlane.xlu0 %754  ;;  %v5608_v21 = vpop.xlane.xlu1 %2132  ;;  %8110 = vst [vmem:[#allocation253_spill] sm:$0xff] %v5628_v37 }
 0x2a9   :  { %8101 = vst [vmem:[#allocation249_spill] sm:$0xff] %v5606_v58  ;;  %v5612_v1 = vpop.xlane.xlu2 %758  ;;  %vm2134_vm10 = vcmp.eq.f32.partialorder %v8104_v44, %v5608_v21  ;;  %3683 = vlog2.f32 %v5606_v58  ;;  %v8115_v58 = vld [vmem:[#allocation140_spill] sm:$0xff] }
 0x2aa   :  { %8102 = vst [vmem:[#allocation250_spill] sm:$0xff] %v5608_v21  ;;  %v5618_v41 = vsel %vm2134_vm10, %v2130_v53, inf  ;;  %3685 = vlog2.f32 %v5612_v1  ;;  %v8116_v21 = vld [vmem:[#allocation39_spill] sm:$0xff] }
 0x2ab   :  { %8103 = vst [vmem:[#allocation251_spill] sm:$0xff] %v5612_v1  ;;  %vm1228_vm12 = vcmp.ge.f32.partialorder %v8116_v21, %v8115_v58  ;;  %v1934_v1 = vcvt.s32.f32 %v1932_v35  ;;  %v8126_v35 = vld [vmem:[#allocation214_spill] sm:$0xff] }
 0x2ac   :  { %8111 = vst [vmem:[#allocation254_spill] sm:$0xff] %v5633_v8  ;;  %v5658_v21 = vsel %vm1228_vm12, %v4111_v4, 128 }
 0x2ad   :  { %2076 = vmin.xlane.f32.xlu0 %v5620_v39  ;;  %780 = vadd.xlane.f32.xlu1 %v5622_v34  ;;  %v1939_v55 = vsel %vm1938_vm13, %v1934_v1, inf  ;;  %v5655_v39 = vcvt.s32.f32 %v1779_v31  ;;  %8122 = vst [vmem:[#allocation257_spill] sm:$0xff] %v5658_v21 }
 0x2ae   :  { %782 = vadd.xlane.f32.xlu2 %v5628_v37 }
 0x2af   :  { %v3684_v19 = vpop.eup %3683  ;;  %8121 = vst [vmem:[#allocation256_spill] sm:$0xff] %v5655_v39 }
 0x2b0   :  { %v5639_v53 = vpop.xlane.xlu0 %1310  ;;  %v5641_v44 = vpop.xlane.xlu1 %756  ;;  %v1011_v37 = vmul.f32 0.6931472, %v3684_v19  ;;  %v2059_v19 = vshra.s32 %v5658_v21, 16 }
 0x2b1   :  { %8113 = vst [vmem:[#allocation131_spill] sm:$0xff] %v5639_v53  ;;  %v5646_v34 = vpop.xlane.xlu2 %1366  ;;  %3687 = vlog2.f32 %v5641_v44  ;;  %v5653_v53 = vcvt.s32.f32 %v1695_v43  ;;  %v3686_v56 = vpop.eup %3685  ;;  %v1498_v43 = vand.u32 65535, %v8126_v35 }
 0x2b2   :  { %8114 = vst [vmem:[#allocation255_spill] sm:$0xff] %v5641_v44  ;;  %v1124_v40 = vadd.f32 %v1011_v37, %v8124_v29  ;;  %v1015_v1 = vmul.f32 0.6931472, %v3686_v56  ;;  %v8129_v29 = vld [vmem:[#allocation218_spill] sm:$0xff]  ;;  %v5687_v21 = vcvt.s32.f32 %v2059_v19 }
 0x2b3   :  { %8117 = vst [vmem:[#allocation39_spill] sm:$0xff] %v5646_v34  ;;  %v8123_v34 = vld [vmem:[#allocation47_spill] sm:$0xff]  ;;  %vm1504_vm15 = vcmp.eq.f32.partialorder %v8129_v29, %v5500_v42  ;;  %v8132_v56 = vld [vmem:[#allocation22_spill] sm:$0xff] }
 0x2b4   :  { %8120 = vst [vmem:[#allocation136_spill] sm:$0xff] %v5653_v53  ;;  %v1848_v58 = vand.u32 65535, %v8123_v34  ;;  %v3008_v31 = vmul.f32 %v1124_v40, %v1124_v40  ;;  %v8131_v40 = vld [vmem:[#allocation63_spill] sm:$0xff] }
 0x2b5   :  { %1940 = vmin.xlane.f32.xlu0 %v1939_v55  ;;  %1698 = vmin.xlane.f32.xlu1 %v5653_v53  ;;  %8125 = vst [vmem:[#allocation47_spill] sm:$0xff] %v5664_v46  ;;  %v1541_v55 = vshra.s32 %v5664_v46, 16  ;;  %vm1207_vm0 = vcmp.ge.f32.partialorder %v8132_v56, %v8131_v40  ;;  %v8139_v56 = vld [vmem:[#allocation135_spill] sm:$0xff] }
 0x2b6   :  { %1782 = vmin.xlane.f32.xlu2 %v5655_v39  ;;  %v1850_v37 = vcvt.s32.f32 %v1848_v58  ;;  %v3135_v53 = vadd.f32 %v5593_v0, %v3008_v31  ;;  %v1500_v39 = vcvt.s32.f32 %v1498_v43  ;;  %v8134_v58 = vld [vmem:[#allocation148_spill] sm:$0xff]  ;;  %v2100_v0 = vand.u32 65535, %v5243_v52 }
 0x2b7   :  { %v3688_v44 = vpop.eup %3687  ;;  %v5691_v42 = vcvt.s32.f32 %v1541_v55  ;;  %v5696_v43 = vsel %vm1207_vm0, %v4111_v4, 128 }
 0x2b8   :  { %v5669_v10 = vpop.xlane.xlu0 %1852  ;;  %v5671_v34 = vpop.xlane.xlu1 %1338  ;;  %v1013_v35 = vmul.f32 0.6931472, %v3688_v44  ;;  %v8135_v44 = vld [vmem:[#allocation110_spill] sm:$0xff]  ;;  %v1505_v29 = vsel %vm1504_vm15, %v1500_v39, inf  ;;  %8137 = vst [vmem:[#allocation22_spill] sm:$0xff] %v5696_v43 }
 0x2b9   :  { %8127 = vst [vmem:[#allocation142_spill] sm:$0xff] %v5669_v10  ;;  %v5677_v32 = vpop.xlane.xlu2 %764  ;;  %vm1854_vm1 = vcmp.eq.f32.partialorder %v5232_v11, %v5669_v10  ;;  %v1918_v31 = vand.u32 65535, %v8135_v44  ;;  %v2114_v11 = vand.u32 65535, %v5237_v20  ;;  %v8140_v39 = vld [vmem:[#allocation34_spill] sm:$0xff] }
 0x2ba   :  { %8128 = vst [vmem:[#allocation214_spill] sm:$0xff] %v5671_v34  ;;  %v5683_v47 = vsel %vm1854_vm1, %v1850_v37, inf  ;;  %v8133_v34 = vld [vmem:[#allocation167_spill] sm:$0xff]  ;;  %v1125_v8 = vadd.f32 %v1013_v35, %v8134_v58  ;;  %v2102_v35 = vcvt.s32.f32 %v2100_v0  ;;  %vm1227_vm2 = vcmp.ge.f32.partialorder %v8140_v39, %v8139_v56 }
 0x2bb   :  { %8130 = vst [vmem:[#allocation218_spill] sm:$0xff] %v5677_v32  ;;  %v1126_v46 = vadd.f32 %v1015_v1, %v8133_v34  ;;  %v8138_v1 = vld [vmem:[#allocation219_spill] sm:$0xff]  ;;  %v1765_v58 = vshra.s32 %v5696_v43, 16  ;;  %v2116_v44 = vcvt.s32.f32 %v2114_v11 }
 0x2bc   :  { %8136 = vst [vmem:[#allocation63_spill] sm:$0xff] %v5691_v42  ;;  %v3009_v10 = vmul.f32 %v1125_v8, %v1125_v8  ;;  %v1512_v37 = vand.u32 65535, %v8138_v1  ;;  %v1920_v8 = vcvt.s32.f32 %v1918_v31 }
 0x2bd   :  { %2062 = vmin.xlane.f32.xlu0 %v5687_v21  ;;  %1506 = vmin.xlane.f32.xlu1 %v1505_v29  ;;  %v3010_v19 = vmul.f32 %v1126_v46, %v1126_v46  ;;  %v8143_v29 = vld [vmem:[#allocation224_spill] sm:$0xff]  ;;  %v8147_v46 = vld [vmem:[#allocation66_spill] sm:$0xff] }
 0x2be   :  { %1544 = vmin.xlane.f32.xlu2 %v5691_v42  ;;  %v3136_v52 = vadd.f32 %v3135_v53, %v3009_v10  ;;  %vm1518_vm3 = vcmp.eq.f32.partialorder %v8143_v29, %v5529_v2  ;;  %v8145_v10 = vld [vmem:[#allocation201_spill] sm:$0xff]  ;;  %v8146_v53 = vld [vmem:[#allocation116_spill] sm:$0xff]  ;;  %vm1190_vm6 = vcmp.ge.f32.partialorder %v8147_v46, %v8133_v34  ;;  %v1514_v0 = vcvt.s32.f32 %v1512_v37 }
 0x2bf   :  { %vm1924_vm5 = vcmp.eq.f32.partialorder %v8146_v53, %v8145_v10  ;;  %v5724_v29 = vcvt.s32.f32 %v1765_v58 }
 0x2c0   :  { %v5702_v55 = vpop.xlane.xlu0 %760  ;;  %v5704_v20 = vpop.xlane.xlu1 %2118  ;;  %v3137_v42 = vadd.f32 %v3136_v52, %v3010_v19  ;;  %v1925_v19 = vsel %vm1924_vm5, %v1920_v8, inf  ;;  %v1519_v52 = vsel %vm1518_vm3, %v1514_v0, inf }
 0x2c1   :  { %8141 = vst [vmem:[#allocation167_spill] sm:$0xff] %v5702_v55  ;;  %v5709_v1 = vpop.xlane.xlu2 %2104  ;;  %vm2120_vm4 = vcmp.eq.f32.partialorder %v5256_v24, %v5704_v20  ;;  %3689 = vlog2.f32 %v5702_v55  ;;  %v5730_v24 = vsel %vm1227_vm2, %v4111_v4, 128 }
 0x2c2   :  { %8142 = vst [vmem:[#allocation148_spill] sm:$0xff] %v5704_v20  ;;  %vm2106_vm7 = vcmp.eq.f32.partialorder %v5262_v6, %v5709_v1  ;;  %v5720_v31 = vsel %vm2120_vm4, %v2116_v44, inf  ;;  %v5733_v6 = vsel %vm1190_vm6, %v4111_v4, 128  ;;  %3691 = vlog2.f32 %v5677_v32  ;;  %v8153_v32 = vld [vmem:[#allocation97_spill] sm:$0xff] }
 0x2c3   :  { %8144 = vst [vmem:[#allocation110_spill] sm:$0xff] %v5709_v1  ;;  %v5722_v11 = vsel %vm2106_vm7, %v2102_v35, inf  ;;  %v2045_v34 = vshra.s32 %v5730_v24, 16  ;;  %v1527_v39 = vshra.s32 %v5733_v6, 16  ;;  %v1904_v1 = vand.u32 65535, %v8153_v32 }
 0x2c4   :  { %8148 = vst [vmem:[#allocation219_spill] sm:$0xff] %v5724_v29 }
 0x2c5   :  { %1926 = vmin.xlane.f32.xlu0 %v1925_v19  ;;  %1520 = vmin.xlane.f32.xlu1 %v1519_v52  ;;  %v5747_v46 = vcvt.s32.f32 %v2045_v34  ;;  %v5749_v19 = vcvt.s32.f32 %v1527_v39  ;;  %v1834_v52 = vand.u32 65535, %v5301_v22  ;;  %v8155_v39 = vld [vmem:[#allocation52_spill] sm:$0xff]  ;;  %v8157_v22 = vld [vmem:[#allocation133_spill] sm:$0xff]  ;;  %v1906_v43 = vcvt.s32.f32 %v1904_v1 }
 0x2c6   :  { %1768 = vmin.xlane.f32.xlu2 %v5724_v29 }
 0x2c7   :  { %v3690_v37 = vpop.eup %3689  ;;  %8151 = vst [vmem:[#allocation201_spill] sm:$0xff] %v5747_v46 }
 0x2c8   :  { %v5738_v35 = vpop.xlane.xlu0 %1352  ;;  %v5740_v8 = vpop.xlane.xlu1 %762  ;;  %v1017_v58 = vmul.f32 0.6931472, %v3690_v37  ;;  %8152 = vst [vmem:[#allocation116_spill] sm:$0xff] %v5749_v19  ;;  %v1596_v37 = vand.u32 65535, %v5305_v50  ;;  %v1836_v50 = vcvt.s32.f32 %v1834_v52 }
 0x2c9   :  { %8149 = vst [vmem:[#allocation34_spill] sm:$0xff] %v5738_v35  ;;  %v5743_v44 = vpop.xlane.xlu2 %1730  ;;  %3693 = vlog2.f32 %v5740_v8  ;;  %v3692_v0 = vpop.eup %3691  ;;  %v8156_v35 = vld [vmem:[#allocation19_spill] sm:$0xff] }
 0x2ca   :  { %8150 = vst [vmem:[#allocation224_spill] sm:$0xff] %v5740_v8  ;;  %v1127_v53 = vadd.f32 %v1017_v58, %v4870_v59  ;;  %v8154_v8 = vld [vmem:[#allocation225_spill] sm:$0xff]  ;;  %v1021_v34 = vmul.f32 0.6931472, %v3692_v0  ;;  %vm1206_vm8 = vcmp.ge.f32.partialorder %v8156_v35, %v8155_v39 }
 0x2cb   :  { %v1470_v59 = vand.u32 65535, %v8154_v8  ;;  %v8162_v8 = vld [vmem:[#allocation190_spill] sm:$0xff]  ;;  %v8164_v0 = vld [vmem:[#allocation229_spill] sm:$0xff] }
 0x2cc   :  { %v3011_v55 = vmul.f32 %v1127_v53, %v1127_v53  ;;  %v8158_v53 = vld [vmem:[#allocation36_spill] sm:$0xff]  ;;  %vm1476_vm12 = vcmp.eq.f32.partialorder %v8164_v0, %v5549_v3 }
 0x2cd   :  { %2048 = vmin.xlane.f32.xlu0 %v5747_v46  ;;  %1492 = vmin.xlane.f32.xlu1 %v5442_v49  ;;  %vm1226_vm9 = vcmp.ge.f32.partialorder %v8158_v53, %v8157_v22 }
 0x2ce   :  { %1530 = vmin.xlane.f32.xlu2 %v5749_v19  ;;  %v3138_v58 = vadd.f32 %v3137_v42, %v3011_v55  ;;  %v8163_v42 = vld [vmem:[#allocation102_spill] sm:$0xff]  ;;  %v1598_v55 = vcvt.s32.f32 %v1596_v37  ;;  %v5786_v37 = vsel %vm1206_vm8, %v4111_v4, 128 }
 0x2cf   :  { %v3694_v20 = vpop.eup %3693  ;;  %vm1910_vm11 = vcmp.eq.f32.partialorder %v8163_v42, %v8162_v8 }
 0x2d0   :  { %v5762_v56 = vpop.xlane.xlu0 %1838  ;;  %v5764_v49 = vpop.xlane.xlu1 %1380  ;;  %v1019_v29 = vmul.f32 0.6931472, %v3694_v20  ;;  %v1129_v20 = vadd.f32 %v1021_v34, %v5005_v16  ;;  %v1820_v16 = vand.u32 65535, %v5331_v26  ;;  %v1751_v34 = vshra.s32 %v5786_v37, 16 }
 0x2d1   :  { %8159 = vst [vmem:[#allocation66_spill] sm:$0xff] %v5762_v56  ;;  %v5766_v32 = vpop.xlane.xlu2 %1600  ;;  %vm1840_vm10 = vcmp.eq.f32.partialorder %v5326_v14, %v5762_v56  ;;  %v1911_v14 = vsel %vm1910_vm11, %v1906_v43, inf  ;;  %v8165_v43 = vld [vmem:[#allocation49_spill] sm:$0xff]  ;;  %v8181_v56 = vld [vmem:[#allocation182_spill] sm:$0xff] }
 0x2d2   :  { %8160 = vst [vmem:[#allocation97_spill] sm:$0xff] %v5764_v49  ;;  %vm1602_vm13 = vcmp.eq.f32.partialorder %v5328_v5, %v5766_v32  ;;  %v5776_v19 = vsel %vm1840_vm10, %v1836_v50, inf  ;;  %v1128_v52 = vadd.f32 %v1019_v29, %v4943_v60  ;;  %v1472_v49 = vcvt.s32.f32 %v1470_v59 }
 0x2d3   :  { %8161 = vst [vmem:[#allocation225_spill] sm:$0xff] %v5766_v32  ;;  %v5780_v46 = vsel %vm1602_vm13, %v1598_v55, inf  ;;  %v5792_v5 = vsel %vm1226_vm9, %v4111_v4, 128  ;;  %v1876_v29 = vand.u32 65535, %v8165_v43  ;;  %v3013_v59 = vmul.f32 %v1129_v20, %v1129_v20  ;;  %v8172_v20 = vld [vmem:[#allocation55_spill] sm:$0xff] }
 0x2d4   :  { %v3012_v1 = vmul.f32 %v1128_v52, %v1128_v52  ;;  %v1477_v60 = vsel %vm1476_vm12, %v1472_v49, inf  ;;  %v2031_v50 = vshra.s32 %v5792_v5, 16  ;;  %v1822_v55 = vcvt.s32.f32 %v1820_v16  ;;  %v8170_v49 = vld [vmem:[#allocation29_spill] sm:$0xff] }
 0x2d5   :  { %1912 = vmin.xlane.f32.xlu0 %v1911_v14  ;;  %2192 = vmin.xlane.f32.xlu1 %v5291_v18  ;;  %v8169_v18 = vld [vmem:[#allocation120_spill] sm:$0xff]  ;;  %v5815_v14 = vcvt.s32.f32 %v1751_v34  ;;  %v1878_v16 = vcvt.s32.f32 %v1876_v29  ;;  %v8177_v34 = vld [vmem:[#allocation125_spill] sm:$0xff] }
 0x2d6   :  { %1478 = vmin.xlane.f32.xlu2 %v1477_v60  ;;  %v3139_v35 = vadd.f32 %v3138_v58, %v3012_v1  ;;  %vm1224_vm15 = vcmp.ge.f32.partialorder %v8170_v49, %v8169_v18  ;;  %v8171_v58 = vld [vmem:[#allocation155_spill] sm:$0xff]  ;;  %v5817_v1 = vcvt.s32.f32 %v2031_v50  ;;  %v1971_v60 = vcvt.f32.s32 %v5197_v28  ;;  %v8176_v49 = vld [vmem:[#allocation146_spill] sm:$0xff] }
 0x2d7   :  { %vm1882_vm1 = vcmp.eq.f32.partialorder %v8172_v20, %v8171_v58  ;;  %8173 = vst [vmem:[#allocation190_spill] sm:$0xff] %v5815_v14  ;;  %v5823_v43 = vsel %vm1224_vm15, %v4111_v4, 128  ;;  %v8178_v20 = vld [vmem:[#allocation30_spill] sm:$0xff] }
 0x2d8   :  { %v5799_v42 = vpop.xlane.xlu0 %766  ;;  %v5801_v53 = vpop.xlane.xlu1 %1824  ;;  %v5805_v0 = vadd.f32 %v3139_v35, %v3013_v59  ;;  %8174 = vst [vmem:[#allocation102_spill] sm:$0xff] %v5823_v43  ;;  %v8175_v59 = vld [vmem:[#allocation83_spill] sm:$0xff]  ;;  %vm1225_vm0 = vcmp.ge.f32.partialorder %v8178_v20, %v8177_v34  ;;  %v2003_v28 = vshra.s32 %v5823_v43, 16  ;;  %v1972_v32 = vshll.u32 %v1971_v60, 16 }
 0x2d9   :  { %8166 = vst [vmem:[#allocation52_spill] sm:$0xff] %v5799_v42  ;;  %v5803_v26 = vpop.xlane.xlu2 %1408  ;;  %vm1826_vm14 = vcmp.eq.f32.partialorder %v5352_v61, %v5801_v53  ;;  %v1883_v61 = vsel %vm1882_vm1, %v1878_v16, inf  ;;  %v1890_v35 = vand.u32 65535, %v8175_v59  ;;  %v8184_v59 = vld [vmem:[#allocation152_spill] sm:$0xff]  ;;  %v5843_v43 = vsel %vm1225_vm0, %v4111_v4, 128 }
 0x2da   :  { %8167 = vst [vmem:[#allocation19_spill] sm:$0xff] %v5801_v53  ;;  %v5813_v52 = vsel %vm1826_vm14, %v1822_v55, inf  ;;  %v2170_v55 = vand.u32 65535, %v8176_v49  ;;  %v1747_v60 = vcvt.f32.s32 %v8041_v48  ;;  %3695 = vlog2.f32 %v5799_v42 }
 0x2db   :  { %8168 = vst [vmem:[#allocation36_spill] sm:$0xff] %v5803_v26  ;;  %v8182_v26 = vld [vmem:[#allocation89_spill] sm:$0xff]  ;;  %v1892_v49 = vcvt.s32.f32 %v1890_v35 }
 0x2dc   :  { %vm1896_vm2 = vcmp.eq.f32.partialorder %v8182_v26, %v8181_v56  ;;  %v7651_v26 = vmov 1.0  }
 0x2dd   :  { %1754 = vmin.xlane.f32.xlu0 %v5815_v14  ;;  %2034 = vmin.xlane.f32.xlu1 %v5817_v1  ;;  %v8183_v14 = vld [vmem:[#allocation228_spill] sm:$0xff]  ;;  %v1897_v20 = vsel %vm1896_vm2, %v1892_v49, inf }
 0x2de   :  { %1884 = vmin.xlane.f32.xlu2 %v1883_v61  ;;  %vm2176_vm3 = vcmp.eq.f32.partialorder %v8184_v59, %v8183_v14  ;;  %v2172_v61 = vcvt.s32.f32 %v2170_v55  ;;  %v8188_v55 = vld [vmem:[#allocation161_spill] sm:$0xff]  ;;  %v1732_v59 = vcvt.f32.s32 %v5743_v44 }
 0x2df   :  { %v8192_v14 = vld [vmem:[#allocation137_spill] sm:$0xff] }
 0x2e0   :  { %v5829_v50 = vpop.xlane.xlu0 %1394  ;;  %v1969_v29 = vpop.xlane.xlu1 %1968  ;;  %v2177_v34 = vsel %vm2176_vm3, %v2172_v61, inf }
 0x2e1   :  { %8179 = vst [vmem:[#allocation229_spill] sm:$0xff] %v5829_v50  ;;  %v5832_v53 = vpop.xlane.xlu2 %1614  ;;  %v1970_v16 = vcvt.f32.s32 %v1969_v29  ;;  %v5840_v50 = vcvt.s32.f32 %v2003_v28  ;;  %v1733_v29 = vcvt.f32.s32 %v8188_v55  ;;  %v2017_v28 = vshra.s32 %v5843_v43, 16 }
 0x2e2   :  { %8180 = vst [vmem:[#allocation49_spill] sm:$0xff] %v5832_v53  ;;  %vm1616_vm10 = vcmp.eq.f32.partialorder %v5383_v51, %v5832_v53 }
 0x2e3   :  { %v5838_v22 = vadd.s32 %v1972_v32, %v1970_v16  ;;  %8186 = vst [vmem:[#allocation155_spill] sm:$0xff] %v5840_v50  ;;  %v8187_v32 = vld [vmem:[#allocation132_spill] sm:$0xff] }
 0x2e4   :  { %v2142_v35 = vand.u32 65535, %v8187_v32  ;;  %v5865_v32 = vcvt.s32.f32 %v2017_v28 }
 0x2e5   :  { %8185 = vst [vmem:[#allocation29_spill] sm:$0xff] %v5838_v22  ;;  %1898 = vmin.xlane.f32.xlu0 %v1897_v20  ;;  %2178 = vmin.xlane.f32.xlu1 %v2177_v34  ;;  %vm7688_vm4 = vcmp.eq.s32.totalorder %v4111_v4, %v5838_v22  ;;  %v1748_v34 = vshll.u32 %v1747_v60, 16  ;;  %v8191_v20 = vld [vmem:[#allocation215_spill] sm:$0xff]  ;;  %v1734_v22 = vshll.u32 %v1733_v29, 16  ;;  %v8196_v60 = vld [vmem:[#allocation164_spill] sm:$0xff]  ;;  %v8197_v29 = vmov 1.0  }
 0x2e6   :  { %2006 = vmin.xlane.f32.xlu2 %v5840_v50  ;;  %3354 = vmatpush.xpose.msk.msrb.mxu3 %vm7688_vm4, %v7651_v26  ;;  %vm2148_vm5 = vcmp.eq.f32.partialorder %v8192_v14, %v8191_v20  ;;  %8194 = vst [vmem:[#allocation30_spill] sm:$0xff] %v5865_v32  ;;  %v2144_v55 = vcvt.s32.f32 %v2142_v35  ;;  %v1425_v50 = vcvt.f32.s32 %v5313_v62  ;;  %v2156_v14 = vand.u32 65535, %v8196_v60  ;;  %v8198_v35 = vld [vmem:[#allocation112_spill] sm:$0xff] }
 0x2e7   :  { %v5868_v18 = vadd.s32 %v1734_v22, %v1732_v59  ;;  %v8199_v62 = vld [vmem:[#allocation28_spill] sm:$0xff]  ;;  %v8202_v59 = vld [vmem:[#allocation41_spill] sm:$0xff] }
 0x2e8   :  { %v1745_v48 = vpop.xlane.xlu0 %1744  ;;  %v5856_v16 = vpop.xlane.xlu1 %768  ;;  %v2149_v44 = vsel %vm2148_vm5, %v2144_v55, inf  ;;  %vm1223_vm7 = vcmp.ge.f32.partialorder %v8199_v62, %v8198_v35  ;;  %v2158_v55 = vcvt.s32.f32 %v2156_v14  ;;  %v8206_v62 = vld [vmem:[#allocation21_spill] sm:$0xff] }
 0x2e9   :  { %8189 = vst [vmem:[#allocation55_spill] sm:$0xff] %v5856_v16  ;;  %v5859_v49 = vpop.xlane.xlu2 %770  ;;  %v1746_v61 = vcvt.f32.s32 %v1745_v48  ;;  %v1426_v48 = vshll.u32 %v1425_v50, 16  ;;  %vm2228_vm8 = vcmp.eq.s32.totalorder %v4111_v4, %v5868_v18  ;;  %v5896_v50 = vsel %vm1223_vm7, %v4111_v4, 128 }
 0x2ea   :  { %8190 = vst [vmem:[#allocation83_spill] sm:$0xff] %v5859_v49  ;;  %3697 = vlog2.f32 %v5856_v16  ;;  %v8223_v16 = vld [vmem:[#allocation154_spill] sm:$0xff] }
 0x2eb   :  { %v5863_v26 = vadd.s32 %v1748_v34, %v1746_v61  ;;  %8195 = vst [vmem:[#allocation182_spill] sm:$0xff] %v5868_v18  ;;  %v8203_v61 = vld [vmem:[#allocation169_spill] sm:$0xff]  ;;  %3699 = vlog2.f32 %v5859_v49 }
 0x2ec   :  { %vm2162_vm9 = vcmp.eq.f32.partialorder %v8203_v61, %v8202_v59  ;;  %8205 = vst [vmem:[#allocation161_spill] sm:$0xff] %v5896_v50  ;;  %v8207_v61 = vld [vmem:[#allocation72_spill] sm:$0xff] }
 0x2ed   :  { %8193 = vst [vmem:[#allocation146_spill] sm:$0xff] %v5863_v26  ;;  %2020 = vmin.xlane.f32.xlu0 %v5865_v32  ;;  %1464 = vmin.xlane.f32.xlu1 %v5471_v45  ;;  %vm2229_vm6 = vcmp.eq.s32.totalorder %v4111_v4, %v5863_v26  ;;  %v2163_v60 = vsel %vm2162_vm9, %v2158_v55, inf  ;;  %v1610_v26 = vand.u32 65535, %v8207_v61  ;;  %v8210_v55 = vld [vmem:[#allocation62_spill] sm:$0xff]  ;;  %v8256_v32 = vld [vmem:[#allocation121_spill] sm:$0xff] }
 0x2ee   :  { %2150 = vmin.xlane.f32.xlu2 %v2149_v44  ;;  %3338 = vmatpush.xpose.msk.msrb.mxu2 %vm2229_vm6, %v8197_v29 }
 0x2f0   :  { %v5881_v22 = vpop.xlane.xlu0 %1586  ;;  %v1423_v28 = vpop.xlane.xlu1 %1422 }
 0x2f1   :  { %8200 = vst [vmem:[#allocation89_spill] sm:$0xff] %v5881_v22  ;;  %v5883_v45 = vpop.xlane.xlu2 %1628  ;;  %v1424_v34 = vcvt.f32.s32 %v1423_v28  ;;  %v1989_v28 = vshra.s32 %v5896_v50, 16 }
 0x2f2   :  { %8201 = vst [vmem:[#allocation152_spill] sm:$0xff] %v5883_v45  ;;  %3339 = vmatpush.xpose.msk.msrb.mxu2 %vm2228_vm8, %v8197_v29  ;;  %vm1630_vm11 = vcmp.eq.f32.partialorder %v5446_v54, %v5883_v45  ;;  %v8216_v54 = vld [vmem:[#allocation99_spill] sm:$0xff]  ;;  %v8241_v45 = vld [vmem:[#allocation32_spill] sm:$0xff] }
 0x2f3   :  { %v5893_v44 = vadd.s32 %v1426_v48, %v1424_v34  ;;  %v5910_v48 = vcvt.s32.f32 %v1989_v28  ;;  %v1612_v34 = vcvt.s32.f32 %v1610_v26 }
 0x2f5   :  { %8204 = vst [vmem:[#allocation132_spill] sm:$0xff] %v5893_v44  ;;  %2164 = vmin.xlane.f32.xlu0 %v2163_v60  ;;  %1870 = vmin.xlane.f32.xlu1 %v5473_v36  ;;  %v1806_v36 = vand.u32 65535, %v5485_v27  ;;  %v1617_v60 = vsel %vm1616_vm10, %v1612_v34, inf  ;;  %v1638_v34 = vand.u32 65535, %v5480_v23 }
 0x2f6   :  { %1436 = vmin.xlane.f32.xlu2 %v8206_v62  ;;  %8209 = vst [vmem:[#allocation164_spill] sm:$0xff] %v5910_v48  ;;  %v1624_v62 = vand.u32 65535, %v5413_v15  ;;  %v1652_v15 = vand.u32 65535, %v5510_v30 }
 0x2f7   :  { %v1808_v44 = vcvt.s32.f32 %v1806_v36  ;;  %v1640_v30 = vcvt.s32.f32 %v1638_v34 }
 0x2f8   :  { %v5902_v20 = vpop.xlane.xlu0 %772  ;;  %v5904_v18 = vpop.xlane.xlu1 %2090  ;;  %v1626_v27 = vcvt.s32.f32 %v1624_v62 }
 0x2f9   :  { %8208 = vst [vmem:[#allocation137_spill] sm:$0xff] %v5902_v20  ;;  %v5906_v14 = vpop.xlane.xlu2 %1572  ;;  %3701 = vlog2.f32 %v5902_v20 }
 0x2fa   :  { %v1631_v28 = vsel %vm1630_vm11, %v1626_v27, inf  ;;  %v1719_v27 = vcvt.f32.s32 %v8084_v38 }
 0x2fd   :  { %1450 = vmin.xlane.f32.xlu0 %v8210_v55  ;;  %1992 = vmin.xlane.f32.xlu1 %v5910_v48 }
 0x2fe   :  { %1618 = vmin.xlane.f32.xlu2 %v1617_v60  ;;  %v8217_v60 = vld [vmem:[#allocation27_spill] sm:$0xff] }
 0x2ff   :  { %vm1222_vm13 = vcmp.ge.f32.partialorder %v8217_v60, %v8216_v54  ;;  %v1720_v60 = vshll.u32 %v1719_v27, 16  ;;  %v1680_v27 = vand.u32 65535, %v5567_v17 }
 0x300   :  { %v5916_v61 = vpop.xlane.xlu0 %1810  ;;  %v5918_v59 = vpop.xlane.xlu1 %1642  ;;  %v5946_v62 = vsel %vm1222_vm13, %v4111_v4, 128 }
 0x301   :  { %8211 = vst [vmem:[#allocation112_spill] sm:$0xff] %v5916_v61  ;;  %v5922_v51 = vpop.xlane.xlu2 %776  ;;  %vm1812_vm12 = vcmp.eq.f32.partialorder %v5505_v57, %v5916_v61  ;;  %vm1644_vm14 = vcmp.eq.f32.partialorder %v5507_v33, %v5918_v59  ;;  %v1666_v33 = vand.u32 65535, %v5515_v7 }
 0x302   :  { %8212 = vst [vmem:[#allocation28_spill] sm:$0xff] %v5918_v59  ;;  %v5926_v26 = vsel %vm1812_vm12, %v1808_v44, inf  ;;  %v1645_v44 = vsel %vm1644_vm14, %v1640_v30, inf }
 0x303   :  { %8213 = vst [vmem:[#allocation169_spill] sm:$0xff] %v5922_v51  ;;  %v1668_v30 = vcvt.s32.f32 %v1666_v33 }
 0x304   :  { %8219 = vst [vmem:[#allocation99_spill] sm:$0xff] %v5946_v62 }
 0x305   :  { %1632 = vmin.xlane.f32.xlu0 %v1631_v28  ;;  %2136 = vmin.xlane.f32.xlu1 %v5618_v41  ;;  %v1654_v41 = vcvt.s32.f32 %v1652_v15  ;;  %v3696_v28 = vpop.eup %3695 }
 0x306   :  { %v1023_v7 = vmul.f32 0.6931472, %v3696_v28 }
 0x308   :  { %v5931_v36 = vpop.xlane.xlu0 %1656  ;;  %v5933_v55 = vpop.xlane.xlu1 %774 }
 0x309   :  { %8214 = vst [vmem:[#allocation21_spill] sm:$0xff] %v5931_v36  ;;  %v5939_v57 = vpop.xlane.xlu2 %1670  ;;  %vm1658_vm15 = vcmp.eq.f32.partialorder %v5537_v25, %v5931_v36  ;;  %v1975_v25 = vshra.s32 %v5946_v62, 16  ;;  %3703 = vlog2.f32 %v5933_v55  ;;  %v8242_v36 = vld [vmem:[#allocation177_spill] sm:$0xff] }
 0x30a   :  { %8215 = vst [vmem:[#allocation72_spill] sm:$0xff] %v5933_v55  ;;  %v1659_v23 = vsel %vm1658_vm15, %v1654_v41, inf  ;;  %vm1672_vm1 = vcmp.eq.f32.partialorder %v5539_v63, %v5939_v57  ;;  %v1957_v63 = vcvt.f32.s32 %v5176_v9  ;;  %3705 = vlog2.f32 %v8223_v16 }
 0x30b   :  { %8218 = vst [vmem:[#allocation62_spill] sm:$0xff] %v5939_v57  ;;  %1660 = vmin.xlane.f32.xlu2 %v1659_v23  ;;  %v5962_v42 = vcvt.s32.f32 %v1975_v25  ;;  %v1130_v9 = vadd.f32 %v1023_v7, %v5007_v12  ;;  %3707 = vlog2.f32 %v5922_v51  ;;  %v8226_v7 = vld [vmem:[#allocation119_spill] sm:$0xff] }
 0x30c   :  { %v1958_v28 = vshll.u32 %v1957_v63, 16  ;;  %v2086_v63 = vand.u32 65535, %v8226_v7 }
 0x30d   :  { %1856 = vmin.xlane.f32.xlu0 %v5683_v47  ;;  %1646 = vmin.xlane.f32.xlu1 %v1645_v44  ;;  %v3698_v47 = vpop.eup %3697  ;;  %v1673_v44 = vsel %vm1672_vm1, %v1668_v30, inf  ;;  %8222 = vst [vmem:[#allocation259_spill] sm:$0xff] %v5962_v42  ;;  %v8225_v30 = vld [vmem:[#allocation231_spill] sm:$0xff] }
 0x30e   :  { %v3700_v33 = vpop.eup %3699 }
 0x30f   :  { %v3702_v25 = vpop.eup %3701  ;;  %v1027_v55 = vmul.f32 0.6931472, %v3700_v33 }
 0x310   :  { %v5954_v15 = vpop.xlane.xlu0 %778  ;;  %v1717_v34 = vpop.xlane.xlu1 %1716 }
 0x311   :  { %8220 = vst [vmem:[#allocation27_spill] sm:$0xff] %v5954_v15  ;;  %v5957_v41 = vpop.xlane.xlu2 %1796  ;;  %v1718_v38 = vcvt.f32.s32 %v1717_v34  ;;  %v1025_v34 = vmul.f32 0.6931472, %v3698_v47  ;;  %v3704_v20 = vpop.eup %3703  ;;  %3709 = vlog2.f32 %v5954_v15 }
 0x312   :  { %v3706_v16 = vpop.eup %3705  ;;  %v1031_v53 = vmul.f32 0.6931472, %v3704_v20  ;;  %v8233_v20 = vld [vmem:[#allocation235_spill] sm:$0xff] }
 0x313   :  { %v5960_v23 = vadd.s32 %v1720_v60, %v1718_v38  ;;  %1674 = vmin.xlane.f32.xlu2 %v1673_v44  ;;  %v1682_v38 = vcvt.s32.f32 %v1680_v27  ;;  %v1131_v47 = vadd.f32 %v1025_v34, %v8225_v30  ;;  %v1029_v27 = vmul.f32 0.6931472, %v3702_v25  ;;  %v8228_v34 = vld [vmem:[#allocation257_spill] sm:$0xff]  ;;  %v8229_v30 = vld [vmem:[#allocation127_spill] sm:$0xff]  ;;  %v8231_v25 = vld [vmem:[#allocation234_spill] sm:$0xff] }
 0x314   :  { %v1792_v51 = vand.u32 65535, %v8229_v30 }
 0x315   :  { %8221 = vst [vmem:[#allocation258_spill] sm:$0xff] %v5960_v23  ;;  %1978 = vmin.xlane.f32.xlu0 %v5962_v42  ;;  %vm2227_vm0 = vcmp.eq.s32.totalorder %v4111_v4, %v5960_v23  ;;  %v3014_v23 = vmul.f32 %v1130_v9, %v1130_v9  ;;  %v3015_v33 = vmul.f32 %v1131_v47, %v1131_v47  ;;  %v1041_v9 = vmul.f32 0.6931472, %v3706_v16 }
 0x316   :  { %3340 = vmatpush.xpose.msk.msrb.mxu2 %vm2227_vm0, %v8197_v29  ;;  %v1133_v7 = vadd.f32 %v1029_v27, %v8233_v20  ;;  %v8238_v27 = vld [vmem:[#allocation162_spill] sm:$0xff]  ;;  %v8239_v20 = vld [vmem:[#allocation80_spill] sm:$0xff] }
 0x317   :  { %v3141_v47 = vadd.f32 %v5805_v0, %v3014_v23  ;;  %v8237_v0 = vld [vmem:[#allocation176_spill] sm:$0xff]  ;;  %vm1588_vm5 = vcmp.eq.f32.partialorder %v8238_v27, %v5881_v22  ;;  %v1134_v30 = vadd.f32 %v1031_v53, %v8239_v20  ;;  %v1139_v59 = vadd.f32 %v1041_v9, %v8241_v45 }
 0x318   :  { %v1955_v60 = vpop.xlane.xlu0 %1954  ;;  %v5976_v17 = vpop.xlane.xlu1 %1684  ;;  %v8244_v27 = vld [vmem:[#allocation252_spill] sm:$0xff] }
 0x319   :  { %8224 = vst [vmem:[#allocation260_spill] sm:$0xff] %v5976_v17  ;;  %v5980_v44 = vpop.xlane.xlu2 %1558  ;;  %v1956_v49 = vcvt.f32.s32 %v1955_v60  ;;  %vm1686_vm2 = vcmp.eq.f32.partialorder %v5595_v13, %v5976_v17  ;;  %v2058_v60 = vand.u32 65535, %v8228_v34  ;;  %v8230_v13 = vld [vmem:[#allocation160_spill] sm:$0xff]  ;;  %v3142_v23 = vadd.f32 %v3141_v47, %v3015_v33  ;;  %v8243_v33 = vld [vmem:[#allocation35_spill] sm:$0xff] }
 0x31a   :  { %v1687_v12 = vsel %vm1686_vm2, %v1682_v38, inf  ;;  %3711 = vlog2.f32 %v8230_v13  ;;  %v2088_v38 = vcvt.s32.f32 %v2086_v63  ;;  %v3017_v63 = vmul.f32 %v1133_v7, %v1133_v7  ;;  %v8245_v45 = vld [vmem:[#allocation196_spill] sm:$0xff] }
 0x31b   :  { %v5986_v61 = vadd.s32 %v1958_v28, %v1956_v49  ;;  %1688 = vmin.xlane.f32.xlu1 %v1687_v12  ;;  %2122 = vmin.xlane.f32.xlu2 %v5720_v31  ;;  %v1132_v49 = vadd.f32 %v1027_v55, %v8231_v25  ;;  %v8232_v31 = vld [vmem:[#allocation100_spill] sm:$0xff]  ;;  %v3708_v12 = vpop.eup %3707  ;;  %v8236_v25 = vld [vmem:[#allocation233_spill] sm:$0xff]  ;;  %3713 = vlog2.f32 %v8237_v0  ;;  %v1943_v47 = vcvt.f32.s32 %v8243_v33  ;;  %v8247_v33 = vld [vmem:[#allocation18_spill] sm:$0xff] }
 0x31c   :  { %v1582_v28 = vand.u32 65535, %v8232_v31  ;;  %v3710_v16 = vpop.eup %3709  ;;  %v2072_v13 = vand.u32 65535, %v8236_v25  ;;  %v6013_v31 = vcvt.s32.f32 %v1792_v51  ;;  %3715 = vlog2.f32 %v8242_v36 }
 0x31d   :  { %8227 = vst [vmem:[#allocation231_spill] sm:$0xff] %v5986_v61  ;;  %1604 = vmin.xlane.f32.xlu0 %v5780_v46  ;;  %vm7687_vm3 = vcmp.eq.s32.totalorder %v4111_v4, %v5986_v61  ;;  %v8234_v46 = vld [vmem:[#allocation254_spill] sm:$0xff]  ;;  %v6010_v61 = vcvt.s32.f32 %v2058_v60  ;;  %v3016_v60 = vmul.f32 %v1132_v49, %v1132_v49  ;;  %v1033_v51 = vmul.f32 0.6931472, %v3708_v12 }
 0x31e   :  { %3355 = vmatpush.xpose.msk.msrb.mxu3 %vm7687_vm3, %v8197_v29  ;;  %v1584_v25 = vcvt.s32.f32 %v1582_v28  ;;  %v1035_v17 = vmul.f32 0.6931472, %v3710_v16  ;;  %v1694_v20 = vand.u32 65535, %v8244_v27  ;;  %v3018_v49 = vmul.f32 %v1134_v30, %v1134_v30  ;;  %v8246_v16 = vld [vmem:[#allocation207_spill] sm:$0xff] }
 0x31f   :  { %v3143_v9 = vadd.f32 %v3142_v23, %v3016_v60  ;;  %v6029_v28 = vcvt.s32.f32 %v2072_v13  ;;  %v6031_v12 = vmul.f32 %v1139_v59, %v1139_v59  ;;  %v8249_v27 = vld [vmem:[#allocation87_spill] sm:$0xff]  ;;  %v8250_v23 = vld [vmem:[#allocation33_spill] sm:$0xff]  ;;  %v8251_v13 = vld [vmem:[#allocation210_spill] sm:$0xff]  ;;  %v1944_v59 = vshll.u32 %v1943_v47, 16 }
 0x320   :  { %v6005_v15 = vpop.xlane.xlu0 %2076  ;;  %v6007_v55 = vpop.xlane.xlu1 %780  ;;  %v1589_v53 = vsel %vm1588_vm5, %v1584_v25, inf  ;;  %v8248_v25 = vld [vmem:[#allocation199_spill] sm:$0xff]  ;;  %v1136_v30 = vadd.f32 %v1035_v17, %v8250_v23  ;;  %v1696_v36 = vcvt.s32.f32 %v1694_v20  ;;  %v8254_v17 = vld [vmem:[#allocation136_spill] sm:$0xff] }
 0x321   :  { %8235 = vst [vmem:[#allocation119_spill] sm:$0xff] %v6007_v55  ;;  %v6019_v34 = vpop.xlane.xlu2 %782  ;;  %v3712_v57 = vpop.eup %3711  ;;  %vm2092_vm7 = vcmp.eq.f32.partialorder %v8248_v25, %v5904_v18 }
 0x322   :  { %8240 = vst [vmem:[#allocation257_spill] sm:$0xff] %v6019_v34  ;;  %3717 = vlog2.f32 %v6019_v34  ;;  %v6033_v7 = vmul.f32 0.6931472, %v3712_v57  ;;  %v3714_v34 = vpop.eup %3713  ;;  %v2093_v47 = vsel %vm2092_vm7, %v2088_v38, inf  ;;  %v3020_v62 = vmul.f32 %v1136_v30, %v1136_v30 }
 0x323   :  { %3719 = vlog2.f32 %v6007_v55  ;;  %2108 = vmin.xlane.f32.xlu2 %v5722_v11  ;;  %v1568_v55 = vand.u32 65535, %v8247_v33  ;;  %v3144_v11 = vadd.f32 %v3143_v9, %v3017_v63  ;;  %v3716_v60 = vpop.eup %3715  ;;  %v8253_v63 = vld [vmem:[#allocation212_spill] sm:$0xff] }
 0x324   :  { %3721 = vlog2.f32 %v8245_v45  ;;  %v1135_v45 = vadd.f32 %v1033_v51, %v8249_v27  ;;  %vm1574_vm9 = vcmp.eq.f32.partialorder %v8253_v63, %v5906_v14 }
 0x325   :  { %1590 = vmin.xlane.f32.xlu0 %v1589_v53  ;;  %3723 = vlog2.f32 %v8246_v16  ;;  %v8252_v16 = vld [vmem:[#allocation47_spill] sm:$0xff]  ;;  %v3145_v9 = vadd.f32 %v3144_v11, %v3018_v49  ;;  %v1570_v23 = vcvt.s32.f32 %v1568_v55  ;;  %v1043_v11 = vmul.f32 0.6931472, %v3714_v34  ;;  %v8259_v34 = vld [vmem:[#allocation141_spill] sm:$0xff] }
 0x326   :  { %3725 = vlog2.f32 %v8251_v13  ;;  %v1540_v0 = vand.u32 65535, %v8252_v16  ;;  %v3019_v13 = vmul.f32 %v1135_v45, %v1135_v45 }
 0x327   :  { %3727 = vlog2.f32 %v8256_v32  ;;  %v1575_v25 = vsel %vm1574_vm9, %v1570_v23, inf  ;;  %v1929_v23 = vcvt.f32.s32 %v8145_v10 }
 0x328   :  { %v1941_v53 = vpop.xlane.xlu0 %1940  ;;  %v6042_v57 = vpop.xlane.xlu1 %1698  ;;  %v3146_v38 = vadd.f32 %v3145_v9, %v3019_v13  ;;  %v8260_v9 = vld [vmem:[#allocation95_spill] sm:$0xff]  ;;  %v8268_v13 = vld [vmem:[#allocation165_spill] sm:$0xff] }
 0x329   :  { %v3718_v33 = vpop.eup %3717  ;;  %v1942_v22 = vcvt.f32.s32 %v1941_v53  ;;  %v6047_v42 = vpop.xlane.xlu2 %1782  ;;  %vm1700_vm10 = vcmp.eq.f32.partialorder %v8254_v17, %v6042_v57  ;;  %v1045_v53 = vmul.f32 0.6931472, %v3716_v60  ;;  %v1554_v60 = vand.u32 65535, %v8259_v34 }
 0x32a   :  { %v3720_v51 = vpop.eup %3719  ;;  %v1039_v27 = vmul.f32 0.6931472, %v3718_v33  ;;  %v1701_v20 = vsel %vm1700_vm10, %v1696_v36, inf  ;;  %v8257_v36 = vld [vmem:[#allocation48_spill] sm:$0xff]  ;;  %v8258_v33 = vld [vmem:[#allocation247_spill] sm:$0xff]  ;;  %3729 = vlog2.f32 %v8260_v9  ;;  %v1523_v9 = vcvt.f32.s32 %v5529_v2 }
 0x32b   :  { %v3722_v16 = vpop.eup %3721  ;;  %v1037_v48 = vmul.f32 0.6931472, %v3720_v51  ;;  %v6054_v50 = vadd.s32 %v1944_v59, %v1942_v22  ;;  %1702 = vmin.xlane.f32.xlu1 %v1701_v20  ;;  %2094 = vmin.xlane.f32.xlu2 %v2093_v47  ;;  %v6069_v59 = vcvt.s32.f32 %v1540_v0  ;;  %v8261_v51 = vld [vmem:[#allocation42_spill] sm:$0xff]  ;;  %v8262_v47 = vld [vmem:[#allocation51_spill] sm:$0xff]  ;;  %v1556_v34 = vcvt.s32.f32 %v1554_v60 }
 0x32c   :  { %v3724_v49 = vpop.eup %3723  ;;  %v1138_v55 = vadd.f32 %v1039_v27, %v8257_v36  ;;  %v1047_v30 = vmul.f32 0.6931472, %v3722_v16  ;;  %v1140_v27 = vadd.f32 %v1043_v11, %v8261_v51  ;;  %v1141_v20 = vadd.f32 %v1045_v53, %v8262_v47  ;;  %v8263_v16 = vld [vmem:[#allocation236_spill] sm:$0xff]  ;;  %v8264_v36 = vld [vmem:[#allocation117_spill] sm:$0xff]  ;;  %v8267_v51 = vld [vmem:[#allocation79_spill] sm:$0xff] }
 0x32d   :  { %8255 = vst [vmem:[#allocation127_spill] sm:$0xff] %v6054_v50  ;;  %v1137_v45 = vadd.f32 %v1037_v48, %v8258_v33  ;;  %1576 = vmin.xlane.f32.xlu0 %v1575_v25  ;;  %vm7686_vm11 = vcmp.eq.s32.totalorder %v4111_v4, %v6054_v50  ;;  %v3726_v22 = vpop.eup %3725  ;;  %v1051_v63 = vmul.f32 0.6931472, %v3724_v49  ;;  %v3147_v48 = vadd.f32 %v3146_v38, %v3020_v62  ;;  %v8265_v49 = vld [vmem:[#allocation163_spill] sm:$0xff]  ;;  %v8266_v53 = vld [vmem:[#allocation185_spill] sm:$0xff] }
 0x32e   :  { %3356 = vmatpush.xpose.msk.msrb.mxu3 %vm7686_vm11, %v8197_v29  ;;  %vm2078_vm12 = vcmp.eq.f32.partialorder %v8263_v16, %v6005_v15  ;;  %3731 = vlog2.f32 %v8264_v36  ;;  %vm1560_vm13 = vcmp.eq.f32.partialorder %v8265_v49, %v5980_v44  ;;  %v3022_v62 = vmul.f32 %v1138_v55, %v1138_v55  ;;  %v3728_v11 = vpop.eup %3727  ;;  %v8273_v49 = vld [vmem:[#allocation124_spill] sm:$0xff] }
 0x32f   :  { %v3021_v17 = vmul.f32 %v1137_v45, %v1137_v45  ;;  %3733 = vlog2.f32 %v8266_v53  ;;  %v1142_v10 = vadd.f32 %v1047_v30, %v8155_v39  ;;  %v1049_v45 = vmul.f32 0.6931472, %v3726_v22 }
 0x330   :  { %v6078_v25 = vpop.xlane.xlu0 %2062  ;;  %v6080_v0 = vpop.xlane.xlu1 %1506  ;;  %v1144_v47 = vadd.f32 %v1051_v63, %v8267_v51  ;;  %3735 = vlog2.f32 %v8268_v13  ;;  %v2079_v55 = vsel %vm2078_vm12, %v6029_v28, inf  ;;  %v1561_v39 = vsel %vm1560_vm13, %v1556_v34, inf  ;;  %v8270_v63 = vld [vmem:[#allocation205_spill] sm:$0xff] }
 0x331   :  { %v3148_v38 = vadd.f32 %v3147_v48, %v3021_v17  ;;  %v6085_v33 = vpop.xlane.xlu2 %1544  ;;  %v3024_v48 = vmul.f32 %v1140_v27, %v1140_v27  ;;  %v8269_v17 = vld [vmem:[#allocation186_spill] sm:$0xff]  ;;  %v3730_v22 = vpop.eup %3729  ;;  %v3025_v30 = vmul.f32 %v1141_v20, %v1141_v20  ;;  %v1930_v60 = vshll.u32 %v1929_v23, 16  ;;  %v8271_v27 = vld [vmem:[#allocation175_spill] sm:$0xff] }
 0x332   :  { %3737 = vlog2.f32 %v8269_v17  ;;  %v1053_v28 = vmul.f32 0.6931472, %v3728_v11  ;;  %v3026_v51 = vmul.f32 %v1142_v10, %v1142_v10  ;;  %v1055_v23 = vmul.f32 0.6931472, %v3730_v22 }
 0x333   :  { %v3149_v32 = vadd.f32 %v3148_v38, %v3022_v62  ;;  %1842 = vmin.xlane.f32.xlu1 %v5776_v19  ;;  %2080 = vmin.xlane.f32.xlu2 %v2079_v55  ;;  %3739 = vlog2.f32 %v8270_v63  ;;  %v1143_v19 = vadd.f32 %v1049_v45, %v8131_v40  ;;  %v8272_v62 = vld [vmem:[#allocation245_spill] sm:$0xff]  ;;  %v3028_v55 = vmul.f32 %v1144_v47, %v1144_v47 }
 0x334   :  { %3741 = vlog2.f32 %v8271_v27  ;;  %v1509_v2 = vcvt.f32.s32 %v8272_v62  ;;  %v3732_v38 = vpop.eup %3731  ;;  %v1524_v36 = vshll.u32 %v1523_v9, 16  ;;  %vm2064_vm14 = vcmp.eq.f32.partialorder %v5687_v21, %v6078_v25  ;;  %v8275_v9 = vld [vmem:[#allocation88_spill] sm:$0xff]  ;;  %v8279_v21 = vld [vmem:[#allocation38_spill] sm:$0xff] }
 0x335   :  { %v3150_v16 = vadd.f32 %v3149_v32, %v6031_v12  ;;  %1562 = vmin.xlane.f32.xlu0 %v1561_v39  ;;  %3743 = vlog2.f32 %v8273_v49  ;;  %v3734_v20 = vpop.eup %3733  ;;  %v1508_v32 = vcvt.f32.s32 %v6080_v0  ;;  %v8274_v39 = vld [vmem:[#allocation63_spill] sm:$0xff]  ;;  %v1057_v22 = vmul.f32 0.6931472, %v3732_v38 }
 0x336   :  { %v3736_v11 = vpop.eup %3735  ;;  %vm1546_vm15 = vcmp.eq.f32.partialorder %v8274_v39, %v6085_v33  ;;  %v1145_v13 = vadd.f32 %v1053_v28, %v8275_v9  ;;  %v1510_v27 = vshll.u32 %v1509_v2, 16  ;;  %v8278_v28 = vld [vmem:[#allocation81_spill] sm:$0xff] }
 0x337   :  { %v3151_v34 = vadd.f32 %v3150_v16, %v3024_v48  ;;  %v3027_v16 = vmul.f32 %v1143_v19, %v1143_v19  ;;  %v8277_v19 = vld [vmem:[#allocation93_spill] sm:$0xff]  ;;  %v1495_v2 = vcvt.f32.s32 %v8278_v28 }
 0x338   :  { %v1927_v40 = vpop.xlane.xlu0 %1926  ;;  %v1521_v12 = vpop.xlane.xlu1 %1520  ;;  %v1146_v38 = vadd.f32 %v1055_v23, %v8277_v19  ;;  %v8282_v23 = vand.u32 65535, %v5733_v6  ;;  %v8284_v9 = vld [vmem:[#allocation113_spill] sm:$0xff] }
 0x339   :  { %v3152_v45 = vadd.f32 %v3151_v34, %v3025_v30  ;;  %v1928_v10 = vcvt.f32.s32 %v1927_v40  ;;  %v6112_v47 = vpop.xlane.xlu2 %1768  ;;  %v1522_v62 = vcvt.f32.s32 %v1521_v12  ;;  %v3738_v48 = vpop.eup %3737  ;;  %v2065_v30 = vsel %vm2064_vm14, %v6010_v61, inf  ;;  %v8280_v61 = vld [vmem:[#allocation221_spill] sm:$0xff] }
 0x33a   :  { %v6115_v49 = vpop.eup %3739  ;;  %v1059_v40 = vmul.f32 0.6931472, %v3736_v11  ;;  %v6132_v12 = vadd.s32 %v1510_v27, %v1508_v32  ;;  %3745 = vlog2.f32 %v8280_v61  ;;  %v1528_v32 = vcvt.s32.f32 %v8282_v23  ;;  %v8289_v23 = vld [vmem:[#allocation56_spill] sm:$0xff] }
 0x33b   :  { %v3153_v0 = vadd.f32 %v3152_v45, %v3026_v51  ;;  %v6117_v63 = vadd.s32 %v1930_v60, %v1928_v10  ;;  %v6119_v17 = vadd.s32 %v1524_v36, %v1522_v62  ;;  %1828 = vmin.xlane.f32.xlu1 %v5813_v52  ;;  %v3742_v34 = vpop.eup %3741  ;;  %2066 = vmin.xlane.f32.xlu2 %v2065_v30  ;;  %v1547_v36 = vsel %vm1546_vm15, %v6069_v59, inf }
 0x33c   :  { %v3744_v60 = vpop.eup %3743  ;;  %v6140_v52 = vadd.f32 %v6033_v7, %v8279_v21  ;;  %v8281_v59 = vand.u32 65535, %v5730_v24  ;;  %v8283_v7 = vld [vmem:[#allocation106_spill] sm:$0xff]  ;;  %v3029_v45 = vmul.f32 %v1145_v13, %v1145_v13  ;;  %v1061_v39 = vmul.f32 0.6931472, %v3742_v34  ;;  %v8285_v24 = vld [vmem:[#allocation201_spill] sm:$0xff] }
 0x33d   :  { %8276 = vst [vmem:[#allocation234_spill] sm:$0xff] %v6117_v63  ;;  %v3154_v51 = vadd.f32 %v3153_v0, %v3027_v16  ;;  %1548 = vmin.xlane.f32.xlu0 %v1547_v36  ;;  %vm2213_vm1 = vcmp.eq.s32.totalorder %v4111_v4, %v6119_v17  ;;  %vm7685_vm2 = vcmp.eq.s32.totalorder %v4111_v4, %v6117_v63  ;;  %v1063_v16 = vmul.f32 0.6931472, %v3744_v60 }
 0x33e   :  { %3322 = vmatpush.xpose.msk.msrb.mxu1 %vm2213_vm1, %v8197_v29  ;;  %3357 = vmatpush.xpose.msk.msrb.mxu3 %vm7685_vm2, %v8197_v29  ;;  %v2046_v27 = vcvt.s32.f32 %v8281_v59  ;;  %v1147_v11 = vadd.f32 %v1057_v22, %v8283_v7  ;;  %v3030_v62 = vmul.f32 %v1146_v38, %v1146_v38  ;;  %v1148_v0 = vadd.f32 %v1059_v40, %v8284_v9  ;;  %v8286_v22 = vld [vmem:[#allocation116_spill] sm:$0xff]  ;;  %v8287_v40 = vld [vmem:[#allocation118_spill] sm:$0xff] }
 0x33f   :  { %v3155_v10 = vadd.f32 %v3154_v51, %v3028_v55  ;;  %v1496_v30 = vshll.u32 %v1495_v2, 16  ;;  %vm2212_vm7 = vcmp.eq.s32.totalorder %v4111_v4, %v6132_v12  ;;  %v1067_v13 = vmul.f32 0.6931472, %v3734_v20 }
 0x340   :  { %v6157_v19 = vpop.xlane.xlu0 %2048  ;;  %v1493_v28 = vpop.xlane.xlu1 %1492  ;;  %v1915_v55 = vcvt.f32.s32 %v8162_v8  ;;  %v3031_v38 = vmul.f32 %v1147_v11, %v1147_v11  ;;  %v1149_v2 = vadd.f32 %v1061_v39, %v8287_v40  ;;  %v1069_v59 = vmul.f32 0.6931472, %v3738_v48  ;;  %v8288_v8 = vld [vmem:[#allocation216_spill] sm:$0xff]  ;;  %v8291_v11 = vld [vmem:[#allocation50_spill] sm:$0xff] }
 0x341   :  { %v3156_v36 = vadd.f32 %v3155_v10, %v3029_v45  ;;  %vm2050_vm5 = vcmp.eq.f32.partialorder %v8285_v24, %v6157_v19  ;;  %v6161_v21 = vpop.xlane.xlu2 %1530  ;;  %v1494_v6 = vcvt.f32.s32 %v1493_v28  ;;  %v3746_v20 = vpop.eup %3745  ;;  %3747 = vlog2.f32 %v8288_v8  ;;  %v8290_v10 = vld [vmem:[#allocation126_spill] sm:$0xff] }
 0x342   :  { %vm1532_vm9 = vcmp.eq.f32.partialorder %v8286_v22, %v6161_v21  ;;  %3323 = vmatpush.xpose.msk.msrb.mxu1 %vm2212_vm7, %v8197_v29  ;;  %v2051_v34 = vsel %vm2050_vm5, %v2046_v27, inf  ;;  %v2195_v7 = vcvt.f32.s32 %v8289_v23  ;;  %v1150_v9 = vadd.f32 %v1063_v16, %v8290_v10 }
 0x343   :  { %v3157_v60 = vadd.f32 %v3156_v36, %v3030_v62  ;;  %v6173_v51 = vadd.s32 %v1496_v30, %v1494_v6  ;;  %1814 = vmin.xlane.f32.xlu1 %v5926_v26  ;;  %2052 = vmin.xlane.f32.xlu2 %v2051_v34  ;;  %v1533_v45 = vsel %vm1532_vm9, %v1528_v32, inf  ;;  %v3032_v28 = vmul.f32 %v1148_v0, %v1148_v0  ;;  %v8292_v26 = vld [vmem:[#allocation20_spill] sm:$0xff]  ;;  %v8293_v32 = vld [vmem:[#allocation138_spill] sm:$0xff]  ;;  %v8294_v0 = vld [vmem:[#allocation53_spill] sm:$0xff] }
 0x344   :  { %v1152_v39 = vadd.f32 %v1067_v13, %v8291_v11  ;;  %v1916_v62 = vshll.u32 %v1915_v55, 16  ;;  %3749 = vlog2.f32 %v8292_v26  ;;  %v1481_v48 = vcvt.f32.s32 %v5549_v3  ;;  %v8295_v36 = vld [vmem:[#allocation58_spill] sm:$0xff]  ;;  %v8296_v13 = vld [vmem:[#allocation239_spill] sm:$0xff] }
 0x345   :  { %v3158_v27 = vadd.f32 %v3157_v60, %v3031_v38  ;;  %1534 = vmin.xlane.f32.xlu0 %v1533_v45  ;;  %vm2211_vm10 = vcmp.eq.s32.totalorder %v4111_v4, %v6173_v51  ;;  %3751 = vlog2.f32 %v8293_v32  ;;  %v3033_v16 = vmul.f32 %v1149_v2, %v1149_v2  ;;  %v8309_v32 = vld [vmem:[#allocation94_spill] sm:$0xff] }
 0x346   :  { %3324 = vmatpush.xpose.msk.msrb.mxu1 %vm2211_vm10, %v8197_v29  ;;  %vm1798_vm12 = vcmp.eq.f32.partialorder %v8294_v0, %v5957_v41  ;;  %v1153_v24 = vadd.f32 %v1069_v59, %v8295_v36  ;;  %v1071_v6 = vmul.f32 0.6931472, %v6115_v49  ;;  %3753 = vlog2.f32 %v8296_v13  ;;  %v8300_v0 = vld [vmem:[#allocation59_spill] sm:$0xff] }
 0x347   :  { %v3159_v30 = vadd.f32 %v3158_v27, %v3032_v28  ;;  %v2196_v55 = vshll.u32 %v2195_v7, 16  ;;  %v3034_v34 = vmul.f32 %v1150_v9, %v1150_v9  ;;  %v3748_v45 = vpop.eup %3747  ;;  %v1073_v2 = vmul.f32 0.6931472, %v3746_v20 }
 0x348   :  { %v1913_v3 = vpop.xlane.xlu0 %1912  ;;  %v2193_v22 = vpop.xlane.xlu1 %2192  ;;  %v1482_v10 = vshll.u32 %v1481_v48, 16  ;;  %v1799_v59 = vsel %vm1798_vm12, %v6013_v31, inf  ;;  %v3035_v49 = vmul.f32 %v6140_v52, %v6140_v52  ;;  %v2030_v48 = vand.u32 65535, %v5792_v5 }
 0x349   :  { %v3160_v38 = vadd.f32 %v3159_v30, %v3033_v16  ;;  %v1914_v40 = vcvt.f32.s32 %v1913_v3  ;;  %v1479_v60 = vpop.xlane.xlu2 %1478  ;;  %v2194_v23 = vcvt.f32.s32 %v2193_v22  ;;  %v3036_v16 = vmul.f32 %v1152_v39, %v1152_v39  ;;  %v8299_v30 = vld [vmem:[#allocation77_spill] sm:$0xff]  ;;  %v8303_v39 = vld [vmem:[#allocation130_spill] sm:$0xff] }
 0x34a   :  { %v1480_v11 = vcvt.f32.s32 %v1479_v60  ;;  %v3750_v27 = vpop.eup %3749  ;;  %3755 = vlog2.f32 %v8299_v30  ;;  %v1154_v31 = vadd.f32 %v1071_v6, %v8300_v0  ;;  %v1075_v3 = vmul.f32 0.6931472, %v3748_v45 }
 0x34b   :  { %v3161_v7 = vadd.f32 %v3160_v38, %v3034_v34  ;;  %v6200_v28 = vadd.s32 %v1916_v62, %v1914_v40  ;;  %v6202_v9 = vadd.s32 %v2196_v55, %v2194_v23  ;;  %1800 = vmin.xlane.f32.xlu1 %v1799_v59  ;;  %v3752_v36 = vpop.eup %3751  ;;  %v3037_v62 = vmul.f32 %v1153_v24, %v1153_v24  ;;  %v8301_v55 = vld [vmem:[#allocation71_spill] sm:$0xff]  ;;  %v8302_v38 = vld [vmem:[#allocation244_spill] sm:$0xff] }
 0x34c   :  { %v6205_v20 = vadd.s32 %v1482_v10, %v1480_v11  ;;  %v3754_v52 = vpop.eup %3753  ;;  %v1155_v34 = vadd.f32 %v1073_v2, %v8301_v55  ;;  %3757 = vlog2.f32 %v8302_v38  ;;  %v1077_v5 = vmul.f32 0.6931472, %v3750_v27  ;;  %v8304_v40 = vld [vmem:[#allocation256_spill] sm:$0xff]  ;;  %v8306_v11 = vld [vmem:[#allocation22_spill] sm:$0xff]  ;;  %v8317_v38 = vld [vmem:[#allocation191_spill] sm:$0xff] }
 0x34d   :  { %8297 = vst [vmem:[#allocation100_spill] sm:$0xff] %v6200_v28  ;;  %v3162_v22 = vadd.f32 %v3161_v7, %v3035_v49  ;;  %vm7684_vm13 = vcmp.eq.s32.totalorder %v4111_v4, %v6200_v28  ;;  %3759 = vlog2.f32 %v8303_v39  ;;  %vm1784_vm15 = vcmp.eq.f32.partialorder %v8304_v40, %v6047_v42  ;;  %v8307_v7 = vld [vmem:[#allocation86_spill] sm:$0xff]  ;;  %v8318_v39 = vld [vmem:[#allocation125_spill] sm:$0xff] }
 0x34e   :  { %8298 = vst [vmem:[#allocation235_spill] sm:$0xff] %v6202_v9  ;;  %vm2210_vm14 = vcmp.eq.s32.totalorder %v4111_v4, %v6205_v20  ;;  %3358 = vmatpush.xpose.msk.msrb.mxu3 %vm7684_vm13, %v8197_v29  ;;  %v1079_v24 = vmul.f32 0.6931472, %v3752_v36  ;;  %v8305_v45 = vand.u32 65535, %v8234_v46  ;;  %v2032_v10 = vcvt.s32.f32 %v2030_v48  ;;  %v8308_v55 = vld [vmem:[#allocation134_spill] sm:$0xff] }
 0x34f   :  { %v3163_v6 = vadd.f32 %v3162_v22, %v3036_v16  ;;  %3325 = vmatpush.xpose.msk.msrb.mxu1 %vm2210_vm14, %v8197_v29  ;;  %v1764_v59 = vand.u32 65535, %v8306_v11  ;;  %v3038_v49 = vmul.f32 %v1154_v31, %v1154_v31  ;;  %v1156_v27 = vadd.f32 %v1075_v3, %v8307_v7  ;;  %v8310_v31 = vld [vmem:[#allocation157_spill] sm:$0xff]  ;;  %v8377_v28 = vld [vmem:[#allocation62_spill] sm:$0xff] }
 0x350   :  { %v6226_v60 = vpop.xlane.xlu0 %1754  ;;  %v6228_v23 = vpop.xlane.xlu1 %2034  ;;  %v1780_v2 = vcvt.s32.f32 %v8305_v45  ;;  %v1081_v36 = vmul.f32 0.6931472, %v3754_v52  ;;  %3761 = vlog2.f32 %v8308_v55  ;;  %v3039_v48 = vmul.f32 %v1155_v34, %v1155_v34 }
 0x351   :  { %v3164_v16 = vadd.f32 %v3163_v6, %v3037_v62  ;;  %v1885_v0 = vpop.xlane.xlu2 %1884  ;;  %vm2036_vm5 = vcmp.eq.f32.partialorder %v5817_v1, %v6228_v23  ;;  %v3756_v22 = vpop.eup %3755  ;;  %v1157_v11 = vadd.f32 %v1077_v5, %v8309_v32  ;;  %3763 = vlog2.f32 %v8310_v31  ;;  %v8311_v6 = vld [vmem:[#allocation166_spill] sm:$0xff]  ;;  %v8313_v32 = vld [vmem:[#allocation248_spill] sm:$0xff] }
 0x352   :  { %v1785_v46 = vsel %vm1784_vm15, %v1780_v2, inf  ;;  %v2037_v45 = vsel %vm2036_vm5, %v2032_v10, inf  ;;  %v3758_v62 = vpop.eup %3757  ;;  %3765 = vlog2.f32 %v8311_v6  ;;  %v1901_v1 = vcvt.f32.s32 %v8181_v56 }
 0x353   :  { %v3165_v3 = vadd.f32 %v3164_v16, %v3038_v49  ;;  %1786 = vmin.xlane.f32.xlu1 %v1785_v46  ;;  %2038 = vmin.xlane.f32.xlu2 %v2037_v45  ;;  %v1158_v52 = vadd.f32 %v1079_v24, %v8216_v54  ;;  %v8312_v7 = vand.u32 65535, %v5786_v37  ;;  %v3760_v2 = vpop.eup %3759  ;;  %v3040_v34 = vmul.f32 %v1156_v27, %v1156_v27  ;;  %v8314_v37 = vld [vmem:[#allocation219_spill] sm:$0xff]  ;;  %v8315_v27 = vld [vmem:[#allocation189_spill] sm:$0xff] }
 0x354   :  { %v1083_v10 = vmul.f32 0.6931472, %v3756_v22  ;;  %3767 = vlog2.f32 %v8313_v32  ;;  %v1887_v49 = vcvt.f32.s32 %v8171_v58  ;;  %v1159_v16 = vadd.f32 %v1081_v36, %v8198_v35  ;;  %v8316_v35 = vld [vmem:[#allocation120_spill] sm:$0xff] }
 0x355   :  { %v6247_v40 = vcvt.s32.f32 %v8312_v7  ;;  %v3166_v5 = vadd.f32 %v3165_v3, %v3039_v48  ;;  %v1766_v46 = vcvt.s32.f32 %v1764_v59  ;;  %v2016_v45 = vand.u32 65535, %v5843_v43 }
 0x356   :  { %v3041_v56 = vmul.f32 %v1157_v11, %v1157_v11  ;;  %v1085_v13 = vmul.f32 0.6931472, %v3758_v62  ;;  %vm1770_vm9 = vcmp.eq.f32.partialorder %v8314_v37, %v6112_v47  ;;  %v3762_v24 = vpop.eup %3761  ;;  %v1902_v7 = vshll.u32 %v1901_v1, 16  ;;  %v8324_v37 = vld [vmem:[#allocation227_spill] sm:$0xff] }
 0x357   :  { %v3167_v54 = vadd.f32 %v3166_v5, %v3040_v34  ;;  %3769 = vlog2.f32 %v8315_v27  ;;  %v3042_v22 = vmul.f32 %v1158_v52, %v1158_v52  ;;  %v1087_v30 = vmul.f32 0.6931472, %v3760_v2  ;;  %v3764_v58 = vpop.eup %3763  ;;  %v8343_v27 = vld [vmem:[#allocation161_spill] sm:$0xff] }
 0x358   :  { %v1899_v48 = vpop.xlane.xlu0 %1898  ;;  %v6256_v3 = vpop.xlane.xlu1 %2178  ;;  %v1160_v59 = vadd.f32 %v1083_v10, %v8316_v35  ;;  %v1886_v36 = vcvt.f32.s32 %v1885_v0  ;;  %v1888_v5 = vshll.u32 %v1887_v49, 16  ;;  %3771 = vlog2.f32 %v8317_v38  ;;  %v8320_v10 = vld [vmem:[#allocation209_spill] sm:$0xff]  ;;  %v8322_v49 = vld [vmem:[#allocation242_spill] sm:$0xff] }
 0x359   :  { %v1900_v43 = vcvt.f32.s32 %v1899_v48  ;;  %v6259_v11 = vpop.xlane.xlu2 %2006  ;;  %v3168_v62 = vadd.f32 %v3167_v54, %v3041_v56  ;;  %v3766_v34 = vpop.eup %3765  ;;  %v3043_v1 = vmul.f32 %v1159_v16, %v1159_v16  ;;  %v1771_v52 = vsel %vm1770_vm9, %v1766_v46, inf  ;;  %v8321_v56 = vld [vmem:[#allocation133_spill] sm:$0xff] }
 0x35a   :  { %v3768_v2 = vpop.eup %3767  ;;  %v1161_v55 = vadd.f32 %v1085_v13, %v8318_v39  ;;  %v1089_v31 = vmul.f32 0.6931472, %v3762_v24  ;;  %3773 = vlog2.f32 %v8320_v10  ;;  %v1162_v54 = vadd.f32 %v1087_v30, %v8321_v56  ;;  %v8329_v56 = vld [vmem:[#allocation30_spill] sm:$0xff] }
 0x35b   :  { %v6266_v32 = vadd.s32 %v1902_v7, %v1900_v43  ;;  %1772 = vmin.xlane.f32.xlu1 %v1771_v52  ;;  %v3169_v0 = vadd.f32 %v3168_v62, %v3042_v22  ;;  %v1467_v48 = vcvt.f32.s32 %v8322_v49  ;;  %v1091_v35 = vmul.f32 0.6931472, %v3764_v58  ;;  %v8325_v22 = vld [vmem:[#allocation135_spill] sm:$0xff]  ;;  %v8327_v62 = vld [vmem:[#allocation222_spill] sm:$0xff] }
 0x35c   :  { %v3044_v16 = vmul.f32 %v1160_v59, %v1160_v59  ;;  %v6271_v6 = vadd.s32 %v1888_v5, %v1886_v36  ;;  %v1095_v39 = vmul.f32 0.6931472, %v3766_v34  ;;  %3775 = vlog2.f32 %v8324_v37  ;;  %v8326_v59 = vld [vmem:[#allocation190_spill] sm:$0xff]  ;;  %v8334_v37 = vld [vmem:[#allocation203_spill] sm:$0xff] }
 0x35d   :  { %8319 = vst [vmem:[#allocation254_spill] sm:$0xff] %v6266_v32  ;;  %vm7683_vm12 = vcmp.eq.s32.totalorder %v4111_v4, %v6266_v32  ;;  %v3170_v46 = vadd.f32 %v3169_v0, %v3043_v1  ;;  %v3770_v13 = vpop.eup %3769  ;;  %v1093_v24 = vmul.f32 0.6931472, %v3768_v2  ;;  %v2018_v30 = vcvt.s32.f32 %v2016_v45  ;;  %v8328_v1 = vld [vmem:[#allocation140_spill] sm:$0xff] }
 0x35e   :  { %8323 = vst [vmem:[#allocation233_spill] sm:$0xff] %v6271_v6  ;;  %3359 = vmatpush.xpose.msk.msrb.mxu3 %vm7683_vm12, %v8197_v29  ;;  %v3045_v7 = vmul.f32 %v1161_v55, %v1161_v55  ;;  %v1163_v58 = vadd.f32 %v1089_v31, %v8325_v22  ;;  %vm1756_vm15 = vcmp.eq.f32.partialorder %v8326_v59, %v6226_v60  ;;  %v3772_v43 = vpop.eup %3771  ;;  %3777 = vlog2.f32 %v8327_v62  ;;  %v8374_v32 = vld [vmem:[#allocation260_spill] sm:$0xff] }
 0x35f   :  { %v3171_v36 = vadd.f32 %v3170_v46, %v3044_v16  ;;  %v3046_v34 = vmul.f32 %v1162_v54, %v1162_v54  ;;  %v1468_v5 = vshll.u32 %v1467_v48, 16  ;;  %v1164_v52 = vadd.f32 %v1091_v35, %v8328_v1  ;;  %v8330_v16 = vld [vmem:[#allocation147_spill] sm:$0xff]  ;;  %v8331_v35 = vld [vmem:[#allocation85_spill] sm:$0xff] }
 0x360   :  { %v6285_v2 = vpop.xlane.xlu0 %2020  ;;  %v1465_v0 = vpop.xlane.xlu1 %1464  ;;  %vm7681_vm9 = vcmp.eq.s32.totalorder %v4111_v4, %v6271_v6  ;;  %v1097_v49 = vmul.f32 0.6931472, %v3770_v13  ;;  %v1165_v46 = vadd.f32 %v1093_v24, %v8330_v16  ;;  %v1757_v48 = vsel %vm1756_vm15, %v6247_v40, inf }
 0x361   :  { %vm2022_vm5 = vcmp.eq.f32.partialorder %v8329_v56, %v6285_v2  ;;  %v1466_v55 = vcvt.f32.s32 %v1465_v0  ;;  %v3172_v31 = vadd.f32 %v3171_v36, %v3045_v7  ;;  %v3774_v45 = vpop.eup %3773  ;;  %3779 = vlog2.f32 %v8331_v35  ;;  %v6301_v1 = vpop.xlane.xlu2 %2150  ;;  %v8332_v36 = vld [vmem:[#allocation44_spill] sm:$0xff]  ;;  %v8335_v35 = vld [vmem:[#allocation57_spill] sm:$0xff] }
 0x362   :  { %3360 = vmatpush.xpose.msk.msrb.mxu3 %vm7681_vm9, %v8197_v29  ;;  %v2023_v54 = vsel %vm2022_vm5, %v2018_v30, inf  ;;  %v3047_v22 = vmul.f32 %v1163_v58, %v1163_v58  ;;  %v3776_v24 = vpop.eup %3775  ;;  %v1166_v0 = vadd.f32 %v1095_v39, %v8332_v36  ;;  %v1099_v56 = vmul.f32 0.6931472, %v3772_v43  ;;  %v8333_v30 = vld [vmem:[#allocation102_spill] sm:$0xff] }
 0x363   :  { %v6303_v7 = vadd.s32 %v1468_v5, %v1466_v55  ;;  %2024 = vmin.xlane.f32.xlu0 %v2023_v54  ;;  %1758 = vmin.xlane.f32.xlu1 %v1757_v48  ;;  %v3173_v13 = vadd.f32 %v3172_v31, %v3046_v34  ;;  %v2002_v16 = vand.u32 65535, %v8333_v30  ;;  %v1873_v62 = vcvt.f32.s32 %v8334_v37  ;;  %v8336_v55 = vld [vmem:[#allocation37_spill] sm:$0xff]  ;;  %v8337_v34 = vld [vmem:[#allocation155_spill] sm:$0xff] }
 0x364   :  { %v3048_v59 = vmul.f32 %v1164_v52, %v1164_v52  ;;  %v3778_v58 = vpop.eup %3777  ;;  %v1167_v5 = vadd.f32 %v1097_v49, %v8335_v35  ;;  %3781 = vlog2.f32 %v8336_v55  ;;  %v1101_v39 = vmul.f32 0.6931472, %v3774_v45  ;;  %v8338_v35 = vld [vmem:[#allocation64_spill] sm:$0xff] }
 0x365   :  { %vm2209_vm15 = vcmp.eq.s32.totalorder %v4111_v4, %v6303_v7  ;;  %v3174_v40 = vadd.f32 %v3173_v13, %v3047_v22  ;;  %v3049_v43 = vmul.f32 %v1165_v46, %v1165_v46  ;;  %vm2008_vm5 = vcmp.eq.f32.partialorder %v8337_v34, %v6259_v11  ;;  %v8339_v46 = vld [vmem:[#allocation65_spill] sm:$0xff] }
 0x366   :  { %3326 = vmatpush.xpose.msk.msrb.mxu1 %vm2209_vm15, %v8197_v29  ;;  %v3050_v52 = vmul.f32 %v1166_v0, %v1166_v0  ;;  %v1103_v31 = vmul.f32 0.6931472, %v3776_v24  ;;  %v2004_v22 = vcvt.s32.f32 %v2002_v16  ;;  %v1168_v13 = vadd.f32 %v1099_v56, %v8338_v35  ;;  %v8342_v16 = vld [vmem:[#allocation241_spill] sm:$0xff] }
 0x367   :  { %v3175_v37 = vadd.f32 %v3174_v40, %v3048_v59  ;;  %v3780_v49 = vpop.eup %3779  ;;  %v1874_v36 = vshll.u32 %v1873_v62, 16  ;;  %v1105_v61 = vmul.f32 0.6931472, %v3778_v58  ;;  %v3051_v45 = vmul.f32 %v1167_v5, %v1167_v5  ;;  %v8341_v59 = vld [vmem:[#allocation78_spill] sm:$0xff]  ;;  %v8344_v5 = vld [vmem:[#allocation92_spill] sm:$0xff] }
 0x368   :  { %v6318_v54 = vpop.xlane.xlu0 %2164  ;;  %v1871_v48 = vpop.xlane.xlu1 %1870  ;;  %v2009_v8 = vsel %vm2008_vm5, %v2004_v22, inf  ;;  %v1169_v26 = vadd.f32 %v1101_v39, %v8339_v46  ;;  %v1170_v40 = vadd.f32 %v1103_v31, %v8341_v59  ;;  %v1107_v34 = vmul.f32 0.6931472, %v3780_v49 }
 0x369   :  { %v1872_v30 = vcvt.f32.s32 %v1871_v48  ;;  %v3176_v55 = vadd.f32 %v3175_v37, %v3049_v43  ;;  %v1453_v38 = vcvt.f32.s32 %v8342_v16  ;;  %v1988_v56 = vand.u32 65535, %v8343_v27  ;;  %v1437_v48 = vpop.xlane.xlu2 %1436  ;;  %v8346_v27 = vld [vmem:[#allocation101_spill] sm:$0xff] }
 0x36a   :  { %v3782_v24 = vpop.eup %3781  ;;  %v3052_v62 = vmul.f32 %v1168_v13, %v1168_v13  ;;  %v1171_v39 = vadd.f32 %v1105_v61, %v8344_v5  ;;  %v3054_v31 = vmul.f32 %v1170_v40, %v1170_v40  ;;  %v1172_v22 = vadd.f32 %v1107_v34, %v8346_v27  ;;  %v8348_v16 = vld [vmem:[#allocation105_spill] sm:$0xff] }
 0x36b   :  { %v6322_v10 = vadd.s32 %v1874_v36, %v1872_v30  ;;  %2010 = vmin.xlane.f32.xlu1 %v2009_v8  ;;  %v3177_v0 = vadd.f32 %v3176_v55, %v3050_v52  ;;  %v3053_v8 = vmul.f32 %v1169_v26, %v1169_v26  ;;  %v8345_v55 = vld [vmem:[#allocation74_spill] sm:$0xff]  ;;  %v1109_v37 = vmul.f32 0.6931472, %v3782_v24 }
 0x36c   :  { %v1439_v43 = vcvt.f32.s32 %v8345_v55  ;;  %v1454_v49 = vshll.u32 %v1453_v38, 16  ;;  %v1990_v36 = vcvt.s32.f32 %v1988_v56  ;;  %v1438_v30 = vcvt.f32.s32 %v1437_v48  ;;  %v8349_v48 = vld [vmem:[#allocation68_spill] sm:$0xff] }
 0x36d   :  { %8340 = vst [vmem:[#allocation162_spill] sm:$0xff] %v6322_v10  ;;  %vm7682_vm5 = vcmp.eq.s32.totalorder %v4111_v4, %v6322_v10  ;;  %v3178_v58 = vadd.f32 %v3177_v0, %v3051_v45  ;;  %v8347_v45 = vld [vmem:[#allocation164_spill] sm:$0xff]  ;;  %v3055_v0 = vmul.f32 %v1171_v39, %v1171_v39  ;;  %v1173_v24 = vadd.f32 %v1109_v37, %v8348_v16 }
 0x36e   :  { %3361 = vmatpush.xpose.msk.msrb.mxu3 %vm7682_vm5, %v8197_v29  ;;  %v1440_v59 = vshll.u32 %v1439_v43, 16  ;;  %v3056_v38 = vmul.f32 %v1172_v22, %v1172_v22  ;;  %v8350_v43 = vld [vmem:[#allocation36_spill] sm:$0xff]  ;;  %vm3191_vm2 = vcmask 0   ;;  %v1691_v53 = vcvt.f32.s32 %v8374_v32 }
 0x36f   :  { %v3179_v52 = vadd.f32 %v3178_v58, %v3052_v62  ;;  %v1411_v58 = vcvt.f32.s32 %v8349_v48  ;;  %v3057_v5 = vmul.f32 %v1173_v24, %v1173_v24  ;;  %v1410_v37 = vcvt.f32.s32 %v8350_v43 }
 0x370   :  { %v1451_v35 = vpop.xlane.xlu0 %1450  ;;  %v6336_v13 = vpop.xlane.xlu1 %1992  ;;  %v6343_v34 = vadd.s32 %v1440_v59, %v1438_v30  ;;  %v8355_v59 = vld [vmem:[#allocation220_spill] sm:$0xff]  ;;  %v1692_v63 = vshll.u32 %v1691_v53, 16 }
 0x371   :  { %v1452_v61 = vcvt.f32.s32 %v1451_v35  ;;  %vm1994_vm9 = vcmp.eq.f32.partialorder %v8347_v45, %v6336_v13  ;;  %v3180_v46 = vadd.f32 %v3179_v52, %v3053_v8  ;;  %v6352_v39 = vpop.xlane.xlu2 %1618  ;;  %v1412_v22 = vshll.u32 %v1411_v58, 16  ;;  %v8352_v35 = vld [vmem:[#allocation142_spill] sm:$0xff] }
 0x372   :  { %v1995_v26 = vsel %vm1994_vm9, %v1990_v36, inf  ;;  %vm2207_vm9 = vcmp.eq.s32.totalorder %v4111_v4, %v6343_v34  ;;  %v1859_v36 = vcvt.f32.s32 %v8352_v35  ;;  %v1383_v16 = vcvt.f32.s32 %v8355_v59  ;;  %v8361_v59 = vld [vmem:[#allocation183_spill] sm:$0xff] }
 0x373   :  { %v6341_v62 = vadd.s32 %v1454_v49, %v1452_v61  ;;  %1996 = vmin.xlane.f32.xlu2 %v1995_v26  ;;  %v3181_v40 = vadd.f32 %v3180_v46, %v3054_v31  ;;  %v8351_v31 = vld [vmem:[#allocation211_spill] sm:$0xff]  ;;  %v6365_v30 = vadd.s32 %v1412_v22, %v1410_v37  ;;  %v8353_v61 = vld [vmem:[#allocation229_spill] sm:$0xff]  ;;  %v8354_v46 = vld [vmem:[#allocation132_spill] sm:$0xff] }
 0x374   :  { %v1397_v27 = vcvt.f32.s32 %v8351_v31  ;;  %v1396_v45 = vcvt.f32.s32 %v8353_v61  ;;  %vm2206_vm12 = vcmp.eq.s32.totalorder %v4111_v4, %v8354_v46  ;;  %v8357_v37 = vld [vmem:[#allocation206_spill] sm:$0xff]  ;;  %v1384_v31 = vshll.u32 %v1383_v16, 16  ;;  %v8360_v61 = vld [vmem:[#allocation99_spill] sm:$0xff] }
 0x375   :  { %vm2208_vm5 = vcmp.eq.s32.totalorder %v4111_v4, %v6341_v62  ;;  %v3182_v56 = vadd.f32 %v3181_v40, %v3055_v0  ;;  %vm7734_vm13 = vcmp.eq.s32.totalorder %v4111_v4, %v6365_v30  ;;  %v1355_v16 = vcvt.f32.s32 %v8361_v59 }
 0x376   :  { %3327 = vmatpush.xpose.msk.msrb.mxu1 %vm2208_vm5, %v8197_v29  ;;  %v1398_v26 = vshll.u32 %v1397_v27, 16  ;;  %v1999_v62 = vcvt.f32.s32 %v6336_v13 }
 0x377   :  { %v3183_v8 = vadd.f32 %v3182_v56, %v3056_v38  ;;  %v1860_v38 = vshll.u32 %v1859_v36, 16  ;;  %v8356_v56 = vld [vmem:[#allocation97_spill] sm:$0xff] }
 0x378   :  { %v6354_v55 = vpop.xlane.xlu0 %1632  ;;  %v1382_v48 = vcvt.f32.s32 %v8356_v56  ;;  %v6390_v36 = vpop.xlane.xlu1 %2136  ;;  %v2000_v13 = vshll.u32 %v1999_v62, 16  ;;  %v8448_v62 = vld [vmem:[#allocation162_spill] sm:$0xff] }
 0x379   :  { %v3184_v52 = vadd.f32 %v3183_v8, %v3057_v5  ;;  %v6378_v5 = vadd.s32 %v1398_v26, %v1396_v45  ;;  %v1974_v45 = vand.u32 65535, %v8360_v61 }
 0x37a   :  { %3328 = vmatpush.xpose.msk.msrb.mxu1 %vm2207_vm9, %v8197_v29  ;;  %v6393_v26 = vadd.s32 %v1384_v31, %v1382_v48  ;;  %v8365_v31 = vld [vmem:[#allocation172_spill] sm:$0xff] }
 0x37b   :  { %v3185_v49 = vrot.slane %v3184_v52, 4  ;;  %vm7689_vm11 = vcmp.eq.s32.totalorder %v4111_v4, %v6378_v5  ;;  %v1976_v48 = vcvt.s32.f32 %v1974_v45 }
 0x37d   :  { %v3186_v0 = vadd.f32 %v3185_v49, %v3184_v52  ;;  %v1369_v52 = vcvt.f32.s32 %v8357_v37  ;;  %v8359_v49 = vld [vmem:[#allocation39_spill] sm:$0xff] }
 0x37e   :  { %3329 = vmatpush.xpose.msk.msrb.mxu1 %vm2206_vm12, %v8197_v29  ;;  %v6375_v24 = vpop.xlane.xlu2 %1660  ;;  %v1368_v35 = vcvt.f32.s32 %v8359_v49  ;;  %v8364_v37 = vld [vmem:[#allocation259_spill] sm:$0xff]  ;;  %v1356_v49 = vshll.u32 %v1355_v16, 16  ;;  %v8368_v16 = vld [vmem:[#allocation46_spill] sm:$0xff] }
 0x37f   :  { %v3187_v40 = vrot.slane %v3186_v0, 2 }
 0x380   :  { %v1857_v58 = vpop.xlane.xlu0 %1856 }
 0x381   :  { %v1858_v8 = vcvt.f32.s32 %v1857_v58  ;;  %v3188_v43 = vadd.f32 %v3187_v40, %v3186_v0  ;;  %v1370_v40 = vshll.u32 %v1369_v52, 16 }
 0x382   :  { %3330 = vmatpush.xpose.msk.msrb.mxu1 %vm7734_vm13, %v8197_v29 }
 0x383   :  { %v6387_v27 = vadd.s32 %v1860_v38, %v1858_v8  ;;  %v3189_v22 = vrot.slane %v3188_v43, 1  ;;  %v6412_v58 = vadd.s32 %v1370_v40, %v1368_v35  ;;  %v8363_v8 = vld [vmem:[#allocation34_spill] sm:$0xff]  ;;  %v8367_v40 = vld [vmem:[#allocation173_spill] sm:$0xff] }
 0x384   :  { %v8366_v35 = vld [vmem:[#allocation214_spill] sm:$0xff] }
 0x385   :  { %8358 = vst [vmem:[#allocation80_spill] sm:$0xff] %v6387_v27  ;;  %vm7690_vm3 = vcmp.eq.s32.totalorder %v4111_v4, %v6387_v27  ;;  %v3190_v0 = vadd.f32 %v3189_v22, %v3188_v43  ;;  %v1354_v43 = vcvt.f32.s32 %v8363_v8  ;;  %v1341_v22 = vcvt.f32.s32 %v8365_v31 }
 0x386   :  { %3331 = vmatpush.xpose.msk.msrb.mxu1 %vm7689_vm11, %v8197_v29  ;;  %3362 = vmatpush.xpose.msk.msrb.mxu3 %vm7690_vm3, %v8197_v29  ;;  %v6408_v38 = vpop.xlane.xlu2 %1674  ;;  %vm7711_vm11 = vcmp.eq.s32.totalorder %v4111_v4, %v6393_v26  ;;  %v1340_v61 = vcvt.f32.s32 %v8366_v35  ;;  %v8370_v35 = vld [vmem:[#allocation131_spill] sm:$0xff] }
 0x387   :  { %3192 = vst.msk [vmem:[#allocation11] sm:$0x1] %vm3191_vm2, %v3190_v0  ;;  %v6425_v45 = vadd.s32 %v1356_v49, %v1354_v43  ;;  %vm7697_vm2 = vcmp.eq.s32.totalorder %v4111_v4, %v6412_v58  ;;  %v6429_v0 = vpop.xlane.xlu1 %1646  ;;  %v1342_v59 = vshll.u32 %v1341_v22, 16  ;;  %v8369_v43 = vld [vmem:[#allocation149_spill] sm:$0xff] }
 0x388   :  { %v6410_v56 = vpop.xlane.xlu0 %1978  ;;  %v1313_v31 = vcvt.f32.s32 %v8369_v43  ;;  %v8371_v43 = vld [vmem:[#allocation228_spill] sm:$0xff]  ;;  %3236 = dma.vmem_to_hbm [thread:$0]  %s3232_s1, 16, %s3234_s7, [#allocation12]  }
 0x389   :  { %8362 = vst [vmem:[#allocation32_spill] sm:$0xff] %v6410_v56  ;;  %vm1980_vm4 = vcmp.eq.f32.partialorder %v8364_v37, %v6410_v56  ;;  %v1326_v37 = vcvt.f32.s32 %v8368_v16  ;;  %v1677_v56 = vcvt.f32.s32 %v8377_v28  ;;  %v8380_v28 = vld [vmem:[#allocation250_spill] sm:$0xff] }
 0x38a   :  { %3332 = vmatpush.xpose.msk.msrb.mxu1 %vm7711_vm11, %v8197_v29  ;;  %v1981_v52 = vsel %vm1980_vm4, %v1976_v48, inf  ;;  %v1327_v48 = vcvt.f32.s32 %v8367_v40  ;;  %vm7692_vm4 = vcmp.eq.s32.totalorder %v4111_v4, %v6425_v45  ;;  %v1312_v40 = vcvt.f32.s32 %v8370_v35 }
 0x38b   :  { %1982 = vmin.xlane.f32.xlu0 %v1981_v52  ;;  %v6439_v52 = vadd.s32 %v1342_v59, %v1340_v61  ;;  %v1314_v16 = vshll.u32 %v1313_v31, 16  ;;  %v1705_v35 = vcvt.f32.s32 %v6042_v57  ;;  %v8373_v31 = vld [vmem:[#allocation41_spill] sm:$0xff] }
 0x38c   :  { %v1328_v49 = vshll.u32 %v1327_v48, 16  ;;  %v2181_v48 = vcvt.f32.s32 %v8371_v43  ;;  %v2167_v6 = vcvt.f32.s32 %v8373_v31 }
 0x38d   :  { %vm7696_vm3 = vcmp.eq.s32.totalorder %v4111_v4, %v6439_v52 }
 0x38e   :  { %3333 = vmatpush.xpose.msk.msrb.mxu1 %vm7697_vm2, %v8197_v29  ;;  %v6436_v8 = vpop.xlane.xlu2 %2122  ;;  %v6448_v22 = vadd.s32 %v1328_v49, %v1326_v37  ;;  %v6462_v37 = vadd.s32 %v1314_v16, %v1312_v40  ;;  %v2180_v49 = vcvt.f32.s32 %v6256_v3  ;;  %v2182_v10 = vshll.u32 %v2181_v48, 16 }
 0x38f   :  { %v1689_v61 = vpop.xlane.xlu1 %1688  ;;  %vm7705_vm2 = vcmp.eq.s32.totalorder %v4111_v4, %v6202_v9  ;;  %v2166_v3 = vcvt.f32.s32 %v6318_v54  ;;  %v1706_v16 = vshll.u32 %v1705_v35, 16  ;;  %v2168_v31 = vshll.u32 %v2167_v6, 16  ;;  %v8378_v35 = vld [vmem:[#allocation66_spill] sm:$0xff] }
 0x390   :  { %v6453_v59 = vpop.xlane.xlu0 %1604  ;;  %8372 = vst [vmem:[#allocation35_spill] sm:$0xff] %v6462_v37  ;;  %v6478_v40 = vadd.s32 %v2182_v10, %v2180_v49  ;;  %v1690_v43 = vcvt.f32.s32 %v1689_v61  ;;  %v8376_v10 = vld [vmem:[#allocation215_spill] sm:$0xff]  ;;  %v1845_v61 = vcvt.f32.s32 %v8378_v35  ;;  %v1676_v9 = vcvt.f32.s32 %v6408_v38  ;;  %v8381_v38 = vld [vmem:[#allocation21_spill] sm:$0xff] }
 0x391   :  { %v2153_v49 = vcvt.f32.s32 %v8376_v10  ;;  %v2139_v6 = vcvt.f32.s32 %v8380_v28 }
 0x392   :  { %3334 = vmatpush.xpose.msk.msrb.mxu1 %vm7692_vm4, %v8197_v29  ;;  %vm7707_vm4 = vcmp.eq.s32.totalorder %v4111_v4, %v6448_v22  ;;  %8375 = vst [vmem:[#allocation252_spill] sm:$0xff] %v6478_v40  ;;  %v6504_v10 = vadd.s32 %v1692_v63, %v1690_v43  ;;  %v1663_v63 = vcvt.f32.s32 %v8381_v38  ;;  %v2138_v43 = vcvt.f32.s32 %v6390_v36 }
 0x393   :  { %v2154_v53 = vshll.u32 %v2153_v49, 16  ;;  %v1662_v49 = vcvt.f32.s32 %v6375_v24  ;;  %v2140_v36 = vshll.u32 %v2139_v6, 16 }
 0x396   :  { %3335 = vmatpush.xpose.msk.msrb.mxu1 %vm7696_vm3, %v8197_v29  ;;  %v6459_v27 = vpop.xlane.xlu2 %2108  ;;  %vm7703_vm3 = vcmp.eq.s32.totalorder %v4111_v4, %v6462_v37  ;;  %v2152_v37 = vcvt.f32.s32 %v6301_v1  ;;  %v1678_v1 = vshll.u32 %v1677_v56, 16  ;;  %v8382_v56 = vld [vmem:[#allocation148_spill] sm:$0xff] }
 0x397   :  { %v8409_v46 = vld [vmem:[#allocation35_spill] sm:$0xff] }
 0x398   :  { %v6492_v54 = vpop.xlane.xlu0 %1590 }
 0x39a   :  { %3336 = vmatpush.xpose.msk.msrb.mxu1 %vm7707_vm4, %v8197_v29  ;;  %vm7712_vm4 = vcmp.eq.s32.totalorder %v4111_v4, %v6504_v10 }
 0x39e   :  { %3337 = vmatpush.xpose.msk.msrb.mxu1 %vm7703_vm3, %v8197_v29  ;;  %v1703_v57 = vpop.xlane.xlu1 %1702  ;;  %v6485_v48 = vpop.xlane.xlu2 %2094  ;;  %vm7706_vm3 = vcmp.eq.s32.totalorder %v4111_v4, %v6478_v40 }
 0x39f   :  { %v1704_v32 = vcvt.f32.s32 %v1703_v57  ;;  %v6499_v57 = vadd.s32 %v2168_v31, %v2166_v3  ;;  %v1846_v3 = vshll.u32 %v1845_v61, 16  ;;  %v6524_v31 = vadd.s32 %v1678_v1, %v1676_v9  ;;  %v8383_v9 = vld [vmem:[#allocation28_spill] sm:$0xff]  ;;  %v8385_v1 = vld [vmem:[#allocation19_spill] sm:$0xff] }
 0x3a0   :  { %v1649_v24 = vcvt.f32.s32 %v8383_v9  ;;  %v1664_v61 = vshll.u32 %v1663_v63, 16  ;;  %v1831_v38 = vcvt.f32.s32 %v8385_v1  ;;  %v6546_v40 = vpop.xlane.xlu0 %1576  ;;  %v2110_v9 = vcvt.f32.s32 %v6459_v27 }
 0x3a1   :  { %v6495_v50 = vadd.s32 %v1706_v16, %v1704_v32  ;;  %8379 = vst [vmem:[#allocation18_spill] sm:$0xff] %v6499_v57  ;;  %v6518_v16 = vadd.s32 %v2154_v53, %v2152_v37  ;;  %v2125_v37 = vcvt.f32.s32 %v8382_v56  ;;  %v1648_v56 = vcvt.f32.s32 %v6429_v0  ;;  %v8387_v0 = vld [vmem:[#allocation152_spill] sm:$0xff] }
 0x3a2   :  { %3370 = vmatpush.xpose.msk.msra.mxu1 %vm7705_vm2, %v8197_v29  ;;  %v6550_v6 = vadd.s32 %v1664_v61, %v1662_v49  ;;  %vm7718_vm11 = vcmp.eq.s32.totalorder %v4111_v4, %v6524_v31  ;;  %v1650_v49 = vshll.u32 %v1649_v24, 16  ;;  %v2097_v27 = vcvt.f32.s32 %v5904_v18 }
 0x3a3   :  { %vm2226_vm2 = vcmp.eq.s32.totalorder %v4111_v4, %v6495_v50  ;;  %v1620_v18 = vcvt.f32.s32 %v6352_v39  ;;  %v8390_v39 = vld [vmem:[#allocation225_spill] sm:$0xff] }
 0x3a4   :  { %3341 = vmatpush.xpose.msk.msrb.mxu2 %vm2226_vm2, %v8197_v29  ;;  %v6577_v1 = vadd.s32 %v1650_v49, %v1648_v56 }
 0x3a6   :  { %3371 = vmatpush.xpose.msk.msra.mxu1 %vm7706_vm3, %v8197_v29  ;;  %v1843_v32 = vpop.xlane.xlu1 %1842  ;;  %vm7710_vm3 = vcmp.eq.s32.totalorder %v4111_v4, %v6499_v57  ;;  %v6526_v35 = vpop.xlane.xlu2 %2080  ;;  %v2124_v57 = vcvt.f32.s32 %v6436_v8  ;;  %v8386_v8 = vld [vmem:[#allocation110_spill] sm:$0xff] }
 0x3a7   :  { %v1844_v28 = vcvt.f32.s32 %v1843_v32  ;;  %v6543_v32 = vadd.s32 %v2140_v36, %v2138_v43  ;;  %v2111_v63 = vcvt.f32.s32 %v8386_v8  ;;  %v1635_v43 = vcvt.f32.s32 %v8387_v0  ;;  %v8389_v0 = vld [vmem:[#allocation112_spill] sm:$0xff] }
 0x3a8   :  { %3342 = vmatpush.xpose.msk.msrb.mxu2 %vm7712_vm4, %v8197_v29  ;;  %v1817_v49 = vcvt.f32.s32 %v8389_v0  ;;  %v8444_v12 = vld [vmem:[#allocation18_spill] sm:$0xff] }
 0x3a9   :  { %v6540_v53 = vadd.s32 %v1846_v3, %v1844_v28  ;;  %v2126_v3 = vshll.u32 %v2125_v37, 16  ;;  %v1832_v28 = vshll.u32 %v1831_v38, 16  ;;  %v1634_v37 = vcvt.f32.s32 %v6354_v55  ;;  %v8388_v55 = vld [vmem:[#allocation49_spill] sm:$0xff] }
 0x3aa   :  { %3372 = vmatpush.xpose.msk.msra.mxu1 %vm7710_vm3, %v8197_v29  ;;  %vm7713_vm3 = vcmp.eq.s32.totalorder %v4111_v4, %v6518_v16  ;;  %v1621_v24 = vcvt.f32.s32 %v8388_v55  ;;  %v1636_v38 = vshll.u32 %v1635_v43, 16  ;;  %v2098_v43 = vshll.u32 %v2097_v27, 16 }
 0x3ab   :  { %8384 = vst [vmem:[#allocation199_spill] sm:$0xff] %v6540_v53  ;;  %vm7714_vm4 = vcmp.eq.s32.totalorder %v4111_v4, %v6540_v53  ;;  %v6571_v36 = vadd.s32 %v2126_v3, %v2124_v57  ;;  %v2112_v57 = vshll.u32 %v2111_v63, 16  ;;  %v2096_v53 = vcvt.f32.s32 %v6485_v48 }
 0x3ac   :  { %3343 = vmatpush.xpose.msk.msrb.mxu2 %vm7718_vm11, %v8197_v29  ;;  %3363 = vmatpush.xpose.msk.msrb.mxu3 %vm7714_vm4, %v8197_v29  ;;  %vm7717_vm4 = vcmp.eq.s32.totalorder %v4111_v4, %v6550_v6  ;;  %v6600_v63 = vadd.s32 %v1636_v38, %v1634_v37  ;;  %v2083_v48 = vcvt.f32.s32 %v6005_v15  ;;  %v1622_v37 = vshll.u32 %v1621_v24, 16 }
 0x3ad   :  { %v2082_v15 = vcvt.f32.s32 %v6526_v35  ;;  %v1606_v38 = vcvt.f32.s32 %v6453_v59  ;;  %v2069_v35 = vcvt.f32.s32 %v6078_v25  ;;  %v1592_v25 = vcvt.f32.s32 %v6492_v54 }
 0x3ae   :  { %3373 = vmatpush.xpose.msk.msra.mxu1 %vm7713_vm3, %v8197_v29  ;;  %v1829_v61 = vpop.xlane.xlu1 %1828  ;;  %vm7716_vm3 = vcmp.eq.s32.totalorder %v4111_v4, %v6543_v32  ;;  %v2067_v56 = vpop.xlane.xlu2 %2066  ;;  %v6627_v55 = vadd.s32 %v1622_v37, %v1620_v18 }
 0x3af   :  { %v1830_v8 = vcvt.f32.s32 %v1829_v61  ;;  %v6594_v61 = vadd.s32 %v2112_v57, %v2110_v9  ;;  %v1607_v9 = vcvt.f32.s32 %v8390_v39  ;;  %v6622_v57 = vadd.s32 %v2098_v43, %v2096_v53 }
 0x3b0   :  { %3344 = vmatpush.xpose.msk.msrb.mxu2 %vm7717_vm4, %v8197_v29  ;;  %vm7723_vm4 = vcmp.eq.s32.totalorder %v4111_v4, %v6577_v1  ;;  %v2084_v53 = vshll.u32 %v2083_v48, 16  ;;  %v1803_v43 = vcvt.f32.s32 %v5957_v41  ;;  %v2068_v37 = vcvt.f32.s32 %v2067_v56 }
 0x3b1   :  { %v6591_v3 = vadd.s32 %v1832_v28, %v1830_v8  ;;  %v6611_v28 = vpop.xlane.xlu0 %1562  ;;  %v1818_v8 = vshll.u32 %v1817_v49, 16  ;;  %v1608_v24 = vshll.u32 %v1607_v9, 16  ;;  %v8391_v49 = vld [vmem:[#allocation89_spill] sm:$0xff]  ;;  %v2070_v41 = vshll.u32 %v2069_v35, 16 }
 0x3b2   :  { %3374 = vmatpush.xpose.msk.msra.mxu1 %vm7716_vm3, %v8197_v29  ;;  %vm7719_vm3 = vcmp.eq.s32.totalorder %v4111_v4, %v6571_v36  ;;  %v1593_v59 = vcvt.f32.s32 %v8391_v49  ;;  %v6645_v39 = vadd.s32 %v2084_v53, %v2082_v15  ;;  %v2055_v56 = vcvt.f32.s32 %v6157_v19 }
 0x3b3   :  { %vm7720_vm11 = vcmp.eq.s32.totalorder %v4111_v4, %v6591_v3  ;;  %v6649_v48 = vadd.s32 %v1608_v24, %v1606_v38  ;;  %v1579_v9 = vcvt.f32.s32 %v5906_v14  ;;  %v6670_v15 = vadd.s32 %v2070_v41, %v2068_v37 }
 0x3b4   :  { %3345 = vmatpush.xpose.msk.msrb.mxu2 %vm7723_vm4, %v8197_v29  ;;  %3364 = vmatpush.xpose.msk.msrb.mxu3 %vm7720_vm11, %v8197_v29  ;;  %vm7722_vm11 = vcmp.eq.s32.totalorder %v4111_v4, %v6600_v63  ;;  %v1594_v54 = vshll.u32 %v1593_v59, 16  ;;  %v1578_v35 = vcvt.f32.s32 %v6546_v40  ;;  %v1565_v14 = vcvt.f32.s32 %v5980_v44 }
 0x3b5   :  { %v2056_v49 = vshll.u32 %v2055_v56, 16  ;;  %v1580_v59 = vshll.u32 %v1579_v9, 16  ;;  %v1789_v40 = vcvt.f32.s32 %v6047_v42  ;;  %v2041_v37 = vcvt.f32.s32 %v6228_v23 }
 0x3b6   :  { %3375 = vmatpush.xpose.msk.msra.mxu1 %vm7719_vm3, %v8197_v29  ;;  %v1815_v27 = vpop.xlane.xlu1 %1814  ;;  %vm7721_vm3 = vcmp.eq.s32.totalorder %v4111_v4, %v6594_v61  ;;  %v6674_v19 = vadd.s32 %v1594_v54, %v1592_v25  ;;  %v1564_v25 = vcvt.f32.s32 %v6611_v28  ;;  %v1566_v42 = vshll.u32 %v1565_v14, 16 }
 0x3b7   :  { %v1816_v0 = vcvt.f32.s32 %v1815_v27  ;;  %v2053_v27 = vpop.xlane.xlu2 %2052  ;;  %v6697_v44 = vadd.s32 %v1580_v59, %v1578_v35  ;;  %v1551_v23 = vcvt.f32.s32 %v6085_v33  ;;  %v1790_v28 = vshll.u32 %v1789_v40, 16 }
 0x3b8   :  { %3346 = vmatpush.xpose.msk.msrb.mxu2 %vm7722_vm11, %v8197_v29  ;;  %vm7728_vm11 = vcmp.eq.s32.totalorder %v4111_v4, %v6627_v55  ;;  %v2042_v41 = vshll.u32 %v2041_v37, 16  ;;  %v6716_v56 = vadd.s32 %v1566_v42, %v1564_v25 }
 0x3b9   :  { %v6642_v18 = vadd.s32 %v1818_v8, %v1816_v0  ;;  %v1804_v8 = vshll.u32 %v1803_v43, 16  ;;  %v1549_v38 = vpop.xlane.xlu0 %1548  ;;  %v2054_v0 = vcvt.f32.s32 %v2053_v27  ;;  %v1552_v35 = vshll.u32 %v1551_v23, 16 }
 0x3ba   :  { %3376 = vmatpush.xpose.msk.msra.mxu1 %vm7721_vm3, %v8197_v29  ;;  %vm7724_vm3 = vcmp.eq.s32.totalorder %v4111_v4, %v6622_v57 }
 0x3bb   :  { %vm7725_vm4 = vcmp.eq.s32.totalorder %v4111_v4, %v6642_v18  ;;  %v6693_v27 = vadd.s32 %v2056_v49, %v2054_v0  ;;  %v1775_v49 = vcvt.f32.s32 %v6112_v47 }
 0x3bc   :  { %3347 = vmatpush.xpose.msk.msrb.mxu2 %vm7728_vm11, %v8197_v29  ;;  %3365 = vmatpush.xpose.msk.msrb.mxu3 %vm7725_vm4, %v8197_v29  ;;  %vm7727_vm4 = vcmp.eq.s32.totalorder %v4111_v4, %v6649_v48 }
 0x3bd   :  { %v1776_v37 = vshll.u32 %v1775_v49, 16 }
 0x3be   :  { %3377 = vmatpush.xpose.msk.msra.mxu1 %vm7724_vm3, %v8197_v29  ;;  %v1801_v53 = vpop.xlane.xlu1 %1800  ;;  %vm7726_vm3 = vcmp.eq.s32.totalorder %v4111_v4, %v6645_v39 }
 0x3bf   :  { %v1802_v24 = vcvt.f32.s32 %v1801_v53 }
 0x3c0   :  { %3348 = vmatpush.xpose.msk.msrb.mxu2 %vm7727_vm4, %v8197_v29  ;;  %vm7732_vm4 = vcmp.eq.s32.totalorder %v4111_v4, %v6674_v19 }
 0x3c1   :  { %v6689_v43 = vadd.s32 %v1804_v8, %v1802_v24  ;;  %v1550_v8 = vcvt.f32.s32 %v1549_v38  ;;  %v1535_v33 = vpop.xlane.xlu0 %1534  ;;  %v1537_v24 = vcvt.f32.s32 %v6161_v21 }
 0x3c2   :  { %3378 = vmatpush.xpose.msk.msra.mxu1 %vm7726_vm3, %v8197_v29  ;;  %vm7729_vm3 = vcmp.eq.s32.totalorder %v4111_v4, %v6670_v15  ;;  %v1536_v40 = vcvt.f32.s32 %v1535_v33 }
 0x3c3   :  { %vm7730_vm11 = vcmp.eq.s32.totalorder %v4111_v4, %v6689_v43  ;;  %v6738_v59 = vadd.s32 %v1552_v35, %v1550_v8  ;;  %v1538_v47 = vshll.u32 %v1537_v24, 16  ;;  %v2013_v24 = vcvt.f32.s32 %v6259_v11 }
 0x3c4   :  { %3349 = vmatpush.xpose.msk.msrb.mxu2 %vm7732_vm4, %v8197_v29  ;;  %3366 = vmatpush.xpose.msk.msrb.mxu3 %vm7730_vm11, %v8197_v29  ;;  %vm7733_vm11 = vcmp.eq.s32.totalorder %v4111_v4, %v6697_v44 }
 0x3c5   :  { %v6756_v25 = vadd.s32 %v1538_v47, %v1536_v40  ;;  %vm2215_vm13 = vcmp.eq.s32.totalorder %v4111_v4, %v6738_v59  ;;  %v2014_v20 = vshll.u32 %v2013_v24, 16  ;;  %v8430_v59 = vld [vmem:[#allocation100_spill] sm:$0xff]  ;;  %v8432_v47 = vld [vmem:[#allocation235_spill] sm:$0xff]  ;;  %v8442_v24 = vld [vmem:[#allocation233_spill] sm:$0xff] }
 0x3c6   :  { %3379 = vmatpush.xpose.msk.msra.mxu1 %vm7729_vm3, %v8197_v29  ;;  %v2039_v54 = vpop.xlane.xlu2 %2038  ;;  %v1787_v9 = vpop.xlane.xlu1 %1786  ;;  %vm7731_vm3 = vcmp.eq.s32.totalorder %v4111_v4, %v6693_v27  ;;  %v8447_v40 = vld [vmem:[#allocation189_spill] sm:$0xff] }
 0x3c7   :  { %v2040_v0 = vcvt.f32.s32 %v2039_v54  ;;  %v1788_v53 = vcvt.f32.s32 %v1787_v9  ;;  %v2390_v54 = vadd.s32 1, %v4111_v4 }
 0x3c8   :  { %3350 = vmatpush.xpose.msk.msrb.mxu2 %vm7733_vm11, %v8197_v29 }
 0x3c9   :  { %v6731_v38 = vadd.s32 %v2042_v41, %v2040_v0  ;;  %v6733_v14 = vadd.s32 %v1790_v28, %v1788_v53  ;;  %v1761_v28 = vcvt.f32.s32 %v6226_v60  ;;  %v2027_v41 = vcvt.f32.s32 %v6285_v2 }
 0x3ca   :  { %3380 = vmatpush.xpose.msk.msra.mxu1 %vm7731_vm3, %v8197_v29  ;;  %vm2216_vm3 = vcmp.eq.s32.totalorder %v4111_v4, %v6716_v56  ;;  %v6785_v60 = vcvt.s32.f32 %v2390_v54  ;;  %v8429_v56 = vld [vmem:[#allocation181_spill] sm:$0xff]  ;;  %v8438_v54 = vld [vmem:[#allocation252_spill] sm:$0xff] }
 0x3cb   :  { %vm7736_vm4 = vcmp.eq.s32.totalorder %v4111_v4, %v6733_v14  ;;  %vm7735_vm11 = vcmp.eq.s32.totalorder %v4111_v4, %v6731_v38  ;;  %v1762_v8 = vshll.u32 %v1761_v28, 16  ;;  %v2028_v0 = vshll.u32 %v2027_v41, 16  ;;  %v8436_v41 = vld [vmem:[#allocation254_spill] sm:$0xff] }
 0x3cc   :  { %3351 = vmatpush.xpose.msk.msrb.mxu2 %vm2216_vm3, %v8197_v29  ;;  %3367 = vmatpush.xpose.msk.msrb.mxu3 %vm7736_vm4, %v8197_v29 }
 0x3cd   :  { %2408 = vmatmul.f32.vlgmr.msrb.gmra.mxu1 %v6785_v60 }
 0x3ce   :  { %3381 = vmatpush.xpose.msk.msra.mxu1 %vm7735_vm11, %v8197_v29  ;;  %v1773_v21 = vpop.xlane.xlu1 %1772  ;;  %vm2214_vm11 = vcmp.eq.s32.totalorder %v4111_v4, %v6756_v25 }
 0x3cf   :  { %v1774_v42 = vcvt.f32.s32 %v1773_v21 }
 0x3d0   :  { %3352 = vmatpush.xpose.msk.msrb.mxu2 %vm2215_vm13, %v8197_v29 }
 0x3d1   :  { %v6764_v23 = vadd.s32 %v1776_v37, %v1774_v42  ;;  %v8434_v37 = vld [vmem:[#allocation249_spill] sm:$0xff] }
 0x3d2   :  { %v8435_v42 = vld [vmem:[#allocation185_spill] sm:$0xff] }
 0x3d3   :  { %vm2231_vm4 = vcmp.eq.s32.totalorder %v4111_v4, %v6764_v23  ;;  %v8490_v23 = vld [vmem:[#allocation192_spill] sm:$0xff] }
 0x3d4   :  { %3353 = vmatpush.xpose.msk.msrb.mxu2 %vm2214_vm11, %v8197_v29  ;;  %3368 = vmatpush.xpose.msk.msrb.mxu3 %vm2231_vm4, %v8197_v29 }
 0x3d6   :  { %v2025_v2 = vpop.xlane.xlu0 %2024  ;;  %v1759_v9 = vpop.xlane.xlu1 %1758 }
 0x3d7   :  { %v2026_v53 = vcvt.f32.s32 %v2025_v2  ;;  %v1760_v33 = vcvt.f32.s32 %v1759_v9  ;;  %2428 = vmatmul.f32.vlgmr.msrb.gmra.mxu2 %v6785_v60  ;;  %v8440_v9 = vld [vmem:[#allocation26_spill] sm:$0xff] }
 0x3d8   :  { %3386 = vmatpush.msk.msra.mxu2 %vm2213_vm1, %v8197_v29 }
 0x3d9   :  { %v6793_v35 = vadd.s32 %v2028_v0, %v2026_v53  ;;  %v6795_v17 = vadd.s32 %v1762_v8, %v1760_v33  ;;  %v8441_v33 = vld [vmem:[#allocation186_spill] sm:$0xff] }
 0x3da   :  { %3387 = vmatpush.msk.msra.mxu2 %vm2212_vm7, %v8197_v29 }
 0x3db   :  { %vm2230_vm1 = vcmp.eq.s32.totalorder %v4111_v4, %v6795_v17  ;;  %vm2249_vm7 = vcmp.eq.s32.totalorder %v4111_v4, %v6793_v35  ;;  %v8495_v17 = vld [vmem:[#allocation158_spill] sm:$0xff]  ;;  %v8501_v35 = vld [vmem:[#allocation253_spill] sm:$0xff] }
 0x3dc   :  { %3388 = vmatpush.msk.msra.mxu2 %vm2211_vm10, %v8197_v29  ;;  %3369 = vmatpush.xpose.msk.msrb.mxu3 %vm2230_vm1, %v8197_v29  ;;  %vm8397_vm10 = vcmp.eq.s32.totalorder %v4111_v4, %v6378_v5  ;;  %v8412_v5 = vld [vmem:[#allocation29_spill] sm:$0xff] }
 0x3dd   :  { %3382 = vmatpush.xpose.msk.msra.mxu1 %vm2249_vm7, %v8197_v29 }
 0x3de   :  { %3389 = vmatpush.msk.msra.mxu2 %vm2210_vm14, %v8197_v29  ;;  %v2011_v51 = vpop.xlane.xlu1 %2010  ;;  %vm8398_vm14 = vcmp.eq.s32.totalorder %v4111_v4, %v6524_v31  ;;  %v8423_v31 = vld [vmem:[#allocation176_spill] sm:$0xff] }
 0x3df   :  { %v2012_v11 = vcvt.f32.s32 %v2011_v51  ;;  %2448 = vmatmul.f32.vlgmr.msrb.gmra.mxu3 %v6785_v60 }
 0x3e0   :  { %3390 = vmatpush.msk.msra.mxu2 %vm2209_vm15, %v8197_v29  ;;  %3402 = vmatpush.msk.msra.mxu3 %vm2229_vm6, %v8197_v29  ;;  %vm8400_vm15 = vcmp.eq.s32.totalorder %v4111_v4, %v6550_v6  ;;  %v8424_v6 = vld [vmem:[#allocation255_spill] sm:$0xff] }
 0x3e1   :  { %v6835_v7 = vadd.s32 %v2014_v20, %v2012_v11  ;;  %v8446_v20 = vld [vmem:[#allocation246_spill] sm:$0xff] }
 0x3e2   :  { %3391 = vmatpush.msk.msra.mxu2 %vm2208_vm5, %v8197_v29  ;;  %3403 = vmatpush.msk.msra.mxu3 %vm2228_vm8, %v8197_v29  ;;  %vm8395_vm8 = vcmp.eq.s32.totalorder %v4111_v4, %v6365_v30  ;;  %vm8401_vm5 = vcmp.eq.s32.totalorder %v4111_v4, %v6412_v58  ;;  %v8416_v58 = vld [vmem:[#allocation159_spill] sm:$0xff] }
 0x3e3   :  { %vm2248_vm6 = vcmp.eq.s32.totalorder %v4111_v4, %v6835_v7  ;;  %v8505_v7 = vld [vmem:[#allocation24_spill] sm:$0xff] }
 0x3e4   :  { %3392 = vmatpush.msk.msra.mxu2 %vm2207_vm9, %v8197_v29  ;;  %3404 = vmatpush.msk.msra.mxu3 %vm2227_vm0, %v8197_v29  ;;  %vm8396_vm0 = vcmp.eq.s32.totalorder %v4111_v4, %v6504_v10  ;;  %vm8402_vm9 = vcmp.eq.s32.totalorder %v4111_v4, %v6577_v1  ;;  %v8421_v10 = vld [vmem:[#allocation127_spill] sm:$0xff]  ;;  %v8425_v1 = vld [vmem:[#allocation234_spill] sm:$0xff] }
 0x3e5   :  { %3383 = vmatpush.xpose.msk.msra.mxu1 %vm2248_vm6, %v8197_v29 }
 0x3e6   :  { %3393 = vmatpush.msk.msra.mxu2 %vm2206_vm12, %v8197_v29  ;;  %3405 = vmatpush.msk.msra.mxu3 %vm2226_vm2, %v8197_v29  ;;  %v1997_v50 = vpop.xlane.xlu2 %1996  ;;  %vm8399_vm12 = vcmp.eq.s32.totalorder %v4111_v4, %v6393_v26  ;;  %v8414_v26 = vld [vmem:[#allocation154_spill] sm:$0xff] }
 0x3e7   :  { %v1998_v34 = vcvt.f32.s32 %v1997_v50  ;;  %3783 = vrcp.f32 %v8414_v26  ;;  %v8453_v26 = vld [vmem:[#allocation191_spill] sm:$0xff] }
 0x3e8   :  { %3394 = vmatpush.msk.msra.mxu2 %vm8395_vm8, %v8197_v29  ;;  %3406 = vmatpush.msk.msra.mxu3 %vm8396_vm0, %v8197_v29  ;;  %vm8403_vm8 = vcmp.eq.s32.totalorder %v4111_v4, %v6425_v45  ;;  %vm8404_vm0 = vcmp.eq.s32.totalorder %v4111_v4, %v6600_v63  ;;  %3785 = vrcp.f32 %v8416_v58  ;;  %v8417_v45 = vld [vmem:[#allocation231_spill] sm:$0xff] }
 0x3e9   :  { %v6876_v30 = vadd.s32 %v2000_v13, %v1998_v34  ;;  %v8451_v13 = vld [vmem:[#allocation243_spill] sm:$0xff]  ;;  %v8452_v34 = vld [vmem:[#allocation114_spill] sm:$0xff] }
 0x3ea   :  { %3395 = vmatpush.msk.msra.mxu2 %vm8397_vm10, %v8197_v29  ;;  %3407 = vmatpush.msk.msra.mxu3 %vm8398_vm14, %v8197_v29  ;;  %vm8405_vm10 = vcmp.eq.s32.totalorder %v4111_v4, %v6439_v52  ;;  %vm8406_vm14 = vcmp.eq.s32.totalorder %v4111_v4, %v6627_v55  ;;  %v8419_v52 = vld [vmem:[#allocation160_spill] sm:$0xff]  ;;  %v8427_v55 = vld [vmem:[#allocation177_spill] sm:$0xff] }
 0x3eb   :  { %vm2247_vm2 = vcmp.eq.s32.totalorder %v4111_v4, %v6876_v30  ;;  %3787 = vrcp.f32 %v8419_v52  ;;  %v8510_v30 = vld [vmem:[#allocation153_spill] sm:$0xff] }
 0x3ec   :  { %3396 = vmatpush.msk.msra.mxu2 %vm8399_vm12, %v8197_v29  ;;  %3408 = vmatpush.msk.msra.mxu3 %vm8400_vm15, %v8197_v29  ;;  %vm8407_vm12 = vcmp.eq.s32.totalorder %v4111_v4, %v6448_v22  ;;  %vm8408_vm15 = vcmp.eq.s32.totalorder %v4111_v4, %v6649_v48  ;;  %v8420_v22 = vld [vmem:[#allocation168_spill] sm:$0xff] }
 0x3ed   :  { %3384 = vmatpush.xpose.msk.msra.mxu1 %vm2247_vm2, %v8197_v29  ;;  %3789 = vrcp.f32 %v8420_v22  ;;  %v6967_v63 = vpop.eup %3783  ;;  %v8428_v48 = vld [vmem:[#allocation32_spill] sm:$0xff]  ;;  %v8458_v22 = vld [vmem:[#allocation195_spill] sm:$0xff] }
 0x3ee   :  { %3397 = vmatpush.msk.msra.mxu2 %vm8401_vm5, %v8197_v29  ;;  %3409 = vmatpush.msk.msra.mxu3 %vm8402_vm9, %v8197_v29  ;;  %vm8410_vm5 = vcmp.eq.s32.totalorder %v4111_v4, %v8409_v46  ;;  %vm8411_vm9 = vcmp.eq.s32.totalorder %v4111_v4, %v6674_v19  ;;  %3791 = vrcp.f32 %v8423_v31  ;;  %v1985_v19 = vcvt.f32.s32 %v8428_v48  ;;  %v8461_v31 = vld [vmem:[#allocation237_spill] sm:$0xff] }
 0x3ef   :  { %3793 = vrcp.f32 %v8424_v6  ;;  %v8464_v48 = vld [vmem:[#allocation197_spill] sm:$0xff] }
 0x3f0   :  { %3398 = vmatpush.msk.msra.mxu2 %vm8403_vm8, %v8197_v29  ;;  %3410 = vmatpush.msk.msra.mxu3 %vm8404_vm0, %v8197_v29  ;;  %vm8413_vm8 = vcmp.eq.s32.totalorder %v4111_v4, %v8412_v5  ;;  %vm8415_vm0 = vcmp.eq.s32.totalorder %v4111_v4, %v6697_v44  ;;  %3795 = vrcp.f32 %v8427_v55  ;;  %v6975_v44 = vpop.eup %3785  ;;  %v1986_v8 = vshll.u32 %v1985_v19, 16  ;;  %v8462_v55 = vld [vmem:[#allocation73_spill] sm:$0xff] }
 0x3f1   :  { %3797 = vrcp.f32 %v8429_v56  ;;  %v6986_v21 = vpop.eup %3787  ;;  %v8466_v19 = vld [vmem:[#allocation213_spill] sm:$0xff] }
 0x3f2   :  { %3399 = vmatpush.msk.msra.mxu2 %vm8405_vm10, %v8197_v29  ;;  %3411 = vmatpush.msk.msra.mxu3 %vm8406_vm14, %v8197_v29  ;;  %vm8418_vm10 = vcmp.eq.s32.totalorder %v4111_v4, %v8417_v45  ;;  %vm8422_vm14 = vcmp.eq.s32.totalorder %v4111_v4, %v8421_v10  ;;  %3799 = vrcp.f32 %v8434_v37  ;;  %v8456_v45 = vld [vmem:[#allocation115_spill] sm:$0xff] }
 0x3f3   :  { %v6990_v25 = vpop.eup %3789  ;;  %3801 = vrcp.f32 %v8435_v42  ;;  %v8459_v10 = vld [vmem:[#allocation199_spill] sm:$0xff] }
 0x3f4   :  { %3400 = vmatpush.msk.msra.mxu2 %vm8407_vm12, %v8197_v29  ;;  %3412 = vmatpush.msk.msra.mxu3 %vm8408_vm15, %v8197_v29  ;;  %vm8433_vm12 = vcmp.eq.s32.totalorder %v4111_v4, %v8432_v47  ;;  %vm8439_vm15 = vcmp.eq.s32.totalorder %v4111_v4, %v8438_v54  ;;  %v7001_v2 = vpop.eup %3791  ;;  %3803 = vrcp.f32 %v8440_v9  ;;  %v8467_v47 = vld [vmem:[#allocation143_spill] sm:$0xff] }
 0x3f5   :  { %v3794_v53 = vpop.eup %3793  ;;  %3805 = vrcp.f32 %v8441_v33 }
 0x3f6   :  { %3401 = vmatpush.msk.msra.mxu2 %vm8410_vm5, %v8197_v29  ;;  %3413 = vmatpush.msk.msra.mxu3 %vm8411_vm9, %v8197_v29  ;;  %vm8443_vm5 = vcmp.eq.s32.totalorder %v4111_v4, %v8442_v24  ;;  %vm8445_vm9 = vcmp.eq.s32.totalorder %v4111_v4, %v8444_v12  ;;  %v7013_v51 = vpop.eup %3795  ;;  %3807 = vrcp.f32 %v8446_v20  ;;  %v933_v46 = vmul.f32 %v3794_v53, %v8452_v34  ;;  %v8482_v24 = vld [vmem:[#allocation226_spill] sm:$0xff]  ;;  %v8484_v12 = vld [vmem:[#allocation119_spill] sm:$0xff] }
 0x3f7   :  { %2848 = vmatmul.f32.vlgmr.msra.gmra.mxu2 %v8197_v29  ;;  %v7018_v49 = vpop.eup %3797  ;;  %3809 = vrcp.f32 %v8447_v40  ;;  %v8489_v34 = vld [vmem:[#allocation27_spill] sm:$0xff] }
 0x3f8   :  { %3418 = vmatpush.msk.msrb.mxu2 %vm8413_vm8, %v8197_v29  ;;  %3414 = vmatpush.msk.msra.mxu3 %vm8415_vm0, %v8197_v29  ;;  %vm8449_vm8 = vcmp.eq.s32.totalorder %v4111_v4, %v8448_v62  ;;  %vm8450_vm0 = vcmp.eq.s32.totalorder %v4111_v4, %v6518_v16  ;;  %v3800_v50 = vpop.eup %3799  ;;  %3811 = vrcp.f32 %v8451_v13  ;;  %v8454_v16 = vld [vmem:[#allocation80_spill] sm:$0xff] }
 0x3f9   :  { %v7033_v5 = vpop.eup %3801  ;;  %3813 = vrcp.f32 %v8453_v26  ;;  %v932_v6 = vmul.f32 %v3800_v50, %v8461_v31  ;;  %v8486_v62 = vld [vmem:[#allocation20_spill] sm:$0xff]  ;;  %v8496_v31 = vld [vmem:[#allocation221_spill] sm:$0xff] }
 0x3fa   :  { %3419 = vmatpush.msk.msrb.mxu2 %vm8418_vm10, %v8197_v29  ;;  %3415 = vmatpush.msk.msra.mxu3 %vm2216_vm3, %v8197_v29  ;;  %vm8426_vm3 = vcmp.eq.s32.totalorder %v4111_v4, %v8425_v1  ;;  %v3804_v58 = vpop.eup %3803  ;;  %3815 = vrcp.f32 %v8456_v45  ;;  %v8494_v45 = vld [vmem:[#allocation169_spill] sm:$0xff] }
 0x3fb   :  { %v7049_v52 = vpop.eup %3805  ;;  %3817 = vrcp.f32 %v8458_v22  ;;  %v931_v56 = vmul.f32 %v3804_v58, %v8466_v19 }
 0x3fc   :  { %3420 = vmatpush.msk.msrb.mxu2 %vm8422_vm14, %v8197_v29  ;;  %3416 = vmatpush.msk.msra.mxu3 %vm2215_vm13, %v8197_v29  ;;  %vm8431_vm13 = vcmp.eq.s32.totalorder %v4111_v4, %v8430_v59  ;;  %vm8455_vm14 = vcmp.eq.s32.totalorder %v4111_v4, %v8454_v16  ;;  %v3808_v1 = vpop.eup %3807  ;;  %3819 = vrcp.f32 %v8462_v55  ;;  %v8491_v16 = vld [vmem:[#allocation216_spill] sm:$0xff] }
 0x3fd   :  { %3821 = vrcp.f32 %v8464_v48  ;;  %v8499_v55 = vld [vmem:[#allocation156_spill] sm:$0xff] }
 0x3fe   :  { %3421 = vmatpush.msk.msrb.mxu2 %vm8426_vm3, %v8197_v29  ;;  %3417 = vmatpush.msk.msra.mxu3 %vm2214_vm11, %v8197_v29  ;;  %v1983_v28 = vpop.xlane.xlu0 %1982  ;;  %vm8437_vm11 = vcmp.eq.s32.totalorder %v4111_v4, %v8436_v41  ;;  %vm8457_vm3 = vcmp.eq.s32.totalorder %v4111_v4, %v6543_v32  ;;  %v7063_v32 = vpop.eup %3809  ;;  %3823 = vrcp.f32 %v8467_v47  ;;  %v8474_v41 = vld [vmem:[#allocation209_spill] sm:$0xff] }
 0x3ff   :  { %2868 = vmatmul.f32.vlgmr.msra.gmra.mxu3 %v8197_v29  ;;  %v1984_v0 = vcvt.f32.s32 %v1983_v28  ;;  %v3812_v59 = vpop.eup %3811  ;;  %v8472_v28 = vld [vmem:[#allocation232_spill] sm:$0xff] }
 0x400   :  { %3422 = vmatpush.msk.msrb.mxu2 %vm8431_vm13, %v8197_v29  ;;  %3434 = vmatpush.msk.msrb.mxu3 %vm8433_vm12, %v8197_v29  ;;  %vm8460_vm13 = vcmp.eq.s32.totalorder %v4111_v4, %v8459_v10  ;;  %vm8463_vm12 = vcmp.eq.s32.totalorder %v4111_v4, %v6571_v36  ;;  %v7076_v36 = vpop.eup %3813 }
 0x401   :  { %v7016_v11 = vadd.s32 %v1986_v8, %v1984_v0  ;;  %v3816_v42 = vpop.eup %3815  ;;  %v8477_v8 = vld [vmem:[#allocation69_spill] sm:$0xff] }
 0x402   :  { %3423 = vmatpush.msk.msrb.mxu2 %vm8437_vm11, %v8197_v29  ;;  %3435 = vmatpush.msk.msrb.mxu3 %vm8439_vm15, %v8197_v29  ;;  %vm8465_vm11 = vcmp.eq.s32.totalorder %v4111_v4, %v6591_v3  ;;  %vm8468_vm15 = vcmp.eq.s32.totalorder %v4111_v4, %v6594_v61  ;;  %v8471_v3 = vld [vmem:[#allocation223_spill] sm:$0xff]  ;;  %v7089_v61 = vpop.eup %3817  ;;  %v8479_v0 = vld [vmem:[#allocation257_spill] sm:$0xff] }
 0x403   :  { %vm2246_vm10 = vcmp.eq.s32.totalorder %v4111_v4, %v7016_v11  ;;  %v930_v37 = vmul.f32 %v3808_v1, %v8471_v3  ;;  %v3820_v9 = vpop.eup %3819  ;;  %v8498_v1 = vld [vmem:[#allocation72_spill] sm:$0xff] }
 0x404   :  { %3424 = vmatpush.msk.msrb.mxu2 %vm8443_vm5, %v8197_v29  ;;  %3436 = vmatpush.msk.msrb.mxu3 %vm8445_vm9, %v8197_v29  ;;  %vm8470_vm5 = vcmp.eq.s32.totalorder %v4111_v4, %v6642_v18  ;;  %vm8473_vm9 = vcmp.eq.s32.totalorder %v4111_v4, %v6622_v57  ;;  %v8476_v18 = vld [vmem:[#allocation45_spill] sm:$0xff]  ;;  %v3822_v57 = vpop.eup %3821 }
 0x405   :  { %3385 = vmatpush.xpose.msk.msra.mxu1 %vm2246_vm10, %v8197_v29  ;;  %v929_v54 = vmul.f32 %v3812_v59, %v8476_v18  ;;  %v3824_v33 = vpop.eup %3823  ;;  %v8506_v18 = vld [vmem:[#allocation83_spill] sm:$0xff] }
 0x406   :  { %3425 = vmatpush.msk.msrb.mxu2 %vm8449_vm8, %v8197_v29  ;;  %3437 = vmatpush.msk.msrb.mxu3 %vm8450_vm0, %v8197_v29  ;;  %vm8475_vm8 = vcmp.eq.s32.totalorder %v4111_v4, %v6689_v43  ;;  %vm8478_vm0 = vcmp.eq.s32.totalorder %v4111_v4, %v6645_v39  ;;  %v8481_v43 = vld [vmem:[#allocation188_spill] sm:$0xff] }
 0x407   :  { %v928_v53 = vmul.f32 %v3816_v42, %v8481_v43  ;;  %v8504_v42 = vld [vmem:[#allocation37_spill] sm:$0xff] }
 0x408   :  { %3426 = vmatpush.msk.msrb.mxu2 %vm8455_vm14, %v8197_v29  ;;  %3438 = vmatpush.msk.msrb.mxu3 %vm8457_vm3, %v8197_v29  ;;  %vm8480_vm14 = vcmp.eq.s32.totalorder %v4111_v4, %v6733_v14  ;;  %vm8483_vm3 = vcmp.eq.s32.totalorder %v4111_v4, %v6670_v15  ;;  %v8485_v14 = vld [vmem:[#allocation198_spill] sm:$0xff]  ;;  %v8488_v15 = vld [vmem:[#allocation84_spill] sm:$0xff] }
 0x409   :  { %2913 = vmatpush.msrb.mxu1 %v933_v46  ;;  %v927_v20 = vmul.f32 %v3820_v9, %v8485_v14  ;;  %v949_v50 = vmul.f32 %v7013_v51, %v8488_v15  ;;  %v926_v46 = vmul.f32 %v3824_v33, %v8490_v23  ;;  %v8512_v14 = vld [vmem:[#allocation109_spill] sm:$0xff]  ;;  %v8514_v15 = vld [vmem:[#allocation227_spill] sm:$0xff]  ;;  %v8517_v23 = vld [vmem:[#allocation90_spill] sm:$0xff] }
 0x40a   :  { %3427 = vmatpush.msk.msrb.mxu2 %vm8460_vm13, %v8197_v29  ;;  %3439 = vmatpush.msk.msrb.mxu3 %vm8463_vm12, %v8197_v29  ;;  %vm8487_vm13 = vcmp.eq.s32.totalorder %v4111_v4, %v6693_v27  ;;  %v8493_v27 = vld [vmem:[#allocation82_spill] sm:$0xff]  ;;  %vm2481_vm12 = vcmask 1042434  }
 0x40b   :  { %2468 = vmatmul.f32.vlgmr.msra.gmra.mxu1 %v6785_v60  ;;  %v8469_v60 = vld [vmem:[#allocation205_spill] sm:$0xff]  ;;  %v948_v51 = vmul.f32 %v7001_v2, %v8493_v27  ;;  %v8519_v27 = vld [vmem:[#allocation124_spill] sm:$0xff] }
 0x40c   :  { %2914 = vmatpush.msrb.mxu1 %v932_v6  ;;  %3428 = vmatpush.msk.msrb.mxu2 %vm8465_vm11, %v8197_v29  ;;  %3825 = vrcp.f32 %v8469_v60  ;;  %v8502_v60 = vld [vmem:[#allocation137_spill] sm:$0xff]  ;;  %vm2483_vm11 = vcmask 1041408  }
 0x40d   :  { %3440 = vmatpush.msk.msrb.mxu3 %vm8468_vm15, %v8197_v29  ;;  %3827 = vrcp.f32 %v8472_v28 }
 0x40e   :  { %2915 = vmatpush.msrb.mxu1 %v931_v56  ;;  %3429 = vmatpush.msk.msrb.mxu2 %vm8470_vm5, %v8197_v29  ;;  %3829 = vrcp.f32 %v8474_v41  ;;  %v8500_v56 = vld [vmem:[#allocation222_spill] sm:$0xff] }
 0x40f   :  { %3441 = vmatpush.msk.msrb.mxu3 %vm8473_vm9, %v8197_v29  ;;  %3831 = vrcp.f32 %v8477_v8  ;;  %v8508_v8 = vld [vmem:[#allocation178_spill] sm:$0xff] }
 0x410   :  { %2916 = vmatpush.msrb.mxu1 %v930_v37  ;;  %3430 = vmatpush.msk.msrb.mxu2 %vm8475_vm8, %v8197_v29  ;;  %3833 = vrcp.f32 %v8479_v0 }
 0x411   :  { %3442 = vmatpush.msk.msrb.mxu3 %vm8478_vm0, %v8197_v29  ;;  %3835 = vrcp.f32 %v8482_v24 }
 0x412   :  { %2917 = vmatpush.msrb.mxu1 %v929_v54  ;;  %3431 = vmatpush.msk.msrb.mxu2 %vm8480_vm14, %v8197_v29  ;;  %v7113_v39 = vpop.eup %3825  ;;  %3837 = vrcp.f32 %v8484_v12  ;;  %v8507_v54 = vld [vmem:[#allocation111_spill] sm:$0xff] }
 0x413   :  { %3443 = vmatpush.msk.msrb.mxu3 %vm8483_vm3, %v8197_v29  ;;  %v3828_v40 = vpop.eup %3827  ;;  %3839 = vrcp.f32 %v8486_v62  ;;  %v922_v9 = vmul.f32 %v3822_v57, %v8507_v54  ;;  %v8511_v12 = vld [vmem:[#allocation55_spill] sm:$0xff]  ;;  %v921_v57 = vmul.f32 %v7089_v61, %v8512_v14  ;;  %v8536_v54 = vld [vmem:[#allocation170_spill] sm:$0xff] }
 0x414   :  { %2918 = vmatpush.msrb.mxu1 %v928_v53  ;;  %3432 = vmatpush.msk.msrb.mxu2 %vm2231_vm4, %v8197_v29  ;;  %v7128_v13 = vpop.eup %3829  ;;  %3841 = vrcp.f32 %v8489_v34  ;;  %vm8492_vm4 = vcmp.eq.s32.totalorder %v4111_v4, %v6731_v38  ;;  %v925_v22 = vmul.f32 %v3828_v40, %v8495_v17  ;;  %v8497_v38 = vld [vmem:[#allocation54_spill] sm:$0xff]  ;;  %v8509_v53 = vld [vmem:[#allocation85_spill] sm:$0xff]  ;;  %v8516_v34 = vld [vmem:[#allocation52_spill] sm:$0xff] }
 0x415   :  { %3444 = vmatpush.msk.msrb.mxu3 %vm8487_vm13, %v8197_v29  ;;  %v3832_v26 = vpop.eup %3831  ;;  %3843 = vrcp.f32 %v8491_v16  ;;  %v947_v2 = vmul.f32 %v6967_v63, %v8497_v38  ;;  %v8503_v63 = vld [vmem:[#allocation150_spill] sm:$0xff]  ;;  %v8515_v4 = vld [vmem:[#allocation193_spill] sm:$0xff] }
 0x416   :  { %2919 = vmatpush.msrb.mxu1 %v927_v20  ;;  %3433 = vmatpush.msk.msrb.mxu2 %vm2230_vm1, %v8197_v29  ;;  %v3834_v58 = vpop.eup %3833  ;;  %3845 = vrcp.f32 %v8494_v45  ;;  %v924_v48 = vmul.f32 %v3832_v26, %v8499_v55  ;;  %v8513_v20 = vld [vmem:[#allocation139_spill] sm:$0xff]  ;;  %v8518_v26 = vld [vmem:[#allocation144_spill] sm:$0xff]  ;;  %v8521_v17 = vld [vmem:[#allocation218_spill] sm:$0xff] }
 0x417   :  { %3445 = vmatpush.msk.msrb.mxu3 %vm8492_vm4, %v8197_v29  ;;  %2888 = vmatmul.f32.vlgmr.msrb.gmra.mxu2 %v8197_v29  ;;  %v3836_v10 = vpop.eup %3835  ;;  %3847 = vrcp.f32 %v8496_v31  ;;  %v946_v59 = vmul.f32 %v3834_v58, %v8501_v35  ;;  %v8523_v31 = vld [vmem:[#allocation122_spill] sm:$0xff] }
 0x418   :  { %2933 = vmatpush.msra.mxu2 %v949_v50  ;;  %2920 = vmatpush.msrb.mxu1 %v926_v46  ;;  %v3838_v6 = vpop.eup %3837  ;;  %3849 = vrcp.f32 %v8498_v1  ;;  %v923_v3 = vmul.f32 %v3836_v10, %v8503_v63  ;;  %v920_v46 = vmul.f32 %v7018_v49, %v8517_v23  ;;  %v962_v38 = vmul.f32 %v7113_v39, %v8523_v31  ;;  %v8528_v35 = vld [vmem:[#allocation98_spill] sm:$0xff]  ;;  %v8531_v63 = vld [vmem:[#allocation107_spill] sm:$0xff] }
 0x419   :  { %3446 = vmatpush.msk.msrb.mxu3 %vm2249_vm7, %v8197_v29  ;;  %v3840_v19 = vpop.eup %3839  ;;  %3851 = vrcp.f32 %v8500_v56  ;;  %v945_v28 = vmul.f32 %v3838_v6, %v8505_v7  ;;  %v8525_v6 = vld [vmem:[#allocation40_spill] sm:$0xff]  ;;  %v8530_v39 = vld [vmem:[#allocation194_spill] sm:$0xff] }
 0x41a   :  { %2934 = vmatpush.msra.mxu2 %v948_v51  ;;  %2921 = vmatpush.msrb.mxu1 %v925_v22  ;;  %v3842_v47 = vpop.eup %3841  ;;  %3853 = vrcp.f32 %v8502_v60  ;;  %v965_v0 = vmul.f32 %v3840_v19, %v8508_v8  ;;  %v8520_v51 = vld [vmem:[#allocation25_spill] sm:$0xff]  ;;  %v8522_v22 = vld [vmem:[#allocation70_spill] sm:$0xff]  ;;  %v8527_v19 = vld [vmem:[#allocation60_spill] sm:$0xff] }
 0x41b   :  { %3447 = vmatpush.msk.msrb.mxu3 %vm2248_vm6, %v8197_v29  ;;  %v3844_v37 = vpop.eup %3843  ;;  %3855 = vrcp.f32 %v8504_v42  ;;  %v944_v33 = vmul.f32 %v3842_v47, %v8510_v30  ;;  %v919_v10 = vmul.f32 %v6990_v25, %v8522_v22  ;;  %v918_v56 = vmul.f32 %v6975_v44, %v8527_v19  ;;  %v8529_v47 = vld [vmem:[#allocation165_spill] sm:$0xff]  ;;  %v8532_v42 = vld [vmem:[#allocation167_spill] sm:$0xff]  ;;  %v8533_v7 = vld [vmem:[#allocation96_spill] sm:$0xff] }
 0x41c   :  { %2935 = vmatpush.msra.mxu2 %v947_v2  ;;  %2922 = vmatpush.msrb.mxu1 %v924_v48  ;;  %v3846_v41 = vpop.eup %3845  ;;  %3857 = vrcp.f32 %v8506_v18  ;;  %v964_v40 = vmul.f32 %v3844_v37, %v8513_v20  ;;  %v8524_v2 = vld [vmem:[#allocation175_spill] sm:$0xff]  ;;  %v8526_v48 = vld [vmem:[#allocation224_spill] sm:$0xff]  ;;  %v961_v25 = vmul.f32 %v7049_v52, %v8528_v35  ;;  %v8542_v20 = vld [vmem:[#allocation166_spill] sm:$0xff] }
 0x41d   :  { %3448 = vmatpush.msk.msrb.mxu3 %vm2247_vm2, %v8197_v29  ;;  %v3848_v43 = vpop.eup %3847  ;;  %3859 = vrcp.f32 %v8509_v53  ;;  %v943_v11 = vmul.f32 %v3846_v41, %v8515_v4  ;;  %v8534_v41 = vld [vmem:[#allocation117_spill] sm:$0xff]  ;;  %v8535_v52 = vld [vmem:[#allocation184_spill] sm:$0xff]  ;;  %v8553_v31 = vld [vmem:[#allocation202_spill] sm:$0xff] }
 0x41e   :  { %2936 = vmatpush.msra.mxu2 %v946_v59  ;;  %2923 = vmatpush.msrb.mxu1 %v923_v3  ;;  %v3850_v24 = vpop.eup %3849  ;;  %3861 = vrcp.f32 %v8511_v12  ;;  %v963_v61 = vmul.f32 %v3848_v43, %v8518_v26  ;;  %v8538_v43 = vld [vmem:[#allocation61_spill] sm:$0xff]  ;;  %v8541_v12 = vld [vmem:[#allocation43_spill] sm:$0xff]  ;;  %v8547_v26 = vld [vmem:[#allocation248_spill] sm:$0xff] }
 0x41f   :  { %3449 = vmatpush.msk.msrb.mxu3 %vm2246_vm10, %v8197_v29  ;;  %v3852_v62 = vpop.eup %3851  ;;  %3863 = vrcp.f32 %v8514_v15  ;;  %v942_v58 = vmul.f32 %v3850_v24, %v8520_v51  ;;  %v959_v53 = vmul.f32 %v6986_v21, %v8538_v43  ;;  %v8545_v21 = vld [vmem:[#allocation151_spill] sm:$0xff]  ;;  %v8550_v51 = vld [vmem:[#allocation128_spill] sm:$0xff]  ;;  %v8568_v43 = vld [vmem:[#allocation77_spill] sm:$0xff]  ;;  %vm2479_vm10 = vcmask 1040384  }
 0x420   :  { %2937 = vmatpush.msra.mxu2 %v945_v28  ;;  %2924 = vmatpush.msrb.mxu1 %v922_v9  ;;  %v3854_v50 = vpop.eup %3853  ;;  %3865 = vrcp.f32 %v8516_v34  ;;  %v960_v28 = vmul.f32 %v7033_v5, %v8533_v7  ;;  %v8539_v5 = vld [vmem:[#allocation95_spill] sm:$0xff] }
 0x421   :  { %2953 = vmatpush.msra.mxu3 %v965_v0  ;;  %v3856_v16 = vpop.eup %3855  ;;  %3867 = vrcp.f32 %v8519_v27  ;;  %v941_v1 = vmul.f32 %v3854_v50, %v8525_v6  ;;  %v8537_v0 = vld [vmem:[#allocation251_spill] sm:$0xff]  ;;  %v8555_v6 = vld [vmem:[#allocation104_spill] sm:$0xff] }
 0x422   :  { %2938 = vmatpush.msra.mxu2 %v944_v33  ;;  %2908 = vmatmul.f32.vlgmr.msrb.gmra.mxu3 %v8197_v29  ;;  %v3858_v45 = vpop.eup %3857  ;;  %3869 = vrcp.f32 %v8521_v17  ;;  %v981_v60 = vmul.f32 %v3856_v16, %v8530_v39  ;;  %v8540_v33 = vld [vmem:[#allocation145_spill] sm:$0xff]  ;;  %v8546_v34 = vld [vmem:[#allocation75_spill] sm:$0xff] }
 0x423   :  { %2925 = vmatpush.msrb.mxu1 %v921_v57  ;;  %2954 = vmatpush.msra.mxu3 %v964_v40  ;;  %v3860_v49 = vpop.eup %3859  ;;  %3871 = vrcp.f32 %v8524_v2  ;;  %v940_v3 = vmul.f32 %v3858_v45, %v8531_v63  ;;  %v979_v24 = vmul.f32 %v3852_v62, %v8540_v33  ;;  %v8543_v40 = vld [vmem:[#allocation200_spill] sm:$0xff]  ;;  %v8549_v27 = vld [vmem:[#allocation207_spill] sm:$0xff]  ;;  %v8554_v2 = vld [vmem:[#allocation210_spill] sm:$0xff] }
 0x424   :  { %2939 = vmatpush.msra.mxu2 %v943_v11  ;;  %v3862_v55 = vpop.eup %3861  ;;  %3873 = vrcp.f32 %v8526_v48  ;;  %v980_v18 = vmul.f32 %v3860_v49, %v8535_v52  ;;  %v8544_v11 = vld [vmem:[#allocation121_spill] sm:$0xff]  ;;  %v8548_v62 = vld [vmem:[#allocation208_spill] sm:$0xff]  ;;  %v8551_v45 = vld [vmem:[#allocation91_spill] sm:$0xff] }
 0x425   :  { %2926 = vmatpush.msrb.mxu1 %v920_v46  ;;  %2955 = vmatpush.msra.mxu3 %v963_v61  ;;  %v3864_v59 = vpop.eup %3863  ;;  %3875 = vrcp.f32 %v8529_v47  ;;  %v939_v9 = vmul.f32 %v3862_v55, %v8536_v54  ;;  %v8556_v55 = vld [vmem:[#allocation240_spill] sm:$0xff]  ;;  %v8560_v47 = vld [vmem:[#allocation103_spill] sm:$0xff] }
 0x426   :  { %2940 = vmatpush.msra.mxu2 %v942_v58  ;;  %v3866_v37 = vpop.eup %3865  ;;  %3877 = vrcp.f32 %v8532_v42  ;;  %v978_v50 = vmul.f32 %v3864_v59, %v8545_v21  ;;  %v977_v58 = vmul.f32 %v7128_v13, %v8550_v51  ;;  %v8557_v13 = vld [vmem:[#allocation134_spill] sm:$0xff]  ;;  %v8559_v59 = vld [vmem:[#allocation196_spill] sm:$0xff]  ;;  %v975_v39 = vmul.f32 %v7063_v32, %v8560_v47 }
 0x427   :  { %2927 = vmatpush.msrb.mxu1 %v919_v10  ;;  %2956 = vmatpush.msra.mxu3 %v962_v38  ;;  %v3868_v44 = vpop.eup %3867  ;;  %3879 = vrcp.f32 %v8534_v41  ;;  %v938_v14 = vmul.f32 %v3866_v37, %v8541_v12  ;;  %v8552_v10 = vld [vmem:[#allocation157_spill] sm:$0xff]  ;;  %v8563_v37 = vld [vmem:[#allocation179_spill] sm:$0xff]  ;;  %v8565_v52 = vld [vmem:[#allocation244_spill] sm:$0xff] }
 0x428   :  { %2941 = vmatpush.msra.mxu2 %v941_v1  ;;  %v3870_v8 = vpop.eup %3869  ;;  %3881 = vrcp.f32 %v8537_v0  ;;  %v958_v15 = vmul.f32 %v3868_v44, %v8543_v40  ;;  %v976_v1 = vmul.f32 %v7076_v36, %v8555_v6  ;;  %v8562_v36 = vld [vmem:[#allocation130_spill] sm:$0xff]  ;;  %v8570_v33 = vld [vmem:[#allocation76_spill] sm:$0xff]  ;;  %v8573_v40 = vld [vmem:[#allocation23_spill] sm:$0xff] }
 0x429   :  { %2928 = vmatpush.msrb.mxu1 %v918_v56  ;;  %2957 = vmatpush.msra.mxu3 %v961_v25  ;;  %v3872_v30 = vpop.eup %3871  ;;  %3883 = vrcp.f32 %v8539_v5  ;;  %v937_v23 = vmul.f32 %v3870_v8, %v8546_v34  ;;  %v8558_v56 = vld [vmem:[#allocation171_spill] sm:$0xff]  ;;  %v8575_v21 = vld [vmem:[#allocation108_spill] sm:$0xff] }
 0x42a   :  { %2942 = vmatpush.msra.mxu2 %v940_v3  ;;  %2929 = vmatmul.f32.vlgmr.msrb.gmra.mxu1 %v8197_v29  ;;  %v3874_v57 = vpop.eup %3873  ;;  %3885 = vrcp.f32 %v8542_v20  ;;  %v957_v61 = vmul.f32 %v3872_v30, %v8548_v62  ;;  %v8576_v34 = vld [vmem:[#allocation204_spill] sm:$0xff] }
 0x42b   :  { %2973 = vmatpush.msra.mxu1 %v981_v60  ;;  %2958 = vmatpush.msra.mxu3 %v960_v28  ;;  %v3876_v4 = vpop.eup %3875  ;;  %3887 = vrcp.f32 %v8544_v11  ;;  %v936_v17 = vmul.f32 %v3874_v57, %v8551_v45  ;;  %v8561_v60 = vld [vmem:[#allocation238_spill] sm:$0xff]  ;;  %v8564_v28 = vld [vmem:[#allocation67_spill] sm:$0xff]  ;;  %v8572_v57 = vld [vmem:[#allocation129_spill] sm:$0xff] }
 0x42c   :  { %2943 = vmatpush.msra.mxu2 %v939_v9  ;;  %v3878_v46 = vpop.eup %3877  ;;  %3889 = vrcp.f32 %v8547_v26  ;;  %v956_v38 = vmul.f32 %v3876_v4, %v8553_v31  ;;  %v8567_v9 = vld [vmem:[#allocation230_spill] sm:$0xff]  ;;  %v8577_v26 = vld [vmem:[#allocation217_spill] sm:$0xff] }
 0x42d   :  { %2974 = vmatpush.msra.mxu1 %v980_v18  ;;  %2959 = vmatpush.msra.mxu3 %v959_v53  ;;  %v3880_v16 = vpop.eup %3879  ;;  %3891 = vrcp.f32 %v8549_v27  ;;  %v935_v48 = vmul.f32 %v3878_v46, %v8556_v55  ;;  %v8566_v18 = vld [vmem:[#allocation174_spill] sm:$0xff]  ;;  %v8569_v53 = vld [vmem:[#allocation123_spill] sm:$0xff] }
 0x42e   :  { %2944 = vmatpush.msra.mxu2 %v938_v14  ;;  %v3882_v22 = vpop.eup %3881  ;;  %3893 = vrcp.f32 %v8552_v10  ;;  %v955_v35 = vmul.f32 %v3880_v16, %v8558_v56  ;;  %v8571_v14 = vld [vmem:[#allocation239_spill] sm:$0xff]  ;;  %v8574_v11 = vld [vmem:[#allocation138_spill] sm:$0xff] }
 0x42f   :  { %2975 = vmatpush.msra.mxu1 %v979_v24  ;;  %2960 = vmatpush.msra.mxu3 %v958_v15  ;;  %v3884_v49 = vpop.eup %3883  ;;  %3895 = vrcp.f32 %v8554_v2  ;;  %v934_v63 = vmul.f32 %v3882_v22, %v8561_v60  ;;  %v8578_v16 = vld [vmem:[#allocation31_spill] sm:$0xff] }
 0x430   :  { %2945 = vmatpush.msra.mxu2 %v937_v23  ;;  %v3886_v19 = vpop.eup %3885  ;;  %3897 = vrcp.f32 %v8557_v13  ;;  %v954_v42 = vmul.f32 %v3884_v49, %v8563_v37 }
 0x431   :  { %2976 = vmatpush.msra.mxu1 %v978_v50  ;;  %2961 = vmatpush.msra.mxu3 %v957_v61  ;;  %v3888_v25 = vpop.eup %3887  ;;  %3899 = vrcp.f32 %v8559_v59  ;;  %v974_v44 = vmul.f32 %v3886_v19, %v8564_v28 }
 0x432   :  { %2946 = vmatpush.msra.mxu2 %v936_v17  ;;  %v3890_v3 = vpop.eup %3889  ;;  %3901 = vrcp.f32 %v8562_v36  ;;  %v953_v54 = vmul.f32 %v3888_v25, %v8566_v18  ;;  %v8580_v17 = vld [vmem:[#allocation187_spill] sm:$0xff] }
 0x433   :  { %2977 = vmatpush.msra.mxu1 %v977_v58  ;;  %2962 = vmatpush.msra.mxu3 %v956_v38  ;;  %v3892_v7 = vpop.eup %3891  ;;  %3903 = vrcp.f32 %v8565_v52  ;;  %v973_v8 = vmul.f32 %v3890_v3, %v8567_v9  ;;  %v8579_v58 = vld [vmem:[#allocation180_spill] sm:$0xff] }
 0x434   :  { %2947 = vmatpush.msra.mxu2 %v935_v48  ;;  %v3894_v41 = vpop.eup %3893  ;;  %3905 = vrcp.f32 %v8568_v43  ;;  %v952_v30 = vmul.f32 %v3892_v7, %v8569_v53 }
 0x435   :  { %2978 = vmatpush.msra.mxu1 %v976_v1  ;;  %2963 = vmatpush.msra.mxu3 %v955_v35  ;;  %v3896_v32 = vpop.eup %3895  ;;  %v972_v24 = vmul.f32 %v3894_v41, %v8570_v33  ;;  %3907 = vrcp.f32 %v8571_v14 }
 0x436   :  { %2948 = vmatpush.msra.mxu2 %v934_v63  ;;  %v3898_v0 = vpop.eup %3897  ;;  %v951_v20 = vmul.f32 %v3896_v32, %v8572_v57  ;;  %3909 = vrcp.f32 %v8574_v11 }
 0x437   :  { %2979 = vmatpush.msra.mxu1 %v975_v39  ;;  %2964 = vmatpush.msra.mxu3 %v954_v42  ;;  %v3900_v5 = vpop.eup %3899  ;;  %v971_v15 = vmul.f32 %v3898_v0, %v8573_v40  ;;  %v8581_v42 = vlaneseq }
 0x438   :  { %2949 = vmatmul.f32.vlgmr.msra.gmra.mxu2 %v8197_v29  ;;  %v3902_v12 = vpop.eup %3901  ;;  %v950_v50 = vmul.f32 %v3900_v5, %v8575_v21 }
 0x439   :  { %2980 = vmatpush.msra.mxu1 %v974_v44  ;;  %2965 = vmatpush.msra.mxu3 %v953_v54  ;;  %v3904_v4 = vpop.eup %3903  ;;  %v970_v23 = vmul.f32 %v3902_v12, %v8576_v34  ;;  %vm2487_vm15 = vcmp.lt.s32.totalorder %v8581_v42, 512 }
 0x43a   :  { %v3906_v46 = vpop.eup %3905  ;;  %v969_v62 = vmul.f32 %v3904_v4, %v8577_v26 }
 0x43b   :  { %2981 = vmatpush.msra.mxu1 %v973_v8  ;;  %2966 = vmatpush.msra.mxu3 %v952_v30  ;;  %v3908_v61 = vpop.eup %3907  ;;  %v968_v27 = vmul.f32 %v3906_v46, %v8578_v16 }
 0x43c   :  { %v3910_v51 = vpop.eup %3909  ;;  %v967_v45 = vmul.f32 %v3908_v61, %v8579_v58 }
 0x43d   :  { %2982 = vmatpush.msra.mxu1 %v972_v24  ;;  %2967 = vmatpush.msra.mxu3 %v951_v20  ;;  %v966_v22 = vmul.f32 %v3910_v51, %v8580_v17 }
 0x43f   :  { %2983 = vmatpush.msra.mxu1 %v971_v15  ;;  %2968 = vmatpush.msra.mxu3 %v950_v50 }
 0x440   :  { %2969 = vmatmul.f32.vlgmr.msra.gmra.mxu3 %v8197_v29 }
 0x441   :  { %2984 = vmatpush.msra.mxu1 %v970_v23 }
 0x443   :  { %2985 = vmatpush.msra.mxu1 %v969_v62 }
 0x445   :  { %2986 = vmatpush.msra.mxu1 %v968_v27 }
 0x447   :  { %2987 = vmatpush.msra.mxu1 %v967_v45 }
 0x449   :  { %2988 = vmatpush.msra.mxu1 %v966_v22 }
 0x44a   :  { %2989 = vmatmul.f32.vlgmr.msra.gmra.mxu1 %v8197_v29  ;;  %v2409_v10 = vpop.f32.mrf.mxu1 }
 0x44b   :  { %v3499_v55 = vceil.f32 %v2409_v10  ;;  %v3500_v29 = vfloor.f32 %v2409_v10  ;;  %vm3498_vm6 = vcmp.lt.s32.totalorder %v2409_v10, 0 }
 0x44d   :  { %v3501_v35 = vsel %vm3498_vm6, %v3499_v55, %v3500_v29 }
 0x44e   :  { %v3502_v60 = vcvt.f32.s32 %v3501_v35 }
 0x45a   :  { %v2429_v31 = vpop.f32.mrf.mxu2 }
 0x45b   :  { %v3504_v49 = vceil.f32 %v2429_v31  ;;  %v3505_v2 = vfloor.f32 %v2429_v31  ;;  %vm3503_vm1 = vcmp.lt.s32.totalorder %v2429_v31, 0 }
 0x45d   :  { %v3506_v48 = vsel %vm3503_vm1, %v3504_v49, %v3505_v2 }
 0x45e   :  { %v3507_v13 = vcvt.f32.s32 %v3506_v48 }
 0x460   :  { %v2476_v63 = vrot.slane %v3507_v13, 7 }
 0x462   :  { %v2449_v38 = vpop.f32.mrf.mxu3  ;;  %v2480_v7 = vsel %vm2479_vm10, %v3502_v60, %v2476_v63 }
 0x463   :  { %v3509_v6 = vceil.f32 %v2449_v38  ;;  %v3510_v1 = vfloor.f32 %v2449_v38  ;;  %vm3508_vm7 = vcmp.lt.s32.totalorder %v2449_v38, 0 }
 0x465   :  { %v3511_v19 = vsel %vm3508_vm7, %v3509_v6, %v3510_v1 }
 0x466   :  { %v3512_v47 = vcvt.f32.s32 %v3511_v19 }
 0x468   :  { %v2477_v36 = vrot.slane %v3512_v47, 6 }
 0x47a   :  { %v2849_v41 = vpop.f32.mrf.mxu2 }
 0x482   :  { %v2869_v52 = vpop.f32.mrf.mxu3 }
 0x483   :  { %v2870_v18 = vadd.f32 %v2869_v52, %v2849_v41 }
 0x488   :  { %v2469_v56 = vpop.f32.mrf.mxu1 }
 0x489   :  { %vm3513_vm2 = vcmp.lt.s32.totalorder %v2469_v56, 0  ;;  %v3514_v25 = vceil.f32 %v2469_v56  ;;  %v3515_v59 = vfloor.f32 %v2469_v56 }
 0x48b   :  { %v3516_v39 = vsel %vm3513_vm2, %v3514_v25, %v3515_v59 }
 0x48c   :  { %v3517_v3 = vcvt.f32.s32 %v3516_v39 }
 0x48e   :  { %v2478_v37 = vrot.slane %v3517_v3, 5 }
 0x490   :  { %v2482_v28 = vsel %vm2481_vm12, %v2477_v36, %v2478_v37 }
 0x491   :  { %v2484_v44 = vsel %vm2483_vm11, %v2480_v7, %v2482_v28 }
 0x492   :  { %2489 = vst.msk [vmem:[#allocation7] sm:$0xf] %vm2487_vm15, %v2484_v44 }
 0x493   :  { %3203 = dma.vmem_to_hbm [thread:$0]  %s3199_s8, 64, %s3201_s11, [#allocation4]  }
 0x49a   :  { %v2889_v54 = vpop.f32.mrf.mxu2 }
 0x49b   :  { %v2890_v32 = vadd.f32 %v2889_v54, %v2870_v18 }
 0x4a5   :  { %v2909_v9 = vpop.f32.mrf.mxu3 }
 0x4a6   :  { %v2910_v8 = vadd.f32 %v2909_v9, %v2890_v32 }
 0x4a7   :  { %v2930_v0 = vpop.f32.mrf.mxu1 }
 0x4a8   :  { %2912 = vst [vmem:[#allocation8] sm:$0x1] %v2910_v8 }
 0x4a9   :  { %3214 = dma.vmem_to_hbm [thread:$0]  %s3210_s13, 16, %s3212_s15, [#allocation9]  }
 0x4bb   :  { %v2950_v43 = vpop.f32.mrf.mxu2 }
 0x4bc   :  { %v2951_v53 = vadd.f32 %v2950_v43, %v2930_v0 }
 0x4c3   :  { %v2970_v30 = vpop.f32.mrf.mxu3 }
 0x4c4   :  { %v2971_v5 = vadd.f32 %v2970_v30, %v2951_v53 }
 0x4c7   :  { %v2990_v33 = vpop.f32.mrf.mxu1 }
 0x4c8   :  { %v2991_v24 = vadd.f32 %v2990_v33, %v2971_v5 }
 0x4ca   :  { %2993 = vst [vmem:[#allocation10] sm:$0x1] %v2991_v24 }
 0x4cb   :  { %3225 = dma.vmem_to_hbm [thread:$0]  %s3221_s17, 16, %s3223_s20, [#allocation9]  }
 0x4cc   :  { %4059 = dma.done.wait [#allocation4], 64  }
 0x4cd   :  { %4060 = vsyncadd [#allocation4], 4294967232 }
 0x4ce   :  { %4061 = dma.done.wait [#allocation9], 32  }
 0x4cf   :  { %4062 = vsyncadd [#allocation9], 4294967264 }
 0x4d0   :  { %4063 = dma.done.wait [#allocation12], 16  }
 0x4d1   :  { %4064 = vsyncadd [#allocation12], 4294967280 }
 0x4d2   :  { %3253 = vsyncpa [#allocation3], 1 }
 0x4d3   :  { %3254 = vsyncpa [#allocation6], 1 }
 0x4d4   :  { %3255 = vsyncpa [#allocation4], 1 }
 0x4d5   :  { %3256 = vsyncpa [#allocation9], 1 }
 0x4d6   :  { %3257 = vsyncpa [#allocation12], 1 }

// kernel: tpu_custom_call.1
= control target key start
LH: loop header
LB: loop body
LE: loop exit
PB: predicated region body
PF: predicated region fallthrough
CT: control target
= control target key end

     0   :  { %11 = vsyncpa [#allocation3], 0  ;;  %s7277_s0 = inlined_call_operand.hbm [shape: f32[512,128], index: 0, kind: input, shape index: {}]   ;;  %s7278_s1 = inlined_call_operand.hbm [shape: f32[128,128], index: 1, kind: input, shape index: {}]   ;;  %s7279_s2 = inlined_call_operand.hbm [shape: s32[1,512], index: 2, kind: output, shape index: {0}]   ;;  %s7280_s3 = inlined_call_operand.hbm [shape: f32[1,128], index: 3, kind: output, shape index: {1}]   ;;  %s7281_s4 = inlined_call_operand.hbm [shape: f32[1,128], index: 4, kind: output, shape index: {2}]   ;;  %s7282_s5 = inlined_call_operand.hbm [shape: f32[1,1], index: 5, kind: output, shape index: {3}]  }
   0x1   :  { %12 = vsyncpa [#allocation6], 0 }
   0x2   :  { %13 = vsyncpa [#allocation4], 0 }
   0x3   :  { %14 = vsyncpa [#allocation9], 0 }
   0x4   :  { %15 = vsyncpa [#allocation12], 0  ;;  %s20_s20 = sshll.u32 %s7277_s0, 4  ;;  %s4065_s21 = smov [#allocation2]   ;;  %s21_s20 = int_to_ptr.hbm [resolvable:$true] %s20_s20 }
   0x5   :  { %s22_s22 = sshll.u32 %s4065_s21, 4  ;;  %s33_s25 = sshll.u32 %s7278_s1, 4  ;;  %s23_s22 = int_to_ptr.vmem [resolvable:$true] %s22_s22  ;;  %s34_s25 = int_to_ptr.hbm [resolvable:$true] %s33_s25 }
   0x6   :  { %s4066_s26 = smov 128   ;;  %s4067_s27 = smov 8  }
   0x7   :  { %28 = dma.hbm_to_vmem [thread:$0]  %s21_s20, 8192, %s23_s22, [#allocation3], %s4066_s26, %s4066_s26, %s4067_s27  }
   0x8   :  { %s4068_s28 = smov [#allocation5]  }
   0x9   :  { %s35_s29 = sshll.u32 %s4068_s28, 4  ;;  %s36_s29 = int_to_ptr.vmem [resolvable:$true] %s35_s29 }
   0xa   :  { %41 = dma.hbm_to_vmem [thread:$0]  %s34_s25, 2048, %s36_s29, [#allocation6], %s4066_s26, %s4066_s26, %s4067_s27  }
   0xb   :  { %4055 = dma.done.wait [#allocation3], 8192  }
   0xc   :  { %4056 = vsyncadd [#allocation3], 4294959104 }
   0xd   :  { %4057 = dma.done.wait [#allocation6], 2048  }
   0xe   :  { %4058 = vsyncadd [#allocation6], 4294965248  ;;  %v129_v0 = vld [vmem:[#allocation5 + $0x78] sm:$0xff]  ;;  %v128_v1 = vld [vmem:[#allocation5 + $0x70] sm:$0xff]  ;;  %s4070_s0 = smov [#allocation11]   ;;  %s3233_s7 = sshll.u32 %s7282_s5, 4  ;;  %s3234_s7 = int_to_ptr.hbm [resolvable:$true] %s3233_s7 }
   0xf   :  { %130 = vmatpush.msra.mxu0 %v129_v0  ;;  %3450 = vmatpush.msra.mxu1 %v129_v0  ;;  %v127_v2 = vld [vmem:[#allocation5 + $0x68] sm:$0xff]  ;;  %v126_v3 = vld [vmem:[#allocation5 + $0x60] sm:$0xff]  ;;  %v125_v4 = vld [vmem:[#allocation5 + $0x58] sm:$0xff]  ;;  %s3231_s1 = sshll.u32 %s4070_s0, 4  ;;  %s4071_s5 = smov [#allocation7]   ;;  %s3232_s1 = int_to_ptr.vmem [resolvable:$true] %s3231_s1 }
  0x10   :  { %3451 = vmatpush.msra.mxu2 %v129_v0  ;;  %3452 = vmatpush.msra.mxu3 %v129_v0  ;;  %v124_v5 = vld [vmem:[#allocation5 + $0x50] sm:$0xff]  ;;  %v123_v6 = vld [vmem:[#allocation5 + $0x48] sm:$0xff]  ;;  %v122_v7 = vld [vmem:[#allocation5 + $0x40] sm:$0xff]  ;;  %s3198_s8 = sshll.u32 %s4071_s5, 4  ;;  %s3200_s11 = sshll.u32 %s7279_s2, 4  ;;  %s3199_s8 = int_to_ptr.vmem [resolvable:$true] %s3198_s8  ;;  %s3201_s11 = int_to_ptr.hbm [resolvable:$true] %s3200_s11 }
  0x11   :  { %131 = vmatpush.msra.mxu0 %v128_v1  ;;  %3453 = vmatpush.msra.mxu1 %v128_v1  ;;  %v121_v8 = vld [vmem:[#allocation5 + $0x38] sm:$0xff]  ;;  %v120_v9 = vld [vmem:[#allocation5 + $0x30] sm:$0xff]  ;;  %v119_v10 = vld [vmem:[#allocation5 + $0x28] sm:$0xff]  ;;  %s4072_s12 = smov [#allocation8]   ;;  %s3211_s15 = sshll.u32 %s7280_s3, 4  ;;  %s3212_s15 = int_to_ptr.hbm [resolvable:$true] %s3211_s15 }
  0x12   :  { %3454 = vmatpush.msra.mxu2 %v128_v1  ;;  %3455 = vmatpush.msra.mxu3 %v128_v1  ;;  %v118_v11 = vld [vmem:[#allocation5 + $0x20] sm:$0xff]  ;;  %v117_v12 = vld [vmem:[#allocation5 + $0x18] sm:$0xff]  ;;  %v116_v13 = vld [vmem:[#allocation5 + $0x10] sm:$0xff]  ;;  %s3209_s13 = sshll.u32 %s4072_s12, 4  ;;  %s4073_s16 = smov [#allocation10]   ;;  %s3210_s13 = int_to_ptr.vmem [resolvable:$true] %s3209_s13 }
  0x13   :  { %132 = vmatpush.msra.mxu0 %v127_v2  ;;  %3456 = vmatpush.msra.mxu1 %v127_v2  ;;  %v115_v14 = vld [vmem:[#allocation5 + $0x8] sm:$0xff]  ;;  %v114_v15 = vld [vmem:[#allocation5] sm:$0xff]  ;;  %v80_v21 = vld [vmem:[#allocation2 + $0xf0] sm:$0xff]  ;;  %s3220_s17 = sshll.u32 %s4073_s16, 4  ;;  %s3222_s20 = sshll.u32 %s7281_s4, 4  ;;  %s3221_s17 = int_to_ptr.vmem [resolvable:$true] %s3220_s17  ;;  %s3223_s20 = int_to_ptr.hbm [resolvable:$true] %s3222_s20 }
  0x14   :  { %3457 = vmatpush.msra.mxu2 %v127_v2  ;;  %3458 = vmatpush.msra.mxu3 %v127_v2  ;;  %v50_v16 = vld [vmem:[#allocation2] sm:$0xff]  ;;  %v79_v17 = vld [vmem:[#allocation2 + $0xe8] sm:$0xff]  ;;  %v92_v22 = vld [vmem:[#allocation2 + $0x150] sm:$0xff]  ;;  %v7283_v2 = vlaneseq }
  0x15   :  { %133 = vmatpush.msra.mxu0 %v126_v3  ;;  %3459 = vmatpush.msra.mxu1 %v126_v3  ;;  %v91_v18 = vld [vmem:[#allocation2 + $0x148] sm:$0xff]  ;;  %v106_v19 = vld [vmem:[#allocation2 + $0x1c0] sm:$0xff]  ;;  %v52_v24 = vld [vmem:[#allocation2 + $0x10] sm:$0xff] }
  0x16   :  { %3460 = vmatpush.msra.mxu2 %v126_v3  ;;  %3461 = vmatpush.msra.mxu3 %v126_v3  ;;  %v51_v20 = vld [vmem:[#allocation2 + $0x8] sm:$0xff]  ;;  %v81_v25 = vld [vmem:[#allocation2 + $0xf8] sm:$0xff]  ;;  %v108_v27 = vld [vmem:[#allocation2 + $0x1d0] sm:$0xff] }
  0x17   :  { %134 = vmatpush.msra.mxu0 %v125_v4  ;;  %3462 = vmatpush.msra.mxu1 %v125_v4  ;;  %v107_v23 = vld [vmem:[#allocation2 + $0x1c8] sm:$0xff]  ;;  %v93_v26 = vld [vmem:[#allocation2 + $0x158] sm:$0xff]  ;;  %v82_v28 = vld [vmem:[#allocation2 + $0x100] sm:$0xff] }
  0x18   :  { %3463 = vmatpush.msra.mxu2 %v125_v4  ;;  %3464 = vmatpush.msra.mxu3 %v125_v4  ;;  %v53_v29 = vld [vmem:[#allocation2 + $0x18] sm:$0xff]  ;;  %v94_v30 = vld [vmem:[#allocation2 + $0x160] sm:$0xff]  ;;  %v83_v32 = vld [vmem:[#allocation2 + $0x108] sm:$0xff]  ;;  %v4111_v4 = vand.u32 127, %v7283_v2 }
  0x19   :  { %135 = vmatpush.msra.mxu0 %v124_v5  ;;  %3465 = vmatpush.msra.mxu1 %v124_v5  ;;  %v109_v31 = vld [vmem:[#allocation2 + $0x1d8] sm:$0xff]  ;;  %v54_v33 = vld [vmem:[#allocation2 + $0x20] sm:$0xff]  ;;  %v95_v34 = vld [vmem:[#allocation2 + $0x168] sm:$0xff] }
  0x1a   :  { %3466 = vmatpush.msra.mxu2 %v124_v5  ;;  %3467 = vmatpush.msra.mxu3 %v124_v5  ;;  %v110_v35 = vld [vmem:[#allocation2 + $0x1e0] sm:$0xff]  ;;  %v55_v36 = vld [vmem:[#allocation2 + $0x28] sm:$0xff]  ;;  %v84_v37 = vld [vmem:[#allocation2 + $0x110] sm:$0xff]  ;;  %vm341_vm0 = vcmp.lt.s32.totalorder %v4111_v4, 8 }
  0x1b   :  { %136 = vmatpush.msra.mxu0 %v123_v6  ;;  %3468 = vmatpush.msra.mxu1 %v123_v6  ;;  %v96_v38 = vld [vmem:[#allocation2 + $0x170] sm:$0xff]  ;;  %v111_v39 = vld [vmem:[#allocation2 + $0x1e8] sm:$0xff]  ;;  %v85_v41 = vld [vmem:[#allocation2 + $0x118] sm:$0xff] }
  0x1c   :  { %3469 = vmatpush.msra.mxu2 %v123_v6  ;;  %3470 = vmatpush.msra.mxu3 %v123_v6  ;;  %v56_v40 = vld [vmem:[#allocation2 + $0x30] sm:$0xff]  ;;  %v97_v42 = vld [vmem:[#allocation2 + $0x178] sm:$0xff]  ;;  %v86_v45 = vld [vmem:[#allocation2 + $0x120] sm:$0xff] }
  0x1d   :  { %137 = vmatpush.msra.mxu0 %v122_v7  ;;  %3471 = vmatpush.msra.mxu1 %v122_v7  ;;  %v112_v43 = vld [vmem:[#allocation2 + $0x1f0] sm:$0xff]  ;;  %v57_v44 = vld [vmem:[#allocation2 + $0x38] sm:$0xff]  ;;  %v98_v46 = vld [vmem:[#allocation2 + $0x180] sm:$0xff] }
  0x1e   :  { %3472 = vmatpush.msra.mxu2 %v122_v7  ;;  %3473 = vmatpush.msra.mxu3 %v122_v7  ;;  %v113_v47 = vld [vmem:[#allocation2 + $0x1f8] sm:$0xff]  ;;  %v58_v48 = vld [vmem:[#allocation2 + $0x40] sm:$0xff]  ;;  %v87_v49 = vld [vmem:[#allocation2 + $0x128] sm:$0xff] }
  0x1f   :  { %138 = vmatpush.msra.mxu0 %v121_v8  ;;  %3474 = vmatpush.msra.mxu1 %v121_v8  ;;  %v99_v50 = vld [vmem:[#allocation2 + $0x188] sm:$0xff]  ;;  %v88_v52 = vld [vmem:[#allocation2 + $0x130] sm:$0xff]  ;;  %v89_v55 = vld [vmem:[#allocation2 + $0x138] sm:$0xff] }
  0x20   :  { %3475 = vmatpush.msra.mxu2 %v121_v8  ;;  %3476 = vmatpush.msra.mxu3 %v121_v8  ;;  %v59_v51 = vld [vmem:[#allocation2 + $0x48] sm:$0xff]  ;;  %v100_v53 = vld [vmem:[#allocation2 + $0x190] sm:$0xff]  ;;  %v101_v56 = vld [vmem:[#allocation2 + $0x198] sm:$0xff] }
  0x21   :  { %139 = vmatpush.msra.mxu0 %v120_v9  ;;  %3477 = vmatpush.msra.mxu1 %v120_v9  ;;  %v60_v54 = vld [vmem:[#allocation2 + $0x50] sm:$0xff]  ;;  %v61_v57 = vld [vmem:[#allocation2 + $0x58] sm:$0xff]  ;;  %v90_v58 = vld [vmem:[#allocation2 + $0x140] sm:$0xff] }
  0x22   :  { %3478 = vmatpush.msra.mxu2 %v120_v9  ;;  %3479 = vmatpush.msra.mxu3 %v120_v9  ;;  %v102_v59 = vld [vmem:[#allocation2 + $0x1a0] sm:$0xff]  ;;  %v103_v61 = vld [vmem:[#allocation2 + $0x1a8] sm:$0xff]  ;;  %v104_v63 = vld [vmem:[#allocation2 + $0x1b0] sm:$0xff] }
  0x23   :  { %140 = vmatpush.msra.mxu0 %v119_v10  ;;  %3480 = vmatpush.msra.mxu1 %v119_v10  ;;  %v62_v60 = vld [vmem:[#allocation2 + $0x60] sm:$0xff]  ;;  %v63_v62 = vld [vmem:[#allocation2 + $0x68] sm:$0xff]  ;;  %v64_v0 = vld [vmem:[#allocation2 + $0x70] sm:$0xff] }
  0x24   :  { %3481 = vmatpush.msra.mxu2 %v119_v10  ;;  %3482 = vmatpush.msra.mxu3 %v119_v10  ;;  %v105_v1 = vld [vmem:[#allocation2 + $0x1b8] sm:$0xff]  ;;  %v66_v9 = vld [vmem:[#allocation2 + $0x80] sm:$0xff] }
  0x25   :  { %141 = vmatpush.msra.mxu0 %v118_v11  ;;  %3483 = vmatpush.msra.mxu1 %v118_v11  ;;  %v65_v3 = vld [vmem:[#allocation2 + $0x78] sm:$0xff] }
  0x26   :  { %3484 = vmatpush.msra.mxu2 %v118_v11  ;;  %3485 = vmatpush.msra.mxu3 %v118_v11 }
  0x27   :  { %142 = vmatpush.msra.mxu0 %v117_v12  ;;  %3486 = vmatpush.msra.mxu1 %v117_v12 }
  0x28   :  { %3487 = vmatpush.msra.mxu2 %v117_v12  ;;  %3488 = vmatpush.msra.mxu3 %v117_v12 }
  0x29   :  { %143 = vmatpush.msra.mxu0 %v116_v13  ;;  %3489 = vmatpush.msra.mxu1 %v116_v13 }
  0x2a   :  { %3490 = vmatpush.msra.mxu2 %v116_v13  ;;  %3491 = vmatpush.msra.mxu3 %v116_v13 }
  0x2b   :  { %144 = vmatpush.msra.mxu0 %v115_v14  ;;  %3492 = vmatpush.msra.mxu1 %v115_v14 }
  0x2c   :  { %3493 = vmatpush.msra.mxu2 %v115_v14  ;;  %3494 = vmatpush.msra.mxu3 %v115_v14 }
  0x2d   :  { %145 = vmatpush.msra.mxu0 %v114_v15  ;;  %3495 = vmatpush.msra.mxu1 %v114_v15 }
  0x2e   :  { %146 = vmatmul.f32.vlgmr.msra.gmra.mxu0 %v50_v16  ;;  %233 = vmatmul.f32.vlgmr.msra.gmra.mxu1 %v79_v17  ;;  %v67_v16 = vld [vmem:[#allocation2 + $0x88] sm:$0xff] }
  0x2f   :  { %3496 = vmatpush.msra.mxu2 %v114_v15  ;;  %3497 = vmatpush.msra.mxu3 %v114_v15 }
  0x30   :  { %269 = vmatmul.f32.vlgmr.msra.gmra.mxu2 %v91_v18  ;;  %314 = vmatmul.f32.vlgmr.msra.gmra.mxu3 %v106_v19 }
  0x36   :  { %149 = vmatmul.f32.gmra.mxu0 %v51_v20  ;;  %236 = vmatmul.f32.gmra.mxu1 %v80_v21 }
  0x38   :  { %272 = vmatmul.f32.gmra.mxu2 %v92_v22  ;;  %317 = vmatmul.f32.gmra.mxu3 %v107_v23 }
  0x3e   :  { %152 = vmatmul.f32.gmra.mxu0 %v52_v24  ;;  %239 = vmatmul.f32.gmra.mxu1 %v81_v25 }
  0x40   :  { %275 = vmatmul.f32.gmra.mxu2 %v93_v26  ;;  %320 = vmatmul.f32.gmra.mxu3 %v108_v27 }
  0x46   :  { %242 = vmatmul.f32.gmra.mxu1 %v82_v28  ;;  %155 = vmatmul.f32.gmra.mxu0 %v53_v29 }
  0x48   :  { %278 = vmatmul.f32.gmra.mxu2 %v94_v30  ;;  %323 = vmatmul.f32.gmra.mxu3 %v109_v31 }
  0x4e   :  { %245 = vmatmul.f32.gmra.mxu1 %v83_v32  ;;  %158 = vmatmul.f32.gmra.mxu0 %v54_v33 }
  0x50   :  { %281 = vmatmul.f32.gmra.mxu2 %v95_v34  ;;  %326 = vmatmul.f32.gmra.mxu3 %v110_v35 }
  0x56   :  { %161 = vmatmul.f32.gmra.mxu0 %v55_v36  ;;  %248 = vmatmul.f32.gmra.mxu1 %v84_v37  ;;  %v68_v36 = vld [vmem:[#allocation2 + $0x90] sm:$0xff] }
  0x58   :  { %284 = vmatmul.f32.gmra.mxu2 %v96_v38  ;;  %329 = vmatmul.f32.gmra.mxu3 %v111_v39 }
  0x5e   :  { %164 = vmatmul.f32.gmra.mxu0 %v56_v40  ;;  %251 = vmatmul.f32.gmra.mxu1 %v85_v41 }
  0x60   :  { %287 = vmatmul.f32.gmra.mxu2 %v97_v42  ;;  %332 = vmatmul.f32.gmra.mxu3 %v112_v43 }
  0x66   :  { %167 = vmatmul.f32.gmra.mxu0 %v57_v44  ;;  %254 = vmatmul.f32.gmra.mxu1 %v86_v45 }
  0x68   :  { %290 = vmatmul.f32.gmra.mxu2 %v98_v46  ;;  %335 = vmatmul.f32.gmra.mxu3 %v113_v47 }
  0x6e   :  { %170 = vmatmul.f32.gmra.mxu0 %v58_v48  ;;  %257 = vmatmul.f32.gmra.mxu1 %v87_v49 }
  0x70   :  { %293 = vmatmul.f32.gmra.mxu2 %v99_v50  ;;  %v69_v50 = vld [vmem:[#allocation2 + $0x98] sm:$0xff] }
  0x76   :  { %173 = vmatmul.f32.gmra.mxu0 %v59_v51  ;;  %260 = vmatmul.f32.gmra.mxu1 %v88_v52 }
  0x78   :  { %296 = vmatmul.f32.gmra.mxu2 %v100_v53 }
  0x7e   :  { %176 = vmatmul.f32.gmra.mxu0 %v60_v54  ;;  %263 = vmatmul.f32.gmra.mxu1 %v89_v55 }
  0x80   :  { %299 = vmatmul.f32.gmra.mxu2 %v101_v56 }
  0x86   :  { %179 = vmatmul.f32.gmra.mxu0 %v61_v57  ;;  %266 = vmatmul.f32.gmra.mxu1 %v90_v58  ;;  %v70_v58 = vld [vmem:[#allocation2 + $0xa0] sm:$0xff] }
  0x88   :  { %302 = vmatmul.f32.gmra.mxu2 %v102_v59 }
  0x8e   :  { %182 = vmatmul.f32.gmra.mxu0 %v62_v60 }
  0x90   :  { %305 = vmatmul.f32.gmra.mxu2 %v103_v61 }
  0x96   :  { %185 = vmatmul.f32.gmra.mxu0 %v63_v62 }
  0x98   :  { %308 = vmatmul.f32.gmra.mxu2 %v104_v63 }
  0x9e   :  { %188 = vmatmul.f32.gmra.mxu0 %v64_v0 }
  0xa0   :  { %311 = vmatmul.f32.gmra.mxu2 %v105_v1 }
  0xa6   :  { %191 = vmatmul.f32.gmra.mxu0 %v65_v3 }
  0xab   :  { %v147_v5 = vpop.f32.mrf.mxu0  ;;  %v234_v6 = vpop.f32.mrf.mxu1 }
  0xac   :  { %v4116_v7 = vsel %vm341_vm0, %v234_v6, -1e+30  ;;  %v4120_v8 = vsel %vm341_vm0, %v147_v5, -1e+30 }
  0xad   :  { %464 = vmax.xlane.f32.xlu2 %v4116_v7  ;;  %406 = vmax.xlane.f32.xlu0 %v4120_v8 }
  0xae   :  { %194 = vmatmul.f32.gmra.mxu0 %v66_v9 }
  0xb3   :  { %v150_v10 = vpop.f32.mrf.mxu0  ;;  %v237_v11 = vpop.f32.mrf.mxu1 }
  0xb4   :  { %v270_v12 = vpop.f32.mrf.mxu2  ;;  %v4126_v13 = vsel %vm341_vm0, %v150_v10, -1e+30  ;;  %v315_v14 = vpop.f32.mrf.mxu3  ;;  %v4136_v17 = vsel %vm341_vm0, %v237_v11, -1e+30 }
  0xb5   :  { %v4130_v15 = vsel %vm341_vm0, %v270_v12, -1e+30  ;;  %408 = vmax.xlane.f32.xlu0 %v4126_v13  ;;  %v4140_v20 = vsel %vm341_vm0, %v315_v14, -1e+30 }
  0xb6   :  { %488 = vmax.xlane.f32.xlu2 %v4130_v15  ;;  %197 = vmatmul.f32.gmra.mxu0 %v67_v16  ;;  %7737 = vst [vmem:[#allocation18_spill] sm:$0xff] %v4140_v20 }
  0xbb   :  { %v153_v18 = vpop.f32.mrf.mxu0  ;;  %v240_v19 = vpop.f32.mrf.mxu1 }
  0xbc   :  { %v273_v21 = vpop.f32.mrf.mxu2  ;;  %v4144_v22 = vsel %vm341_vm0, %v153_v18, -1e+30  ;;  %v318_v23 = vpop.f32.mrf.mxu3  ;;  %v4151_v24 = vsel %vm341_vm0, %v240_v19, -1e+30 }
  0xbd   :  { %466 = vmax.xlane.f32.xlu0 %v4136_v17  ;;  %410 = vmax.xlane.f32.xlu1 %v4144_v22  ;;  %v4155_v25 = vsel %vm341_vm0, %v273_v21, -1e+30  ;;  %v4170_v32 = vsel %vm341_vm0, %v318_v23, -1e+30 }
  0xbe   :  { %518 = vmax.xlane.f32.xlu2 %v4140_v20  ;;  %7739 = vst [vmem:[#allocation20_spill] sm:$0xff] %v4170_v32  ;;  %200 = vmatmul.f32.gmra.mxu0 %v68_v36 }
  0xc3   :  { %v243_v26 = vpop.f32.mrf.mxu1  ;;  %v156_v27 = vpop.f32.mrf.mxu0 }
  0xc4   :  { %v4159_v28 = vsel %vm341_vm0, %v243_v26, -1e+30  ;;  %v276_v29 = vpop.f32.mrf.mxu2  ;;  %v321_v30 = vpop.f32.mrf.mxu3  ;;  %v4204_v48 = vsel %vm341_vm0, %v156_v27, -1e+30 }
  0xc5   :  { %7738 = vst [vmem:[#allocation19_spill] sm:$0xff] %v4159_v28  ;;  %490 = vmax.xlane.f32.xlu0 %v4155_v25  ;;  %468 = vmax.xlane.f32.xlu1 %v4151_v24  ;;  %v4166_v31 = vsel %vm341_vm0, %v276_v29, -1e+30  ;;  %v4181_v39 = vsel %vm341_vm0, %v321_v30, -1e+30 }
  0xc6   :  { %470 = vmax.xlane.f32.xlu2 %v4159_v28  ;;  %7740 = vst [vmem:[#allocation21_spill] sm:$0xff] %v4181_v39  ;;  %203 = vmatmul.f32.gmra.mxu0 %v69_v50 }
  0xcb   :  { %v159_v33 = vpop.f32.mrf.mxu0  ;;  %v246_v37 = vpop.f32.mrf.mxu1 }
  0xcc   :  { %v279_v34 = vpop.f32.mrf.mxu2  ;;  %v324_v38 = vpop.f32.mrf.mxu3  ;;  %v4185_v40 = vsel %vm341_vm0, %v246_v37, -1e+30  ;;  %v4200_v45 = vsel %vm341_vm0, %v159_v33, -1e+30 }
  0xcd   :  { %v4174_v35 = vsel %vm341_vm0, %v279_v34, -1e+30  ;;  %520 = vmax.xlane.f32.xlu0 %v4170_v32  ;;  %492 = vmax.xlane.f32.xlu1 %v4166_v31  ;;  %7741 = vst [vmem:[#allocation22_spill] sm:$0xff] %v4185_v40  ;;  %v4189_v41 = vsel %vm341_vm0, %v324_v38, -1e+30 }
  0xce   :  { %494 = vmax.xlane.f32.xlu2 %v4174_v35  ;;  %7742 = vst [vmem:[#allocation23_spill] sm:$0xff] %v4189_v41  ;;  %206 = vmatmul.f32.gmra.mxu0 %v70_v58 }
  0xd3   :  { %v162_v42 = vpop.f32.mrf.mxu0  ;;  %v249_v46 = vpop.f32.mrf.mxu1 }
  0xd4   :  { %v282_v43 = vpop.f32.mrf.mxu2  ;;  %v327_v51 = vpop.f32.mrf.mxu3  ;;  %v4211_v52 = vsel %vm341_vm0, %v249_v46, -1e+30  ;;  %v4219_v54 = vsel %vm341_vm0, %v162_v42, -1e+30 }
  0xd5   :  { %472 = vmax.xlane.f32.xlu0 %v4185_v40  ;;  %522 = vmax.xlane.f32.xlu1 %v4181_v39  ;;  %v4196_v44 = vsel %vm341_vm0, %v282_v43, -1e+30  ;;  %7743 = vst [vmem:[#allocation24_spill] sm:$0xff] %v4211_v52  ;;  %v4215_v53 = vsel %vm341_vm0, %v327_v51, -1e+30  ;;  %v71_v43 = vld [vmem:[#allocation2 + $0xa8] sm:$0xff] }
  0xd6   :  { %524 = vmax.xlane.f32.xlu2 %v4189_v41  ;;  %209 = vmatmul.f32.gmra.mxu0 %v71_v43 }
  0xdb   :  { %v165_v47 = vpop.f32.mrf.mxu0  ;;  %v252_v57 = vpop.f32.mrf.mxu1 }
  0xdc   :  { %v285_v49 = vpop.f32.mrf.mxu2  ;;  %v4226_v59 = vsel %vm341_vm0, %v165_v47, -1e+30  ;;  %v4234_v61 = vsel %vm341_vm0, %v252_v57, -1e+30  ;;  %v330_v62 = vpop.f32.mrf.mxu3 }
  0xdd   :  { %496 = vmax.xlane.f32.xlu0 %v4196_v44  ;;  %412 = vmax.xlane.f32.xlu1 %v4204_v48  ;;  %v4230_v60 = vsel %vm341_vm0, %v285_v49, -1e+30  ;;  %7744 = vst [vmem:[#allocation25_spill] sm:$0xff] %v4234_v61  ;;  %v4245_v5 = vsel %vm341_vm0, %v330_v62, -1e+30 }
  0xde   :  { %414 = vmax.xlane.f32.xlu2 %v4200_v45 }
  0xe3   :  { %v168_v55 = vpop.f32.mrf.mxu0  ;;  %v255_v1 = vpop.f32.mrf.mxu1 }
  0xe4   :  { %v288_v56 = vpop.f32.mrf.mxu2  ;;  %v4241_v3 = vsel %vm341_vm0, %v255_v1, -1e+30  ;;  %v333_v11 = vpop.f32.mrf.mxu3  ;;  %v4264_v18 = vsel %vm341_vm0, %v168_v55, -1e+30  ;;  %v72_v55 = vld [vmem:[#allocation2 + $0xb0] sm:$0xff]  ;;  %v73_v1 = vld [vmem:[#allocation2 + $0xb8] sm:$0xff] }
  0xe5   :  { %526 = vmax.xlane.f32.xlu0 %v4215_v53  ;;  %474 = vmax.xlane.f32.xlu1 %v4211_v52  ;;  %7745 = vst [vmem:[#allocation26_spill] sm:$0xff] %v4241_v3  ;;  %v4249_v6 = vsel %vm341_vm0, %v288_v56, -1e+30  ;;  %v4260_v16 = vsel %vm341_vm0, %v333_v11, -1e+30 }
  0xe6   :  { %416 = vmax.xlane.f32.xlu2 %v4219_v54  ;;  %212 = vmatmul.f32.gmra.mxu0 %v72_v55 }
  0xeb   :  { %v171_v63 = vpop.f32.mrf.mxu0  ;;  %v258_v12 = vpop.f32.mrf.mxu1 }
  0xec   :  { %v291_v0 = vpop.f32.mrf.mxu2  ;;  %v336_v23 = vpop.f32.mrf.mxu3  ;;  %v4271_v26 = vsel %vm341_vm0, %v258_v12, -1e+30  ;;  %v4279_v30 = vsel %vm341_vm0, %v171_v63, -1e+30 }
  0xed   :  { %498 = vmax.xlane.f32.xlu1 %v4230_v60  ;;  %418 = vmax.xlane.f32.xlu0 %v4226_v59  ;;  %v4256_v14 = vsel %vm341_vm0, %v291_v0, -1e+30  ;;  %v4275_v27 = vsel %vm341_vm0, %v336_v23, -1e+30 }
  0xee   :  { %476 = vmax.xlane.f32.xlu2 %v4234_v61  ;;  %7746 = vst [vmem:[#allocation27_spill] sm:$0xff] %v4256_v14  ;;  %215 = vmatmul.f32.gmra.mxu0 %v73_v1 }
  0xf3   :  { %v174_v9 = vpop.f32.mrf.mxu0  ;;  %v261_v29 = vpop.f32.mrf.mxu1 }
  0xf4   :  { %v294_v10 = vpop.f32.mrf.mxu2  ;;  %v4286_v36 = vsel %vm341_vm0, %v261_v29, -1e+30  ;;  %v4290_v37 = vsel %vm341_vm0, %v174_v9, -1e+30 }
  0xf5   :  { %528 = vmax.xlane.f32.xlu1 %v4245_v5  ;;  %478 = vmax.xlane.f32.xlu0 %v4241_v3  ;;  %v4294_v38 = vsel %vm341_vm0, %v294_v10, -1e+30 }
  0xf6   :  { %500 = vmax.xlane.f32.xlu2 %v4249_v6  ;;  %7747 = vst [vmem:[#allocation28_spill] sm:$0xff] %v4294_v38 }
  0xfb   :  { %v177_v19 = vpop.f32.mrf.mxu0  ;;  %v264_v42 = vpop.f32.mrf.mxu1 }
  0xfc   :  { %v297_v21 = vpop.f32.mrf.mxu2  ;;  %v4301_v49 = vsel %vm341_vm0, %v264_v42, -1e+30  ;;  %v4305_v50 = vsel %vm341_vm0, %v177_v19, -1e+30 }
  0xfd   :  { %502 = vmax.xlane.f32.xlu0 %v4256_v14  ;;  %420 = vmax.xlane.f32.xlu1 %v4264_v18  ;;  %v4309_v51 = vsel %vm341_vm0, %v297_v21, -1e+30 }
  0xfe   :  { %530 = vmax.xlane.f32.xlu2 %v4260_v16  ;;  %7748 = vst [vmem:[#allocation29_spill] sm:$0xff] %v4309_v51 }
 0x103   :  { %v180_v33 = vpop.f32.mrf.mxu0  ;;  %v267_v56 = vpop.f32.mrf.mxu1 }
 0x104   :  { %v300_v34 = vpop.f32.mrf.mxu2  ;;  %v4316_v57 = vsel %vm341_vm0, %v267_v56, -1e+30  ;;  %v4324_v0 = vsel %vm341_vm0, %v180_v33, -1e+30 }
 0x105   :  { %532 = vmax.xlane.f32.xlu0 %v4275_v27  ;;  %480 = vmax.xlane.f32.xlu1 %v4271_v26  ;;  %v4320_v63 = vsel %vm341_vm0, %v300_v34, -1e+30  ;;  %7750 = vst [vmem:[#allocation31_spill] sm:$0xff] %v4324_v0 }
 0x106   :  { %422 = vmax.xlane.f32.xlu2 %v4279_v30  ;;  %7749 = vst [vmem:[#allocation30_spill] sm:$0xff] %v4320_v63 }
 0x10b   :  { %v183_v46 = vpop.f32.mrf.mxu0 }
 0x10c   :  { %v303_v47 = vpop.f32.mrf.mxu2  ;;  %v4339_v12 = vsel %vm341_vm0, %v183_v46, -1e+30 }
 0x10d   :  { %504 = vmax.xlane.f32.xlu1 %v4294_v38  ;;  %424 = vmax.xlane.f32.xlu0 %v4290_v37  ;;  %7754 = vst [vmem:[#allocation35_spill] sm:$0xff] %v4339_v12  ;;  %v4343_v19 = vsel %vm341_vm0, %v303_v47, -1e+30 }
 0x10e   :  { %482 = vmax.xlane.f32.xlu2 %v4286_v36  ;;  %7755 = vst [vmem:[#allocation36_spill] sm:$0xff] %v4343_v19 }
 0x113   :  { %v186_v58 = vpop.f32.mrf.mxu0 }
 0x114   :  { %v306_v62 = vpop.f32.mrf.mxu2  ;;  %v4364_v43 = vsel %vm341_vm0, %v186_v58, -1e+30 }
 0x115   :  { %484 = vmax.xlane.f32.xlu0 %v4301_v49  ;;  %426 = vmax.xlane.f32.xlu1 %v4305_v50  ;;  %v4335_v11 = vsel %vm341_vm0, %v306_v62, -1e+30 }
 0x116   :  { %506 = vmax.xlane.f32.xlu2 %v4309_v51  ;;  %7753 = vst [vmem:[#allocation34_spill] sm:$0xff] %v4335_v11 }
 0x11b   :  { %v189_v21 = vpop.f32.mrf.mxu0 }
 0x11c   :  { %v309_v23 = vpop.f32.mrf.mxu2  ;;  %v4360_v42 = vsel %vm341_vm0, %v189_v21, -1e+30 }
 0x11d   :  { %508 = vmax.xlane.f32.xlu0 %v4320_v63  ;;  %486 = vmax.xlane.f32.xlu1 %v4316_v57  ;;  %v4354_v34 = vsel %vm341_vm0, %v309_v23, -1e+30  ;;  %7759 = vst [vmem:[#allocation40_spill] sm:$0xff] %v4360_v42 }
 0x11e   :  { %428 = vmax.xlane.f32.xlu2 %v4324_v0  ;;  %7758 = vst [vmem:[#allocation39_spill] sm:$0xff] %v4354_v34 }
 0x120   :  { %v4329_v9 = vpop.xlane.xlu2 %464  ;;  %v4331_v10 = vpop.xlane.xlu0 %406 }
 0x121   :  { %7751 = vst [vmem:[#allocation32_spill] sm:$0xff] %v4329_v9  ;;  %vm1174_vm1 = vcmp.ge.f32.partialorder %v4120_v8, %v4331_v10  ;;  %v563_v47 = vsub.f32 %v4116_v7, %v4329_v9  ;;  %vm1203_vm2 = vcmp.ge.f32.partialorder %v4116_v7, %v4329_v9  ;;  %v534_v7 = vsub.f32 %v4120_v8, %v4331_v10 }
 0x122   :  { %7752 = vst [vmem:[#allocation33_spill] sm:$0xff] %v4331_v10  ;;  %v4369_v46 = vsel %vm1174_vm1, %v4111_v4, 128 }
 0x123   :  { %7760 = vst [vmem:[#allocation41_spill] sm:$0xff] %v4369_v46  ;;  %v192_v55 = vpop.f32.mrf.mxu0  ;;  %v1303_v58 = vshra.s32 %v4369_v46, 16  ;;  %v656_v23 = vmul.f32 1.442695, %v563_v47  ;;  %v4396_v46 = vsel %vm1203_vm2, %v4111_v4, 128 }
 0x124   :  { %v312_v56 = vpop.f32.mrf.mxu2  ;;  %v4385_v2 = vsel %vm341_vm0, %v192_v55, -1e+30  ;;  %7767 = vst [vmem:[#allocation48_spill] sm:$0xff] %v4396_v46  ;;  %v598_v10 = vmul.f32 1.442695, %v534_v7 }
 0x125   :  { %510 = vmax.xlane.f32.xlu1 %v4343_v19  ;;  %430 = vmax.xlane.f32.xlu0 %v4339_v12  ;;  %7764 = vst [vmem:[#allocation45_spill] sm:$0xff] %v4385_v2  ;;  %3527 = vpow2.f32 %v656_v23 }
 0x126   :  { %512 = vmax.xlane.f32.xlu2 %v4335_v11  ;;  %v4393_v11 = vcvt.s32.f32 %v1303_v58  ;;  %3529 = vpow2.f32 %v598_v10 }
 0x128   :  { %v4348_v29 = vpop.xlane.xlu0 %408  ;;  %7766 = vst [vmem:[#allocation47_spill] sm:$0xff] %v4393_v11 }
 0x129   :  { %7756 = vst [vmem:[#allocation37_spill] sm:$0xff] %v4348_v29  ;;  %v4350_v33 = vpop.xlane.xlu2 %488  ;;  %vm1175_vm6 = vcmp.ge.f32.partialorder %v4126_v13, %v4348_v29 }
 0x12a   :  { %7757 = vst [vmem:[#allocation38_spill] sm:$0xff] %v4350_v33  ;;  %vm1215_vm3 = vcmp.ge.f32.partialorder %v4130_v15, %v4350_v33  ;;  %v575_v55 = vsub.f32 %v4130_v15, %v4350_v33 }
 0x12b   :  { %v4403_v47 = vsel %vm1215_vm3, %v4111_v4, 128  ;;  %v4420_v15 = vpop.eup %3527 }
 0x12c   :  { %7768 = vst [vmem:[#allocation49_spill] sm:$0xff] %v4403_v47  ;;  %v1877_v8 = vshra.s32 %v4403_v47, 16 }
 0x12d   :  { %514 = vmax.xlane.f32.xlu0 %v4354_v34  ;;  %432 = vmax.xlane.f32.xlu1 %v4364_v43  ;;  %v4389_v34 = vsel %vm341_vm0, %v312_v56, -1e+30  ;;  %v1709_v56 = vshra.s32 %v4396_v46, 16  ;;  %7773 = vst [vmem:[#allocation54_spill] sm:$0xff] %v4420_v15  ;;  %v4441_v46 = vpop.eup %3529 }
 0x12e   :  { %434 = vmax.xlane.f32.xlu2 %v4360_v42  ;;  %7765 = vst [vmem:[#allocation46_spill] sm:$0xff] %v4389_v34  ;;  %v4422_v23 = vcvt.s32.f32 %v1877_v8 }
 0x12f   :  { %v4418_v12 = vcvt.s32.f32 %v1709_v56  ;;  %v535_v56 = vsub.f32 %v4126_v13, %v4348_v29  ;;  %7779 = vst [vmem:[#allocation60_spill] sm:$0xff] %v4441_v46 }
 0x130   :  { %v4374_v62 = vpop.xlane.xlu0 %466  ;;  %v4376_v1 = vpop.xlane.xlu1 %410  ;;  %7774 = vst [vmem:[#allocation55_spill] sm:$0xff] %v4422_v23 }
 0x131   :  { %7761 = vst [vmem:[#allocation42_spill] sm:$0xff] %v4374_v62  ;;  %v4379_v21 = vpop.xlane.xlu2 %518  ;;  %vm1204_vm4 = vcmp.ge.f32.partialorder %v4136_v17, %v4374_v62  ;;  %vm1176_vm5 = vcmp.ge.f32.partialorder %v4144_v22, %v4376_v1  ;;  %v564_v13 = vsub.f32 %v4136_v17, %v4374_v62 }
 0x132   :  { %7762 = vst [vmem:[#allocation43_spill] sm:$0xff] %v4376_v1  ;;  %v4427_v33 = vsel %vm1204_vm4, %v4111_v4, 128  ;;  %v590_v7 = vsub.f32 %v4140_v20, %v4379_v21  ;;  %v600_v20 = vmul.f32 1.442695, %v535_v56 }
 0x133   :  { %7763 = vst [vmem:[#allocation44_spill] sm:$0xff] %v4379_v21  ;;  %v1723_v10 = vshra.s32 %v4427_v33, 16  ;;  %v658_v17 = vmul.f32 1.442695, %v564_v13 }
 0x134   :  { %7772 = vst [vmem:[#allocation53_spill] sm:$0xff] %v4418_v12 }
 0x135   :  { %516 = vmax.xlane.f32.xlu1 %v4389_v34  ;;  %436 = vmax.xlane.f32.xlu0 %v4385_v2  ;;  %v680_v2 = vmul.f32 1.442695, %v575_v55  ;;  %7775 = vst [vmem:[#allocation56_spill] sm:$0xff] %v4427_v33  ;;  %v74_v55 = vld [vmem:[#allocation2 + $0xc0] sm:$0xff] }
 0x136   :  { %1306 = vmin.xlane.f32.xlu2 %v4393_v11  ;;  %218 = vmatmul.f32.gmra.mxu0 %v74_v55  ;;  %v195_v55 = vpop.f32.mrf.mxu0 }
 0x137   :  { %3531 = vpow2.f32 %v680_v2  ;;  %v4445_v2 = vcvt.s32.f32 %v1723_v10  ;;  %v4462_v10 = vsel %vm341_vm0, %v195_v55, -1e+30  ;;  %v76_v55 = vld [vmem:[#allocation2 + $0xd0] sm:$0xff] }
 0x138   :  { %v4409_v58 = vpop.xlane.xlu0 %490  ;;  %v4411_v9 = vpop.xlane.xlu1 %468  ;;  %7785 = vst [vmem:[#allocation66_spill] sm:$0xff] %v4462_v10 }
 0x139   :  { %7769 = vst [vmem:[#allocation50_spill] sm:$0xff] %v4409_v58  ;;  %v4414_v34 = vpop.xlane.xlu2 %470  ;;  %vm1205_vm7 = vcmp.ge.f32.partialorder %v4151_v24, %v4411_v9  ;;  %vm1216_vm8 = vcmp.ge.f32.partialorder %v4155_v25, %v4409_v58 }
 0x13a   :  { %7770 = vst [vmem:[#allocation51_spill] sm:$0xff] %v4411_v9 }
 0x13b   :  { %7771 = vst [vmem:[#allocation52_spill] sm:$0xff] %v4414_v34 }
 0x13c   :  { %7781 = vst [vmem:[#allocation62_spill] sm:$0xff] %v4445_v2 }
 0x13d   :  { %1712 = vmin.xlane.f32.xlu1 %v4418_v12  ;;  %784 = vadd.xlane.f32.xlu0 %v4420_v15  ;;  %v710_v12 = vmul.f32 1.442695, %v590_v7  ;;  %v4443_v21 = vpop.eup %3531 }
 0x13e   :  { %1880 = vmin.xlane.f32.xlu2 %v4422_v23  ;;  %7780 = vst [vmem:[#allocation61_spill] sm:$0xff] %v4443_v21  ;;  %v75_v23 = vld [vmem:[#allocation2 + $0xc8] sm:$0xff]  ;;  %v198_v29 = vpop.f32.mrf.mxu0 }
 0x13f   :  { %3533 = vpow2.f32 %v710_v12  ;;  %221 = vmatmul.f32.gmra.mxu0 %v75_v23  ;;  %v4470_v23 = vsel %vm1175_vm6, %v4111_v4, 128  ;;  %v4493_v62 = vsel %vm341_vm0, %v198_v29, -1e+30 }
 0x140   :  { %v4434_v8 = vpop.xlane.xlu0 %520  ;;  %v4436_v47 = vpop.xlane.xlu1 %492  ;;  %3535 = vpow2.f32 %v600_v20  ;;  %v4467_v20 = vsel %vm1176_vm5, %v4111_v4, 128  ;;  %7788 = vst [vmem:[#allocation69_spill] sm:$0xff] %v4470_v23  ;;  %v1317_v11 = vshra.s32 %v4470_v23, 16 }
 0x141   :  { %7776 = vst [vmem:[#allocation57_spill] sm:$0xff] %v4434_v8  ;;  %v4439_v15 = vpop.xlane.xlu2 %494  ;;  %3537 = vpow2.f32 %v658_v17  ;;  %v4523_v17 = vsel %vm1216_vm8, %v4111_v4, 128  ;;  %vm1217_vm10 = vcmp.ge.f32.partialorder %v4166_v31, %v4436_v47 }
 0x142   :  { %7777 = vst [vmem:[#allocation58_spill] sm:$0xff] %v4436_v47  ;;  %vm1218_vm11 = vcmp.ge.f32.partialorder %v4174_v35, %v4439_v15 }
 0x143   :  { %7778 = vst [vmem:[#allocation59_spill] sm:$0xff] %v4439_v15 }
 0x144   :  { %7787 = vst [vmem:[#allocation68_spill] sm:$0xff] %v4467_v20 }
 0x145   :  { %726 = vadd.xlane.f32.xlu1 %v4441_v46  ;;  %808 = vadd.xlane.f32.xlu0 %v4443_v21  ;;  %v4464_v12 = vpop.eup %3533  ;;  %v565_v46 = vsub.f32 %v4151_v24, %v4411_v9  ;;  %7793 = vst [vmem:[#allocation74_spill] sm:$0xff] %v4493_v62  ;;  %v536_v24 = vsub.f32 %v4144_v22, %v4376_v1  ;;  %v1891_v1 = vshra.s32 %v4523_v17, 16 }
 0x146   :  { %1726 = vmin.xlane.f32.xlu2 %v4445_v2  ;;  %7786 = vst [vmem:[#allocation67_spill] sm:$0xff] %v4464_v12  ;;  %v4472_v21 = vpop.eup %3535  ;;  %v1331_v2 = vshra.s32 %v4467_v20, 16  ;;  %v4497_v20 = vcvt.s32.f32 %v1317_v11 }
 0x147   :  { %7789 = vst [vmem:[#allocation70_spill] sm:$0xff] %v4472_v21  ;;  %224 = vmatmul.f32.gmra.mxu0 %v76_v55  ;;  %v4500_v55 = vsel %vm1205_vm7, %v4111_v4, 128  ;;  %v602_v13 = vmul.f32 1.442695, %v536_v24  ;;  %v4520_v9 = vpop.eup %3537  ;;  %v576_v24 = vsub.f32 %v4155_v25, %v4409_v58  ;;  %v4545_v0 = vcvt.s32.f32 %v1891_v1 }
 0x148   :  { %v4450_v33 = vpop.xlane.xlu0 %472  ;;  %v4452_v7 = vpop.xlane.xlu1 %522  ;;  %v4495_v63 = vcvt.s32.f32 %v1331_v2  ;;  %7795 = vst [vmem:[#allocation76_spill] sm:$0xff] %v4497_v20  ;;  %v1737_v29 = vshra.s32 %v4500_v55, 16 }
 0x149   :  { %7782 = vst [vmem:[#allocation63_spill] sm:$0xff] %v4450_v33  ;;  %v4454_v56 = vpop.xlane.xlu2 %524 }
 0x14a   :  { %7783 = vst [vmem:[#allocation64_spill] sm:$0xff] %v4452_v7  ;;  %v4518_v22 = vcvt.s32.f32 %v1737_v29  ;;  %v577_v29 = vsub.f32 %v4166_v31, %v4436_v47 }
 0x14b   :  { %7784 = vst [vmem:[#allocation65_spill] sm:$0xff] %v4454_v56 }
 0x14c   :  { %7794 = vst [vmem:[#allocation75_spill] sm:$0xff] %v4495_v63  ;;  %v684_v23 = vmul.f32 1.442695, %v577_v29  ;;  %v201_v29 = vpop.f32.mrf.mxu0 }
 0x14d   :  { %838 = vadd.xlane.f32.xlu0 %v4464_v12  ;;  %438 = vmax.xlane.f32.xlu1 %v4462_v10  ;;  %7796 = vst [vmem:[#allocation77_spill] sm:$0xff] %v4500_v55 }
 0x14e   :  { %728 = vadd.xlane.f32.xlu2 %v4472_v21  ;;  %v660_v21 = vmul.f32 1.442695, %v565_v46  ;;  %7800 = vst [vmem:[#allocation81_spill] sm:$0xff] %v4518_v22 }
 0x14f   :  { %7801 = vst [vmem:[#allocation82_spill] sm:$0xff] %v4520_v9 }
 0x150   :  { %v4483_v42 = vpop.xlane.xlu0 %496  ;;  %v4485_v12 = vpop.xlane.xlu1 %412  ;;  %3539 = vpow2.f32 %v660_v21  ;;  %7802 = vst [vmem:[#allocation83_spill] sm:$0xff] %v4523_v17 }
 0x151   :  { %7790 = vst [vmem:[#allocation71_spill] sm:$0xff] %v4483_v42  ;;  %v4487_v10 = vpop.xlane.xlu2 %414  ;;  %vm1177_vm9 = vcmp.ge.f32.partialorder %v4204_v48, %v4485_v12  ;;  %3541 = vpow2.f32 %v602_v13  ;;  %v537_v31 = vsub.f32 %v4204_v48, %v4485_v12  ;;  %vm1219_vm14 = vcmp.ge.f32.partialorder %v4196_v44, %v4483_v42 }
 0x152   :  { %7791 = vst [vmem:[#allocation72_spill] sm:$0xff] %v4485_v12  ;;  %v4530_v55 = vsel %vm1177_vm9, %v4111_v4, 128  ;;  %vm1178_vm12 = vcmp.ge.f32.partialorder %v4200_v45, %v4487_v10 }
 0x153   :  { %7792 = vst [vmem:[#allocation73_spill] sm:$0xff] %v4487_v10 }
 0x154   :  { %7804 = vst [vmem:[#allocation85_spill] sm:$0xff] %v4530_v55 }
 0x155   :  { %1334 = vmin.xlane.f32.xlu0 %v4495_v63  ;;  %1320 = vmin.xlane.f32.xlu1 %v4497_v20  ;;  %v682_v20 = vmul.f32 1.442695, %v576_v24  ;;  %7808 = vst [vmem:[#allocation89_spill] sm:$0xff] %v4545_v0  ;;  %v592_v24 = vsub.f32 %v4181_v39, %v4452_v7  ;;  %v579_v39 = vsub.f32 %v4196_v44, %v4483_v42 }
 0x156   :  { %440 = vmax.xlane.f32.xlu2 %v4493_v62  ;;  %v4525_v21 = vpop.eup %3539 }
 0x157   :  { %7803 = vst [vmem:[#allocation84_spill] sm:$0xff] %v4525_v21  ;;  %v4547_v25 = vpop.eup %3541  ;;  %3543 = vpow2.f32 %v682_v20  ;;  %v714_v20 = vmul.f32 1.442695, %v592_v24  ;;  %v688_v44 = vmul.f32 1.442695, %v579_v39 }
 0x158   :  { %v4508_v46 = vpop.xlane.xlu0 %526  ;;  %v4510_v11 = vpop.xlane.xlu1 %474  ;;  %7809 = vst [vmem:[#allocation90_spill] sm:$0xff] %v4547_v25  ;;  %3545 = vpow2.f32 %v684_v23 }
 0x159   :  { %7797 = vst [vmem:[#allocation78_spill] sm:$0xff] %v4508_v46  ;;  %v4512_v2 = vpop.xlane.xlu2 %416  ;;  %vm1234_vm15 = vcmp.ge.f32.partialorder %v4215_v53, %v4508_v46  ;;  %v594_v39 = vsub.f32 %v4215_v53, %v4508_v46 }
 0x15a   :  { %7798 = vst [vmem:[#allocation79_spill] sm:$0xff] %v4510_v11  ;;  %vm1179_vm1 = vcmp.ge.f32.partialorder %v4219_v54, %v4512_v2 }
 0x15b   :  { %7799 = vst [vmem:[#allocation80_spill] sm:$0xff] %v4512_v2 }
 0x15d   :  { %1740 = vmin.xlane.f32.xlu0 %v4518_v22  ;;  %786 = vadd.xlane.f32.xlu1 %v4520_v9  ;;  %v1345_v9 = vshra.s32 %v4530_v55, 16  ;;  %v4570_v17 = vpop.eup %3543  ;;  %v566_v55 = vsub.f32 %v4159_v28, %v4414_v34  ;;  %v604_v34 = vmul.f32 1.442695, %v537_v31 }
 0x15e   :  { %788 = vadd.xlane.f32.xlu2 %v4525_v21  ;;  %v591_v21 = vsub.f32 %v4170_v32, %v4434_v8  ;;  %7815 = vst [vmem:[#allocation96_spill] sm:$0xff] %v4570_v17  ;;  %v4575_v23 = vpop.eup %3545 }
 0x15f   :  { %v4549_v13 = vcvt.s32.f32 %v1345_v9  ;;  %7817 = vst [vmem:[#allocation98_spill] sm:$0xff] %v4575_v23  ;;  %v662_v28 = vmul.f32 1.442695, %v566_v55 }
 0x160   :  { %v4538_v63 = vpop.xlane.xlu1 %498  ;;  %v4540_v62 = vpop.xlane.xlu0 %418 }
 0x161   :  { %7805 = vst [vmem:[#allocation86_spill] sm:$0xff] %v4538_v63  ;;  %v4543_v22 = vpop.xlane.xlu2 %476  ;;  %vm1180_vm13 = vcmp.ge.f32.partialorder %v4226_v59, %v4540_v62  ;;  %vm1220_vm3 = vcmp.ge.f32.partialorder %v4230_v60, %v4538_v63 }
 0x162   :  { %7806 = vst [vmem:[#allocation87_spill] sm:$0xff] %v4540_v62 }
 0x163   :  { %7807 = vst [vmem:[#allocation88_spill] sm:$0xff] %v4543_v22 }
 0x164   :  { %7810 = vst [vmem:[#allocation91_spill] sm:$0xff] %v4549_v13 }
 0x165   :  { %730 = vadd.xlane.f32.xlu0 %v4547_v25  ;;  %1894 = vmin.xlane.f32.xlu1 %v4545_v0  ;;  %v712_v25 = vmul.f32 1.442695, %v591_v21  ;;  %v4568_v0 = vsel %vm341_vm0, %v201_v29, -1e+30  ;;  %v538_v21 = vsub.f32 %v4200_v45, %v4487_v10  ;;  %v567_v45 = vsub.f32 %v4185_v40, %v4450_v33 }
 0x166   :  { %1348 = vmin.xlane.f32.xlu2 %v4549_v13  ;;  %7814 = vst [vmem:[#allocation95_spill] sm:$0xff] %v4568_v0  ;;  %v4573_v13 = vsel %vm1217_vm10, %v4111_v4, 128 }
 0x167   :  { %7816 = vst [vmem:[#allocation97_spill] sm:$0xff] %v4573_v13  ;;  %3547 = vpow2.f32 %v712_v25  ;;  %v1905_v24 = vshra.s32 %v4573_v13, 16 }
 0x168   :  { %v4558_v1 = vpop.xlane.xlu1 %528  ;;  %v4560_v58 = vpop.xlane.xlu0 %478  ;;  %3549 = vpow2.f32 %v714_v20 }
 0x169   :  { %7811 = vst [vmem:[#allocation92_spill] sm:$0xff] %v4558_v1  ;;  %v4562_v9 = vpop.xlane.xlu2 %500  ;;  %v4593_v32 = vcvt.s32.f32 %v1905_v24  ;;  %v204_v20 = vpop.f32.mrf.mxu0  ;;  %3551 = vpow2.f32 %v662_v28  ;;  %vm1235_vm4 = vcmp.ge.f32.partialorder %v4245_v5, %v4558_v1 }
 0x16a   :  { %7812 = vst [vmem:[#allocation93_spill] sm:$0xff] %v4560_v58  ;;  %3553 = vpow2.f32 %v604_v34  ;;  %v77_v34 = vld [vmem:[#allocation2 + $0xd8] sm:$0xff]  ;;  %vm1221_vm5 = vcmp.ge.f32.partialorder %v4249_v6, %v4562_v9 }
 0x16b   :  { %7813 = vst [vmem:[#allocation94_spill] sm:$0xff] %v4562_v9  ;;  %227 = vmatmul.f32.gmra.mxu0 %v77_v34 }
 0x16c   :  { %7821 = vst [vmem:[#allocation102_spill] sm:$0xff] %v4593_v32 }
 0x16d   :  { %810 = vadd.xlane.f32.xlu1 %v4570_v17  ;;  %442 = vmax.xlane.f32.xlu0 %v4568_v0  ;;  %v606_v0 = vmul.f32 1.442695, %v538_v21  ;;  %v4595_v48 = vpop.eup %3547 }
 0x16e   :  { %812 = vadd.xlane.f32.xlu2 %v4575_v23  ;;  %7822 = vst [vmem:[#allocation103_spill] sm:$0xff] %v4595_v48  ;;  %v4597_v25 = vpop.eup %3549  ;;  %v4615_v23 = vsel %vm1218_vm11, %v4111_v4, 128 }
 0x16f   :  { %7823 = vst [vmem:[#allocation104_spill] sm:$0xff] %v4597_v25  ;;  %3555 = vpow2.f32 %v606_v0  ;;  %v4610_v24 = vpop.eup %3551  ;;  %v578_v0 = vsub.f32 %v4174_v35, %v4439_v15  ;;  %v1919_v13 = vshra.s32 %v4615_v23, 16 }
 0x170   :  { %v4587_v29 = vpop.xlane.xlu0 %502  ;;  %v4589_v47 = vpop.xlane.xlu1 %420  ;;  %7827 = vst [vmem:[#allocation108_spill] sm:$0xff] %v4610_v24 }
 0x171   :  { %7818 = vst [vmem:[#allocation99_spill] sm:$0xff] %v4587_v29  ;;  %v4591_v17 = vpop.xlane.xlu2 %530  ;;  %v686_v35 = vmul.f32 1.442695, %v578_v0  ;;  %v4643_v34 = vcvt.s32.f32 %v1919_v13  ;;  %vm1181_vm6 = vcmp.ge.f32.partialorder %v4264_v18, %v4589_v47 }
 0x172   :  { %7819 = vst [vmem:[#allocation100_spill] sm:$0xff] %v4589_v47  ;;  %vm1236_vm2 = vcmp.ge.f32.partialorder %v4260_v16, %v4591_v17 }
 0x173   :  { %7820 = vst [vmem:[#allocation101_spill] sm:$0xff] %v4591_v17  ;;  %3557 = vpow2.f32 %v686_v35 }
 0x174   :  { %7829 = vst [vmem:[#allocation110_spill] sm:$0xff] %v4615_v23  ;;  %v4646_v23 = vsel %vm1178_vm12, %v4111_v4, 128 }
 0x175   :  { %840 = vadd.xlane.f32.xlu1 %v4595_v48  ;;  %1908 = vmin.xlane.f32.xlu0 %v4593_v32  ;;  %v4612_v48 = vpop.eup %3553  ;;  %v207_v32 = vpop.f32.mrf.mxu0  ;;  %7835 = vst [vmem:[#allocation116_spill] sm:$0xff] %v4643_v34  ;;  %v1359_v13 = vshra.s32 %v4646_v23, 16 }
 0x176   :  { %842 = vadd.xlane.f32.xlu2 %v4597_v25  ;;  %7828 = vst [vmem:[#allocation109_spill] sm:$0xff] %v4612_v48  ;;  %v4617_v28 = vpop.eup %3555  ;;  %v568_v25 = vsub.f32 %v4211_v52, %v4510_v11  ;;  %v4641_v15 = vsel %vm341_vm0, %v207_v32, -1e+30  ;;  %v593_v52 = vsub.f32 %v4189_v41, %v4454_v56  ;;  %v78_v32 = vld [vmem:[#allocation2 + $0xe0] sm:$0xff] }
 0x177   :  { %7830 = vst [vmem:[#allocation111_spill] sm:$0xff] %v4617_v28  ;;  %230 = vmatmul.f32.gmra.mxu0 %v78_v32  ;;  %v4664_v40 = vcvt.s32.f32 %v1359_v13 }
 0x178   :  { %v4602_v55 = vpop.xlane.xlu0 %532  ;;  %v4604_v31 = vpop.xlane.xlu1 %480  ;;  %7834 = vst [vmem:[#allocation115_spill] sm:$0xff] %v4641_v15  ;;  %v716_v0 = vmul.f32 1.442695, %v593_v52  ;;  %v580_v52 = vsub.f32 %v4230_v60, %v4538_v63 }
 0x179   :  { %7824 = vst [vmem:[#allocation105_spill] sm:$0xff] %v4602_v55  ;;  %v4606_v21 = vpop.xlane.xlu2 %422  ;;  %v4666_v33 = vpop.eup %3557  ;;  %v571_v60 = vsub.f32 %v4271_v26, %v4604_v31  ;;  %vm1237_vm8 = vcmp.ge.f32.partialorder %v4275_v27, %v4602_v55 }
 0x17a   :  { %7825 = vst [vmem:[#allocation106_spill] sm:$0xff] %v4604_v31  ;;  %vm1182_vm10 = vcmp.ge.f32.partialorder %v4279_v30, %v4606_v21 }
 0x17b   :  { %7826 = vst [vmem:[#allocation107_spill] sm:$0xff] %v4606_v21 }
 0x17c   :  { %7836 = vst [vmem:[#allocation117_spill] sm:$0xff] %v4646_v23 }
 0x17d   :  { %732 = vadd.xlane.f32.xlu1 %v4612_v48  ;;  %790 = vadd.xlane.f32.xlu0 %v4610_v24  ;;  %v4637_v24 = vsel %vm341_vm0, %v204_v20, -1e+30  ;;  %7840 = vst [vmem:[#allocation121_spill] sm:$0xff] %v4664_v40  ;;  %v210_v53 = vpop.f32.mrf.mxu0 }
 0x17e   :  { %734 = vadd.xlane.f32.xlu2 %v4617_v28  ;;  %7833 = vst [vmem:[#allocation114_spill] sm:$0xff] %v4637_v24  ;;  %v666_v28 = vmul.f32 1.442695, %v568_v25 }
 0x17f   :  { %7841 = vst [vmem:[#allocation122_spill] sm:$0xff] %v4666_v33 }
 0x180   :  { %v4627_v12 = vpop.xlane.xlu1 %504  ;;  %v4629_v8 = vpop.xlane.xlu0 %424  ;;  %3559 = vpow2.f32 %v666_v28  ;;  %v4673_v28 = vsel %vm1180_vm13, %v4111_v4, 128 }
 0x181   :  { %7831 = vst [vmem:[#allocation112_spill] sm:$0xff] %v4627_v12  ;;  %v4631_v48 = vpop.xlane.xlu2 %482  ;;  %3561 = vpow2.f32 %v716_v0  ;;  %v1387_v13 = vshra.s32 %v4673_v28, 16  ;;  %vm1183_vm7 = vcmp.ge.f32.partialorder %v4290_v37, %v4629_v8 }
 0x182   :  { %7832 = vst [vmem:[#allocation113_spill] sm:$0xff] %v4631_v48 }
 0x183   :  { %7843 = vst [vmem:[#allocation124_spill] sm:$0xff] %v4673_v28  ;;  %v4699_v28 = vsel %vm1234_vm15, %v4111_v4, 128 }
 0x184   :  { %7851 = vst [vmem:[#allocation132_spill] sm:$0xff] %v4699_v28  ;;  %v2143_v7 = vshra.s32 %v4699_v28, 16 }
 0x185   :  { %1922 = vmin.xlane.f32.xlu0 %v4643_v34  ;;  %444 = vmax.xlane.f32.xlu1 %v4637_v24  ;;  %v664_v34 = vmul.f32 1.442695, %v567_v45 }
 0x186   :  { %446 = vmax.xlane.f32.xlu2 %v4641_v15  ;;  %v4668_v35 = vpop.eup %3559  ;;  %v4696_v15 = vsel %vm1219_vm14, %v4111_v4, 128 }
 0x187   :  { %7842 = vst [vmem:[#allocation123_spill] sm:$0xff] %v4668_v35  ;;  %3563 = vpow2.f32 %v664_v34  ;;  %v4689_v0 = vpop.eup %3561  ;;  %v690_v34 = vmul.f32 1.442695, %v580_v52  ;;  %v595_v52 = vsub.f32 %v4245_v5, %v4558_v1  ;;  %v569_v5 = vsub.f32 %v4234_v61, %v4543_v22 }
 0x188   :  { %v4656_v25 = vpop.xlane.xlu0 %484  ;;  %v4658_v20 = vpop.xlane.xlu1 %426  ;;  %7847 = vst [vmem:[#allocation128_spill] sm:$0xff] %v4689_v0 }
 0x189   :  { %7837 = vst [vmem:[#allocation118_spill] sm:$0xff] %v4656_v25  ;;  %v4660_v11 = vpop.xlane.xlu2 %506  ;;  %3565 = vpow2.f32 %v690_v34  ;;  %v539_v34 = vsub.f32 %v4219_v54, %v4512_v2  ;;  %v718_v54 = vmul.f32 1.442695, %v594_v39  ;;  %v541_v39 = vsub.f32 %v4264_v18, %v4589_v47 }
 0x18a   :  { %7838 = vst [vmem:[#allocation119_spill] sm:$0xff] %v4658_v20  ;;  %3567 = vpow2.f32 %v688_v44  ;;  %v4857_v18 = vsel %vm1183_vm7, %v4111_v4, 128  ;;  %vm1184_vm9 = vcmp.ge.f32.partialorder %v4305_v50, %v4658_v20 }
 0x18b   :  { %7839 = vst [vmem:[#allocation120_spill] sm:$0xff] %v4660_v11  ;;  %v608_v23 = vmul.f32 1.442695, %v539_v34  ;;  %v540_v34 = vsub.f32 %v4226_v59, %v4540_v62 }
 0x18c   :  { %7850 = vst [vmem:[#allocation131_spill] sm:$0xff] %v4696_v15 }
 0x18d   :  { %814 = vadd.xlane.f32.xlu0 %v4666_v33  ;;  %1362 = vmin.xlane.f32.xlu1 %v4664_v40  ;;  %v4693_v33 = vcvt.s32.f32 %v1387_v13  ;;  %v1933_v13 = vshra.s32 %v4696_v15, 16  ;;  %v4723_v15 = vsel %vm1179_vm1, %v4111_v4, 128 }
 0x18e   :  { %794 = vadd.xlane.f32.xlu2 %v4668_v35  ;;  %v4691_v35 = vpop.eup %3563  ;;  %7857 = vst [vmem:[#allocation138_spill] sm:$0xff] %v4723_v15 }
 0x18f   :  { %7848 = vst [vmem:[#allocation129_spill] sm:$0xff] %v4691_v35  ;;  %v4718_v42 = vcvt.s32.f32 %v1933_v13  ;;  %v4725_v28 = vpop.eup %3565 }
 0x190   :  { %v4678_v45 = vpop.xlane.xlu0 %508  ;;  %v4680_v32 = vpop.xlane.xlu1 %486  ;;  %7849 = vst [vmem:[#allocation130_spill] sm:$0xff] %v4693_v33 }
 0x191   :  { %7844 = vst [vmem:[#allocation125_spill] sm:$0xff] %v4678_v45  ;;  %v4683_v10 = vpop.xlane.xlu2 %428  ;;  %v4745_v46 = vpop.eup %3567  ;;  %vm1214_vm12 = vcmp.ge.f32.partialorder %v4316_v57, %v4680_v32 }
 0x192   :  { %7845 = vst [vmem:[#allocation126_spill] sm:$0xff] %v4680_v32 }
 0x193   :  { %7846 = vst [vmem:[#allocation127_spill] sm:$0xff] %v4683_v10 }
 0x194   :  { %7855 = vst [vmem:[#allocation136_spill] sm:$0xff] %v4718_v42 }
 0x195   :  { %844 = vadd.xlane.f32.xlu0 %v4689_v0  ;;  %792 = vadd.xlane.f32.xlu1 %v4691_v35  ;;  %v720_v35 = vmul.f32 1.442695, %v595_v52  ;;  %7858 = vst [vmem:[#allocation139_spill] sm:$0xff] %v4725_v28 }
 0x196   :  { %1390 = vmin.xlane.f32.xlu2 %v4693_v33  ;;  %v4720_v33 = vcvt.s32.f32 %v2143_v7  ;;  %v1373_v7 = vshra.s32 %v4723_v15, 16  ;;  %7863 = vst [vmem:[#allocation144_spill] sm:$0xff] %v4745_v46 }
 0x197   :  { %3569 = vpow2.f32 %v720_v35  ;;  %v4752_v35 = vsel %vm1236_vm2, %v4111_v4, 128 }
 0x198   :  { %v4710_v40 = vpop.xlane.xlu1 %510  ;;  %v4712_v24 = vpop.xlane.xlu0 %430  ;;  %7856 = vst [vmem:[#allocation137_spill] sm:$0xff] %v4720_v33  ;;  %3571 = vpow2.f32 %v608_v23  ;;  %v610_v23 = vmul.f32 1.442695, %v540_v34 }
 0x199   :  { %7852 = vst [vmem:[#allocation133_spill] sm:$0xff] %v4710_v40  ;;  %v4714_v0 = vpop.xlane.xlu2 %512  ;;  %3573 = vpow2.f32 %v718_v54  ;;  %v213_v54 = vpop.f32.mrf.mxu0 }
 0x19a   :  { %7853 = vst [vmem:[#allocation134_spill] sm:$0xff] %v4712_v24  ;;  %3575 = vpow2.f32 %v610_v23 }
 0x19b   :  { %7854 = vst [vmem:[#allocation135_spill] sm:$0xff] %v4714_v0 }
 0x19c   :  { %7865 = vst [vmem:[#allocation146_spill] sm:$0xff] %v4752_v35 }
 0x19d   :  { %1936 = vmin.xlane.f32.xlu0 %v4718_v42  ;;  %2146 = vmin.xlane.f32.xlu1 %v4720_v33  ;;  %v4743_v33 = vcvt.s32.f32 %v1373_v7  ;;  %v4747_v44 = vpop.eup %3569  ;;  %v2171_v42 = vshra.s32 %v4752_v35, 16 }
 0x19e   :  { %818 = vadd.xlane.f32.xlu2 %v4725_v28  ;;  %7864 = vst [vmem:[#allocation145_spill] sm:$0xff] %v4747_v44  ;;  %v4766_v2 = vpop.eup %3571 }
 0x19f   :  { %7862 = vst [vmem:[#allocation143_spill] sm:$0xff] %v4743_v33  ;;  %v4768_v15 = vpop.eup %3573  ;;  %v4770_v59 = vcvt.s32.f32 %v2171_v42  ;;  %v4785_v42 = vsel %vm341_vm0, %v210_v53, -1e+30 }
 0x1a0   :  { %v4735_v52 = vpop.xlane.xlu0 %514  ;;  %v4737_v13 = vpop.xlane.xlu1 %432  ;;  %7869 = vst [vmem:[#allocation150_spill] sm:$0xff] %v4766_v2 }
 0x1a1   :  { %7859 = vst [vmem:[#allocation140_spill] sm:$0xff] %v4735_v52  ;;  %v4739_v41 = vpop.xlane.xlu2 %434  ;;  %vm1187_vm11 = vcmp.ge.f32.partialorder %v4364_v43, %v4737_v13 }
 0x1a2   :  { %7860 = vst [vmem:[#allocation141_spill] sm:$0xff] %v4737_v13 }
 0x1a3   :  { %7861 = vst [vmem:[#allocation142_spill] sm:$0xff] %v4739_v41 }
 0x1a4   :  { %7870 = vst [vmem:[#allocation151_spill] sm:$0xff] %v4768_v15 }
 0x1a5   :  { %1376 = vmin.xlane.f32.xlu0 %v4743_v33  ;;  %816 = vadd.xlane.f32.xlu1 %v4745_v46  ;;  %v612_v33 = vmul.f32 1.442695, %v541_v39  ;;  %7871 = vst [vmem:[#allocation152_spill] sm:$0xff] %v4770_v59  ;;  %v4787_v39 = vpop.eup %3575 }
 0x1a6   :  { %848 = vadd.xlane.f32.xlu2 %v4747_v44  ;;  %7875 = vst [vmem:[#allocation156_spill] sm:$0xff] %v4787_v39 }
 0x1a7   :  { %3577 = vpow2.f32 %v612_v33  ;;  %v216_v33 = vpop.f32.mrf.mxu0 }
 0x1a8   :  { %v4759_v7 = vpop.xlane.xlu1 %516  ;;  %v4761_v28 = vpop.xlane.xlu0 %436 }
 0x1a9   :  { %7866 = vst [vmem:[#allocation147_spill] sm:$0xff] %v4759_v7  ;;  %v4764_v46 = vpop.xlane.xlu2 %1306 }
 0x1aa   :  { %7867 = vst [vmem:[#allocation148_spill] sm:$0xff] %v4761_v28 }
 0x1ab   :  { %7868 = vst [vmem:[#allocation149_spill] sm:$0xff] %v4764_v46 }
 0x1ad   :  { %736 = vadd.xlane.f32.xlu0 %v4766_v2  ;;  %846 = vadd.xlane.f32.xlu1 %v4768_v15  ;;  %v4790_v15 = vsel %vm1220_vm3, %v4111_v4, 128  ;;  %v4792_v23 = vpop.eup %3577  ;;  %vm1213_vm3 = vcmp.ge.f32.partialorder %v4301_v49, %v4656_v25 }
 0x1ae   :  { %2174 = vmin.xlane.f32.xlu2 %v4770_v59  ;;  %7876 = vst [vmem:[#allocation157_spill] sm:$0xff] %v4790_v15  ;;  %v1947_v53 = vshra.s32 %v4790_v15, 16  ;;  %v4816_v59 = vsel %vm341_vm0, %v216_v33, -1e+30  ;;  %v4824_v15 = vsel %vm1221_vm5, %v4111_v4, 128 }
 0x1af   :  { %7877 = vst [vmem:[#allocation158_spill] sm:$0xff] %v4792_v23 }
 0x1b0   :  { %v4775_v44 = vpop.xlane.xlu1 %1712  ;;  %v4777_v35 = vpop.xlane.xlu0 %784  ;;  %7881 = vst [vmem:[#allocation162_spill] sm:$0xff] %v4816_v59 }
 0x1b1   :  { %7872 = vst [vmem:[#allocation153_spill] sm:$0xff] %v4775_v44  ;;  %v4779_v34 = vpop.xlane.xlu2 %1880 }
 0x1b2   :  { %7873 = vst [vmem:[#allocation154_spill] sm:$0xff] %v4777_v35 }
 0x1b3   :  { %7874 = vst [vmem:[#allocation155_spill] sm:$0xff] %v4779_v34  ;;  %v4818_v34 = vcvt.s32.f32 %v1947_v53 }
 0x1b4   :  { %7884 = vst [vmem:[#allocation165_spill] sm:$0xff] %v4824_v15 }
 0x1b5   :  { %738 = vadd.xlane.f32.xlu1 %v4787_v39  ;;  %448 = vmax.xlane.f32.xlu0 %v4785_v42  ;;  %v4812_v39 = vsel %vm341_vm0, %v213_v54, -1e+30  ;;  %7882 = vst [vmem:[#allocation163_spill] sm:$0xff] %v4818_v34 }
 0x1b6   :  { %740 = vadd.xlane.f32.xlu2 %v4792_v23  ;;  %v672_v23 = vmul.f32 1.442695, %v571_v60  ;;  %v1961_v60 = vshra.s32 %v4824_v15, 16 }
 0x1b8   :  { %v4800_v2 = vpop.xlane.xlu1 %726  ;;  %v4802_v63 = vpop.xlane.xlu0 %808  ;;  %3579 = vpow2.f32 %v672_v23  ;;  %v4845_v61 = vcvt.s32.f32 %v1961_v60 }
 0x1b9   :  { %7878 = vst [vmem:[#allocation159_spill] sm:$0xff] %v4800_v2  ;;  %v4804_v35 = vpop.xlane.xlu2 %1726 }
 0x1ba   :  { %7879 = vst [vmem:[#allocation160_spill] sm:$0xff] %v4802_v63  ;;  %v4821_v63 = vsel %vm1235_vm4, %v4111_v4, 128 }
 0x1bb   :  { %7880 = vst [vmem:[#allocation161_spill] sm:$0xff] %v4804_v35  ;;  %v2157_v54 = vshra.s32 %v4821_v63, 16 }
 0x1bc   :  { %7883 = vst [vmem:[#allocation164_spill] sm:$0xff] %v4821_v63  ;;  %v4848_v63 = vsel %vm1181_vm6, %v4111_v4, 128 }
 0x1bd   :  { %1950 = vmin.xlane.f32.xlu0 %v4818_v34  ;;  %450 = vmax.xlane.f32.xlu1 %v4812_v39  ;;  %v668_v34 = vmul.f32 1.442695, %v569_v5  ;;  %v4843_v44 = vcvt.s32.f32 %v2157_v54  ;;  %7889 = vst [vmem:[#allocation170_spill] sm:$0xff] %v4845_v61  ;;  %v570_v5 = vsub.f32 %v4241_v3, %v4560_v58  ;;  %v583_v54 = vsub.f32 %v4294_v38, %v4627_v12 }
 0x1be   :  { %452 = vmax.xlane.f32.xlu2 %v4816_v59  ;;  %v4850_v23 = vpop.eup %3579  ;;  %v1401_v60 = vshra.s32 %v4848_v63, 16  ;;  %v596_v38 = vsub.f32 %v4260_v16, %v4591_v17  ;;  %v4895_v16 = vpop.f32.mrf.mxu0  ;;  %v544_v17 = vsub.f32 %v4305_v50, %v4658_v20  ;;  %v4931_v58 = vsel %vm1182_vm10, %v4111_v4, 128 }
 0x1bf   :  { %7888 = vst [vmem:[#allocation169_spill] sm:$0xff] %v4843_v44  ;;  %3581 = vpow2.f32 %v668_v34  ;;  %v670_v47 = vmul.f32 1.442695, %v570_v5  ;;  %vm1212_vm10 = vcmp.ge.f32.partialorder %v4286_v36, %v4631_v48 }
 0x1c0   :  { %v4833_v33 = vpop.xlane.xlu0 %838  ;;  %v4835_v53 = vpop.xlane.xlu1 %438  ;;  %7890 = vst [vmem:[#allocation171_spill] sm:$0xff] %v4850_v23  ;;  %v4872_v3 = vcvt.s32.f32 %v1401_v60 }
 0x1c1   :  { %7885 = vst [vmem:[#allocation166_spill] sm:$0xff] %v4833_v33  ;;  %v4837_v1 = vpop.xlane.xlu2 %728  ;;  %v581_v33 = vsub.f32 %v4249_v6, %v4562_v9  ;;  %v1429_v9 = vshra.s32 %v4857_v18, 16 }
 0x1c2   :  { %7886 = vst [vmem:[#allocation167_spill] sm:$0xff] %v4835_v53 }
 0x1c3   :  { %7887 = vst [vmem:[#allocation168_spill] sm:$0xff] %v4837_v1  ;;  %v4876_v34 = vcvt.s32.f32 %v1429_v9  ;;  %v722_v9 = vmul.f32 1.442695, %v596_v38  ;;  %v4907_v38 = vsel %vm1184_vm9, %v4111_v4, 128 }
 0x1c5   :  { %2160 = vmin.xlane.f32.xlu0 %v4843_v44  ;;  %1964 = vmin.xlane.f32.xlu1 %v4845_v61  ;;  %v692_v44 = vmul.f32 1.442695, %v581_v33  ;;  %v696_v61 = vmul.f32 1.442695, %v583_v54 }
 0x1c6   :  { %800 = vadd.xlane.f32.xlu2 %v4850_v23  ;;  %v4874_v23 = vpop.eup %3581  ;;  %v222_v20 = vpop.f32.mrf.mxu0 }
 0x1c7   :  { %7893 = vst [vmem:[#allocation174_spill] sm:$0xff] %v4874_v23  ;;  %3583 = vpow2.f32 %v692_v44 }
 0x1c8   :  { %v4865_v22 = vpop.xlane.xlu0 %1334  ;;  %v4867_v6 = vpop.xlane.xlu1 %1320  ;;  %3585 = vpow2.f32 %v670_v47 }
 0x1c9   :  { %7891 = vst [vmem:[#allocation172_spill] sm:$0xff] %v4865_v22  ;;  %v4870_v59 = vpop.xlane.xlu2 %440  ;;  %3587 = vpow2.f32 %v696_v61  ;;  %v4900_v61 = vsel %vm1237_vm8, %v4111_v4, 128 }
 0x1ca   :  { %7892 = vst [vmem:[#allocation173_spill] sm:$0xff] %v4867_v6  ;;  %3589 = vpow2.f32 %v722_v9 }
 0x1cd   :  { %796 = vadd.xlane.f32.xlu0 %v4874_v23  ;;  %1404 = vmin.xlane.f32.xlu1 %v4872_v3  ;;  %v4893_v44 = vpop.eup %3583  ;;  %v582_v23 = vsub.f32 %v4256_v14, %v4587_v29  ;;  %v618_v29 = vmul.f32 1.442695, %v544_v17  ;;  %v597_v17 = vsub.f32 %v4275_v27, %v4602_v55  ;;  %v574_v27 = vsub.f32 %v4316_v57, %v4680_v32  ;;  %v7930_v57 = vld [vmem:[#allocation30_spill] sm:$0xff] }
 0x1ce   :  { %1432 = vmin.xlane.f32.xlu2 %v4876_v34  ;;  %7897 = vst [vmem:[#allocation178_spill] sm:$0xff] %v4893_v44  ;;  %v4897_v60 = vpop.eup %3585 }
 0x1cf   :  { %7898 = vst [vmem:[#allocation179_spill] sm:$0xff] %v4897_v60  ;;  %v4902_v47 = vpop.eup %3587  ;;  %v694_v14 = vmul.f32 1.442695, %v582_v23  ;;  %v1415_v23 = vshra.s32 %v4931_v58, 16 }
 0x1d0   :  { %v4883_v33 = vpop.xlane.xlu0 %1740  ;;  %v4885_v5 = vpop.xlane.xlu1 %786  ;;  %7899 = vst [vmem:[#allocation180_spill] sm:$0xff] %v4902_v47 }
 0x1d1   :  { %7894 = vst [vmem:[#allocation175_spill] sm:$0xff] %v4883_v33  ;;  %v4887_v54 = vpop.xlane.xlu2 %788  ;;  %v4926_v9 = vpop.eup %3589  ;;  %3591 = vpow2.f32 %v694_v14  ;;  %v543_v14 = vsub.f32 %v4290_v37, %v4629_v8 }
 0x1d2   :  { %7895 = vst [vmem:[#allocation176_spill] sm:$0xff] %v4885_v5  ;;  %3593 = vpow2.f32 %v618_v29 }
 0x1d3   :  { %7896 = vst [vmem:[#allocation177_spill] sm:$0xff] %v4887_v54  ;;  %v2185_v54 = vshra.s32 %v4900_v61, 16  ;;  %v616_v55 = vmul.f32 1.442695, %v543_v14  ;;  %v586_v14 = vsub.f32 %v4343_v19, %v4710_v40 }
 0x1d4   :  { %7903 = vst [vmem:[#allocation184_spill] sm:$0xff] %v4926_v9 }
 0x1d5   :  { %820 = vadd.xlane.f32.xlu0 %v4893_v44  ;;  %798 = vadd.xlane.f32.xlu1 %v4897_v60  ;;  %v1443_v60 = vshra.s32 %v4907_v38, 16 }
 0x1d6   :  { %824 = vadd.xlane.f32.xlu2 %v4902_v47  ;;  %v4924_v47 = vcvt.s32.f32 %v2185_v54 }
 0x1d7   :  { %v4928_v50 = vcvt.s32.f32 %v1443_v60  ;;  %v4949_v62 = vpop.eup %3591 }
 0x1d8   :  { %v4915_v5 = vpop.xlane.xlu0 %730  ;;  %v4917_v12 = vpop.xlane.xlu1 %1894  ;;  %7906 = vst [vmem:[#allocation187_spill] sm:$0xff] %v4949_v62 }
 0x1d9   :  { %7900 = vst [vmem:[#allocation181_spill] sm:$0xff] %v4915_v5  ;;  %v4920_v44 = vpop.xlane.xlu2 %1348  ;;  %v4951_v15 = vpop.eup %3593 }
 0x1da   :  { %7901 = vst [vmem:[#allocation182_spill] sm:$0xff] %v4917_v12  ;;  %v542_v12 = vsub.f32 %v4279_v30, %v4606_v21  ;;  %v4947_v21 = vcvt.s32.f32 %v1415_v23 }
 0x1db   :  { %7902 = vst [vmem:[#allocation183_spill] sm:$0xff] %v4920_v44 }
 0x1dc   :  { %v614_v33 = vmul.f32 1.442695, %v542_v12  ;;  %7907 = vst [vmem:[#allocation188_spill] sm:$0xff] %v4951_v15  ;;  %v225_v12 = vpop.f32.mrf.mxu0 }
 0x1dd   :  { %850 = vadd.xlane.f32.xlu0 %v4926_v9  ;;  %2188 = vmin.xlane.f32.xlu1 %v4924_v47  ;;  %v724_v9 = vmul.f32 1.442695, %v597_v17  ;;  %v4970_v37 = vsel %vm341_vm0, %v225_v12, -1e+30 }
 0x1de   :  { %1446 = vmin.xlane.f32.xlu2 %v4928_v50  ;;  %3595 = vpow2.f32 %v614_v33  ;;  %v678_v33 = vmul.f32 1.442695, %v574_v27  ;;  %7912 = vst [vmem:[#allocation193_spill] sm:$0xff] %v4970_v37 }
 0x1df   :  { %3597 = vpow2.f32 %v724_v9  ;;  %v572_v9 = vsub.f32 %v4286_v36, %v4631_v48 }
 0x1e0   :  { %v4941_v54 = vpop.xlane.xlu1 %810  ;;  %v4943_v60 = vpop.xlane.xlu0 %442  ;;  %3599 = vpow2.f32 %v616_v55 }
 0x1e1   :  { %7904 = vst [vmem:[#allocation185_spill] sm:$0xff] %v4941_v54  ;;  %v4945_v30 = vpop.xlane.xlu2 %812  ;;  %3601 = vpow2.f32 %v678_v33  ;;  %v584_v33 = vsub.f32 %v4309_v51, %v4660_v11  ;;  %v5015_v51 = vsel %vm341_vm0, %v222_v20, -1e+30 }
 0x1e2   :  { %7905 = vst [vmem:[#allocation186_spill] sm:$0xff] %v4945_v30 }
 0x1e3   :  { %v698_v54 = vmul.f32 1.442695, %v584_v33  ;;  %7922 = vst [vmem:[#allocation203_spill] sm:$0xff] %v5015_v51 }
 0x1e4   :  { %v4966_v30 = vpop.eup %3595 }
 0x1e5   :  { %1418 = vmin.xlane.f32.xlu0 %v4947_v21  ;;  %822 = vadd.xlane.f32.xlu1 %v4949_v62  ;;  %7911 = vst [vmem:[#allocation192_spill] sm:$0xff] %v4966_v30  ;;  %v4972_v62 = vpop.eup %3597 }
 0x1e6   :  { %746 = vadd.xlane.f32.xlu2 %v4951_v15  ;;  %7913 = vst [vmem:[#allocation194_spill] sm:$0xff] %v4972_v62 }
 0x1e8   :  { %v4960_v29 = vpop.xlane.xlu1 %840  ;;  %v4962_v17 = vpop.xlane.xlu0 %1908 }
 0x1e9   :  { %7908 = vst [vmem:[#allocation189_spill] sm:$0xff] %v4960_v29  ;;  %v4964_v23 = vpop.xlane.xlu2 %842  ;;  %v4987_v29 = vpop.eup %3599 }
 0x1ea   :  { %7909 = vst [vmem:[#allocation190_spill] sm:$0xff] %v4962_v17  ;;  %v4994_v55 = vpop.eup %3601 }
 0x1eb   :  { %7910 = vst [vmem:[#allocation191_spill] sm:$0xff] %v4964_v23  ;;  %v674_v23 = vmul.f32 1.442695, %v572_v9  ;;  %v573_v9 = vsub.f32 %v4301_v49, %v4656_v25  ;;  %v7986_v25 = vld [vmem:[#allocation68_spill] sm:$0xff] }
 0x1ec   :  { %7917 = vst [vmem:[#allocation198_spill] sm:$0xff] %v4987_v29 }
 0x1ed   :  { %742 = vadd.xlane.f32.xlu0 %v4966_v30  ;;  %852 = vadd.xlane.f32.xlu1 %v4972_v62  ;;  %v702_v30 = vmul.f32 1.442695, %v586_v14  ;;  %v4992_v62 = vsel %vm341_vm0, %v4895_v16, -1e+30  ;;  %7919 = vst [vmem:[#allocation200_spill] sm:$0xff] %v4994_v55  ;;  %3603 = vpow2.f32 %v674_v23  ;;  %v547_v23 = vsub.f32 %v4364_v43, %v4737_v13 }
 0x1ee   :  { %458 = vmax.xlane.f32.xlu2 %v4970_v37  ;;  %7918 = vst [vmem:[#allocation199_spill] sm:$0xff] %v4992_v62  ;;  %v676_v17 = vmul.f32 1.442695, %v573_v9 }
 0x1ef   :  { %3605 = vpow2.f32 %v702_v30  ;;  %v5022_v30 = vsel %vm1187_vm11, %v4111_v4, 128 }
 0x1f0   :  { %v4981_v27 = vpop.xlane.xlu1 %732  ;;  %v4983_v12 = vpop.xlane.xlu0 %790  ;;  %3607 = vpow2.f32 %v698_v54  ;;  %v1485_v9 = vshra.s32 %v5022_v30, 16  ;;  %v7927_v54 = vld [vmem:[#allocation31_spill] sm:$0xff] }
 0x1f1   :  { %7914 = vst [vmem:[#allocation195_spill] sm:$0xff] %v4981_v27  ;;  %v4985_v15 = vpop.xlane.xlu2 %734  ;;  %3609 = vpow2.f32 %v676_v17  ;;  %vm1185_vm13 = vcmp.ge.f32.partialorder %v7927_v54, %v4683_v10  ;;  %v624_v17 = vmul.f32 1.442695, %v547_v23  ;;  %v585_v23 = vsub.f32 %v7930_v57, %v4678_v45 }
 0x1f2   :  { %7915 = vst [vmem:[#allocation196_spill] sm:$0xff] %v4983_v12  ;;  %v5042_v43 = vcvt.s32.f32 %v1485_v9  ;;  %v5048_v19 = vsel %vm1185_vm13, %v4111_v4, 128 }
 0x1f3   :  { %7916 = vst [vmem:[#allocation197_spill] sm:$0xff] %v4985_v15  ;;  %v1457_v32 = vshra.s32 %v5048_v19, 16  ;;  %3611 = vpow2.f32 %v624_v17 }
 0x1f5   :  { %744 = vadd.xlane.f32.xlu1 %v4987_v29  ;;  %454 = vmax.xlane.f32.xlu0 %v4992_v62  ;;  %v5011_v29 = vpop.eup %3603  ;;  %v5069_v57 = vcvt.s32.f32 %v1457_v32 }
 0x1f6   :  { %806 = vadd.xlane.f32.xlu2 %v4994_v55  ;;  %7921 = vst [vmem:[#allocation202_spill] sm:$0xff] %v5011_v29  ;;  %v5017_v55 = vpop.eup %3605 }
 0x1f7   :  { %7923 = vst [vmem:[#allocation204_spill] sm:$0xff] %v5017_v55 }
 0x1f8   :  { %v5003_v14 = vpop.xlane.xlu0 %1922  ;;  %v5005_v16 = vpop.xlane.xlu1 %444  ;;  %7936 = vst [vmem:[#allocation212_spill] sm:$0xff] %v5069_v57 }
 0x1f9   :  { %7920 = vst [vmem:[#allocation201_spill] sm:$0xff] %v5003_v14  ;;  %v5007_v12 = vpop.xlane.xlu2 %446 }
 0x1fd   :  { %802 = vadd.xlane.f32.xlu0 %v5011_v29  ;;  %456 = vmax.xlane.f32.xlu1 %v5015_v51  ;;  %v5038_v29 = vpop.eup %3607 }
 0x1fe   :  { %830 = vadd.xlane.f32.xlu2 %v5017_v55  ;;  %7928 = vst [vmem:[#allocation31_spill] sm:$0xff] %v5038_v29  ;;  %v5040_v55 = vpop.eup %3609 }
 0x1ff   :  { %7929 = vst [vmem:[#allocation208_spill] sm:$0xff] %v5040_v55  ;;  %v5071_v45 = vpop.eup %3611 }
 0x200   :  { %v5027_v33 = vpop.xlane.xlu0 %814  ;;  %v5029_v20 = vpop.xlane.xlu1 %1362  ;;  %7937 = vst [vmem:[#allocation213_spill] sm:$0xff] %v5071_v45 }
 0x201   :  { %7924 = vst [vmem:[#allocation205_spill] sm:$0xff] %v5027_v33  ;;  %v5032_v11 = vpop.xlane.xlu2 %794  ;;  %v5045_v33 = vsel %vm1214_vm12, %v4111_v4, 128 }
 0x202   :  { %7925 = vst [vmem:[#allocation206_spill] sm:$0xff] %v5029_v20  ;;  %v1863_v9 = vshra.s32 %v5045_v33, 16 }
 0x203   :  { %7926 = vst [vmem:[#allocation207_spill] sm:$0xff] %v5032_v11  ;;  %v545_v11 = vsub.f32 %v7927_v54, %v4683_v10 }
 0x204   :  { %v5067_v10 = vcvt.s32.f32 %v1863_v9 }
 0x205   :  { %826 = vadd.xlane.f32.xlu0 %v5038_v29  ;;  %804 = vadd.xlane.f32.xlu1 %v5040_v55  ;;  %v620_v13 = vmul.f32 1.442695, %v545_v11  ;;  %v700_v29 = vmul.f32 1.442695, %v585_v23  ;;  %v7934_v55 = vld [vmem:[#allocation40_spill] sm:$0xff]  ;;  %v7939_v11 = vld [vmem:[#allocation35_spill] sm:$0xff] }
 0x206   :  { %1488 = vmin.xlane.f32.xlu2 %v5042_v43  ;;  %vm1188_vm14 = vcmp.ge.f32.partialorder %v7934_v55, %v4739_v41  ;;  %7935 = vst [vmem:[#allocation40_spill] sm:$0xff] %v5067_v10  ;;  %v546_v23 = vsub.f32 %v7939_v11, %v4712_v24  ;;  %vm1186_vm1 = vcmp.ge.f32.partialorder %v7939_v11, %v4712_v24  ;;  %v7956_v11 = vld [vmem:[#allocation39_spill] sm:$0xff] }
 0x207   :  { %3613 = vpow2.f32 %v620_v13  ;;  %v5076_v17 = vsel %vm1188_vm14, %v4111_v4, 128  ;;  %v7943_v13 = vld [vmem:[#allocation45_spill] sm:$0xff] }
 0x208   :  { %v5059_v40 = vpop.xlane.xlu0 %844  ;;  %v5061_v14 = vpop.xlane.xlu1 %792  ;;  %7938 = vst [vmem:[#allocation214_spill] sm:$0xff] %v5076_v17  ;;  %3615 = vpow2.f32 %v700_v29  ;;  %v622_v37 = vmul.f32 1.442695, %v546_v23  ;;  %vm1189_vm15 = vcmp.ge.f32.partialorder %v7943_v13, %v4761_v28  ;;  %v7948_v23 = vld [vmem:[#allocation46_spill] sm:$0xff] }
 0x209   :  { %7931 = vst [vmem:[#allocation209_spill] sm:$0xff] %v5059_v40  ;;  %v5063_v54 = vpop.xlane.xlu2 %1390  ;;  %v1499_v40 = vshra.s32 %v5076_v17, 16  ;;  %v228_v29 = vpop.f32.mrf.mxu0 }
 0x20a   :  { %7932 = vst [vmem:[#allocation210_spill] sm:$0xff] %v5061_v14  ;;  %3617 = vpow2.f32 %v622_v37 }
 0x20b   :  { %7933 = vst [vmem:[#allocation211_spill] sm:$0xff] %v5063_v54  ;;  %v5094_v62 = vcvt.s32.f32 %v1499_v40 }
 0x20d   :  { %1866 = vmin.xlane.f32.xlu0 %v5067_v10  ;;  %1460 = vmin.xlane.f32.xlu1 %v5069_v57  ;;  %v5090_v57 = vpop.eup %3613  ;;  %7946 = vst [vmem:[#allocation218_spill] sm:$0xff] %v5094_v62 }
 0x20e   :  { %752 = vadd.xlane.f32.xlu2 %v5071_v45  ;;  %7944 = vst [vmem:[#allocation45_spill] sm:$0xff] %v5090_v57  ;;  %v5092_v10 = vpop.eup %3615  ;;  %v5099_v45 = vsel %vm1189_vm15, %v4111_v4, 128 }
 0x20f   :  { %7945 = vst [vmem:[#allocation217_spill] sm:$0xff] %v5092_v10  ;;  %v1513_v40 = vshra.s32 %v5099_v45, 16 }
 0x210   :  { %v5081_v9 = vpop.xlane.xlu0 %1936  ;;  %v5083_v32 = vpop.xlane.xlu1 %2146  ;;  %7947 = vst [vmem:[#allocation219_spill] sm:$0xff] %v5099_v45 }
 0x211   :  { %7940 = vst [vmem:[#allocation35_spill] sm:$0xff] %v5081_v9  ;;  %v5086_v14 = vpop.xlane.xlu2 %818  ;;  %v5117_v37 = vpop.eup %3617 }
 0x212   :  { %7941 = vst [vmem:[#allocation215_spill] sm:$0xff] %v5083_v32 }
 0x213   :  { %7942 = vst [vmem:[#allocation216_spill] sm:$0xff] %v5086_v14  ;;  %v589_v14 = vsub.f32 %v7948_v23, %v4759_v7  ;;  %v5122_v23 = vsel %vm1186_vm1, %v4111_v4, 128  ;;  %vm1211_vm1 = vcmp.ge.f32.partialorder %v4271_v26, %v4604_v31 }
 0x214   :  { %7952 = vst [vmem:[#allocation223_spill] sm:$0xff] %v5117_v37  ;;  %v5331_v26 = vsel %vm1211_vm1, %v4111_v4, 128 }
 0x215   :  { %748 = vadd.xlane.f32.xlu0 %v5090_v57  ;;  %828 = vadd.xlane.f32.xlu1 %v5092_v10  ;;  %v5115_v10 = vsel %vm341_vm0, %v228_v29, -1e+30  ;;  %v708_v57 = vmul.f32 1.442695, %v589_v14  ;;  %7954 = vst [vmem:[#allocation225_spill] sm:$0xff] %v5122_v23  ;;  %v231_v14 = vpop.f32.mrf.mxu0  ;;  %v1471_v29 = vshra.s32 %v5122_v23, 16 }
 0x216   :  { %1502 = vmin.xlane.f32.xlu2 %v5094_v62  ;;  %v5119_v62 = vcvt.s32.f32 %v1513_v40 }
 0x217   :  { %3619 = vpow2.f32 %v708_v57  ;;  %v548_v57 = vsub.f32 %v7934_v55, %v4739_v41  ;;  %v7968_v55 = vld [vmem:[#allocation76_spill] sm:$0xff]  ;;  %v7982_v41 = vld [vmem:[#allocation47_spill] sm:$0xff] }
 0x218   :  { %v5104_v32 = vpop.xlane.xlu0 %1376  ;;  %v5106_v17 = vpop.xlane.xlu1 %816  ;;  %7953 = vst [vmem:[#allocation224_spill] sm:$0xff] %v5119_v62  ;;  %vm1322_vm2 = vcmp.eq.f32.partialorder %v7968_v55, %v4867_v6  ;;  %vm1308_vm4 = vcmp.eq.f32.partialorder %v7982_v41, %v4764_v46  ;;  %v1330_v41 = vand.u32 65535, %v7986_v25  ;;  %v7987_v46 = vld [vmem:[#allocation74_spill] sm:$0xff] }
 0x219   :  { %7949 = vst [vmem:[#allocation220_spill] sm:$0xff] %v5104_v32  ;;  %v5109_v9 = vpop.xlane.xlu2 %848 }
 0x21a   :  { %7950 = vst [vmem:[#allocation221_spill] sm:$0xff] %v5106_v17  ;;  %v7955_v17 = vld [vmem:[#allocation34_spill] sm:$0xff] }
 0x21b   :  { %7951 = vst [vmem:[#allocation222_spill] sm:$0xff] %v5109_v9  ;;  %v587_v45 = vsub.f32 %v7955_v17, %v4714_v0  ;;  %v588_v9 = vsub.f32 %v7956_v11, %v4735_v52  ;;  %v5142_v0 = vcvt.s32.f32 %v1471_v29 }
 0x21d   :  { %750 = vadd.xlane.f32.xlu1 %v5117_v37  ;;  %460 = vmax.xlane.f32.xlu0 %v5115_v10  ;;  %v704_v24 = vmul.f32 1.442695, %v587_v45  ;;  %v706_v17 = vmul.f32 1.442695, %v588_v9  ;;  %v5140_v37 = vsel %vm341_vm0, %v231_v14, -1e+30  ;;  %v5144_v11 = vpop.eup %3619 }
 0x21e   :  { %1516 = vmin.xlane.f32.xlu2 %v5119_v62  ;;  %7960 = vst [vmem:[#allocation229_spill] sm:$0xff] %v5142_v0  ;;  %v7962_v45 = vld [vmem:[#allocation66_spill] sm:$0xff]  ;;  %v7963_v14 = vld [vmem:[#allocation69_spill] sm:$0xff] }
 0x21f   :  { %7961 = vst [vmem:[#allocation230_spill] sm:$0xff] %v5144_v11  ;;  %3621 = vpow2.f32 %v704_v24  ;;  %v550_v9 = vsub.f32 %v7962_v45, %v4835_v53  ;;  %v626_v24 = vmul.f32 1.442695, %v548_v57 }
 0x220   :  { %v5132_v40 = vpop.xlane.xlu0 %736  ;;  %v5134_v7 = vpop.xlane.xlu1 %846  ;;  %3623 = vpow2.f32 %v706_v17 }
 0x221   :  { %7957 = vst [vmem:[#allocation226_spill] sm:$0xff] %v5132_v40  ;;  %v5136_v51 = vpop.xlane.xlu2 %2174  ;;  %v630_v17 = vmul.f32 1.442695, %v550_v9  ;;  %3625 = vpow2.f32 %v626_v24  ;;  %v7978_v24 = vld [vmem:[#allocation117_spill] sm:$0xff] }
 0x222   :  { %7958 = vst [vmem:[#allocation227_spill] sm:$0xff] %v5134_v7  ;;  %v1316_v7 = vand.u32 65535, %v7963_v14 }
 0x223   :  { %7959 = vst [vmem:[#allocation228_spill] sm:$0xff] %v5136_v51  ;;  %3627 = vpow2.f32 %v630_v17  ;;  %v1358_v17 = vand.u32 65535, %v7978_v24 }
 0x224   :  { %v1318_v62 = vcvt.s32.f32 %v1316_v7 }
 0x225   :  { %1474 = vmin.xlane.f32.xlu0 %v5142_v0  ;;  %462 = vmax.xlane.f32.xlu1 %v5140_v37  ;;  %v7967_v0 = vld [vmem:[#allocation23_spill] sm:$0xff] }
 0x226   :  { %836 = vadd.xlane.f32.xlu2 %v5144_v11  ;;  %vm1233_vm0 = vcmp.ge.f32.partialorder %v7967_v0, %v4454_v56  ;;  %v5164_v11 = vpop.eup %3621  ;;  %v1323_v53 = vsel %vm1322_vm2, %v1318_v62, inf  ;;  %v549_v0 = vsub.f32 %v7943_v13, %v4761_v28  ;;  %v7979_v56 = vld [vmem:[#allocation114_spill] sm:$0xff] }
 0x227   :  { %7969 = vst [vmem:[#allocation23_spill] sm:$0xff] %v5164_v11  ;;  %v5166_v45 = vpop.eup %3623  ;;  %v5169_v14 = vsel %vm1233_vm0, %v4111_v4, 128 }
 0x228   :  { %v5154_v29 = vpop.xlane.xlu1 %738  ;;  %v5156_v51 = vpop.xlane.xlu0 %448  ;;  %7970 = vst [vmem:[#allocation76_spill] sm:$0xff] %v5166_v45  ;;  %v2129_v57 = vshra.s32 %v5169_v14, 16  ;;  %v628_v6 = vmul.f32 1.442695, %v549_v0  ;;  %v553_v0 = vsub.f32 %v7979_v56, %v5005_v16 }
 0x229   :  { %7964 = vst [vmem:[#allocation69_spill] sm:$0xff] %v5154_v29  ;;  %v5158_v23 = vpop.xlane.xlu2 %740  ;;  %vm1195_vm14 = vcmp.ge.f32.partialorder %v4785_v42, %v5156_v51 }
 0x22a   :  { %7965 = vst [vmem:[#allocation231_spill] sm:$0xff] %v5156_v51  ;;  %v5182_v62 = vcvt.s32.f32 %v2129_v57  ;;  %3629 = vpow2.f32 %v628_v6  ;;  %v636_v24 = vmul.f32 1.442695, %v553_v0 }
 0x22b   :  { %7966 = vst [vmem:[#allocation232_spill] sm:$0xff] %v5158_v23 }
 0x22c   :  { %7971 = vst [vmem:[#allocation233_spill] sm:$0xff] %v5169_v14  ;;  %v1428_v14 = vand.u32 65535, %v4857_v18  ;;  %3631 = vpow2.f32 %v636_v24  ;;  %v1332_v24 = vcvt.s32.f32 %v1330_v41 }
 0x22d   :  { %832 = vadd.xlane.f32.xlu0 %v5164_v11  ;;  %834 = vadd.xlane.f32.xlu1 %v5166_v45  ;;  %7974 = vst [vmem:[#allocation236_spill] sm:$0xff] %v5182_v62  ;;  %v5184_v11 = vpop.eup %3625 }
 0x22e   :  { %1324 = vmin.xlane.f32.xlu2 %v1323_v53  ;;  %7975 = vst [vmem:[#allocation237_spill] sm:$0xff] %v5184_v11  ;;  %v5186_v45 = vpop.eup %3627  ;;  %v7977_v53 = vld [vmem:[#allocation41_spill] sm:$0xff]  ;;  %v1430_v25 = vcvt.s32.f32 %v1428_v14 }
 0x22f   :  { %7976 = vst [vmem:[#allocation238_spill] sm:$0xff] %v5186_v45  ;;  %v1302_v13 = vand.u32 65535, %v7977_v53  ;;  %v7983_v53 = vld [vmem:[#allocation121_spill] sm:$0xff] }
 0x230   :  { %v5176_v9 = vpop.xlane.xlu0 %1950  ;;  %v5178_v7 = vpop.xlane.xlu1 %450  ;;  %vm1364_vm5 = vcmp.eq.f32.partialorder %v7983_v53, %v5029_v20  ;;  %v551_v53 = vsub.f32 %v7987_v46, %v4870_v59  ;;  %v7991_v20 = vld [vmem:[#allocation21_spill] sm:$0xff] }
 0x231   :  { %7972 = vst [vmem:[#allocation234_spill] sm:$0xff] %v5178_v7  ;;  %v5180_v55 = vpop.xlane.xlu2 %452  ;;  %v1304_v6 = vcvt.s32.f32 %v1302_v13  ;;  %v5207_v52 = vpop.eup %3629  ;;  %vm1196_vm2 = vcmp.ge.f32.partialorder %v4812_v39, %v5178_v7 }
 0x232   :  { %7973 = vst [vmem:[#allocation235_spill] sm:$0xff] %v5180_v55 }
 0x233   :  { %7984 = vst [vmem:[#allocation114_spill] sm:$0xff] %v5207_v52 }
 0x235   :  { %754 = vadd.xlane.f32.xlu0 %v5184_v11  ;;  %2132 = vmin.xlane.f32.xlu1 %v5182_v62  ;;  %v1309_v62 = vsel %vm1308_vm4, %v1304_v6, inf  ;;  %v7990_v6 = vld [vmem:[#allocation64_spill] sm:$0xff] }
 0x236   :  { %758 = vadd.xlane.f32.xlu2 %v5186_v45  ;;  %v1360_v45 = vcvt.s32.f32 %v1358_v17  ;;  %vm1232_vm6 = vcmp.ge.f32.partialorder %v7991_v20, %v7990_v6  ;;  %v5239_v6 = vpop.eup %3631 }
 0x237   :  { %v5237_v20 = vsel %vm1232_vm6, %v4111_v4, 128 }
 0x238   :  { %v5195_v57 = vpop.xlane.xlu0 %2160  ;;  %v5197_v28 = vpop.xlane.xlu1 %1964  ;;  %v1365_v49 = vsel %vm1364_vm5, %v1360_v45, inf  ;;  %v7993_v45 = vld [vmem:[#allocation75_spill] sm:$0xff]  ;;  %v2115_v41 = vshra.s32 %v5237_v20, 16 }
 0x239   :  { %7980 = vst [vmem:[#allocation41_spill] sm:$0xff] %v5195_v57  ;;  %v5201_v11 = vpop.xlane.xlu2 %800  ;;  %v5210_v57 = vsel %vm1213_vm3, %v4111_v4, 128  ;;  %vm1336_vm7 = vcmp.eq.f32.partialorder %v7993_v45, %v4865_v22 }
 0x23a   :  { %7981 = vst [vmem:[#allocation117_spill] sm:$0xff] %v5201_v11  ;;  %v1849_v13 = vshra.s32 %v5210_v57, 16 }
 0x23b   :  { %7985 = vst [vmem:[#allocation47_spill] sm:$0xff] %v5210_v57  ;;  %v1337_v57 = vsel %vm1336_vm7, %v1332_v24, inf  ;;  %v5256_v24 = vcvt.s32.f32 %v2115_v41 }
 0x23c   :  { %v5232_v11 = vcvt.s32.f32 %v1849_v13  ;;  %7997 = vst [vmem:[#allocation75_spill] sm:$0xff] %v5239_v6 }
 0x23d   :  { %1310 = vmin.xlane.f32.xlu0 %v1309_v62  ;;  %756 = vadd.xlane.f32.xlu1 %v5207_v52  ;;  %v7994_v62 = vld [vmem:[#allocation57_spill] sm:$0xff]  ;;  %v7995_v52 = vld [vmem:[#allocation20_spill] sm:$0xff] }
 0x23e   :  { %1366 = vmin.xlane.f32.xlu2 %v1365_v49  ;;  %vm1231_vm8 = vcmp.ge.f32.partialorder %v7995_v52, %v7994_v62  ;;  %v632_v49 = vmul.f32 1.442695, %v551_v53  ;;  %v2184_v62 = vand.u32 65535, %v4900_v61 }
 0x23f   :  { %v5243_v52 = vsel %vm1231_vm8, %v4111_v4, 128 }
 0x240   :  { %v5218_v17 = vpop.xlane.xlu0 %796  ;;  %v5220_v0 = vpop.xlane.xlu1 %1404  ;;  %3633 = vpow2.f32 %v632_v49  ;;  %v2101_v45 = vshra.s32 %v5243_v52, 16  ;;  %v8003_v49 = vld [vmem:[#allocation85_spill] sm:$0xff] }
 0x241   :  { %7988 = vst [vmem:[#allocation121_spill] sm:$0xff] %v5218_v17  ;;  %v5224_v18 = vpop.xlane.xlu2 %1432  ;;  %3635 = vlog2.f32 %v4837_v1  ;;  %vm1406_vm3 = vcmp.eq.f32.partialorder %v4872_v3, %v5220_v0 }
 0x242   :  { %7989 = vst [vmem:[#allocation68_spill] sm:$0xff] %v5220_v0  ;;  %vm1434_vm9 = vcmp.eq.f32.partialorder %v4876_v34, %v5224_v18  ;;  %v7998_v34 = vld [vmem:[#allocation95_spill] sm:$0xff] }
 0x243   :  { %7992 = vst [vmem:[#allocation74_spill] sm:$0xff] %v5224_v18  ;;  %v5234_v17 = vsel %vm1434_vm9, %v1430_v25, inf  ;;  %v552_v14 = vsub.f32 %v7998_v34, %v4943_v60  ;;  %v1344_v18 = vand.u32 65535, %v8003_v49  ;;  %v2186_v49 = vcvt.s32.f32 %v2184_v62 }
 0x244   :  { %7996 = vst [vmem:[#allocation21_spill] sm:$0xff] %v5234_v17 }
 0x245   :  { %1852 = vmin.xlane.f32.xlu0 %v5232_v11  ;;  %1338 = vmin.xlane.f32.xlu1 %v1337_v57  ;;  %v634_v57 = vmul.f32 1.442695, %v552_v14  ;;  %v8004_v14 = vld [vmem:[#allocation56_spill] sm:$0xff] }
 0x246   :  { %764 = vadd.xlane.f32.xlu2 %v5239_v6  ;;  %v5258_v22 = vpop.eup %3633  ;;  %v5262_v6 = vcvt.s32.f32 %v2101_v45  ;;  %v1722_v41 = vand.u32 65535, %v8004_v14  ;;  %v8008_v14 = vld [vmem:[#allocation62_spill] sm:$0xff] }
 0x247   :  { %8002 = vst [vmem:[#allocation240_spill] sm:$0xff] %v5258_v22  ;;  %3637 = vpow2.f32 %v634_v57  ;;  %vm1728_vm12 = vcmp.eq.f32.partialorder %v8008_v14, %v4804_v35  ;;  %v8019_v35 = vld [vmem:[#allocation43_spill] sm:$0xff] }
 0x248   :  { %v5249_v53 = vpop.xlane.xlu0 %820  ;;  %v5251_v13 = vpop.xlane.xlu1 %798  ;;  %3639 = vlog2.f32 %v4800_v2  ;;  %v1724_v62 = vcvt.s32.f32 %v1722_v41 }
 0x249   :  { %7999 = vst [vmem:[#allocation20_spill] sm:$0xff] %v5249_v53  ;;  %v5254_v25 = vpop.xlane.xlu2 %824  ;;  %v1442_v53 = vand.u32 65535, %v4907_v38  ;;  %3641 = vlog2.f32 %v4915_v5  ;;  %v1346_v38 = vcvt.s32.f32 %v1344_v18 }
 0x24a   :  { %8000 = vst [vmem:[#allocation95_spill] sm:$0xff] %v5251_v13  ;;  %3643 = vlog2.f32 %v4981_v27  ;;  %v1729_v27 = vsel %vm1728_vm12, %v1724_v62, inf }
 0x24b   :  { %8001 = vst [vmem:[#allocation239_spill] sm:$0xff] %v5254_v25  ;;  %v1444_v1 = vcvt.s32.f32 %v1442_v53  ;;  %3645 = vlog2.f32 %v4985_v15 }
 0x24c   :  { %3647 = vlog2.f32 %v5132_v40 }
 0x24d   :  { %760 = vadd.xlane.f32.xlu0 %v5258_v22  ;;  %2118 = vmin.xlane.f32.xlu1 %v5256_v24  ;;  %v8009_v22 = vld [vmem:[#allocation91_spill] sm:$0xff]  ;;  %3649 = vlog2.f32 %v5154_v29 }
 0x24e   :  { %2104 = vmin.xlane.f32.xlu2 %v5262_v6  ;;  %vm1350_vm13 = vcmp.eq.f32.partialorder %v8009_v22, %v4920_v44  ;;  %v5301_v22 = vsel %vm1212_vm10, %v4111_v4, 128  ;;  %v8013_v44 = vld [vmem:[#allocation115_spill] sm:$0xff] }
 0x24f   :  { %v1351_v14 = vsel %vm1350_vm13, %v1346_v38, inf  ;;  %v554_v38 = vsub.f32 %v8013_v44, %v5007_v12  ;;  %v1835_v36 = vshra.s32 %v5301_v22, 16  ;;  %vm1194_vm7 = vcmp.ge.f32.partialorder %v8013_v44, %v5007_v12 }
 0x250   :  { %v5274_v61 = vpop.xlane.xlu0 %850  ;;  %v5276_v45 = vpop.xlane.xlu1 %2188 }
 0x251   :  { %8005 = vst [vmem:[#allocation85_spill] sm:$0xff] %v5274_v61  ;;  %vm2190_vm11 = vcmp.eq.f32.partialorder %v4924_v47, %v5276_v45  ;;  %v5280_v57 = vpop.xlane.xlu2 %1446  ;;  %v3636_v47 = vpop.eup %3635  ;;  %v638_v15 = vmul.f32 1.442695, %v554_v38 }
 0x252   :  { %8006 = vst [vmem:[#allocation56_spill] sm:$0xff] %v5276_v45  ;;  %vm1448_vm15 = vcmp.eq.f32.partialorder %v4928_v50, %v5280_v57  ;;  %v5291_v18 = vsel %vm2190_vm11, %v2186_v49, inf  ;;  %v5295_v2 = vpop.eup %3637  ;;  %v5305_v50 = vsel %vm1195_vm14, %v4111_v4, 128  ;;  %v8017_v45 = vld [vmem:[#allocation37_spill] sm:$0xff]  ;;  %vm1193_vm11 = vcmp.ge.f32.partialorder %v7979_v56, %v5005_v16 }
 0x253   :  { %8007 = vst [vmem:[#allocation241_spill] sm:$0xff] %v5280_v57  ;;  %v5293_v5 = vsel %vm1448_vm15, %v1444_v1, inf  ;;  %v3640_v53 = vpop.eup %3639  ;;  %v8012_v1 = vld [vmem:[#allocation138_spill] sm:$0xff]  ;;  %v985_v57 = vmul.f32 0.6931472, %v3636_v47  ;;  %v8016_v47 = vld [vmem:[#allocation143_spill] sm:$0xff]  ;;  %3651 = vpow2.f32 %v638_v15 }
 0x254   :  { %8010 = vst [vmem:[#allocation62_spill] sm:$0xff] %v5293_v5  ;;  %v3642_v41 = vpop.eup %3641  ;;  %v1372_v49 = vand.u32 65535, %v8012_v1  ;;  %v983_v1 = vmul.f32 0.6931472, %v3640_v53  ;;  %vm1378_vm0 = vcmp.eq.f32.partialorder %v8016_v47, %v5104_v32  ;;  %3653 = vlog2.f32 %v5158_v23  ;;  %v8026_v23 = vld [vmem:[#allocation80_spill] sm:$0xff] }
 0x255   :  { %8011 = vst [vmem:[#allocation91_spill] sm:$0xff] %v5295_v2  ;;  %1352 = vmin.xlane.f32.xlu0 %v1351_v14  ;;  %762 = vadd.xlane.f32.xlu1 %v5295_v2  ;;  %v3644_v61 = vpop.eup %3643  ;;  %v1597_v2 = vshra.s32 %v5305_v50, 16  ;;  %v987_v25 = vmul.f32 0.6931472, %v3642_v41  ;;  %v1111_v48 = vadd.f32 %v985_v57, %v8017_v45  ;;  %v8018_v41 = vld [vmem:[#allocation33_spill] sm:$0xff]  ;;  %v1400_v45 = vand.u32 65535, %v4848_v63 }
 0x256   :  { %1730 = vmin.xlane.f32.xlu2 %v1729_v27  ;;  %v1374_v40 = vcvt.s32.f32 %v1372_v49  ;;  %v989_v13 = vmul.f32 0.6931472, %v3644_v61  ;;  %v3646_v53 = vpop.eup %3645  ;;  %v1110_v31 = vadd.f32 %v983_v1, %v8018_v41  ;;  %v8020_v61 = vld [vmem:[#allocation72_spill] sm:$0xff]  ;;  %v1821_v57 = vshra.s32 %v5331_v26, 16 }
 0x257   :  { %v5328_v5 = vcvt.s32.f32 %v1597_v2  ;;  %v1112_v47 = vadd.f32 %v987_v25, %v8019_v35  ;;  %v3648_v49 = vpop.eup %3647  ;;  %v2995_v2 = vmul.f32 %v1111_v48, %v1111_v48  ;;  %v1402_v15 = vcvt.s32.f32 %v1400_v45 }
 0x258   :  { %v5313_v62 = vpop.xlane.xlu0 %1418  ;;  %v5315_v14 = vpop.xlane.xlu1 %822  ;;  %v1379_v17 = vsel %vm1378_vm0, %v1374_v40, inf  ;;  %v1113_v40 = vadd.f32 %v989_v13, %v8020_v61  ;;  %v993_v41 = vmul.f32 0.6931472, %v3648_v49  ;;  %v5352_v61 = vcvt.s32.f32 %v1821_v57  ;;  %v8029_v57 = vld [vmem:[#allocation165_spill] sm:$0xff] }
 0x259   :  { %8014 = vst [vmem:[#allocation138_spill] sm:$0xff] %v5315_v14  ;;  %v5320_v27 = vpop.xlane.xlu2 %746  ;;  %v5326_v14 = vcvt.s32.f32 %v1835_v36  ;;  %v3650_v38 = vpop.eup %3649  ;;  %v991_v36 = vmul.f32 0.6931472, %v3646_v53  ;;  %v2996_v25 = vmul.f32 %v1112_v47, %v1112_v47  ;;  %v5361_v45 = vsel %vm1196_vm2, %v4111_v4, 128 }
 0x25a   :  { %8015 = vst [vmem:[#allocation115_spill] sm:$0xff] %v5320_v27  ;;  %v2997_v13 = vmul.f32 %v1113_v40, %v1113_v40  ;;  %v995_v53 = vmul.f32 0.6931472, %v3650_v38  ;;  %v5354_v29 = vpop.eup %3651  ;;  %v1115_v32 = vadd.f32 %v993_v41, %v8026_v23  ;;  %v1960_v38 = vand.u32 65535, %v8029_v57  ;;  %v8033_v57 = vld [vmem:[#allocation130_spill] sm:$0xff] }
 0x25b   :  { %8024 = vst [vmem:[#allocation43_spill] sm:$0xff] %v5354_v29  ;;  %v3654_v3 = vpop.eup %3653  ;;  %v556_v41 = vsub.f32 %v4812_v39, %v5178_v7  ;;  %vm1392_vm4 = vcmp.eq.f32.partialorder %v8033_v57, %v5063_v54  ;;  %vm1420_vm10 = vcmp.eq.f32.partialorder %v4947_v21, %v5313_v62  ;;  %v1862_v21 = vand.u32 65535, %v5045_v33 }
 0x25c   :  { %8027 = vst [vmem:[#allocation72_spill] sm:$0xff] %v5361_v45  ;;  %v5450_v56 = vsel %vm1193_vm11, %v4111_v4, 128 }
 0x25d   :  { %1838 = vmin.xlane.f32.xlu0 %v5326_v14  ;;  %1380 = vmin.xlane.f32.xlu1 %v1379_v17  ;;  %v2994_v17 = vmul.f32 %v1110_v31, %v1110_v31  ;;  %v8025_v31 = vld [vmem:[#allocation73_spill] sm:$0xff]  ;;  %v642_v0 = vmul.f32 1.442695, %v556_v41 }
 0x25e   :  { %1600 = vmin.xlane.f32.xlu2 %v5328_v5  ;;  %v1114_v47 = vadd.f32 %v991_v36, %v8025_v31  ;;  %v8030_v36 = vld [vmem:[#allocation87_spill] sm:$0xff] }
 0x25f   :  { %v3122_v48 = vadd.f32 %v2995_v2, %v2994_v17  ;;  %v8028_v2 = vld [vmem:[#allocation124_spill] sm:$0xff]  ;;  %v555_v17 = vsub.f32 %v4785_v42, %v5156_v51  ;;  %v2999_v42 = vmul.f32 %v1115_v32, %v1115_v32 }
 0x260   :  { %v5341_v1 = vpop.xlane.xlu0 %742  ;;  %v5343_v35 = vpop.xlane.xlu1 %852  ;;  %v1386_v40 = vand.u32 65535, %v8028_v2  ;;  %v1611_v2 = vshra.s32 %v5361_v45, 16 }
 0x261   :  { %8021 = vst [vmem:[#allocation143_spill] sm:$0xff] %v5341_v1  ;;  %v5345_v63 = vpop.xlane.xlu2 %458  ;;  %3655 = vlog2.f32 %v5341_v1  ;;  %v3123_v49 = vadd.f32 %v3122_v48, %v2996_v25  ;;  %v1116_v25 = vadd.f32 %v995_v53, %v8030_v36  ;;  %v2998_v48 = vmul.f32 %v1114_v47, %v1114_v47  ;;  %v8035_v53 = vld [vmem:[#allocation170_spill] sm:$0xff] }
 0x262   :  { %8022 = vst [vmem:[#allocation37_spill] sm:$0xff] %v5343_v35  ;;  %v1407_v35 = vsel %vm1406_vm3, %v1402_v15, inf  ;;  %3657 = vlog2.f32 %v5320_v27  ;;  %v997_v1 = vmul.f32 0.6931472, %v3654_v3  ;;  %vm1966_vm5 = vcmp.eq.f32.partialorder %v8035_v53, %v5197_v28 }
 0x263   :  { %8023 = vst [vmem:[#allocation33_spill] sm:$0xff] %v5345_v63  ;;  %v3124_v23 = vadd.f32 %v3123_v49, %v2997_v13  ;;  %v640_v39 = vmul.f32 1.442695, %v555_v17  ;;  %v1388_v47 = vcvt.s32.f32 %v1386_v40  ;;  %v1962_v49 = vcvt.s32.f32 %v1960_v38  ;;  %v8038_v17 = vld [vmem:[#allocation77_spill] sm:$0xff] }
 0x264   :  { %v3000_v27 = vmul.f32 %v1116_v25, %v1116_v25  ;;  %v5383_v51 = vcvt.s32.f32 %v1611_v2  ;;  %v1736_v53 = vand.u32 65535, %v8038_v17  ;;  %v8042_v2 = vld [vmem:[#allocation81_spill] sm:$0xff] }
 0x265   :  { %766 = vadd.xlane.f32.xlu0 %v5354_v29  ;;  %1824 = vmin.xlane.f32.xlu1 %v5352_v61  ;;  %v3125_v36 = vadd.f32 %v3124_v23, %v2998_v48  ;;  %v1393_v57 = vsel %vm1392_vm4, %v1388_v47, inf  ;;  %v1967_v32 = vsel %vm1966_vm5, %v1962_v49, inf  ;;  %v8041_v48 = vld [vmem:[#allocation175_spill] sm:$0xff] }
 0x266   :  { %1408 = vmin.xlane.f32.xlu2 %v1407_v35  ;;  %vm1742_vm6 = vcmp.eq.f32.partialorder %v8042_v2, %v8041_v48 }
 0x267   :  { %v3656_v15 = vpop.eup %3655  ;;  %v3126_v3 = vadd.f32 %v3125_v36, %v2999_v42 }
 0x268   :  { %v5371_v31 = vpop.xlane.xlu1 %744  ;;  %v5373_v29 = vpop.xlane.xlu0 %454  ;;  %v999_v35 = vmul.f32 0.6931472, %v3656_v15  ;;  %v8036_v15 = vld [vmem:[#allocation100_spill] sm:$0xff] }
 0x269   :  { %8031 = vst [vmem:[#allocation73_spill] sm:$0xff] %v5371_v31  ;;  %v5378_v13 = vpop.xlane.xlu2 %806  ;;  %3659 = vlog2.f32 %v5371_v31  ;;  %v3658_v7 = vpop.eup %3657  ;;  %v1117_v54 = vadd.f32 %v997_v1, %v8036_v15  ;;  %v3127_v40 = vadd.f32 %v3126_v3, %v3000_v27  ;;  %v8044_v27 = vld [vmem:[#allocation162_spill] sm:$0xff] }
 0x26a   :  { %8032 = vst [vmem:[#allocation80_spill] sm:$0xff] %v5373_v29  ;;  %3661 = vpow2.f32 %v640_v39  ;;  %v1003_v38 = vmul.f32 0.6931472, %v3658_v7  ;;  %vm1197_vm8 = vcmp.ge.f32.partialorder %v8044_v27, %v5180_v55  ;;  %v1738_v7 = vcvt.s32.f32 %v1736_v53  ;;  %v8045_v39 = vld [vmem:[#allocation119_spill] sm:$0xff] }
 0x26b   :  { %8034 = vst [vmem:[#allocation124_spill] sm:$0xff] %v5378_v13  ;;  %v8037_v13 = vld [vmem:[#allocation107_spill] sm:$0xff]  ;;  %3663 = vpow2.f32 %v642_v0  ;;  %v3001_v1 = vmul.f32 %v1117_v54, %v1117_v54  ;;  %v1484_v54 = vand.u32 65535, %v5022_v30  ;;  %v5413_v15 = vsel %vm1197_vm8, %v4111_v4, 128  ;;  %v8049_v30 = vld [vmem:[#allocation44_spill] sm:$0xff] }
 0x26c   :  { %v1118_v45 = vadd.f32 %v999_v35, %v8037_v13  ;;  %v1120_v47 = vadd.f32 %v1003_v38, %v8045_v39  ;;  %v557_v17 = vsub.f32 %v8044_v27, %v5180_v55 }
 0x26d   :  { %1394 = vmin.xlane.f32.xlu0 %v1393_v57  ;;  %1968 = vmin.xlane.f32.xlu1 %v1967_v32  ;;  %v3128_v0 = vadd.f32 %v3127_v40, %v3001_v1  ;;  %v1743_v57 = vsel %vm1742_vm6, %v1738_v7, inf  ;;  %v5406_v32 = vsel %vm1194_vm7, %v4111_v4, 128  ;;  %v1486_v27 = vcvt.s32.f32 %v1484_v54 }
 0x26e   :  { %1614 = vmin.xlane.f32.xlu2 %v5383_v51  ;;  %v3002_v42 = vmul.f32 %v1118_v45, %v1118_v45  ;;  %8047 = vst [vmem:[#allocation100_spill] sm:$0xff] %v5406_v32  ;;  %v3004_v53 = vmul.f32 %v1120_v47, %v1120_v47  ;;  %v1583_v38 = vshra.s32 %v5406_v32, 16  ;;  %v644_v7 = vmul.f32 1.442695, %v557_v17 }
 0x26f   :  { %v3660_v23 = vpop.eup %3659  ;;  %v1569_v17 = vshra.s32 %v5450_v56, 16  ;;  %vm1192_vm6 = vcmp.ge.f32.partialorder %v7998_v34, %v4943_v60  ;;  %v8091_v34 = vld [vmem:[#allocation157_spill] sm:$0xff] }
 0x270   :  { %v5389_v25 = vpop.xlane.xlu0 %802  ;;  %v5391_v41 = vpop.xlane.xlu1 %456  ;;  %v1001_v35 = vmul.f32 0.6931472, %v3660_v23  ;;  %v3129_v45 = vadd.f32 %v3128_v0, %v3002_v42  ;;  %v8050_v23 = vld [vmem:[#allocation18_spill] sm:$0xff]  ;;  %v1625_v42 = vshra.s32 %v5413_v15, 16  ;;  %v5437_v39 = vcvt.s32.f32 %v1583_v38  ;;  %v8060_v38 = vld [vmem:[#allocation93_spill] sm:$0xff] }
 0x271   :  { %8039 = vst [vmem:[#allocation165_spill] sm:$0xff] %v5389_v25  ;;  %v5397_v13 = vpop.xlane.xlu2 %830  ;;  %v5403_v36 = vpop.eup %3661  ;;  %vm1230_vm9 = vcmp.ge.f32.partialorder %v8050_v23, %v8049_v30  ;;  %3665 = vpow2.f32 %v644_v7  ;;  %v8061_v23 = vld [vmem:[#allocation26_spill] sm:$0xff]  ;;  %v8064_v7 = vld [vmem:[#allocation212_spill] sm:$0xff]  ;;  %v5482_v31 = vcvt.s32.f32 %v1569_v17 }
 0x272   :  { %8040 = vst [vmem:[#allocation87_spill] sm:$0xff] %v5391_v41  ;;  %v1119_v49 = vadd.f32 %v1001_v35, %v4629_v8  ;;  %v5408_v44 = vpop.eup %3663  ;;  %v1414_v8 = vand.u32 65535, %v4931_v58  ;;  %v5440_v47 = vsel %vm1230_vm9, %v4111_v4, 128  ;;  %v5446_v54 = vcvt.s32.f32 %v1625_v42  ;;  %v8062_v42 = vld [vmem:[#allocation199_spill] sm:$0xff] }
 0x273   :  { %8043 = vst [vmem:[#allocation130_spill] sm:$0xff] %v5397_v13  ;;  %vm1210_vm13 = vcmp.ge.f32.partialorder %v8061_v23, %v8060_v38  ;;  %vm1198_vm14 = vcmp.ge.f32.partialorder %v8062_v42, %v5373_v29  ;;  %v8077_v38 = vld [vmem:[#allocation25_spill] sm:$0xff] }
 0x274   :  { %8046 = vst [vmem:[#allocation170_spill] sm:$0xff] %v5403_v36  ;;  %v3003_v3 = vmul.f32 %v1119_v49, %v1119_v49  ;;  %v1416_v0 = vcvt.s32.f32 %v1414_v8  ;;  %v2087_v8 = vshra.s32 %v5440_v47, 16  ;;  %v5480_v23 = vsel %vm1198_vm14, %v4111_v4, 128 }
 0x275   :  { %8048 = vst [vmem:[#allocation107_spill] sm:$0xff] %v5408_v44  ;;  %1744 = vmin.xlane.f32.xlu0 %v1743_v57  ;;  %768 = vadd.xlane.f32.xlu1 %v5403_v36  ;;  %v1456_v57 = vand.u32 65535, %v5048_v19  ;;  %vm1191_vm14 = vcmp.ge.f32.partialorder %v7987_v46, %v4870_v59 }
 0x276   :  { %770 = vadd.xlane.f32.xlu2 %v5408_v44  ;;  %v3130_v40 = vadd.f32 %v3129_v45, %v3003_v3  ;;  %8054 = vst [vmem:[#allocation162_spill] sm:$0xff] %v5437_v39  ;;  %v1421_v45 = vsel %vm1420_vm10, %v1416_v0, inf  ;;  %v5664_v46 = vsel %vm1191_vm14, %v4111_v4, 128 }
 0x277   :  { %8055 = vst [vmem:[#allocation119_spill] sm:$0xff] %v5440_v47  ;;  %v5477_v44 = vpop.eup %3665 }
 0x278   :  { %v5422_v2 = vpop.xlane.xlu0 %826  ;;  %v5424_v1 = vpop.xlane.xlu1 %804  ;;  %v5431_v35 = vadd.f32 %v3130_v40, %v3004_v53  ;;  %8056 = vst [vmem:[#allocation18_spill] sm:$0xff] %v5450_v56  ;;  %v1458_v53 = vcvt.s32.f32 %v1456_v57  ;;  %v1864_v40 = vcvt.s32.f32 %v1862_v21  ;;  %v5475_v21 = vcvt.s32.f32 %v2087_v8 }
 0x279   :  { %8051 = vst [vmem:[#allocation77_spill] sm:$0xff] %v5422_v2  ;;  %v5429_v58 = vpop.xlane.xlu2 %1488  ;;  %v1639_v8 = vshra.s32 %v5480_v23, 16 }
 0x27a   :  { %8052 = vst [vmem:[#allocation175_spill] sm:$0xff] %v5424_v1  ;;  %vm1490_vm12 = vcmp.eq.f32.partialorder %v5042_v43, %v5429_v58  ;;  %v8057_v43 = vld [vmem:[#allocation203_spill] sm:$0xff] }
 0x27b   :  { %8053 = vst [vmem:[#allocation81_spill] sm:$0xff] %v5429_v58  ;;  %v5442_v49 = vsel %vm1490_vm12, %v1486_v27, inf  ;;  %v559_v3 = vsub.f32 %v8057_v43, %v5391_v41  ;;  %v8063_v27 = vld [vmem:[#allocation40_spill] sm:$0xff]  ;;  %vm1199_vm0 = vcmp.ge.f32.partialorder %v8057_v43, %v5391_v41 }
 0x27c   :  { %8066 = vst [vmem:[#allocation199_spill] sm:$0xff] %v5475_v21  ;;  %v5510_v30 = vsel %vm1199_vm0, %v4111_v4, 128  ;;  %v8076_v58 = vld [vmem:[#allocation88_spill] sm:$0xff] }
 0x27d   :  { %1586 = vmin.xlane.f32.xlu0 %v5437_v39  ;;  %1422 = vmin.xlane.f32.xlu1 %v1421_v45  ;;  %v648_v57 = vmul.f32 1.442695, %v559_v3  ;;  %8067 = vst [vmem:[#allocation40_spill] sm:$0xff] %v5477_v44  ;;  %vm1209_vm3 = vcmp.ge.f32.partialorder %v8077_v38, %v8076_v58  ;;  %v8081_v38 = vld [vmem:[#allocation48_spill] sm:$0xff] }
 0x27e   :  { %1628 = vmin.xlane.f32.xlu2 %v5446_v54  ;;  %8068 = vst [vmem:[#allocation212_spill] sm:$0xff] %v5482_v31 }
 0x27f   :  { %3667 = vpow2.f32 %v648_v57 }
 0x280   :  { %v5456_v33 = vpop.xlane.xlu0 %1866  ;;  %v5458_v19 = vpop.xlane.xlu1 %1460 }
 0x281   :  { %8058 = vst [vmem:[#allocation203_spill] sm:$0xff] %v5456_v33  ;;  %vm1868_vm15 = vcmp.eq.f32.partialorder %v8063_v27, %v5456_v33  ;;  %vm1462_vm1 = vcmp.eq.f32.partialorder %v8064_v7, %v5458_v19  ;;  %v5469_v0 = vpop.xlane.xlu2 %752  ;;  %v5485_v27 = vsel %vm1210_vm13, %v4111_v4, 128  ;;  %v558_v7 = vsub.f32 %v8062_v42, %v5373_v29 }
 0x282   :  { %8059 = vst [vmem:[#allocation242_spill] sm:$0xff] %v5458_v19  ;;  %v5471_v45 = vsel %vm1462_vm1, %v1458_v53, inf  ;;  %v5473_v36 = vsel %vm1868_vm15, %v1864_v40, inf  ;;  %v1807_v3 = vshra.s32 %v5485_v27, 16  ;;  %v5507_v33 = vcvt.s32.f32 %v1639_v8 }
 0x283   :  { %8065 = vst [vmem:[#allocation26_spill] sm:$0xff] %v5469_v0  ;;  %v646_v40 = vmul.f32 1.442695, %v558_v7 }
 0x284   :  { %v5505_v57 = vcvt.s32.f32 %v1807_v3  ;;  %v1653_v3 = vshra.s32 %v5510_v30, 16 }
 0x285   :  { %772 = vadd.xlane.f32.xlu0 %v5477_v44  ;;  %2090 = vmin.xlane.f32.xlu1 %v5475_v21  ;;  %v8072_v44 = vld [vmem:[#allocation193_spill] sm:$0xff]  ;;  %v5512_v19 = vpop.eup %3667  ;;  %v8087_v21 = vld [vmem:[#allocation134_spill] sm:$0xff] }
 0x286   :  { %1572 = vmin.xlane.f32.xlu2 %v5482_v31  ;;  %vm1200_vm2 = vcmp.ge.f32.partialorder %v8072_v44, %v5345_v63  ;;  %8073 = vst [vmem:[#allocation193_spill] sm:$0xff] %v5512_v19  ;;  %v560_v43 = vsub.f32 %v8072_v44, %v5345_v63  ;;  %v5537_v25 = vcvt.s32.f32 %v1653_v3 }
 0x287   :  { %v5515_v7 = vsel %vm1200_vm2, %v4111_v4, 128 }
 0x288   :  { %v5494_v53 = vpop.xlane.xlu0 %748  ;;  %v5496_v17 = vpop.xlane.xlu1 %828  ;;  %v650_v44 = vmul.f32 1.442695, %v560_v43  ;;  %v1708_v43 = vand.u32 65535, %v8081_v38  ;;  %v8084_v38 = vld [vmem:[#allocation153_spill] sm:$0xff] }
 0x289   :  { %8069 = vst [vmem:[#allocation243_spill] sm:$0xff] %v5494_v53  ;;  %v5500_v42 = vpop.xlane.xlu2 %1502  ;;  %3669 = vlog2.f32 %v5494_v53 }
 0x28a   :  { %8070 = vst [vmem:[#allocation244_spill] sm:$0xff] %v5496_v17  ;;  %3671 = vpow2.f32 %v646_v40  ;;  %v1667_v40 = vshra.s32 %v5515_v7, 16 }
 0x28b   :  { %8071 = vst [vmem:[#allocation245_spill] sm:$0xff] %v5500_v42  ;;  %3673 = vlog2.f32 %v5469_v0 }
 0x28c   :  { %v5539_v63 = vcvt.s32.f32 %v1667_v40 }
 0x28d   :  { %1810 = vmin.xlane.f32.xlu0 %v5505_v57  ;;  %1642 = vmin.xlane.f32.xlu1 %v5507_v33 }
 0x28e   :  { %776 = vadd.xlane.f32.xlu2 %v5512_v19  ;;  %v8079_v19 = vld [vmem:[#allocation127_spill] sm:$0xff] }
 0x28f   :  { %v3670_v8 = vpop.eup %3669 }
 0x290   :  { %v5524_v53 = vpop.xlane.xlu1 %750  ;;  %v5526_v13 = vpop.xlane.xlu0 %460  ;;  %v1005_v17 = vmul.f32 0.6931472, %v3670_v8  ;;  %v5544_v8 = vsel %vm1209_vm3, %v4111_v4, 128 }
 0x291   :  { %8074 = vst [vmem:[#allocation246_spill] sm:$0xff] %v5524_v53  ;;  %v5529_v2 = vpop.xlane.xlu2 %1516  ;;  %3675 = vlog2.f32 %v5524_v53  ;;  %v5534_v0 = vpop.eup %3671  ;;  %vm1201_vm4 = vcmp.ge.f32.partialorder %v5115_v10, %v5526_v13 }
 0x292   :  { %8075 = vst [vmem:[#allocation247_spill] sm:$0xff] %v5526_v13  ;;  %v1121_v1 = vadd.f32 %v1005_v17, %v8079_v19  ;;  %v3674_v31 = vpop.eup %3673  ;;  %3677 = vpow2.f32 %v650_v44  ;;  %v8085_v44 = vld [vmem:[#allocation53_spill] sm:$0xff] }
 0x293   :  { %8078 = vst [vmem:[#allocation25_spill] sm:$0xff] %v5534_v0  ;;  %v1009_v53 = vmul.f32 0.6931472, %v3674_v31  ;;  %vm1714_vm5 = vcmp.eq.f32.partialorder %v8085_v44, %v8084_v38  ;;  %v1710_v31 = vcvt.s32.f32 %v1708_v43  ;;  %v5573_v44 = vsel %vm1192_vm6, %v4111_v4, 128 }
 0x294   :  { %v3005_v41 = vmul.f32 %v1121_v1, %v1121_v1  ;;  %8080 = vst [vmem:[#allocation127_spill] sm:$0xff] %v5544_v8  ;;  %v1793_v1 = vshra.s32 %v5544_v8, 16  ;;  %v1946_v43 = vand.u32 65535, %v8091_v34  ;;  %v8095_v34 = vld [vmem:[#allocation46_spill] sm:$0xff] }
 0x295   :  { %1656 = vmin.xlane.f32.xlu0 %v5537_v25  ;;  %774 = vadd.xlane.f32.xlu1 %v5534_v0  ;;  %v1715_v55 = vsel %vm1714_vm5, %v1710_v31, inf }
 0x296   :  { %1670 = vmin.xlane.f32.xlu2 %v5539_v63  ;;  %v3132_v19 = vadd.f32 %v5431_v35, %v3005_v41  ;;  %v8086_v41 = vld [vmem:[#allocation141_spill] sm:$0xff]  ;;  %v5569_v39 = vcvt.s32.f32 %v1793_v1 }
 0x297   :  { %v3676_v17 = vpop.eup %3675  ;;  %v1123_v35 = vadd.f32 %v1009_v53, %v8086_v41  ;;  %8090 = vst [vmem:[#allocation141_spill] sm:$0xff] %v5573_v44  ;;  %v1555_v41 = vshra.s32 %v5573_v44, 16 }
 0x298   :  { %v5549_v3 = vpop.xlane.xlu0 %1474  ;;  %v5551_v40 = vpop.xlane.xlu1 %462  ;;  %v1007_v58 = vmul.f32 0.6931472, %v3676_v17  ;;  %v5567_v17 = vsel %vm1201_vm4, %v4111_v4, 128  ;;  %8089 = vst [vmem:[#allocation53_spill] sm:$0xff] %v5569_v39 }
 0x299   :  { %8082 = vst [vmem:[#allocation48_spill] sm:$0xff] %v5551_v40  ;;  %v5556_v0 = vpop.xlane.xlu2 %836  ;;  %v5564_v29 = vpop.eup %3677  ;;  %v562_v1 = vsub.f32 %v5140_v37, %v5551_v40  ;;  %vm1202_vm9 = vcmp.ge.f32.partialorder %v5140_v37, %v5551_v40 }
 0x29a   :  { %8083 = vst [vmem:[#allocation248_spill] sm:$0xff] %v5556_v0  ;;  %v1122_v56 = vadd.f32 %v1007_v58, %v8087_v21  ;;  %v561_v58 = vsub.f32 %v5115_v10, %v5526_v13  ;;  %v3007_v21 = vmul.f32 %v1123_v35, %v1123_v35  ;;  %v8097_v10 = vld [vmem:[#allocation163_spill] sm:$0xff]  ;;  %v1948_v35 = vcvt.s32.f32 %v1946_v43 }
 0x29b   :  { %8088 = vst [vmem:[#allocation153_spill] sm:$0xff] %v5564_v29  ;;  %vm1952_vm8 = vcmp.eq.f32.partialorder %v8097_v10, %v5176_v9  ;;  %v5625_v10 = vsel %vm1202_vm9, %v4111_v4, 128 }
 0x29c   :  { %v3006_v0 = vmul.f32 %v1122_v56, %v1122_v56  ;;  %v1681_v56 = vshra.s32 %v5567_v17, 16  ;;  %v1953_v44 = vsel %vm1952_vm8, %v1948_v35, inf  ;;  %8109 = vst [vmem:[#allocation252_spill] sm:$0xff] %v5625_v10 }
 0x29d   :  { %778 = vadd.xlane.f32.xlu0 %v5564_v29  ;;  %1716 = vmin.xlane.f32.xlu1 %v1715_v55  ;;  %v8094_v29 = vld [vmem:[#allocation147_spill] sm:$0xff] }
 0x29e   :  { %1796 = vmin.xlane.f32.xlu2 %v5569_v39  ;;  %v3133_v53 = vadd.f32 %v3132_v19, %v3006_v0  ;;  %vm1229_vm7 = vcmp.ge.f32.partialorder %v8095_v34, %v8094_v29  ;;  %v652_v19 = vmul.f32 1.442695, %v561_v58  ;;  %v654_v39 = vmul.f32 1.442695, %v562_v1  ;;  %v8119_v29 = vld [vmem:[#allocation136_spill] sm:$0xff] }
 0x29f   :  { %v5595_v13 = vcvt.s32.f32 %v1681_v56  ;;  %v5601_v47 = vsel %vm1229_vm7, %v4111_v4, 128  ;;  %v8105_v56 = vld [vmem:[#allocation79_spill] sm:$0xff] }
 0x2a0   :  { %v5582_v31 = vpop.xlane.xlu0 %832  ;;  %v5584_v55 = vpop.xlane.xlu1 %834  ;;  %v5593_v0 = vadd.f32 %v3133_v53, %v3007_v21  ;;  %3679 = vpow2.f32 %v652_v19  ;;  %v2073_v43 = vshra.s32 %v5601_v47, 16  ;;  %v8112_v19 = vld [vmem:[#allocation131_spill] sm:$0xff] }
 0x2a1   :  { %8092 = vst [vmem:[#allocation134_spill] sm:$0xff] %v5582_v31  ;;  %v5589_v32 = vpop.xlane.xlu2 %1324  ;;  %v8098_v31 = vld [vmem:[#allocation233_spill] sm:$0xff]  ;;  %3681 = vpow2.f32 %v654_v39  ;;  %v1932_v35 = vand.u32 65535, %v8112_v19 }
 0x2a2   :  { %8093 = vst [vmem:[#allocation157_spill] sm:$0xff] %v5584_v55  ;;  %v2128_v8 = vand.u32 65535, %v8098_v31  ;;  %v5598_v55 = vcvt.s32.f32 %v1555_v41  ;;  %v8106_v31 = vld [vmem:[#allocation24_spill] sm:$0xff]  ;;  %v5620_v39 = vcvt.s32.f32 %v2073_v43  ;;  %v1695_v43 = vshra.s32 %v5625_v10, 16 }
 0x2a3   :  { %8096 = vst [vmem:[#allocation46_spill] sm:$0xff] %v5589_v32  ;;  %vm1208_vm11 = vcmp.ge.f32.partialorder %v8106_v31, %v8105_v56  ;;  %v8118_v32 = vld [vmem:[#allocation35_spill] sm:$0xff] }
 0x2a4   :  { %8099 = vst [vmem:[#allocation163_spill] sm:$0xff] %v5598_v55  ;;  %v2130_v53 = vcvt.s32.f32 %v2128_v8  ;;  %v5633_v8 = vsel %vm1208_vm11, %v4111_v4, 128  ;;  %vm1938_vm13 = vcmp.eq.f32.partialorder %v8119_v29, %v8118_v32  ;;  %v8124_v29 = vld [vmem:[#allocation142_spill] sm:$0xff] }
 0x2a5   :  { %8100 = vst [vmem:[#allocation233_spill] sm:$0xff] %v5601_v47  ;;  %1954 = vmin.xlane.f32.xlu0 %v1953_v44  ;;  %1684 = vmin.xlane.f32.xlu1 %v5595_v13  ;;  %v8104_v44 = vld [vmem:[#allocation236_spill] sm:$0xff]  ;;  %v1779_v31 = vshra.s32 %v5633_v8, 16 }
 0x2a6   :  { %1558 = vmin.xlane.f32.xlu2 %v5598_v55  ;;  %8107 = vst [vmem:[#allocation236_spill] sm:$0xff] %v5620_v39  ;;  %v5622_v34 = vpop.eup %3679 }
 0x2a7   :  { %8108 = vst [vmem:[#allocation24_spill] sm:$0xff] %v5622_v34  ;;  %v5628_v37 = vpop.eup %3681 }
 0x2a8   :  { %v5606_v58 = vpop.xlane.xlu0 %754  ;;  %v5608_v21 = vpop.xlane.xlu1 %2132  ;;  %8110 = vst [vmem:[#allocation253_spill] sm:$0xff] %v5628_v37 }
 0x2a9   :  { %8101 = vst [vmem:[#allocation249_spill] sm:$0xff] %v5606_v58  ;;  %v5612_v1 = vpop.xlane.xlu2 %758  ;;  %vm2134_vm10 = vcmp.eq.f32.partialorder %v8104_v44, %v5608_v21  ;;  %3683 = vlog2.f32 %v5606_v58  ;;  %v8115_v58 = vld [vmem:[#allocation140_spill] sm:$0xff] }
 0x2aa   :  { %8102 = vst [vmem:[#allocation250_spill] sm:$0xff] %v5608_v21  ;;  %v5618_v41 = vsel %vm2134_vm10, %v2130_v53, inf  ;;  %3685 = vlog2.f32 %v5612_v1  ;;  %v8116_v21 = vld [vmem:[#allocation39_spill] sm:$0xff] }
 0x2ab   :  { %8103 = vst [vmem:[#allocation251_spill] sm:$0xff] %v5612_v1  ;;  %vm1228_vm12 = vcmp.ge.f32.partialorder %v8116_v21, %v8115_v58  ;;  %v1934_v1 = vcvt.s32.f32 %v1932_v35  ;;  %v8126_v35 = vld [vmem:[#allocation214_spill] sm:$0xff] }
 0x2ac   :  { %8111 = vst [vmem:[#allocation254_spill] sm:$0xff] %v5633_v8  ;;  %v5658_v21 = vsel %vm1228_vm12, %v4111_v4, 128 }
 0x2ad   :  { %2076 = vmin.xlane.f32.xlu0 %v5620_v39  ;;  %780 = vadd.xlane.f32.xlu1 %v5622_v34  ;;  %v1939_v55 = vsel %vm1938_vm13, %v1934_v1, inf  ;;  %v5655_v39 = vcvt.s32.f32 %v1779_v31  ;;  %8122 = vst [vmem:[#allocation257_spill] sm:$0xff] %v5658_v21 }
 0x2ae   :  { %782 = vadd.xlane.f32.xlu2 %v5628_v37 }
 0x2af   :  { %v3684_v19 = vpop.eup %3683  ;;  %8121 = vst [vmem:[#allocation256_spill] sm:$0xff] %v5655_v39 }
 0x2b0   :  { %v5639_v53 = vpop.xlane.xlu0 %1310  ;;  %v5641_v44 = vpop.xlane.xlu1 %756  ;;  %v1011_v37 = vmul.f32 0.6931472, %v3684_v19  ;;  %v2059_v19 = vshra.s32 %v5658_v21, 16 }
 0x2b1   :  { %8113 = vst [vmem:[#allocation131_spill] sm:$0xff] %v5639_v53  ;;  %v5646_v34 = vpop.xlane.xlu2 %1366  ;;  %3687 = vlog2.f32 %v5641_v44  ;;  %v5653_v53 = vcvt.s32.f32 %v1695_v43  ;;  %v3686_v56 = vpop.eup %3685  ;;  %v1498_v43 = vand.u32 65535, %v8126_v35 }
 0x2b2   :  { %8114 = vst [vmem:[#allocation255_spill] sm:$0xff] %v5641_v44  ;;  %v1124_v40 = vadd.f32 %v1011_v37, %v8124_v29  ;;  %v1015_v1 = vmul.f32 0.6931472, %v3686_v56  ;;  %v8129_v29 = vld [vmem:[#allocation218_spill] sm:$0xff]  ;;  %v5687_v21 = vcvt.s32.f32 %v2059_v19 }
 0x2b3   :  { %8117 = vst [vmem:[#allocation39_spill] sm:$0xff] %v5646_v34  ;;  %v8123_v34 = vld [vmem:[#allocation47_spill] sm:$0xff]  ;;  %vm1504_vm15 = vcmp.eq.f32.partialorder %v8129_v29, %v5500_v42  ;;  %v8132_v56 = vld [vmem:[#allocation22_spill] sm:$0xff] }
 0x2b4   :  { %8120 = vst [vmem:[#allocation136_spill] sm:$0xff] %v5653_v53  ;;  %v1848_v58 = vand.u32 65535, %v8123_v34  ;;  %v3008_v31 = vmul.f32 %v1124_v40, %v1124_v40  ;;  %v8131_v40 = vld [vmem:[#allocation63_spill] sm:$0xff] }
 0x2b5   :  { %1940 = vmin.xlane.f32.xlu0 %v1939_v55  ;;  %1698 = vmin.xlane.f32.xlu1 %v5653_v53  ;;  %8125 = vst [vmem:[#allocation47_spill] sm:$0xff] %v5664_v46  ;;  %v1541_v55 = vshra.s32 %v5664_v46, 16  ;;  %vm1207_vm0 = vcmp.ge.f32.partialorder %v8132_v56, %v8131_v40  ;;  %v8139_v56 = vld [vmem:[#allocation135_spill] sm:$0xff] }
 0x2b6   :  { %1782 = vmin.xlane.f32.xlu2 %v5655_v39  ;;  %v1850_v37 = vcvt.s32.f32 %v1848_v58  ;;  %v3135_v53 = vadd.f32 %v5593_v0, %v3008_v31  ;;  %v1500_v39 = vcvt.s32.f32 %v1498_v43  ;;  %v8134_v58 = vld [vmem:[#allocation148_spill] sm:$0xff]  ;;  %v2100_v0 = vand.u32 65535, %v5243_v52 }
 0x2b7   :  { %v3688_v44 = vpop.eup %3687  ;;  %v5691_v42 = vcvt.s32.f32 %v1541_v55  ;;  %v5696_v43 = vsel %vm1207_vm0, %v4111_v4, 128 }
 0x2b8   :  { %v5669_v10 = vpop.xlane.xlu0 %1852  ;;  %v5671_v34 = vpop.xlane.xlu1 %1338  ;;  %v1013_v35 = vmul.f32 0.6931472, %v3688_v44  ;;  %v8135_v44 = vld [vmem:[#allocation110_spill] sm:$0xff]  ;;  %v1505_v29 = vsel %vm1504_vm15, %v1500_v39, inf  ;;  %8137 = vst [vmem:[#allocation22_spill] sm:$0xff] %v5696_v43 }
 0x2b9   :  { %8127 = vst [vmem:[#allocation142_spill] sm:$0xff] %v5669_v10  ;;  %v5677_v32 = vpop.xlane.xlu2 %764  ;;  %vm1854_vm1 = vcmp.eq.f32.partialorder %v5232_v11, %v5669_v10  ;;  %v1918_v31 = vand.u32 65535, %v8135_v44  ;;  %v2114_v11 = vand.u32 65535, %v5237_v20  ;;  %v8140_v39 = vld [vmem:[#allocation34_spill] sm:$0xff] }
 0x2ba   :  { %8128 = vst [vmem:[#allocation214_spill] sm:$0xff] %v5671_v34  ;;  %v5683_v47 = vsel %vm1854_vm1, %v1850_v37, inf  ;;  %v8133_v34 = vld [vmem:[#allocation167_spill] sm:$0xff]  ;;  %v1125_v8 = vadd.f32 %v1013_v35, %v8134_v58  ;;  %v2102_v35 = vcvt.s32.f32 %v2100_v0  ;;  %vm1227_vm2 = vcmp.ge.f32.partialorder %v8140_v39, %v8139_v56 }
 0x2bb   :  { %8130 = vst [vmem:[#allocation218_spill] sm:$0xff] %v5677_v32  ;;  %v1126_v46 = vadd.f32 %v1015_v1, %v8133_v34  ;;  %v8138_v1 = vld [vmem:[#allocation219_spill] sm:$0xff]  ;;  %v1765_v58 = vshra.s32 %v5696_v43, 16  ;;  %v2116_v44 = vcvt.s32.f32 %v2114_v11 }
 0x2bc   :  { %8136 = vst [vmem:[#allocation63_spill] sm:$0xff] %v5691_v42  ;;  %v3009_v10 = vmul.f32 %v1125_v8, %v1125_v8  ;;  %v1512_v37 = vand.u32 65535, %v8138_v1  ;;  %v1920_v8 = vcvt.s32.f32 %v1918_v31 }
 0x2bd   :  { %2062 = vmin.xlane.f32.xlu0 %v5687_v21  ;;  %1506 = vmin.xlane.f32.xlu1 %v1505_v29  ;;  %v3010_v19 = vmul.f32 %v1126_v46, %v1126_v46  ;;  %v8143_v29 = vld [vmem:[#allocation224_spill] sm:$0xff]  ;;  %v8147_v46 = vld [vmem:[#allocation66_spill] sm:$0xff] }
 0x2be   :  { %1544 = vmin.xlane.f32.xlu2 %v5691_v42  ;;  %v3136_v52 = vadd.f32 %v3135_v53, %v3009_v10  ;;  %vm1518_vm3 = vcmp.eq.f32.partialorder %v8143_v29, %v5529_v2  ;;  %v8145_v10 = vld [vmem:[#allocation201_spill] sm:$0xff]  ;;  %v8146_v53 = vld [vmem:[#allocation116_spill] sm:$0xff]  ;;  %vm1190_vm6 = vcmp.ge.f32.partialorder %v8147_v46, %v8133_v34  ;;  %v1514_v0 = vcvt.s32.f32 %v1512_v37 }
 0x2bf   :  { %vm1924_vm5 = vcmp.eq.f32.partialorder %v8146_v53, %v8145_v10  ;;  %v5724_v29 = vcvt.s32.f32 %v1765_v58 }
 0x2c0   :  { %v5702_v55 = vpop.xlane.xlu0 %760  ;;  %v5704_v20 = vpop.xlane.xlu1 %2118  ;;  %v3137_v42 = vadd.f32 %v3136_v52, %v3010_v19  ;;  %v1925_v19 = vsel %vm1924_vm5, %v1920_v8, inf  ;;  %v1519_v52 = vsel %vm1518_vm3, %v1514_v0, inf }
 0x2c1   :  { %8141 = vst [vmem:[#allocation167_spill] sm:$0xff] %v5702_v55  ;;  %v5709_v1 = vpop.xlane.xlu2 %2104  ;;  %vm2120_vm4 = vcmp.eq.f32.partialorder %v5256_v24, %v5704_v20  ;;  %3689 = vlog2.f32 %v5702_v55  ;;  %v5730_v24 = vsel %vm1227_vm2, %v4111_v4, 128 }
 0x2c2   :  { %8142 = vst [vmem:[#allocation148_spill] sm:$0xff] %v5704_v20  ;;  %vm2106_vm7 = vcmp.eq.f32.partialorder %v5262_v6, %v5709_v1  ;;  %v5720_v31 = vsel %vm2120_vm4, %v2116_v44, inf  ;;  %v5733_v6 = vsel %vm1190_vm6, %v4111_v4, 128  ;;  %3691 = vlog2.f32 %v5677_v32  ;;  %v8153_v32 = vld [vmem:[#allocation97_spill] sm:$0xff] }
 0x2c3   :  { %8144 = vst [vmem:[#allocation110_spill] sm:$0xff] %v5709_v1  ;;  %v5722_v11 = vsel %vm2106_vm7, %v2102_v35, inf  ;;  %v2045_v34 = vshra.s32 %v5730_v24, 16  ;;  %v1527_v39 = vshra.s32 %v5733_v6, 16  ;;  %v1904_v1 = vand.u32 65535, %v8153_v32 }
 0x2c4   :  { %8148 = vst [vmem:[#allocation219_spill] sm:$0xff] %v5724_v29 }
 0x2c5   :  { %1926 = vmin.xlane.f32.xlu0 %v1925_v19  ;;  %1520 = vmin.xlane.f32.xlu1 %v1519_v52  ;;  %v5747_v46 = vcvt.s32.f32 %v2045_v34  ;;  %v5749_v19 = vcvt.s32.f32 %v1527_v39  ;;  %v1834_v52 = vand.u32 65535, %v5301_v22  ;;  %v8155_v39 = vld [vmem:[#allocation52_spill] sm:$0xff]  ;;  %v8157_v22 = vld [vmem:[#allocation133_spill] sm:$0xff]  ;;  %v1906_v43 = vcvt.s32.f32 %v1904_v1 }
 0x2c6   :  { %1768 = vmin.xlane.f32.xlu2 %v5724_v29 }
 0x2c7   :  { %v3690_v37 = vpop.eup %3689  ;;  %8151 = vst [vmem:[#allocation201_spill] sm:$0xff] %v5747_v46 }
 0x2c8   :  { %v5738_v35 = vpop.xlane.xlu0 %1352  ;;  %v5740_v8 = vpop.xlane.xlu1 %762  ;;  %v1017_v58 = vmul.f32 0.6931472, %v3690_v37  ;;  %8152 = vst [vmem:[#allocation116_spill] sm:$0xff] %v5749_v19  ;;  %v1596_v37 = vand.u32 65535, %v5305_v50  ;;  %v1836_v50 = vcvt.s32.f32 %v1834_v52 }
 0x2c9   :  { %8149 = vst [vmem:[#allocation34_spill] sm:$0xff] %v5738_v35  ;;  %v5743_v44 = vpop.xlane.xlu2 %1730  ;;  %3693 = vlog2.f32 %v5740_v8  ;;  %v3692_v0 = vpop.eup %3691  ;;  %v8156_v35 = vld [vmem:[#allocation19_spill] sm:$0xff] }
 0x2ca   :  { %8150 = vst [vmem:[#allocation224_spill] sm:$0xff] %v5740_v8  ;;  %v1127_v53 = vadd.f32 %v1017_v58, %v4870_v59  ;;  %v8154_v8 = vld [vmem:[#allocation225_spill] sm:$0xff]  ;;  %v1021_v34 = vmul.f32 0.6931472, %v3692_v0  ;;  %vm1206_vm8 = vcmp.ge.f32.partialorder %v8156_v35, %v8155_v39 }
 0x2cb   :  { %v1470_v59 = vand.u32 65535, %v8154_v8  ;;  %v8162_v8 = vld [vmem:[#allocation190_spill] sm:$0xff]  ;;  %v8164_v0 = vld [vmem:[#allocation229_spill] sm:$0xff] }
 0x2cc   :  { %v3011_v55 = vmul.f32 %v1127_v53, %v1127_v53  ;;  %v8158_v53 = vld [vmem:[#allocation36_spill] sm:$0xff]  ;;  %vm1476_vm12 = vcmp.eq.f32.partialorder %v8164_v0, %v5549_v3 }
 0x2cd   :  { %2048 = vmin.xlane.f32.xlu0 %v5747_v46  ;;  %1492 = vmin.xlane.f32.xlu1 %v5442_v49  ;;  %vm1226_vm9 = vcmp.ge.f32.partialorder %v8158_v53, %v8157_v22 }
 0x2ce   :  { %1530 = vmin.xlane.f32.xlu2 %v5749_v19  ;;  %v3138_v58 = vadd.f32 %v3137_v42, %v3011_v55  ;;  %v8163_v42 = vld [vmem:[#allocation102_spill] sm:$0xff]  ;;  %v1598_v55 = vcvt.s32.f32 %v1596_v37  ;;  %v5786_v37 = vsel %vm1206_vm8, %v4111_v4, 128 }
 0x2cf   :  { %v3694_v20 = vpop.eup %3693  ;;  %vm1910_vm11 = vcmp.eq.f32.partialorder %v8163_v42, %v8162_v8 }
 0x2d0   :  { %v5762_v56 = vpop.xlane.xlu0 %1838  ;;  %v5764_v49 = vpop.xlane.xlu1 %1380  ;;  %v1019_v29 = vmul.f32 0.6931472, %v3694_v20  ;;  %v1129_v20 = vadd.f32 %v1021_v34, %v5005_v16  ;;  %v1820_v16 = vand.u32 65535, %v5331_v26  ;;  %v1751_v34 = vshra.s32 %v5786_v37, 16 }
 0x2d1   :  { %8159 = vst [vmem:[#allocation66_spill] sm:$0xff] %v5762_v56  ;;  %v5766_v32 = vpop.xlane.xlu2 %1600  ;;  %vm1840_vm10 = vcmp.eq.f32.partialorder %v5326_v14, %v5762_v56  ;;  %v1911_v14 = vsel %vm1910_vm11, %v1906_v43, inf  ;;  %v8165_v43 = vld [vmem:[#allocation49_spill] sm:$0xff]  ;;  %v8181_v56 = vld [vmem:[#allocation182_spill] sm:$0xff] }
 0x2d2   :  { %8160 = vst [vmem:[#allocation97_spill] sm:$0xff] %v5764_v49  ;;  %vm1602_vm13 = vcmp.eq.f32.partialorder %v5328_v5, %v5766_v32  ;;  %v5776_v19 = vsel %vm1840_vm10, %v1836_v50, inf  ;;  %v1128_v52 = vadd.f32 %v1019_v29, %v4943_v60  ;;  %v1472_v49 = vcvt.s32.f32 %v1470_v59 }
 0x2d3   :  { %8161 = vst [vmem:[#allocation225_spill] sm:$0xff] %v5766_v32  ;;  %v5780_v46 = vsel %vm1602_vm13, %v1598_v55, inf  ;;  %v5792_v5 = vsel %vm1226_vm9, %v4111_v4, 128  ;;  %v1876_v29 = vand.u32 65535, %v8165_v43  ;;  %v3013_v59 = vmul.f32 %v1129_v20, %v1129_v20  ;;  %v8172_v20 = vld [vmem:[#allocation55_spill] sm:$0xff] }
 0x2d4   :  { %v3012_v1 = vmul.f32 %v1128_v52, %v1128_v52  ;;  %v1477_v60 = vsel %vm1476_vm12, %v1472_v49, inf  ;;  %v2031_v50 = vshra.s32 %v5792_v5, 16  ;;  %v1822_v55 = vcvt.s32.f32 %v1820_v16  ;;  %v8170_v49 = vld [vmem:[#allocation29_spill] sm:$0xff] }
 0x2d5   :  { %1912 = vmin.xlane.f32.xlu0 %v1911_v14  ;;  %2192 = vmin.xlane.f32.xlu1 %v5291_v18  ;;  %v8169_v18 = vld [vmem:[#allocation120_spill] sm:$0xff]  ;;  %v5815_v14 = vcvt.s32.f32 %v1751_v34  ;;  %v1878_v16 = vcvt.s32.f32 %v1876_v29  ;;  %v8177_v34 = vld [vmem:[#allocation125_spill] sm:$0xff] }
 0x2d6   :  { %1478 = vmin.xlane.f32.xlu2 %v1477_v60  ;;  %v3139_v35 = vadd.f32 %v3138_v58, %v3012_v1  ;;  %vm1224_vm15 = vcmp.ge.f32.partialorder %v8170_v49, %v8169_v18  ;;  %v8171_v58 = vld [vmem:[#allocation155_spill] sm:$0xff]  ;;  %v5817_v1 = vcvt.s32.f32 %v2031_v50  ;;  %v1971_v60 = vcvt.f32.s32 %v5197_v28  ;;  %v8176_v49 = vld [vmem:[#allocation146_spill] sm:$0xff] }
 0x2d7   :  { %vm1882_vm1 = vcmp.eq.f32.partialorder %v8172_v20, %v8171_v58  ;;  %8173 = vst [vmem:[#allocation190_spill] sm:$0xff] %v5815_v14  ;;  %v5823_v43 = vsel %vm1224_vm15, %v4111_v4, 128  ;;  %v8178_v20 = vld [vmem:[#allocation30_spill] sm:$0xff] }
 0x2d8   :  { %v5799_v42 = vpop.xlane.xlu0 %766  ;;  %v5801_v53 = vpop.xlane.xlu1 %1824  ;;  %v5805_v0 = vadd.f32 %v3139_v35, %v3013_v59  ;;  %8174 = vst [vmem:[#allocation102_spill] sm:$0xff] %v5823_v43  ;;  %v8175_v59 = vld [vmem:[#allocation83_spill] sm:$0xff]  ;;  %vm1225_vm0 = vcmp.ge.f32.partialorder %v8178_v20, %v8177_v34  ;;  %v2003_v28 = vshra.s32 %v5823_v43, 16  ;;  %v1972_v32 = vshll.u32 %v1971_v60, 16 }
 0x2d9   :  { %8166 = vst [vmem:[#allocation52_spill] sm:$0xff] %v5799_v42  ;;  %v5803_v26 = vpop.xlane.xlu2 %1408  ;;  %vm1826_vm14 = vcmp.eq.f32.partialorder %v5352_v61, %v5801_v53  ;;  %v1883_v61 = vsel %vm1882_vm1, %v1878_v16, inf  ;;  %v1890_v35 = vand.u32 65535, %v8175_v59  ;;  %v8184_v59 = vld [vmem:[#allocation152_spill] sm:$0xff]  ;;  %v5843_v43 = vsel %vm1225_vm0, %v4111_v4, 128 }
 0x2da   :  { %8167 = vst [vmem:[#allocation19_spill] sm:$0xff] %v5801_v53  ;;  %v5813_v52 = vsel %vm1826_vm14, %v1822_v55, inf  ;;  %v2170_v55 = vand.u32 65535, %v8176_v49  ;;  %v1747_v60 = vcvt.f32.s32 %v8041_v48  ;;  %3695 = vlog2.f32 %v5799_v42 }
 0x2db   :  { %8168 = vst [vmem:[#allocation36_spill] sm:$0xff] %v5803_v26  ;;  %v8182_v26 = vld [vmem:[#allocation89_spill] sm:$0xff]  ;;  %v1892_v49 = vcvt.s32.f32 %v1890_v35 }
 0x2dc   :  { %vm1896_vm2 = vcmp.eq.f32.partialorder %v8182_v26, %v8181_v56  ;;  %v7651_v26 = vmov 1.0  }
 0x2dd   :  { %1754 = vmin.xlane.f32.xlu0 %v5815_v14  ;;  %2034 = vmin.xlane.f32.xlu1 %v5817_v1  ;;  %v8183_v14 = vld [vmem:[#allocation228_spill] sm:$0xff]  ;;  %v1897_v20 = vsel %vm1896_vm2, %v1892_v49, inf }
 0x2de   :  { %1884 = vmin.xlane.f32.xlu2 %v1883_v61  ;;  %vm2176_vm3 = vcmp.eq.f32.partialorder %v8184_v59, %v8183_v14  ;;  %v2172_v61 = vcvt.s32.f32 %v2170_v55  ;;  %v8188_v55 = vld [vmem:[#allocation161_spill] sm:$0xff]  ;;  %v1732_v59 = vcvt.f32.s32 %v5743_v44 }
 0x2df   :  { %v8192_v14 = vld [vmem:[#allocation137_spill] sm:$0xff] }
 0x2e0   :  { %v5829_v50 = vpop.xlane.xlu0 %1394  ;;  %v1969_v29 = vpop.xlane.xlu1 %1968  ;;  %v2177_v34 = vsel %vm2176_vm3, %v2172_v61, inf }
 0x2e1   :  { %8179 = vst [vmem:[#allocation229_spill] sm:$0xff] %v5829_v50  ;;  %v5832_v53 = vpop.xlane.xlu2 %1614  ;;  %v1970_v16 = vcvt.f32.s32 %v1969_v29  ;;  %v5840_v50 = vcvt.s32.f32 %v2003_v28  ;;  %v1733_v29 = vcvt.f32.s32 %v8188_v55  ;;  %v2017_v28 = vshra.s32 %v5843_v43, 16 }
 0x2e2   :  { %8180 = vst [vmem:[#allocation49_spill] sm:$0xff] %v5832_v53  ;;  %vm1616_vm10 = vcmp.eq.f32.partialorder %v5383_v51, %v5832_v53 }
 0x2e3   :  { %v5838_v22 = vadd.s32 %v1972_v32, %v1970_v16  ;;  %8186 = vst [vmem:[#allocation155_spill] sm:$0xff] %v5840_v50  ;;  %v8187_v32 = vld [vmem:[#allocation132_spill] sm:$0xff] }
 0x2e4   :  { %v2142_v35 = vand.u32 65535, %v8187_v32  ;;  %v5865_v32 = vcvt.s32.f32 %v2017_v28 }
 0x2e5   :  { %8185 = vst [vmem:[#allocation29_spill] sm:$0xff] %v5838_v22  ;;  %1898 = vmin.xlane.f32.xlu0 %v1897_v20  ;;  %2178 = vmin.xlane.f32.xlu1 %v2177_v34  ;;  %vm7688_vm4 = vcmp.eq.s32.totalorder %v4111_v4, %v5838_v22  ;;  %v1748_v34 = vshll.u32 %v1747_v60, 16  ;;  %v8191_v20 = vld [vmem:[#allocation215_spill] sm:$0xff]  ;;  %v1734_v22 = vshll.u32 %v1733_v29, 16  ;;  %v8196_v60 = vld [vmem:[#allocation164_spill] sm:$0xff]  ;;  %v8197_v29 = vmov 1.0  }
 0x2e6   :  { %2006 = vmin.xlane.f32.xlu2 %v5840_v50  ;;  %3354 = vmatpush.xpose.msk.msrb.mxu3 %vm7688_vm4, %v7651_v26  ;;  %vm2148_vm5 = vcmp.eq.f32.partialorder %v8192_v14, %v8191_v20  ;;  %8194 = vst [vmem:[#allocation30_spill] sm:$0xff] %v5865_v32  ;;  %v2144_v55 = vcvt.s32.f32 %v2142_v35  ;;  %v1425_v50 = vcvt.f32.s32 %v5313_v62  ;;  %v2156_v14 = vand.u32 65535, %v8196_v60  ;;  %v8198_v35 = vld [vmem:[#allocation112_spill] sm:$0xff] }
 0x2e7   :  { %v5868_v18 = vadd.s32 %v1734_v22, %v1732_v59  ;;  %v8199_v62 = vld [vmem:[#allocation28_spill] sm:$0xff]  ;;  %v8202_v59 = vld [vmem:[#allocation41_spill] sm:$0xff] }
 0x2e8   :  { %v1745_v48 = vpop.xlane.xlu0 %1744  ;;  %v5856_v16 = vpop.xlane.xlu1 %768  ;;  %v2149_v44 = vsel %vm2148_vm5, %v2144_v55, inf  ;;  %vm1223_vm7 = vcmp.ge.f32.partialorder %v8199_v62, %v8198_v35  ;;  %v2158_v55 = vcvt.s32.f32 %v2156_v14  ;;  %v8206_v62 = vld [vmem:[#allocation21_spill] sm:$0xff] }
 0x2e9   :  { %8189 = vst [vmem:[#allocation55_spill] sm:$0xff] %v5856_v16  ;;  %v5859_v49 = vpop.xlane.xlu2 %770  ;;  %v1746_v61 = vcvt.f32.s32 %v1745_v48  ;;  %v1426_v48 = vshll.u32 %v1425_v50, 16  ;;  %vm2228_vm8 = vcmp.eq.s32.totalorder %v4111_v4, %v5868_v18  ;;  %v5896_v50 = vsel %vm1223_vm7, %v4111_v4, 128 }
 0x2ea   :  { %8190 = vst [vmem:[#allocation83_spill] sm:$0xff] %v5859_v49  ;;  %3697 = vlog2.f32 %v5856_v16  ;;  %v8223_v16 = vld [vmem:[#allocation154_spill] sm:$0xff] }
 0x2eb   :  { %v5863_v26 = vadd.s32 %v1748_v34, %v1746_v61  ;;  %8195 = vst [vmem:[#allocation182_spill] sm:$0xff] %v5868_v18  ;;  %v8203_v61 = vld [vmem:[#allocation169_spill] sm:$0xff]  ;;  %3699 = vlog2.f32 %v5859_v49 }
 0x2ec   :  { %vm2162_vm9 = vcmp.eq.f32.partialorder %v8203_v61, %v8202_v59  ;;  %8205 = vst [vmem:[#allocation161_spill] sm:$0xff] %v5896_v50  ;;  %v8207_v61 = vld [vmem:[#allocation72_spill] sm:$0xff] }
 0x2ed   :  { %8193 = vst [vmem:[#allocation146_spill] sm:$0xff] %v5863_v26  ;;  %2020 = vmin.xlane.f32.xlu0 %v5865_v32  ;;  %1464 = vmin.xlane.f32.xlu1 %v5471_v45  ;;  %vm2229_vm6 = vcmp.eq.s32.totalorder %v4111_v4, %v5863_v26  ;;  %v2163_v60 = vsel %vm2162_vm9, %v2158_v55, inf  ;;  %v1610_v26 = vand.u32 65535, %v8207_v61  ;;  %v8210_v55 = vld [vmem:[#allocation62_spill] sm:$0xff]  ;;  %v8256_v32 = vld [vmem:[#allocation121_spill] sm:$0xff] }
 0x2ee   :  { %2150 = vmin.xlane.f32.xlu2 %v2149_v44  ;;  %3338 = vmatpush.xpose.msk.msrb.mxu2 %vm2229_vm6, %v8197_v29 }
 0x2f0   :  { %v5881_v22 = vpop.xlane.xlu0 %1586  ;;  %v1423_v28 = vpop.xlane.xlu1 %1422 }
 0x2f1   :  { %8200 = vst [vmem:[#allocation89_spill] sm:$0xff] %v5881_v22  ;;  %v5883_v45 = vpop.xlane.xlu2 %1628  ;;  %v1424_v34 = vcvt.f32.s32 %v1423_v28  ;;  %v1989_v28 = vshra.s32 %v5896_v50, 16 }
 0x2f2   :  { %8201 = vst [vmem:[#allocation152_spill] sm:$0xff] %v5883_v45  ;;  %3339 = vmatpush.xpose.msk.msrb.mxu2 %vm2228_vm8, %v8197_v29  ;;  %vm1630_vm11 = vcmp.eq.f32.partialorder %v5446_v54, %v5883_v45  ;;  %v8216_v54 = vld [vmem:[#allocation99_spill] sm:$0xff]  ;;  %v8241_v45 = vld [vmem:[#allocation32_spill] sm:$0xff] }
 0x2f3   :  { %v5893_v44 = vadd.s32 %v1426_v48, %v1424_v34  ;;  %v5910_v48 = vcvt.s32.f32 %v1989_v28  ;;  %v1612_v34 = vcvt.s32.f32 %v1610_v26 }
 0x2f5   :  { %8204 = vst [vmem:[#allocation132_spill] sm:$0xff] %v5893_v44  ;;  %2164 = vmin.xlane.f32.xlu0 %v2163_v60  ;;  %1870 = vmin.xlane.f32.xlu1 %v5473_v36  ;;  %v1806_v36 = vand.u32 65535, %v5485_v27  ;;  %v1617_v60 = vsel %vm1616_vm10, %v1612_v34, inf  ;;  %v1638_v34 = vand.u32 65535, %v5480_v23 }
 0x2f6   :  { %1436 = vmin.xlane.f32.xlu2 %v8206_v62  ;;  %8209 = vst [vmem:[#allocation164_spill] sm:$0xff] %v5910_v48  ;;  %v1624_v62 = vand.u32 65535, %v5413_v15  ;;  %v1652_v15 = vand.u32 65535, %v5510_v30 }
 0x2f7   :  { %v1808_v44 = vcvt.s32.f32 %v1806_v36  ;;  %v1640_v30 = vcvt.s32.f32 %v1638_v34 }
 0x2f8   :  { %v5902_v20 = vpop.xlane.xlu0 %772  ;;  %v5904_v18 = vpop.xlane.xlu1 %2090  ;;  %v1626_v27 = vcvt.s32.f32 %v1624_v62 }
 0x2f9   :  { %8208 = vst [vmem:[#allocation137_spill] sm:$0xff] %v5902_v20  ;;  %v5906_v14 = vpop.xlane.xlu2 %1572  ;;  %3701 = vlog2.f32 %v5902_v20 }
 0x2fa   :  { %v1631_v28 = vsel %vm1630_vm11, %v1626_v27, inf  ;;  %v1719_v27 = vcvt.f32.s32 %v8084_v38 }
 0x2fd   :  { %1450 = vmin.xlane.f32.xlu0 %v8210_v55  ;;  %1992 = vmin.xlane.f32.xlu1 %v5910_v48 }
 0x2fe   :  { %1618 = vmin.xlane.f32.xlu2 %v1617_v60  ;;  %v8217_v60 = vld [vmem:[#allocation27_spill] sm:$0xff] }
 0x2ff   :  { %vm1222_vm13 = vcmp.ge.f32.partialorder %v8217_v60, %v8216_v54  ;;  %v1720_v60 = vshll.u32 %v1719_v27, 16  ;;  %v1680_v27 = vand.u32 65535, %v5567_v17 }
 0x300   :  { %v5916_v61 = vpop.xlane.xlu0 %1810  ;;  %v5918_v59 = vpop.xlane.xlu1 %1642  ;;  %v5946_v62 = vsel %vm1222_vm13, %v4111_v4, 128 }
 0x301   :  { %8211 = vst [vmem:[#allocation112_spill] sm:$0xff] %v5916_v61  ;;  %v5922_v51 = vpop.xlane.xlu2 %776  ;;  %vm1812_vm12 = vcmp.eq.f32.partialorder %v5505_v57, %v5916_v61  ;;  %vm1644_vm14 = vcmp.eq.f32.partialorder %v5507_v33, %v5918_v59  ;;  %v1666_v33 = vand.u32 65535, %v5515_v7 }
 0x302   :  { %8212 = vst [vmem:[#allocation28_spill] sm:$0xff] %v5918_v59  ;;  %v5926_v26 = vsel %vm1812_vm12, %v1808_v44, inf  ;;  %v1645_v44 = vsel %vm1644_vm14, %v1640_v30, inf }
 0x303   :  { %8213 = vst [vmem:[#allocation169_spill] sm:$0xff] %v5922_v51  ;;  %v1668_v30 = vcvt.s32.f32 %v1666_v33 }
 0x304   :  { %8219 = vst [vmem:[#allocation99_spill] sm:$0xff] %v5946_v62 }
 0x305   :  { %1632 = vmin.xlane.f32.xlu0 %v1631_v28  ;;  %2136 = vmin.xlane.f32.xlu1 %v5618_v41  ;;  %v1654_v41 = vcvt.s32.f32 %v1652_v15  ;;  %v3696_v28 = vpop.eup %3695 }
 0x306   :  { %v1023_v7 = vmul.f32 0.6931472, %v3696_v28 }
 0x308   :  { %v5931_v36 = vpop.xlane.xlu0 %1656  ;;  %v5933_v55 = vpop.xlane.xlu1 %774 }
 0x309   :  { %8214 = vst [vmem:[#allocation21_spill] sm:$0xff] %v5931_v36  ;;  %v5939_v57 = vpop.xlane.xlu2 %1670  ;;  %vm1658_vm15 = vcmp.eq.f32.partialorder %v5537_v25, %v5931_v36  ;;  %v1975_v25 = vshra.s32 %v5946_v62, 16  ;;  %3703 = vlog2.f32 %v5933_v55  ;;  %v8242_v36 = vld [vmem:[#allocation177_spill] sm:$0xff] }
 0x30a   :  { %8215 = vst [vmem:[#allocation72_spill] sm:$0xff] %v5933_v55  ;;  %v1659_v23 = vsel %vm1658_vm15, %v1654_v41, inf  ;;  %vm1672_vm1 = vcmp.eq.f32.partialorder %v5539_v63, %v5939_v57  ;;  %v1957_v63 = vcvt.f32.s32 %v5176_v9  ;;  %3705 = vlog2.f32 %v8223_v16 }
 0x30b   :  { %8218 = vst [vmem:[#allocation62_spill] sm:$0xff] %v5939_v57  ;;  %1660 = vmin.xlane.f32.xlu2 %v1659_v23  ;;  %v5962_v42 = vcvt.s32.f32 %v1975_v25  ;;  %v1130_v9 = vadd.f32 %v1023_v7, %v5007_v12  ;;  %3707 = vlog2.f32 %v5922_v51  ;;  %v8226_v7 = vld [vmem:[#allocation119_spill] sm:$0xff] }
 0x30c   :  { %v1958_v28 = vshll.u32 %v1957_v63, 16  ;;  %v2086_v63 = vand.u32 65535, %v8226_v7 }
 0x30d   :  { %1856 = vmin.xlane.f32.xlu0 %v5683_v47  ;;  %1646 = vmin.xlane.f32.xlu1 %v1645_v44  ;;  %v3698_v47 = vpop.eup %3697  ;;  %v1673_v44 = vsel %vm1672_vm1, %v1668_v30, inf  ;;  %8222 = vst [vmem:[#allocation259_spill] sm:$0xff] %v5962_v42  ;;  %v8225_v30 = vld [vmem:[#allocation231_spill] sm:$0xff] }
 0x30e   :  { %v3700_v33 = vpop.eup %3699 }
 0x30f   :  { %v3702_v25 = vpop.eup %3701  ;;  %v1027_v55 = vmul.f32 0.6931472, %v3700_v33 }
 0x310   :  { %v5954_v15 = vpop.xlane.xlu0 %778  ;;  %v1717_v34 = vpop.xlane.xlu1 %1716 }
 0x311   :  { %8220 = vst [vmem:[#allocation27_spill] sm:$0xff] %v5954_v15  ;;  %v5957_v41 = vpop.xlane.xlu2 %1796  ;;  %v1718_v38 = vcvt.f32.s32 %v1717_v34  ;;  %v1025_v34 = vmul.f32 0.6931472, %v3698_v47  ;;  %v3704_v20 = vpop.eup %3703  ;;  %3709 = vlog2.f32 %v5954_v15 }
 0x312   :  { %v3706_v16 = vpop.eup %3705  ;;  %v1031_v53 = vmul.f32 0.6931472, %v3704_v20  ;;  %v8233_v20 = vld [vmem:[#allocation235_spill] sm:$0xff] }
 0x313   :  { %v5960_v23 = vadd.s32 %v1720_v60, %v1718_v38  ;;  %1674 = vmin.xlane.f32.xlu2 %v1673_v44  ;;  %v1682_v38 = vcvt.s32.f32 %v1680_v27  ;;  %v1131_v47 = vadd.f32 %v1025_v34, %v8225_v30  ;;  %v1029_v27 = vmul.f32 0.6931472, %v3702_v25  ;;  %v8228_v34 = vld [vmem:[#allocation257_spill] sm:$0xff]  ;;  %v8229_v30 = vld [vmem:[#allocation127_spill] sm:$0xff]  ;;  %v8231_v25 = vld [vmem:[#allocation234_spill] sm:$0xff] }
 0x314   :  { %v1792_v51 = vand.u32 65535, %v8229_v30 }
 0x315   :  { %8221 = vst [vmem:[#allocation258_spill] sm:$0xff] %v5960_v23  ;;  %1978 = vmin.xlane.f32.xlu0 %v5962_v42  ;;  %vm2227_vm0 = vcmp.eq.s32.totalorder %v4111_v4, %v5960_v23  ;;  %v3014_v23 = vmul.f32 %v1130_v9, %v1130_v9  ;;  %v3015_v33 = vmul.f32 %v1131_v47, %v1131_v47  ;;  %v1041_v9 = vmul.f32 0.6931472, %v3706_v16 }
 0x316   :  { %3340 = vmatpush.xpose.msk.msrb.mxu2 %vm2227_vm0, %v8197_v29  ;;  %v1133_v7 = vadd.f32 %v1029_v27, %v8233_v20  ;;  %v8238_v27 = vld [vmem:[#allocation162_spill] sm:$0xff]  ;;  %v8239_v20 = vld [vmem:[#allocation80_spill] sm:$0xff] }
 0x317   :  { %v3141_v47 = vadd.f32 %v5805_v0, %v3014_v23  ;;  %v8237_v0 = vld [vmem:[#allocation176_spill] sm:$0xff]  ;;  %vm1588_vm5 = vcmp.eq.f32.partialorder %v8238_v27, %v5881_v22  ;;  %v1134_v30 = vadd.f32 %v1031_v53, %v8239_v20  ;;  %v1139_v59 = vadd.f32 %v1041_v9, %v8241_v45 }
 0x318   :  { %v1955_v60 = vpop.xlane.xlu0 %1954  ;;  %v5976_v17 = vpop.xlane.xlu1 %1684  ;;  %v8244_v27 = vld [vmem:[#allocation252_spill] sm:$0xff] }
 0x319   :  { %8224 = vst [vmem:[#allocation260_spill] sm:$0xff] %v5976_v17  ;;  %v5980_v44 = vpop.xlane.xlu2 %1558  ;;  %v1956_v49 = vcvt.f32.s32 %v1955_v60  ;;  %vm1686_vm2 = vcmp.eq.f32.partialorder %v5595_v13, %v5976_v17  ;;  %v2058_v60 = vand.u32 65535, %v8228_v34  ;;  %v8230_v13 = vld [vmem:[#allocation160_spill] sm:$0xff]  ;;  %v3142_v23 = vadd.f32 %v3141_v47, %v3015_v33  ;;  %v8243_v33 = vld [vmem:[#allocation35_spill] sm:$0xff] }
 0x31a   :  { %v1687_v12 = vsel %vm1686_vm2, %v1682_v38, inf  ;;  %3711 = vlog2.f32 %v8230_v13  ;;  %v2088_v38 = vcvt.s32.f32 %v2086_v63  ;;  %v3017_v63 = vmul.f32 %v1133_v7, %v1133_v7  ;;  %v8245_v45 = vld [vmem:[#allocation196_spill] sm:$0xff] }
 0x31b   :  { %v5986_v61 = vadd.s32 %v1958_v28, %v1956_v49  ;;  %1688 = vmin.xlane.f32.xlu1 %v1687_v12  ;;  %2122 = vmin.xlane.f32.xlu2 %v5720_v31  ;;  %v1132_v49 = vadd.f32 %v1027_v55, %v8231_v25  ;;  %v8232_v31 = vld [vmem:[#allocation100_spill] sm:$0xff]  ;;  %v3708_v12 = vpop.eup %3707  ;;  %v8236_v25 = vld [vmem:[#allocation233_spill] sm:$0xff]  ;;  %3713 = vlog2.f32 %v8237_v0  ;;  %v1943_v47 = vcvt.f32.s32 %v8243_v33  ;;  %v8247_v33 = vld [vmem:[#allocation18_spill] sm:$0xff] }
 0x31c   :  { %v1582_v28 = vand.u32 65535, %v8232_v31  ;;  %v3710_v16 = vpop.eup %3709  ;;  %v2072_v13 = vand.u32 65535, %v8236_v25  ;;  %v6013_v31 = vcvt.s32.f32 %v1792_v51  ;;  %3715 = vlog2.f32 %v8242_v36 }
 0x31d   :  { %8227 = vst [vmem:[#allocation231_spill] sm:$0xff] %v5986_v61  ;;  %1604 = vmin.xlane.f32.xlu0 %v5780_v46  ;;  %vm7687_vm3 = vcmp.eq.s32.totalorder %v4111_v4, %v5986_v61  ;;  %v8234_v46 = vld [vmem:[#allocation254_spill] sm:$0xff]  ;;  %v6010_v61 = vcvt.s32.f32 %v2058_v60  ;;  %v3016_v60 = vmul.f32 %v1132_v49, %v1132_v49  ;;  %v1033_v51 = vmul.f32 0.6931472, %v3708_v12 }
 0x31e   :  { %3355 = vmatpush.xpose.msk.msrb.mxu3 %vm7687_vm3, %v8197_v29  ;;  %v1584_v25 = vcvt.s32.f32 %v1582_v28  ;;  %v1035_v17 = vmul.f32 0.6931472, %v3710_v16  ;;  %v1694_v20 = vand.u32 65535, %v8244_v27  ;;  %v3018_v49 = vmul.f32 %v1134_v30, %v1134_v30  ;;  %v8246_v16 = vld [vmem:[#allocation207_spill] sm:$0xff] }
 0x31f   :  { %v3143_v9 = vadd.f32 %v3142_v23, %v3016_v60  ;;  %v6029_v28 = vcvt.s32.f32 %v2072_v13  ;;  %v6031_v12 = vmul.f32 %v1139_v59, %v1139_v59  ;;  %v8249_v27 = vld [vmem:[#allocation87_spill] sm:$0xff]  ;;  %v8250_v23 = vld [vmem:[#allocation33_spill] sm:$0xff]  ;;  %v8251_v13 = vld [vmem:[#allocation210_spill] sm:$0xff]  ;;  %v1944_v59 = vshll.u32 %v1943_v47, 16 }
 0x320   :  { %v6005_v15 = vpop.xlane.xlu0 %2076  ;;  %v6007_v55 = vpop.xlane.xlu1 %780  ;;  %v1589_v53 = vsel %vm1588_vm5, %v1584_v25, inf  ;;  %v8248_v25 = vld [vmem:[#allocation199_spill] sm:$0xff]  ;;  %v1136_v30 = vadd.f32 %v1035_v17, %v8250_v23  ;;  %v1696_v36 = vcvt.s32.f32 %v1694_v20  ;;  %v8254_v17 = vld [vmem:[#allocation136_spill] sm:$0xff] }
 0x321   :  { %8235 = vst [vmem:[#allocation119_spill] sm:$0xff] %v6007_v55  ;;  %v6019_v34 = vpop.xlane.xlu2 %782  ;;  %v3712_v57 = vpop.eup %3711  ;;  %vm2092_vm7 = vcmp.eq.f32.partialorder %v8248_v25, %v5904_v18 }
 0x322   :  { %8240 = vst [vmem:[#allocation257_spill] sm:$0xff] %v6019_v34  ;;  %3717 = vlog2.f32 %v6019_v34  ;;  %v6033_v7 = vmul.f32 0.6931472, %v3712_v57  ;;  %v3714_v34 = vpop.eup %3713  ;;  %v2093_v47 = vsel %vm2092_vm7, %v2088_v38, inf  ;;  %v3020_v62 = vmul.f32 %v1136_v30, %v1136_v30 }
 0x323   :  { %3719 = vlog2.f32 %v6007_v55  ;;  %2108 = vmin.xlane.f32.xlu2 %v5722_v11  ;;  %v1568_v55 = vand.u32 65535, %v8247_v33  ;;  %v3144_v11 = vadd.f32 %v3143_v9, %v3017_v63  ;;  %v3716_v60 = vpop.eup %3715  ;;  %v8253_v63 = vld [vmem:[#allocation212_spill] sm:$0xff] }
 0x324   :  { %3721 = vlog2.f32 %v8245_v45  ;;  %v1135_v45 = vadd.f32 %v1033_v51, %v8249_v27  ;;  %vm1574_vm9 = vcmp.eq.f32.partialorder %v8253_v63, %v5906_v14 }
 0x325   :  { %1590 = vmin.xlane.f32.xlu0 %v1589_v53  ;;  %3723 = vlog2.f32 %v8246_v16  ;;  %v8252_v16 = vld [vmem:[#allocation47_spill] sm:$0xff]  ;;  %v3145_v9 = vadd.f32 %v3144_v11, %v3018_v49  ;;  %v1570_v23 = vcvt.s32.f32 %v1568_v55  ;;  %v1043_v11 = vmul.f32 0.6931472, %v3714_v34  ;;  %v8259_v34 = vld [vmem:[#allocation141_spill] sm:$0xff] }
 0x326   :  { %3725 = vlog2.f32 %v8251_v13  ;;  %v1540_v0 = vand.u32 65535, %v8252_v16  ;;  %v3019_v13 = vmul.f32 %v1135_v45, %v1135_v45 }
 0x327   :  { %3727 = vlog2.f32 %v8256_v32  ;;  %v1575_v25 = vsel %vm1574_vm9, %v1570_v23, inf  ;;  %v1929_v23 = vcvt.f32.s32 %v8145_v10 }
 0x328   :  { %v1941_v53 = vpop.xlane.xlu0 %1940  ;;  %v6042_v57 = vpop.xlane.xlu1 %1698  ;;  %v3146_v38 = vadd.f32 %v3145_v9, %v3019_v13  ;;  %v8260_v9 = vld [vmem:[#allocation95_spill] sm:$0xff]  ;;  %v8268_v13 = vld [vmem:[#allocation165_spill] sm:$0xff] }
 0x329   :  { %v3718_v33 = vpop.eup %3717  ;;  %v1942_v22 = vcvt.f32.s32 %v1941_v53  ;;  %v6047_v42 = vpop.xlane.xlu2 %1782  ;;  %vm1700_vm10 = vcmp.eq.f32.partialorder %v8254_v17, %v6042_v57  ;;  %v1045_v53 = vmul.f32 0.6931472, %v3716_v60  ;;  %v1554_v60 = vand.u32 65535, %v8259_v34 }
 0x32a   :  { %v3720_v51 = vpop.eup %3719  ;;  %v1039_v27 = vmul.f32 0.6931472, %v3718_v33  ;;  %v1701_v20 = vsel %vm1700_vm10, %v1696_v36, inf  ;;  %v8257_v36 = vld [vmem:[#allocation48_spill] sm:$0xff]  ;;  %v8258_v33 = vld [vmem:[#allocation247_spill] sm:$0xff]  ;;  %3729 = vlog2.f32 %v8260_v9  ;;  %v1523_v9 = vcvt.f32.s32 %v5529_v2 }
 0x32b   :  { %v3722_v16 = vpop.eup %3721  ;;  %v1037_v48 = vmul.f32 0.6931472, %v3720_v51  ;;  %v6054_v50 = vadd.s32 %v1944_v59, %v1942_v22  ;;  %1702 = vmin.xlane.f32.xlu1 %v1701_v20  ;;  %2094 = vmin.xlane.f32.xlu2 %v2093_v47  ;;  %v6069_v59 = vcvt.s32.f32 %v1540_v0  ;;  %v8261_v51 = vld [vmem:[#allocation42_spill] sm:$0xff]  ;;  %v8262_v47 = vld [vmem:[#allocation51_spill] sm:$0xff]  ;;  %v1556_v34 = vcvt.s32.f32 %v1554_v60 }
 0x32c   :  { %v3724_v49 = vpop.eup %3723  ;;  %v1138_v55 = vadd.f32 %v1039_v27, %v8257_v36  ;;  %v1047_v30 = vmul.f32 0.6931472, %v3722_v16  ;;  %v1140_v27 = vadd.f32 %v1043_v11, %v8261_v51  ;;  %v1141_v20 = vadd.f32 %v1045_v53, %v8262_v47  ;;  %v8263_v16 = vld [vmem:[#allocation236_spill] sm:$0xff]  ;;  %v8264_v36 = vld [vmem:[#allocation117_spill] sm:$0xff]  ;;  %v8267_v51 = vld [vmem:[#allocation79_spill] sm:$0xff] }
 0x32d   :  { %8255 = vst [vmem:[#allocation127_spill] sm:$0xff] %v6054_v50  ;;  %v1137_v45 = vadd.f32 %v1037_v48, %v8258_v33  ;;  %1576 = vmin.xlane.f32.xlu0 %v1575_v25  ;;  %vm7686_vm11 = vcmp.eq.s32.totalorder %v4111_v4, %v6054_v50  ;;  %v3726_v22 = vpop.eup %3725  ;;  %v1051_v63 = vmul.f32 0.6931472, %v3724_v49  ;;  %v3147_v48 = vadd.f32 %v3146_v38, %v3020_v62  ;;  %v8265_v49 = vld [vmem:[#allocation163_spill] sm:$0xff]  ;;  %v8266_v53 = vld [vmem:[#allocation185_spill] sm:$0xff] }
 0x32e   :  { %3356 = vmatpush.xpose.msk.msrb.mxu3 %vm7686_vm11, %v8197_v29  ;;  %vm2078_vm12 = vcmp.eq.f32.partialorder %v8263_v16, %v6005_v15  ;;  %3731 = vlog2.f32 %v8264_v36  ;;  %vm1560_vm13 = vcmp.eq.f32.partialorder %v8265_v49, %v5980_v44  ;;  %v3022_v62 = vmul.f32 %v1138_v55, %v1138_v55  ;;  %v3728_v11 = vpop.eup %3727  ;;  %v8273_v49 = vld [vmem:[#allocation124_spill] sm:$0xff] }
 0x32f   :  { %v3021_v17 = vmul.f32 %v1137_v45, %v1137_v45  ;;  %3733 = vlog2.f32 %v8266_v53  ;;  %v1142_v10 = vadd.f32 %v1047_v30, %v8155_v39  ;;  %v1049_v45 = vmul.f32 0.6931472, %v3726_v22 }
 0x330   :  { %v6078_v25 = vpop.xlane.xlu0 %2062  ;;  %v6080_v0 = vpop.xlane.xlu1 %1506  ;;  %v1144_v47 = vadd.f32 %v1051_v63, %v8267_v51  ;;  %3735 = vlog2.f32 %v8268_v13  ;;  %v2079_v55 = vsel %vm2078_vm12, %v6029_v28, inf  ;;  %v1561_v39 = vsel %vm1560_vm13, %v1556_v34, inf  ;;  %v8270_v63 = vld [vmem:[#allocation205_spill] sm:$0xff] }
 0x331   :  { %v3148_v38 = vadd.f32 %v3147_v48, %v3021_v17  ;;  %v6085_v33 = vpop.xlane.xlu2 %1544  ;;  %v3024_v48 = vmul.f32 %v1140_v27, %v1140_v27  ;;  %v8269_v17 = vld [vmem:[#allocation186_spill] sm:$0xff]  ;;  %v3730_v22 = vpop.eup %3729  ;;  %v3025_v30 = vmul.f32 %v1141_v20, %v1141_v20  ;;  %v1930_v60 = vshll.u32 %v1929_v23, 16  ;;  %v8271_v27 = vld [vmem:[#allocation175_spill] sm:$0xff] }
 0x332   :  { %3737 = vlog2.f32 %v8269_v17  ;;  %v1053_v28 = vmul.f32 0.6931472, %v3728_v11  ;;  %v3026_v51 = vmul.f32 %v1142_v10, %v1142_v10  ;;  %v1055_v23 = vmul.f32 0.6931472, %v3730_v22 }
 0x333   :  { %v3149_v32 = vadd.f32 %v3148_v38, %v3022_v62  ;;  %1842 = vmin.xlane.f32.xlu1 %v5776_v19  ;;  %2080 = vmin.xlane.f32.xlu2 %v2079_v55  ;;  %3739 = vlog2.f32 %v8270_v63  ;;  %v1143_v19 = vadd.f32 %v1049_v45, %v8131_v40  ;;  %v8272_v62 = vld [vmem:[#allocation245_spill] sm:$0xff]  ;;  %v3028_v55 = vmul.f32 %v1144_v47, %v1144_v47 }
 0x334   :  { %3741 = vlog2.f32 %v8271_v27  ;;  %v1509_v2 = vcvt.f32.s32 %v8272_v62  ;;  %v3732_v38 = vpop.eup %3731  ;;  %v1524_v36 = vshll.u32 %v1523_v9, 16  ;;  %vm2064_vm14 = vcmp.eq.f32.partialorder %v5687_v21, %v6078_v25  ;;  %v8275_v9 = vld [vmem:[#allocation88_spill] sm:$0xff]  ;;  %v8279_v21 = vld [vmem:[#allocation38_spill] sm:$0xff] }
 0x335   :  { %v3150_v16 = vadd.f32 %v3149_v32, %v6031_v12  ;;  %1562 = vmin.xlane.f32.xlu0 %v1561_v39  ;;  %3743 = vlog2.f32 %v8273_v49  ;;  %v3734_v20 = vpop.eup %3733  ;;  %v1508_v32 = vcvt.f32.s32 %v6080_v0  ;;  %v8274_v39 = vld [vmem:[#allocation63_spill] sm:$0xff]  ;;  %v1057_v22 = vmul.f32 0.6931472, %v3732_v38 }
 0x336   :  { %v3736_v11 = vpop.eup %3735  ;;  %vm1546_vm15 = vcmp.eq.f32.partialorder %v8274_v39, %v6085_v33  ;;  %v1145_v13 = vadd.f32 %v1053_v28, %v8275_v9  ;;  %v1510_v27 = vshll.u32 %v1509_v2, 16  ;;  %v8278_v28 = vld [vmem:[#allocation81_spill] sm:$0xff] }
 0x337   :  { %v3151_v34 = vadd.f32 %v3150_v16, %v3024_v48  ;;  %v3027_v16 = vmul.f32 %v1143_v19, %v1143_v19  ;;  %v8277_v19 = vld [vmem:[#allocation93_spill] sm:$0xff]  ;;  %v1495_v2 = vcvt.f32.s32 %v8278_v28 }
 0x338   :  { %v1927_v40 = vpop.xlane.xlu0 %1926  ;;  %v1521_v12 = vpop.xlane.xlu1 %1520  ;;  %v1146_v38 = vadd.f32 %v1055_v23, %v8277_v19  ;;  %v8282_v23 = vand.u32 65535, %v5733_v6  ;;  %v8284_v9 = vld [vmem:[#allocation113_spill] sm:$0xff] }
 0x339   :  { %v3152_v45 = vadd.f32 %v3151_v34, %v3025_v30  ;;  %v1928_v10 = vcvt.f32.s32 %v1927_v40  ;;  %v6112_v47 = vpop.xlane.xlu2 %1768  ;;  %v1522_v62 = vcvt.f32.s32 %v1521_v12  ;;  %v3738_v48 = vpop.eup %3737  ;;  %v2065_v30 = vsel %vm2064_vm14, %v6010_v61, inf  ;;  %v8280_v61 = vld [vmem:[#allocation221_spill] sm:$0xff] }
 0x33a   :  { %v6115_v49 = vpop.eup %3739  ;;  %v1059_v40 = vmul.f32 0.6931472, %v3736_v11  ;;  %v6132_v12 = vadd.s32 %v1510_v27, %v1508_v32  ;;  %3745 = vlog2.f32 %v8280_v61  ;;  %v1528_v32 = vcvt.s32.f32 %v8282_v23  ;;  %v8289_v23 = vld [vmem:[#allocation56_spill] sm:$0xff] }
 0x33b   :  { %v3153_v0 = vadd.f32 %v3152_v45, %v3026_v51  ;;  %v6117_v63 = vadd.s32 %v1930_v60, %v1928_v10  ;;  %v6119_v17 = vadd.s32 %v1524_v36, %v1522_v62  ;;  %1828 = vmin.xlane.f32.xlu1 %v5813_v52  ;;  %v3742_v34 = vpop.eup %3741  ;;  %2066 = vmin.xlane.f32.xlu2 %v2065_v30  ;;  %v1547_v36 = vsel %vm1546_vm15, %v6069_v59, inf }
 0x33c   :  { %v3744_v60 = vpop.eup %3743  ;;  %v6140_v52 = vadd.f32 %v6033_v7, %v8279_v21  ;;  %v8281_v59 = vand.u32 65535, %v5730_v24  ;;  %v8283_v7 = vld [vmem:[#allocation106_spill] sm:$0xff]  ;;  %v3029_v45 = vmul.f32 %v1145_v13, %v1145_v13  ;;  %v1061_v39 = vmul.f32 0.6931472, %v3742_v34  ;;  %v8285_v24 = vld [vmem:[#allocation201_spill] sm:$0xff] }
 0x33d   :  { %8276 = vst [vmem:[#allocation234_spill] sm:$0xff] %v6117_v63  ;;  %v3154_v51 = vadd.f32 %v3153_v0, %v3027_v16  ;;  %1548 = vmin.xlane.f32.xlu0 %v1547_v36  ;;  %vm2213_vm1 = vcmp.eq.s32.totalorder %v4111_v4, %v6119_v17  ;;  %vm7685_vm2 = vcmp.eq.s32.totalorder %v4111_v4, %v6117_v63  ;;  %v1063_v16 = vmul.f32 0.6931472, %v3744_v60 }
 0x33e   :  { %3322 = vmatpush.xpose.msk.msrb.mxu1 %vm2213_vm1, %v8197_v29  ;;  %3357 = vmatpush.xpose.msk.msrb.mxu3 %vm7685_vm2, %v8197_v29  ;;  %v2046_v27 = vcvt.s32.f32 %v8281_v59  ;;  %v1147_v11 = vadd.f32 %v1057_v22, %v8283_v7  ;;  %v3030_v62 = vmul.f32 %v1146_v38, %v1146_v38  ;;  %v1148_v0 = vadd.f32 %v1059_v40, %v8284_v9  ;;  %v8286_v22 = vld [vmem:[#allocation116_spill] sm:$0xff]  ;;  %v8287_v40 = vld [vmem:[#allocation118_spill] sm:$0xff] }
 0x33f   :  { %v3155_v10 = vadd.f32 %v3154_v51, %v3028_v55  ;;  %v1496_v30 = vshll.u32 %v1495_v2, 16  ;;  %vm2212_vm7 = vcmp.eq.s32.totalorder %v4111_v4, %v6132_v12  ;;  %v1067_v13 = vmul.f32 0.6931472, %v3734_v20 }
 0x340   :  { %v6157_v19 = vpop.xlane.xlu0 %2048  ;;  %v1493_v28 = vpop.xlane.xlu1 %1492  ;;  %v1915_v55 = vcvt.f32.s32 %v8162_v8  ;;  %v3031_v38 = vmul.f32 %v1147_v11, %v1147_v11  ;;  %v1149_v2 = vadd.f32 %v1061_v39, %v8287_v40  ;;  %v1069_v59 = vmul.f32 0.6931472, %v3738_v48  ;;  %v8288_v8 = vld [vmem:[#allocation216_spill] sm:$0xff]  ;;  %v8291_v11 = vld [vmem:[#allocation50_spill] sm:$0xff] }
 0x341   :  { %v3156_v36 = vadd.f32 %v3155_v10, %v3029_v45  ;;  %vm2050_vm5 = vcmp.eq.f32.partialorder %v8285_v24, %v6157_v19  ;;  %v6161_v21 = vpop.xlane.xlu2 %1530  ;;  %v1494_v6 = vcvt.f32.s32 %v1493_v28  ;;  %v3746_v20 = vpop.eup %3745  ;;  %3747 = vlog2.f32 %v8288_v8  ;;  %v8290_v10 = vld [vmem:[#allocation126_spill] sm:$0xff] }
 0x342   :  { %vm1532_vm9 = vcmp.eq.f32.partialorder %v8286_v22, %v6161_v21  ;;  %3323 = vmatpush.xpose.msk.msrb.mxu1 %vm2212_vm7, %v8197_v29  ;;  %v2051_v34 = vsel %vm2050_vm5, %v2046_v27, inf  ;;  %v2195_v7 = vcvt.f32.s32 %v8289_v23  ;;  %v1150_v9 = vadd.f32 %v1063_v16, %v8290_v10 }
 0x343   :  { %v3157_v60 = vadd.f32 %v3156_v36, %v3030_v62  ;;  %v6173_v51 = vadd.s32 %v1496_v30, %v1494_v6  ;;  %1814 = vmin.xlane.f32.xlu1 %v5926_v26  ;;  %2052 = vmin.xlane.f32.xlu2 %v2051_v34  ;;  %v1533_v45 = vsel %vm1532_vm9, %v1528_v32, inf  ;;  %v3032_v28 = vmul.f32 %v1148_v0, %v1148_v0  ;;  %v8292_v26 = vld [vmem:[#allocation20_spill] sm:$0xff]  ;;  %v8293_v32 = vld [vmem:[#allocation138_spill] sm:$0xff]  ;;  %v8294_v0 = vld [vmem:[#allocation53_spill] sm:$0xff] }
 0x344   :  { %v1152_v39 = vadd.f32 %v1067_v13, %v8291_v11  ;;  %v1916_v62 = vshll.u32 %v1915_v55, 16  ;;  %3749 = vlog2.f32 %v8292_v26  ;;  %v1481_v48 = vcvt.f32.s32 %v5549_v3  ;;  %v8295_v36 = vld [vmem:[#allocation58_spill] sm:$0xff]  ;;  %v8296_v13 = vld [vmem:[#allocation239_spill] sm:$0xff] }
 0x345   :  { %v3158_v27 = vadd.f32 %v3157_v60, %v3031_v38  ;;  %1534 = vmin.xlane.f32.xlu0 %v1533_v45  ;;  %vm2211_vm10 = vcmp.eq.s32.totalorder %v4111_v4, %v6173_v51  ;;  %3751 = vlog2.f32 %v8293_v32  ;;  %v3033_v16 = vmul.f32 %v1149_v2, %v1149_v2  ;;  %v8309_v32 = vld [vmem:[#allocation94_spill] sm:$0xff] }
 0x346   :  { %3324 = vmatpush.xpose.msk.msrb.mxu1 %vm2211_vm10, %v8197_v29  ;;  %vm1798_vm12 = vcmp.eq.f32.partialorder %v8294_v0, %v5957_v41  ;;  %v1153_v24 = vadd.f32 %v1069_v59, %v8295_v36  ;;  %v1071_v6 = vmul.f32 0.6931472, %v6115_v49  ;;  %3753 = vlog2.f32 %v8296_v13  ;;  %v8300_v0 = vld [vmem:[#allocation59_spill] sm:$0xff] }
 0x347   :  { %v3159_v30 = vadd.f32 %v3158_v27, %v3032_v28  ;;  %v2196_v55 = vshll.u32 %v2195_v7, 16  ;;  %v3034_v34 = vmul.f32 %v1150_v9, %v1150_v9  ;;  %v3748_v45 = vpop.eup %3747  ;;  %v1073_v2 = vmul.f32 0.6931472, %v3746_v20 }
 0x348   :  { %v1913_v3 = vpop.xlane.xlu0 %1912  ;;  %v2193_v22 = vpop.xlane.xlu1 %2192  ;;  %v1482_v10 = vshll.u32 %v1481_v48, 16  ;;  %v1799_v59 = vsel %vm1798_vm12, %v6013_v31, inf  ;;  %v3035_v49 = vmul.f32 %v6140_v52, %v6140_v52  ;;  %v2030_v48 = vand.u32 65535, %v5792_v5 }
 0x349   :  { %v3160_v38 = vadd.f32 %v3159_v30, %v3033_v16  ;;  %v1914_v40 = vcvt.f32.s32 %v1913_v3  ;;  %v1479_v60 = vpop.xlane.xlu2 %1478  ;;  %v2194_v23 = vcvt.f32.s32 %v2193_v22  ;;  %v3036_v16 = vmul.f32 %v1152_v39, %v1152_v39  ;;  %v8299_v30 = vld [vmem:[#allocation77_spill] sm:$0xff]  ;;  %v8303_v39 = vld [vmem:[#allocation130_spill] sm:$0xff] }
 0x34a   :  { %v1480_v11 = vcvt.f32.s32 %v1479_v60  ;;  %v3750_v27 = vpop.eup %3749  ;;  %3755 = vlog2.f32 %v8299_v30  ;;  %v1154_v31 = vadd.f32 %v1071_v6, %v8300_v0  ;;  %v1075_v3 = vmul.f32 0.6931472, %v3748_v45 }
 0x34b   :  { %v3161_v7 = vadd.f32 %v3160_v38, %v3034_v34  ;;  %v6200_v28 = vadd.s32 %v1916_v62, %v1914_v40  ;;  %v6202_v9 = vadd.s32 %v2196_v55, %v2194_v23  ;;  %1800 = vmin.xlane.f32.xlu1 %v1799_v59  ;;  %v3752_v36 = vpop.eup %3751  ;;  %v3037_v62 = vmul.f32 %v1153_v24, %v1153_v24  ;;  %v8301_v55 = vld [vmem:[#allocation71_spill] sm:$0xff]  ;;  %v8302_v38 = vld [vmem:[#allocation244_spill] sm:$0xff] }
 0x34c   :  { %v6205_v20 = vadd.s32 %v1482_v10, %v1480_v11  ;;  %v3754_v52 = vpop.eup %3753  ;;  %v1155_v34 = vadd.f32 %v1073_v2, %v8301_v55  ;;  %3757 = vlog2.f32 %v8302_v38  ;;  %v1077_v5 = vmul.f32 0.6931472, %v3750_v27  ;;  %v8304_v40 = vld [vmem:[#allocation256_spill] sm:$0xff]  ;;  %v8306_v11 = vld [vmem:[#allocation22_spill] sm:$0xff]  ;;  %v8317_v38 = vld [vmem:[#allocation191_spill] sm:$0xff] }
 0x34d   :  { %8297 = vst [vmem:[#allocation100_spill] sm:$0xff] %v6200_v28  ;;  %v3162_v22 = vadd.f32 %v3161_v7, %v3035_v49  ;;  %vm7684_vm13 = vcmp.eq.s32.totalorder %v4111_v4, %v6200_v28  ;;  %3759 = vlog2.f32 %v8303_v39  ;;  %vm1784_vm15 = vcmp.eq.f32.partialorder %v8304_v40, %v6047_v42  ;;  %v8307_v7 = vld [vmem:[#allocation86_spill] sm:$0xff]  ;;  %v8318_v39 = vld [vmem:[#allocation125_spill] sm:$0xff] }
 0x34e   :  { %8298 = vst [vmem:[#allocation235_spill] sm:$0xff] %v6202_v9  ;;  %vm2210_vm14 = vcmp.eq.s32.totalorder %v4111_v4, %v6205_v20  ;;  %3358 = vmatpush.xpose.msk.msrb.mxu3 %vm7684_vm13, %v8197_v29  ;;  %v1079_v24 = vmul.f32 0.6931472, %v3752_v36  ;;  %v8305_v45 = vand.u32 65535, %v8234_v46  ;;  %v2032_v10 = vcvt.s32.f32 %v2030_v48  ;;  %v8308_v55 = vld [vmem:[#allocation134_spill] sm:$0xff] }
 0x34f   :  { %v3163_v6 = vadd.f32 %v3162_v22, %v3036_v16  ;;  %3325 = vmatpush.xpose.msk.msrb.mxu1 %vm2210_vm14, %v8197_v29  ;;  %v1764_v59 = vand.u32 65535, %v8306_v11  ;;  %v3038_v49 = vmul.f32 %v1154_v31, %v1154_v31  ;;  %v1156_v27 = vadd.f32 %v1075_v3, %v8307_v7  ;;  %v8310_v31 = vld [vmem:[#allocation157_spill] sm:$0xff]  ;;  %v8377_v28 = vld [vmem:[#allocation62_spill] sm:$0xff] }
 0x350   :  { %v6226_v60 = vpop.xlane.xlu0 %1754  ;;  %v6228_v23 = vpop.xlane.xlu1 %2034  ;;  %v1780_v2 = vcvt.s32.f32 %v8305_v45  ;;  %v1081_v36 = vmul.f32 0.6931472, %v3754_v52  ;;  %3761 = vlog2.f32 %v8308_v55  ;;  %v3039_v48 = vmul.f32 %v1155_v34, %v1155_v34 }
 0x351   :  { %v3164_v16 = vadd.f32 %v3163_v6, %v3037_v62  ;;  %v1885_v0 = vpop.xlane.xlu2 %1884  ;;  %vm2036_vm5 = vcmp.eq.f32.partialorder %v5817_v1, %v6228_v23  ;;  %v3756_v22 = vpop.eup %3755  ;;  %v1157_v11 = vadd.f32 %v1077_v5, %v8309_v32  ;;  %3763 = vlog2.f32 %v8310_v31  ;;  %v8311_v6 = vld [vmem:[#allocation166_spill] sm:$0xff]  ;;  %v8313_v32 = vld [vmem:[#allocation248_spill] sm:$0xff] }
 0x352   :  { %v1785_v46 = vsel %vm1784_vm15, %v1780_v2, inf  ;;  %v2037_v45 = vsel %vm2036_vm5, %v2032_v10, inf  ;;  %v3758_v62 = vpop.eup %3757  ;;  %3765 = vlog2.f32 %v8311_v6  ;;  %v1901_v1 = vcvt.f32.s32 %v8181_v56 }
 0x353   :  { %v3165_v3 = vadd.f32 %v3164_v16, %v3038_v49  ;;  %1786 = vmin.xlane.f32.xlu1 %v1785_v46  ;;  %2038 = vmin.xlane.f32.xlu2 %v2037_v45  ;;  %v1158_v52 = vadd.f32 %v1079_v24, %v8216_v54  ;;  %v8312_v7 = vand.u32 65535, %v5786_v37  ;;  %v3760_v2 = vpop.eup %3759  ;;  %v3040_v34 = vmul.f32 %v1156_v27, %v1156_v27  ;;  %v8314_v37 = vld [vmem:[#allocation219_spill] sm:$0xff]  ;;  %v8315_v27 = vld [vmem:[#allocation189_spill] sm:$0xff] }
 0x354   :  { %v1083_v10 = vmul.f32 0.6931472, %v3756_v22  ;;  %3767 = vlog2.f32 %v8313_v32  ;;  %v1887_v49 = vcvt.f32.s32 %v8171_v58  ;;  %v1159_v16 = vadd.f32 %v1081_v36, %v8198_v35  ;;  %v8316_v35 = vld [vmem:[#allocation120_spill] sm:$0xff] }
 0x355   :  { %v6247_v40 = vcvt.s32.f32 %v8312_v7  ;;  %v3166_v5 = vadd.f32 %v3165_v3, %v3039_v48  ;;  %v1766_v46 = vcvt.s32.f32 %v1764_v59  ;;  %v2016_v45 = vand.u32 65535, %v5843_v43 }
 0x356   :  { %v3041_v56 = vmul.f32 %v1157_v11, %v1157_v11  ;;  %v1085_v13 = vmul.f32 0.6931472, %v3758_v62  ;;  %vm1770_vm9 = vcmp.eq.f32.partialorder %v8314_v37, %v6112_v47  ;;  %v3762_v24 = vpop.eup %3761  ;;  %v1902_v7 = vshll.u32 %v1901_v1, 16  ;;  %v8324_v37 = vld [vmem:[#allocation227_spill] sm:$0xff] }
 0x357   :  { %v3167_v54 = vadd.f32 %v3166_v5, %v3040_v34  ;;  %3769 = vlog2.f32 %v8315_v27  ;;  %v3042_v22 = vmul.f32 %v1158_v52, %v1158_v52  ;;  %v1087_v30 = vmul.f32 0.6931472, %v3760_v2  ;;  %v3764_v58 = vpop.eup %3763  ;;  %v8343_v27 = vld [vmem:[#allocation161_spill] sm:$0xff] }
 0x358   :  { %v1899_v48 = vpop.xlane.xlu0 %1898  ;;  %v6256_v3 = vpop.xlane.xlu1 %2178  ;;  %v1160_v59 = vadd.f32 %v1083_v10, %v8316_v35  ;;  %v1886_v36 = vcvt.f32.s32 %v1885_v0  ;;  %v1888_v5 = vshll.u32 %v1887_v49, 16  ;;  %3771 = vlog2.f32 %v8317_v38  ;;  %v8320_v10 = vld [vmem:[#allocation209_spill] sm:$0xff]  ;;  %v8322_v49 = vld [vmem:[#allocation242_spill] sm:$0xff] }
 0x359   :  { %v1900_v43 = vcvt.f32.s32 %v1899_v48  ;;  %v6259_v11 = vpop.xlane.xlu2 %2006  ;;  %v3168_v62 = vadd.f32 %v3167_v54, %v3041_v56  ;;  %v3766_v34 = vpop.eup %3765  ;;  %v3043_v1 = vmul.f32 %v1159_v16, %v1159_v16  ;;  %v1771_v52 = vsel %vm1770_vm9, %v1766_v46, inf  ;;  %v8321_v56 = vld [vmem:[#allocation133_spill] sm:$0xff] }
 0x35a   :  { %v3768_v2 = vpop.eup %3767  ;;  %v1161_v55 = vadd.f32 %v1085_v13, %v8318_v39  ;;  %v1089_v31 = vmul.f32 0.6931472, %v3762_v24  ;;  %3773 = vlog2.f32 %v8320_v10  ;;  %v1162_v54 = vadd.f32 %v1087_v30, %v8321_v56  ;;  %v8329_v56 = vld [vmem:[#allocation30_spill] sm:$0xff] }
 0x35b   :  { %v6266_v32 = vadd.s32 %v1902_v7, %v1900_v43  ;;  %1772 = vmin.xlane.f32.xlu1 %v1771_v52  ;;  %v3169_v0 = vadd.f32 %v3168_v62, %v3042_v22  ;;  %v1467_v48 = vcvt.f32.s32 %v8322_v49  ;;  %v1091_v35 = vmul.f32 0.6931472, %v3764_v58  ;;  %v8325_v22 = vld [vmem:[#allocation135_spill] sm:$0xff]  ;;  %v8327_v62 = vld [vmem:[#allocation222_spill] sm:$0xff] }
 0x35c   :  { %v3044_v16 = vmul.f32 %v1160_v59, %v1160_v59  ;;  %v6271_v6 = vadd.s32 %v1888_v5, %v1886_v36  ;;  %v1095_v39 = vmul.f32 0.6931472, %v3766_v34  ;;  %3775 = vlog2.f32 %v8324_v37  ;;  %v8326_v59 = vld [vmem:[#allocation190_spill] sm:$0xff]  ;;  %v8334_v37 = vld [vmem:[#allocation203_spill] sm:$0xff] }
 0x35d   :  { %8319 = vst [vmem:[#allocation254_spill] sm:$0xff] %v6266_v32  ;;  %vm7683_vm12 = vcmp.eq.s32.totalorder %v4111_v4, %v6266_v32  ;;  %v3170_v46 = vadd.f32 %v3169_v0, %v3043_v1  ;;  %v3770_v13 = vpop.eup %3769  ;;  %v1093_v24 = vmul.f32 0.6931472, %v3768_v2  ;;  %v2018_v30 = vcvt.s32.f32 %v2016_v45  ;;  %v8328_v1 = vld [vmem:[#allocation140_spill] sm:$0xff] }
 0x35e   :  { %8323 = vst [vmem:[#allocation233_spill] sm:$0xff] %v6271_v6  ;;  %3359 = vmatpush.xpose.msk.msrb.mxu3 %vm7683_vm12, %v8197_v29  ;;  %v3045_v7 = vmul.f32 %v1161_v55, %v1161_v55  ;;  %v1163_v58 = vadd.f32 %v1089_v31, %v8325_v22  ;;  %vm1756_vm15 = vcmp.eq.f32.partialorder %v8326_v59, %v6226_v60  ;;  %v3772_v43 = vpop.eup %3771  ;;  %3777 = vlog2.f32 %v8327_v62  ;;  %v8374_v32 = vld [vmem:[#allocation260_spill] sm:$0xff] }
 0x35f   :  { %v3171_v36 = vadd.f32 %v3170_v46, %v3044_v16  ;;  %v3046_v34 = vmul.f32 %v1162_v54, %v1162_v54  ;;  %v1468_v5 = vshll.u32 %v1467_v48, 16  ;;  %v1164_v52 = vadd.f32 %v1091_v35, %v8328_v1  ;;  %v8330_v16 = vld [vmem:[#allocation147_spill] sm:$0xff]  ;;  %v8331_v35 = vld [vmem:[#allocation85_spill] sm:$0xff] }
 0x360   :  { %v6285_v2 = vpop.xlane.xlu0 %2020  ;;  %v1465_v0 = vpop.xlane.xlu1 %1464  ;;  %vm7681_vm9 = vcmp.eq.s32.totalorder %v4111_v4, %v6271_v6  ;;  %v1097_v49 = vmul.f32 0.6931472, %v3770_v13  ;;  %v1165_v46 = vadd.f32 %v1093_v24, %v8330_v16  ;;  %v1757_v48 = vsel %vm1756_vm15, %v6247_v40, inf }
 0x361   :  { %vm2022_vm5 = vcmp.eq.f32.partialorder %v8329_v56, %v6285_v2  ;;  %v1466_v55 = vcvt.f32.s32 %v1465_v0  ;;  %v3172_v31 = vadd.f32 %v3171_v36, %v3045_v7  ;;  %v3774_v45 = vpop.eup %3773  ;;  %3779 = vlog2.f32 %v8331_v35  ;;  %v6301_v1 = vpop.xlane.xlu2 %2150  ;;  %v8332_v36 = vld [vmem:[#allocation44_spill] sm:$0xff]  ;;  %v8335_v35 = vld [vmem:[#allocation57_spill] sm:$0xff] }
 0x362   :  { %3360 = vmatpush.xpose.msk.msrb.mxu3 %vm7681_vm9, %v8197_v29  ;;  %v2023_v54 = vsel %vm2022_vm5, %v2018_v30, inf  ;;  %v3047_v22 = vmul.f32 %v1163_v58, %v1163_v58  ;;  %v3776_v24 = vpop.eup %3775  ;;  %v1166_v0 = vadd.f32 %v1095_v39, %v8332_v36  ;;  %v1099_v56 = vmul.f32 0.6931472, %v3772_v43  ;;  %v8333_v30 = vld [vmem:[#allocation102_spill] sm:$0xff] }
 0x363   :  { %v6303_v7 = vadd.s32 %v1468_v5, %v1466_v55  ;;  %2024 = vmin.xlane.f32.xlu0 %v2023_v54  ;;  %1758 = vmin.xlane.f32.xlu1 %v1757_v48  ;;  %v3173_v13 = vadd.f32 %v3172_v31, %v3046_v34  ;;  %v2002_v16 = vand.u32 65535, %v8333_v30  ;;  %v1873_v62 = vcvt.f32.s32 %v8334_v37  ;;  %v8336_v55 = vld [vmem:[#allocation37_spill] sm:$0xff]  ;;  %v8337_v34 = vld [vmem:[#allocation155_spill] sm:$0xff] }
 0x364   :  { %v3048_v59 = vmul.f32 %v1164_v52, %v1164_v52  ;;  %v3778_v58 = vpop.eup %3777  ;;  %v1167_v5 = vadd.f32 %v1097_v49, %v8335_v35  ;;  %3781 = vlog2.f32 %v8336_v55  ;;  %v1101_v39 = vmul.f32 0.6931472, %v3774_v45  ;;  %v8338_v35 = vld [vmem:[#allocation64_spill] sm:$0xff] }
 0x365   :  { %vm2209_vm15 = vcmp.eq.s32.totalorder %v4111_v4, %v6303_v7  ;;  %v3174_v40 = vadd.f32 %v3173_v13, %v3047_v22  ;;  %v3049_v43 = vmul.f32 %v1165_v46, %v1165_v46  ;;  %vm2008_vm5 = vcmp.eq.f32.partialorder %v8337_v34, %v6259_v11  ;;  %v8339_v46 = vld [vmem:[#allocation65_spill] sm:$0xff] }
 0x366   :  { %3326 = vmatpush.xpose.msk.msrb.mxu1 %vm2209_vm15, %v8197_v29  ;;  %v3050_v52 = vmul.f32 %v1166_v0, %v1166_v0  ;;  %v1103_v31 = vmul.f32 0.6931472, %v3776_v24  ;;  %v2004_v22 = vcvt.s32.f32 %v2002_v16  ;;  %v1168_v13 = vadd.f32 %v1099_v56, %v8338_v35  ;;  %v8342_v16 = vld [vmem:[#allocation241_spill] sm:$0xff] }
 0x367   :  { %v3175_v37 = vadd.f32 %v3174_v40, %v3048_v59  ;;  %v3780_v49 = vpop.eup %3779  ;;  %v1874_v36 = vshll.u32 %v1873_v62, 16  ;;  %v1105_v61 = vmul.f32 0.6931472, %v3778_v58  ;;  %v3051_v45 = vmul.f32 %v1167_v5, %v1167_v5  ;;  %v8341_v59 = vld [vmem:[#allocation78_spill] sm:$0xff]  ;;  %v8344_v5 = vld [vmem:[#allocation92_spill] sm:$0xff] }
 0x368   :  { %v6318_v54 = vpop.xlane.xlu0 %2164  ;;  %v1871_v48 = vpop.xlane.xlu1 %1870  ;;  %v2009_v8 = vsel %vm2008_vm5, %v2004_v22, inf  ;;  %v1169_v26 = vadd.f32 %v1101_v39, %v8339_v46  ;;  %v1170_v40 = vadd.f32 %v1103_v31, %v8341_v59  ;;  %v1107_v34 = vmul.f32 0.6931472, %v3780_v49 }
 0x369   :  { %v1872_v30 = vcvt.f32.s32 %v1871_v48  ;;  %v3176_v55 = vadd.f32 %v3175_v37, %v3049_v43  ;;  %v1453_v38 = vcvt.f32.s32 %v8342_v16  ;;  %v1988_v56 = vand.u32 65535, %v8343_v27  ;;  %v1437_v48 = vpop.xlane.xlu2 %1436  ;;  %v8346_v27 = vld [vmem:[#allocation101_spill] sm:$0xff] }
 0x36a   :  { %v3782_v24 = vpop.eup %3781  ;;  %v3052_v62 = vmul.f32 %v1168_v13, %v1168_v13  ;;  %v1171_v39 = vadd.f32 %v1105_v61, %v8344_v5  ;;  %v3054_v31 = vmul.f32 %v1170_v40, %v1170_v40  ;;  %v1172_v22 = vadd.f32 %v1107_v34, %v8346_v27  ;;  %v8348_v16 = vld [vmem:[#allocation105_spill] sm:$0xff] }
 0x36b   :  { %v6322_v10 = vadd.s32 %v1874_v36, %v1872_v30  ;;  %2010 = vmin.xlane.f32.xlu1 %v2009_v8  ;;  %v3177_v0 = vadd.f32 %v3176_v55, %v3050_v52  ;;  %v3053_v8 = vmul.f32 %v1169_v26, %v1169_v26  ;;  %v8345_v55 = vld [vmem:[#allocation74_spill] sm:$0xff]  ;;  %v1109_v37 = vmul.f32 0.6931472, %v3782_v24 }
 0x36c   :  { %v1439_v43 = vcvt.f32.s32 %v8345_v55  ;;  %v1454_v49 = vshll.u32 %v1453_v38, 16  ;;  %v1990_v36 = vcvt.s32.f32 %v1988_v56  ;;  %v1438_v30 = vcvt.f32.s32 %v1437_v48  ;;  %v8349_v48 = vld [vmem:[#allocation68_spill] sm:$0xff] }
 0x36d   :  { %8340 = vst [vmem:[#allocation162_spill] sm:$0xff] %v6322_v10  ;;  %vm7682_vm5 = vcmp.eq.s32.totalorder %v4111_v4, %v6322_v10  ;;  %v3178_v58 = vadd.f32 %v3177_v0, %v3051_v45  ;;  %v8347_v45 = vld [vmem:[#allocation164_spill] sm:$0xff]  ;;  %v3055_v0 = vmul.f32 %v1171_v39, %v1171_v39  ;;  %v1173_v24 = vadd.f32 %v1109_v37, %v8348_v16 }
 0x36e   :  { %3361 = vmatpush.xpose.msk.msrb.mxu3 %vm7682_vm5, %v8197_v29  ;;  %v1440_v59 = vshll.u32 %v1439_v43, 16  ;;  %v3056_v38 = vmul.f32 %v1172_v22, %v1172_v22  ;;  %v8350_v43 = vld [vmem:[#allocation36_spill] sm:$0xff]  ;;  %vm3191_vm2 = vcmask 0   ;;  %v1691_v53 = vcvt.f32.s32 %v8374_v32 }
 0x36f   :  { %v3179_v52 = vadd.f32 %v3178_v58, %v3052_v62  ;;  %v1411_v58 = vcvt.f32.s32 %v8349_v48  ;;  %v3057_v5 = vmul.f32 %v1173_v24, %v1173_v24  ;;  %v1410_v37 = vcvt.f32.s32 %v8350_v43 }
 0x370   :  { %v1451_v35 = vpop.xlane.xlu0 %1450  ;;  %v6336_v13 = vpop.xlane.xlu1 %1992  ;;  %v6343_v34 = vadd.s32 %v1440_v59, %v1438_v30  ;;  %v8355_v59 = vld [vmem:[#allocation220_spill] sm:$0xff]  ;;  %v1692_v63 = vshll.u32 %v1691_v53, 16 }
 0x371   :  { %v1452_v61 = vcvt.f32.s32 %v1451_v35  ;;  %vm1994_vm9 = vcmp.eq.f32.partialorder %v8347_v45, %v6336_v13  ;;  %v3180_v46 = vadd.f32 %v3179_v52, %v3053_v8  ;;  %v6352_v39 = vpop.xlane.xlu2 %1618  ;;  %v1412_v22 = vshll.u32 %v1411_v58, 16  ;;  %v8352_v35 = vld [vmem:[#allocation142_spill] sm:$0xff] }
 0x372   :  { %v1995_v26 = vsel %vm1994_vm9, %v1990_v36, inf  ;;  %vm2207_vm9 = vcmp.eq.s32.totalorder %v4111_v4, %v6343_v34  ;;  %v1859_v36 = vcvt.f32.s32 %v8352_v35  ;;  %v1383_v16 = vcvt.f32.s32 %v8355_v59  ;;  %v8361_v59 = vld [vmem:[#allocation183_spill] sm:$0xff] }
 0x373   :  { %v6341_v62 = vadd.s32 %v1454_v49, %v1452_v61  ;;  %1996 = vmin.xlane.f32.xlu2 %v1995_v26  ;;  %v3181_v40 = vadd.f32 %v3180_v46, %v3054_v31  ;;  %v8351_v31 = vld [vmem:[#allocation211_spill] sm:$0xff]  ;;  %v6365_v30 = vadd.s32 %v1412_v22, %v1410_v37  ;;  %v8353_v61 = vld [vmem:[#allocation229_spill] sm:$0xff]  ;;  %v8354_v46 = vld [vmem:[#allocation132_spill] sm:$0xff] }
 0x374   :  { %v1397_v27 = vcvt.f32.s32 %v8351_v31  ;;  %v1396_v45 = vcvt.f32.s32 %v8353_v61  ;;  %vm2206_vm12 = vcmp.eq.s32.totalorder %v4111_v4, %v8354_v46  ;;  %v8357_v37 = vld [vmem:[#allocation206_spill] sm:$0xff]  ;;  %v1384_v31 = vshll.u32 %v1383_v16, 16  ;;  %v8360_v61 = vld [vmem:[#allocation99_spill] sm:$0xff] }
 0x375   :  { %vm2208_vm5 = vcmp.eq.s32.totalorder %v4111_v4, %v6341_v62  ;;  %v3182_v56 = vadd.f32 %v3181_v40, %v3055_v0  ;;  %vm7734_vm13 = vcmp.eq.s32.totalorder %v4111_v4, %v6365_v30  ;;  %v1355_v16 = vcvt.f32.s32 %v8361_v59 }
 0x376   :  { %3327 = vmatpush.xpose.msk.msrb.mxu1 %vm2208_vm5, %v8197_v29  ;;  %v1398_v26 = vshll.u32 %v1397_v27, 16  ;;  %v1999_v62 = vcvt.f32.s32 %v6336_v13 }
 0x377   :  { %v3183_v8 = vadd.f32 %v3182_v56, %v3056_v38  ;;  %v1860_v38 = vshll.u32 %v1859_v36, 16  ;;  %v8356_v56 = vld [vmem:[#allocation97_spill] sm:$0xff] }
 0x378   :  { %v6354_v55 = vpop.xlane.xlu0 %1632  ;;  %v1382_v48 = vcvt.f32.s32 %v8356_v56  ;;  %v6390_v36 = vpop.xlane.xlu1 %2136  ;;  %v2000_v13 = vshll.u32 %v1999_v62, 16  ;;  %v8448_v62 = vld [vmem:[#allocation162_spill] sm:$0xff] }
 0x379   :  { %v3184_v52 = vadd.f32 %v3183_v8, %v3057_v5  ;;  %v6378_v5 = vadd.s32 %v1398_v26, %v1396_v45  ;;  %v1974_v45 = vand.u32 65535, %v8360_v61 }
 0x37a   :  { %3328 = vmatpush.xpose.msk.msrb.mxu1 %vm2207_vm9, %v8197_v29  ;;  %v6393_v26 = vadd.s32 %v1384_v31, %v1382_v48  ;;  %v8365_v31 = vld [vmem:[#allocation172_spill] sm:$0xff] }
 0x37b   :  { %v3185_v49 = vrot.slane %v3184_v52, 4  ;;  %vm7689_vm11 = vcmp.eq.s32.totalorder %v4111_v4, %v6378_v5  ;;  %v1976_v48 = vcvt.s32.f32 %v1974_v45 }
 0x37d   :  { %v3186_v0 = vadd.f32 %v3185_v49, %v3184_v52  ;;  %v1369_v52 = vcvt.f32.s32 %v8357_v37  ;;  %v8359_v49 = vld [vmem:[#allocation39_spill] sm:$0xff] }
 0x37e   :  { %3329 = vmatpush.xpose.msk.msrb.mxu1 %vm2206_vm12, %v8197_v29  ;;  %v6375_v24 = vpop.xlane.xlu2 %1660  ;;  %v1368_v35 = vcvt.f32.s32 %v8359_v49  ;;  %v8364_v37 = vld [vmem:[#allocation259_spill] sm:$0xff]  ;;  %v1356_v49 = vshll.u32 %v1355_v16, 16  ;;  %v8368_v16 = vld [vmem:[#allocation46_spill] sm:$0xff] }
 0x37f   :  { %v3187_v40 = vrot.slane %v3186_v0, 2 }
 0x380   :  { %v1857_v58 = vpop.xlane.xlu0 %1856 }
 0x381   :  { %v1858_v8 = vcvt.f32.s32 %v1857_v58  ;;  %v3188_v43 = vadd.f32 %v3187_v40, %v3186_v0  ;;  %v1370_v40 = vshll.u32 %v1369_v52, 16 }
 0x382   :  { %3330 = vmatpush.xpose.msk.msrb.mxu1 %vm7734_vm13, %v8197_v29 }
 0x383   :  { %v6387_v27 = vadd.s32 %v1860_v38, %v1858_v8  ;;  %v3189_v22 = vrot.slane %v3188_v43, 1  ;;  %v6412_v58 = vadd.s32 %v1370_v40, %v1368_v35  ;;  %v8363_v8 = vld [vmem:[#allocation34_spill] sm:$0xff]  ;;  %v8367_v40 = vld [vmem:[#allocation173_spill] sm:$0xff] }
 0x384   :  { %v8366_v35 = vld [vmem:[#allocation214_spill] sm:$0xff] }
 0x385   :  { %8358 = vst [vmem:[#allocation80_spill] sm:$0xff] %v6387_v27  ;;  %vm7690_vm3 = vcmp.eq.s32.totalorder %v4111_v4, %v6387_v27  ;;  %v3190_v0 = vadd.f32 %v3189_v22, %v3188_v43  ;;  %v1354_v43 = vcvt.f32.s32 %v8363_v8  ;;  %v1341_v22 = vcvt.f32.s32 %v8365_v31 }
 0x386   :  { %3331 = vmatpush.xpose.msk.msrb.mxu1 %vm7689_vm11, %v8197_v29  ;;  %3362 = vmatpush.xpose.msk.msrb.mxu3 %vm7690_vm3, %v8197_v29  ;;  %v6408_v38 = vpop.xlane.xlu2 %1674  ;;  %vm7711_vm11 = vcmp.eq.s32.totalorder %v4111_v4, %v6393_v26  ;;  %v1340_v61 = vcvt.f32.s32 %v8366_v35  ;;  %v8370_v35 = vld [vmem:[#allocation131_spill] sm:$0xff] }
 0x387   :  { %3192 = vst.msk [vmem:[#allocation11] sm:$0x1] %vm3191_vm2, %v3190_v0  ;;  %v6425_v45 = vadd.s32 %v1356_v49, %v1354_v43  ;;  %vm7697_vm2 = vcmp.eq.s32.totalorder %v4111_v4, %v6412_v58  ;;  %v6429_v0 = vpop.xlane.xlu1 %1646  ;;  %v1342_v59 = vshll.u32 %v1341_v22, 16  ;;  %v8369_v43 = vld [vmem:[#allocation149_spill] sm:$0xff] }
 0x388   :  { %v6410_v56 = vpop.xlane.xlu0 %1978  ;;  %v1313_v31 = vcvt.f32.s32 %v8369_v43  ;;  %v8371_v43 = vld [vmem:[#allocation228_spill] sm:$0xff]  ;;  %3236 = dma.vmem_to_hbm [thread:$0]  %s3232_s1, 16, %s3234_s7, [#allocation12]  }
 0x389   :  { %8362 = vst [vmem:[#allocation32_spill] sm:$0xff] %v6410_v56  ;;  %vm1980_vm4 = vcmp.eq.f32.partialorder %v8364_v37, %v6410_v56  ;;  %v1326_v37 = vcvt.f32.s32 %v8368_v16  ;;  %v1677_v56 = vcvt.f32.s32 %v8377_v28  ;;  %v8380_v28 = vld [vmem:[#allocation250_spill] sm:$0xff] }
 0x38a   :  { %3332 = vmatpush.xpose.msk.msrb.mxu1 %vm7711_vm11, %v8197_v29  ;;  %v1981_v52 = vsel %vm1980_vm4, %v1976_v48, inf  ;;  %v1327_v48 = vcvt.f32.s32 %v8367_v40  ;;  %vm7692_vm4 = vcmp.eq.s32.totalorder %v4111_v4, %v6425_v45  ;;  %v1312_v40 = vcvt.f32.s32 %v8370_v35 }
 0x38b   :  { %1982 = vmin.xlane.f32.xlu0 %v1981_v52  ;;  %v6439_v52 = vadd.s32 %v1342_v59, %v1340_v61  ;;  %v1314_v16 = vshll.u32 %v1313_v31, 16  ;;  %v1705_v35 = vcvt.f32.s32 %v6042_v57  ;;  %v8373_v31 = vld [vmem:[#allocation41_spill] sm:$0xff] }
 0x38c   :  { %v1328_v49 = vshll.u32 %v1327_v48, 16  ;;  %v2181_v48 = vcvt.f32.s32 %v8371_v43  ;;  %v2167_v6 = vcvt.f32.s32 %v8373_v31 }
 0x38d   :  { %vm7696_vm3 = vcmp.eq.s32.totalorder %v4111_v4, %v6439_v52 }
 0x38e   :  { %3333 = vmatpush.xpose.msk.msrb.mxu1 %vm7697_vm2, %v8197_v29  ;;  %v6436_v8 = vpop.xlane.xlu2 %2122  ;;  %v6448_v22 = vadd.s32 %v1328_v49, %v1326_v37  ;;  %v6462_v37 = vadd.s32 %v1314_v16, %v1312_v40  ;;  %v2180_v49 = vcvt.f32.s32 %v6256_v3  ;;  %v2182_v10 = vshll.u32 %v2181_v48, 16 }
 0x38f   :  { %v1689_v61 = vpop.xlane.xlu1 %1688  ;;  %vm7705_vm2 = vcmp.eq.s32.totalorder %v4111_v4, %v6202_v9  ;;  %v2166_v3 = vcvt.f32.s32 %v6318_v54  ;;  %v1706_v16 = vshll.u32 %v1705_v35, 16  ;;  %v2168_v31 = vshll.u32 %v2167_v6, 16  ;;  %v8378_v35 = vld [vmem:[#allocation66_spill] sm:$0xff] }
 0x390   :  { %v6453_v59 = vpop.xlane.xlu0 %1604  ;;  %8372 = vst [vmem:[#allocation35_spill] sm:$0xff] %v6462_v37  ;;  %v6478_v40 = vadd.s32 %v2182_v10, %v2180_v49  ;;  %v1690_v43 = vcvt.f32.s32 %v1689_v61  ;;  %v8376_v10 = vld [vmem:[#allocation215_spill] sm:$0xff]  ;;  %v1845_v61 = vcvt.f32.s32 %v8378_v35  ;;  %v1676_v9 = vcvt.f32.s32 %v6408_v38  ;;  %v8381_v38 = vld [vmem:[#allocation21_spill] sm:$0xff] }
 0x391   :  { %v2153_v49 = vcvt.f32.s32 %v8376_v10  ;;  %v2139_v6 = vcvt.f32.s32 %v8380_v28 }
 0x392   :  { %3334 = vmatpush.xpose.msk.msrb.mxu1 %vm7692_vm4, %v8197_v29  ;;  %vm7707_vm4 = vcmp.eq.s32.totalorder %v4111_v4, %v6448_v22  ;;  %8375 = vst [vmem:[#allocation252_spill] sm:$0xff] %v6478_v40  ;;  %v6504_v10 = vadd.s32 %v1692_v63, %v1690_v43  ;;  %v1663_v63 = vcvt.f32.s32 %v8381_v38  ;;  %v2138_v43 = vcvt.f32.s32 %v6390_v36 }
 0x393   :  { %v2154_v53 = vshll.u32 %v2153_v49, 16  ;;  %v1662_v49 = vcvt.f32.s32 %v6375_v24  ;;  %v2140_v36 = vshll.u32 %v2139_v6, 16 }
 0x396   :  { %3335 = vmatpush.xpose.msk.msrb.mxu1 %vm7696_vm3, %v8197_v29  ;;  %v6459_v27 = vpop.xlane.xlu2 %2108  ;;  %vm7703_vm3 = vcmp.eq.s32.totalorder %v4111_v4, %v6462_v37  ;;  %v2152_v37 = vcvt.f32.s32 %v6301_v1  ;;  %v1678_v1 = vshll.u32 %v1677_v56, 16  ;;  %v8382_v56 = vld [vmem:[#allocation148_spill] sm:$0xff] }
 0x397   :  { %v8409_v46 = vld [vmem:[#allocation35_spill] sm:$0xff] }
 0x398   :  { %v6492_v54 = vpop.xlane.xlu0 %1590 }
 0x39a   :  { %3336 = vmatpush.xpose.msk.msrb.mxu1 %vm7707_vm4, %v8197_v29  ;;  %vm7712_vm4 = vcmp.eq.s32.totalorder %v4111_v4, %v6504_v10 }
 0x39e   :  { %3337 = vmatpush.xpose.msk.msrb.mxu1 %vm7703_vm3, %v8197_v29  ;;  %v1703_v57 = vpop.xlane.xlu1 %1702  ;;  %v6485_v48 = vpop.xlane.xlu2 %2094  ;;  %vm7706_vm3 = vcmp.eq.s32.totalorder %v4111_v4, %v6478_v40 }
 0x39f   :  { %v1704_v32 = vcvt.f32.s32 %v1703_v57  ;;  %v6499_v57 = vadd.s32 %v2168_v31, %v2166_v3  ;;  %v1846_v3 = vshll.u32 %v1845_v61, 16  ;;  %v6524_v31 = vadd.s32 %v1678_v1, %v1676_v9  ;;  %v8383_v9 = vld [vmem:[#allocation28_spill] sm:$0xff]  ;;  %v8385_v1 = vld [vmem:[#allocation19_spill] sm:$0xff] }
 0x3a0   :  { %v1649_v24 = vcvt.f32.s32 %v8383_v9  ;;  %v1664_v61 = vshll.u32 %v1663_v63, 16  ;;  %v1831_v38 = vcvt.f32.s32 %v8385_v1  ;;  %v6546_v40 = vpop.xlane.xlu0 %1576  ;;  %v2110_v9 = vcvt.f32.s32 %v6459_v27 }
 0x3a1   :  { %v6495_v50 = vadd.s32 %v1706_v16, %v1704_v32  ;;  %8379 = vst [vmem:[#allocation18_spill] sm:$0xff] %v6499_v57  ;;  %v6518_v16 = vadd.s32 %v2154_v53, %v2152_v37  ;;  %v2125_v37 = vcvt.f32.s32 %v8382_v56  ;;  %v1648_v56 = vcvt.f32.s32 %v6429_v0  ;;  %v8387_v0 = vld [vmem:[#allocation152_spill] sm:$0xff] }
 0x3a2   :  { %3370 = vmatpush.xpose.msk.msra.mxu1 %vm7705_vm2, %v8197_v29  ;;  %v6550_v6 = vadd.s32 %v1664_v61, %v1662_v49  ;;  %vm7718_vm11 = vcmp.eq.s32.totalorder %v4111_v4, %v6524_v31  ;;  %v1650_v49 = vshll.u32 %v1649_v24, 16  ;;  %v2097_v27 = vcvt.f32.s32 %v5904_v18 }
 0x3a3   :  { %vm2226_vm2 = vcmp.eq.s32.totalorder %v4111_v4, %v6495_v50  ;;  %v1620_v18 = vcvt.f32.s32 %v6352_v39  ;;  %v8390_v39 = vld [vmem:[#allocation225_spill] sm:$0xff] }
 0x3a4   :  { %3341 = vmatpush.xpose.msk.msrb.mxu2 %vm2226_vm2, %v8197_v29  ;;  %v6577_v1 = vadd.s32 %v1650_v49, %v1648_v56 }
 0x3a6   :  { %3371 = vmatpush.xpose.msk.msra.mxu1 %vm7706_vm3, %v8197_v29  ;;  %v1843_v32 = vpop.xlane.xlu1 %1842  ;;  %vm7710_vm3 = vcmp.eq.s32.totalorder %v4111_v4, %v6499_v57  ;;  %v6526_v35 = vpop.xlane.xlu2 %2080  ;;  %v2124_v57 = vcvt.f32.s32 %v6436_v8  ;;  %v8386_v8 = vld [vmem:[#allocation110_spill] sm:$0xff] }
 0x3a7   :  { %v1844_v28 = vcvt.f32.s32 %v1843_v32  ;;  %v6543_v32 = vadd.s32 %v2140_v36, %v2138_v43  ;;  %v2111_v63 = vcvt.f32.s32 %v8386_v8  ;;  %v1635_v43 = vcvt.f32.s32 %v8387_v0  ;;  %v8389_v0 = vld [vmem:[#allocation112_spill] sm:$0xff] }
 0x3a8   :  { %3342 = vmatpush.xpose.msk.msrb.mxu2 %vm7712_vm4, %v8197_v29  ;;  %v1817_v49 = vcvt.f32.s32 %v8389_v0  ;;  %v8444_v12 = vld [vmem:[#allocation18_spill] sm:$0xff] }
 0x3a9   :  { %v6540_v53 = vadd.s32 %v1846_v3, %v1844_v28  ;;  %v2126_v3 = vshll.u32 %v2125_v37, 16  ;;  %v1832_v28 = vshll.u32 %v1831_v38, 16  ;;  %v1634_v37 = vcvt.f32.s32 %v6354_v55  ;;  %v8388_v55 = vld [vmem:[#allocation49_spill] sm:$0xff] }
 0x3aa   :  { %3372 = vmatpush.xpose.msk.msra.mxu1 %vm7710_vm3, %v8197_v29  ;;  %vm7713_vm3 = vcmp.eq.s32.totalorder %v4111_v4, %v6518_v16  ;;  %v1621_v24 = vcvt.f32.s32 %v8388_v55  ;;  %v1636_v38 = vshll.u32 %v1635_v43, 16  ;;  %v2098_v43 = vshll.u32 %v2097_v27, 16 }
 0x3ab   :  { %8384 = vst [vmem:[#allocation199_spill] sm:$0xff] %v6540_v53  ;;  %vm7714_vm4 = vcmp.eq.s32.totalorder %v4111_v4, %v6540_v53  ;;  %v6571_v36 = vadd.s32 %v2126_v3, %v2124_v57  ;;  %v2112_v57 = vshll.u32 %v2111_v63, 16  ;;  %v2096_v53 = vcvt.f32.s32 %v6485_v48 }
 0x3ac   :  { %3343 = vmatpush.xpose.msk.msrb.mxu2 %vm7718_vm11, %v8197_v29  ;;  %3363 = vmatpush.xpose.msk.msrb.mxu3 %vm7714_vm4, %v8197_v29  ;;  %vm7717_vm4 = vcmp.eq.s32.totalorder %v4111_v4, %v6550_v6  ;;  %v6600_v63 = vadd.s32 %v1636_v38, %v1634_v37  ;;  %v2083_v48 = vcvt.f32.s32 %v6005_v15  ;;  %v1622_v37 = vshll.u32 %v1621_v24, 16 }
 0x3ad   :  { %v2082_v15 = vcvt.f32.s32 %v6526_v35  ;;  %v1606_v38 = vcvt.f32.s32 %v6453_v59  ;;  %v2069_v35 = vcvt.f32.s32 %v6078_v25  ;;  %v1592_v25 = vcvt.f32.s32 %v6492_v54 }
 0x3ae   :  { %3373 = vmatpush.xpose.msk.msra.mxu1 %vm7713_vm3, %v8197_v29  ;;  %v1829_v61 = vpop.xlane.xlu1 %1828  ;;  %vm7716_vm3 = vcmp.eq.s32.totalorder %v4111_v4, %v6543_v32  ;;  %v2067_v56 = vpop.xlane.xlu2 %2066  ;;  %v6627_v55 = vadd.s32 %v1622_v37, %v1620_v18 }
 0x3af   :  { %v1830_v8 = vcvt.f32.s32 %v1829_v61  ;;  %v6594_v61 = vadd.s32 %v2112_v57, %v2110_v9  ;;  %v1607_v9 = vcvt.f32.s32 %v8390_v39  ;;  %v6622_v57 = vadd.s32 %v2098_v43, %v2096_v53 }
 0x3b0   :  { %3344 = vmatpush.xpose.msk.msrb.mxu2 %vm7717_vm4, %v8197_v29  ;;  %vm7723_vm4 = vcmp.eq.s32.totalorder %v4111_v4, %v6577_v1  ;;  %v2084_v53 = vshll.u32 %v2083_v48, 16  ;;  %v1803_v43 = vcvt.f32.s32 %v5957_v41  ;;  %v2068_v37 = vcvt.f32.s32 %v2067_v56 }
 0x3b1   :  { %v6591_v3 = vadd.s32 %v1832_v28, %v1830_v8  ;;  %v6611_v28 = vpop.xlane.xlu0 %1562  ;;  %v1818_v8 = vshll.u32 %v1817_v49, 16  ;;  %v1608_v24 = vshll.u32 %v1607_v9, 16  ;;  %v8391_v49 = vld [vmem:[#allocation89_spill] sm:$0xff]  ;;  %v2070_v41 = vshll.u32 %v2069_v35, 16 }
 0x3b2   :  { %3374 = vmatpush.xpose.msk.msra.mxu1 %vm7716_vm3, %v8197_v29  ;;  %vm7719_vm3 = vcmp.eq.s32.totalorder %v4111_v4, %v6571_v36  ;;  %v1593_v59 = vcvt.f32.s32 %v8391_v49  ;;  %v6645_v39 = vadd.s32 %v2084_v53, %v2082_v15  ;;  %v2055_v56 = vcvt.f32.s32 %v6157_v19 }
 0x3b3   :  { %vm7720_vm11 = vcmp.eq.s32.totalorder %v4111_v4, %v6591_v3  ;;  %v6649_v48 = vadd.s32 %v1608_v24, %v1606_v38  ;;  %v1579_v9 = vcvt.f32.s32 %v5906_v14  ;;  %v6670_v15 = vadd.s32 %v2070_v41, %v2068_v37 }
 0x3b4   :  { %3345 = vmatpush.xpose.msk.msrb.mxu2 %vm7723_vm4, %v8197_v29  ;;  %3364 = vmatpush.xpose.msk.msrb.mxu3 %vm7720_vm11, %v8197_v29  ;;  %vm7722_vm11 = vcmp.eq.s32.totalorder %v4111_v4, %v6600_v63  ;;  %v1594_v54 = vshll.u32 %v1593_v59, 16  ;;  %v1578_v35 = vcvt.f32.s32 %v6546_v40  ;;  %v1565_v14 = vcvt.f32.s32 %v5980_v44 }
 0x3b5   :  { %v2056_v49 = vshll.u32 %v2055_v56, 16  ;;  %v1580_v59 = vshll.u32 %v1579_v9, 16  ;;  %v1789_v40 = vcvt.f32.s32 %v6047_v42  ;;  %v2041_v37 = vcvt.f32.s32 %v6228_v23 }
 0x3b6   :  { %3375 = vmatpush.xpose.msk.msra.mxu1 %vm7719_vm3, %v8197_v29  ;;  %v1815_v27 = vpop.xlane.xlu1 %1814  ;;  %vm7721_vm3 = vcmp.eq.s32.totalorder %v4111_v4, %v6594_v61  ;;  %v6674_v19 = vadd.s32 %v1594_v54, %v1592_v25  ;;  %v1564_v25 = vcvt.f32.s32 %v6611_v28  ;;  %v1566_v42 = vshll.u32 %v1565_v14, 16 }
 0x3b7   :  { %v1816_v0 = vcvt.f32.s32 %v1815_v27  ;;  %v2053_v27 = vpop.xlane.xlu2 %2052  ;;  %v6697_v44 = vadd.s32 %v1580_v59, %v1578_v35  ;;  %v1551_v23 = vcvt.f32.s32 %v6085_v33  ;;  %v1790_v28 = vshll.u32 %v1789_v40, 16 }
 0x3b8   :  { %3346 = vmatpush.xpose.msk.msrb.mxu2 %vm7722_vm11, %v8197_v29  ;;  %vm7728_vm11 = vcmp.eq.s32.totalorder %v4111_v4, %v6627_v55  ;;  %v2042_v41 = vshll.u32 %v2041_v37, 16  ;;  %v6716_v56 = vadd.s32 %v1566_v42, %v1564_v25 }
 0x3b9   :  { %v6642_v18 = vadd.s32 %v1818_v8, %v1816_v0  ;;  %v1804_v8 = vshll.u32 %v1803_v43, 16  ;;  %v1549_v38 = vpop.xlane.xlu0 %1548  ;;  %v2054_v0 = vcvt.f32.s32 %v2053_v27  ;;  %v1552_v35 = vshll.u32 %v1551_v23, 16 }
 0x3ba   :  { %3376 = vmatpush.xpose.msk.msra.mxu1 %vm7721_vm3, %v8197_v29  ;;  %vm7724_vm3 = vcmp.eq.s32.totalorder %v4111_v4, %v6622_v57 }
 0x3bb   :  { %vm7725_vm4 = vcmp.eq.s32.totalorder %v4111_v4, %v6642_v18  ;;  %v6693_v27 = vadd.s32 %v2056_v49, %v2054_v0  ;;  %v1775_v49 = vcvt.f32.s32 %v6112_v47 }
 0x3bc   :  { %3347 = vmatpush.xpose.msk.msrb.mxu2 %vm7728_vm11, %v8197_v29  ;;  %3365 = vmatpush.xpose.msk.msrb.mxu3 %vm7725_vm4, %v8197_v29  ;;  %vm7727_vm4 = vcmp.eq.s32.totalorder %v4111_v4, %v6649_v48 }
 0x3bd   :  { %v1776_v37 = vshll.u32 %v1775_v49, 16 }
 0x3be   :  { %3377 = vmatpush.xpose.msk.msra.mxu1 %vm7724_vm3, %v8197_v29  ;;  %v1801_v53 = vpop.xlane.xlu1 %1800  ;;  %vm7726_vm3 = vcmp.eq.s32.totalorder %v4111_v4, %v6645_v39 }
 0x3bf   :  { %v1802_v24 = vcvt.f32.s32 %v1801_v53 }
 0x3c0   :  { %3348 = vmatpush.xpose.msk.msrb.mxu2 %vm7727_vm4, %v8197_v29  ;;  %vm7732_vm4 = vcmp.eq.s32.totalorder %v4111_v4, %v6674_v19 }
 0x3c1   :  { %v6689_v43 = vadd.s32 %v1804_v8, %v1802_v24  ;;  %v1550_v8 = vcvt.f32.s32 %v1549_v38  ;;  %v1535_v33 = vpop.xlane.xlu0 %1534  ;;  %v1537_v24 = vcvt.f32.s32 %v6161_v21 }
 0x3c2   :  { %3378 = vmatpush.xpose.msk.msra.mxu1 %vm7726_vm3, %v8197_v29  ;;  %vm7729_vm3 = vcmp.eq.s32.totalorder %v4111_v4, %v6670_v15  ;;  %v1536_v40 = vcvt.f32.s32 %v1535_v33 }
 0x3c3   :  { %vm7730_vm11 = vcmp.eq.s32.totalorder %v4111_v4, %v6689_v43  ;;  %v6738_v59 = vadd.s32 %v1552_v35, %v1550_v8  ;;  %v1538_v47 = vshll.u32 %v1537_v24, 16  ;;  %v2013_v24 = vcvt.f32.s32 %v6259_v11 }
 0x3c4   :  { %3349 = vmatpush.xpose.msk.msrb.mxu2 %vm7732_vm4, %v8197_v29  ;;  %3366 = vmatpush.xpose.msk.msrb.mxu3 %vm7730_vm11, %v8197_v29  ;;  %vm7733_vm11 = vcmp.eq.s32.totalorder %v4111_v4, %v6697_v44 }
 0x3c5   :  { %v6756_v25 = vadd.s32 %v1538_v47, %v1536_v40  ;;  %vm2215_vm13 = vcmp.eq.s32.totalorder %v4111_v4, %v6738_v59  ;;  %v2014_v20 = vshll.u32 %v2013_v24, 16  ;;  %v8430_v59 = vld [vmem:[#allocation100_spill] sm:$0xff]  ;;  %v8432_v47 = vld [vmem:[#allocation235_spill] sm:$0xff]  ;;  %v8442_v24 = vld [vmem:[#allocation233_spill] sm:$0xff] }
 0x3c6   :  { %3379 = vmatpush.xpose.msk.msra.mxu1 %vm7729_vm3, %v8197_v29  ;;  %v2039_v54 = vpop.xlane.xlu2 %2038  ;;  %v1787_v9 = vpop.xlane.xlu1 %1786  ;;  %vm7731_vm3 = vcmp.eq.s32.totalorder %v4111_v4, %v6693_v27  ;;  %v8447_v40 = vld [vmem:[#allocation189_spill] sm:$0xff] }
 0x3c7   :  { %v2040_v0 = vcvt.f32.s32 %v2039_v54  ;;  %v1788_v53 = vcvt.f32.s32 %v1787_v9  ;;  %v2390_v54 = vadd.s32 1, %v4111_v4 }
 0x3c8   :  { %3350 = vmatpush.xpose.msk.msrb.mxu2 %vm7733_vm11, %v8197_v29 }
 0x3c9   :  { %v6731_v38 = vadd.s32 %v2042_v41, %v2040_v0  ;;  %v6733_v14 = vadd.s32 %v1790_v28, %v1788_v53  ;;  %v1761_v28 = vcvt.f32.s32 %v6226_v60  ;;  %v2027_v41 = vcvt.f32.s32 %v6285_v2 }
 0x3ca   :  { %3380 = vmatpush.xpose.msk.msra.mxu1 %vm7731_vm3, %v8197_v29  ;;  %vm2216_vm3 = vcmp.eq.s32.totalorder %v4111_v4, %v6716_v56  ;;  %v6785_v60 = vcvt.s32.f32 %v2390_v54  ;;  %v8429_v56 = vld [vmem:[#allocation181_spill] sm:$0xff]  ;;  %v8438_v54 = vld [vmem:[#allocation252_spill] sm:$0xff] }
 0x3cb   :  { %vm7736_vm4 = vcmp.eq.s32.totalorder %v4111_v4, %v6733_v14  ;;  %vm7735_vm11 = vcmp.eq.s32.totalorder %v4111_v4, %v6731_v38  ;;  %v1762_v8 = vshll.u32 %v1761_v28, 16  ;;  %v2028_v0 = vshll.u32 %v2027_v41, 16  ;;  %v8436_v41 = vld [vmem:[#allocation254_spill] sm:$0xff] }
 0x3cc   :  { %3351 = vmatpush.xpose.msk.msrb.mxu2 %vm2216_vm3, %v8197_v29  ;;  %3367 = vmatpush.xpose.msk.msrb.mxu3 %vm7736_vm4, %v8197_v29 }
 0x3cd   :  { %2408 = vmatmul.f32.vlgmr.msrb.gmra.mxu1 %v6785_v60 }
 0x3ce   :  { %3381 = vmatpush.xpose.msk.msra.mxu1 %vm7735_vm11, %v8197_v29  ;;  %v1773_v21 = vpop.xlane.xlu1 %1772  ;;  %vm2214_vm11 = vcmp.eq.s32.totalorder %v4111_v4, %v6756_v25 }
 0x3cf   :  { %v1774_v42 = vcvt.f32.s32 %v1773_v21 }
 0x3d0   :  { %3352 = vmatpush.xpose.msk.msrb.mxu2 %vm2215_vm13, %v8197_v29 }
 0x3d1   :  { %v6764_v23 = vadd.s32 %v1776_v37, %v1774_v42  ;;  %v8434_v37 = vld [vmem:[#allocation249_spill] sm:$0xff] }
 0x3d2   :  { %v8435_v42 = vld [vmem:[#allocation185_spill] sm:$0xff] }
 0x3d3   :  { %vm2231_vm4 = vcmp.eq.s32.totalorder %v4111_v4, %v6764_v23  ;;  %v8490_v23 = vld [vmem:[#allocation192_spill] sm:$0xff] }
 0x3d4   :  { %3353 = vmatpush.xpose.msk.msrb.mxu2 %vm2214_vm11, %v8197_v29  ;;  %3368 = vmatpush.xpose.msk.msrb.mxu3 %vm2231_vm4, %v8197_v29 }
 0x3d6   :  { %v2025_v2 = vpop.xlane.xlu0 %2024  ;;  %v1759_v9 = vpop.xlane.xlu1 %1758 }
 0x3d7   :  { %v2026_v53 = vcvt.f32.s32 %v2025_v2  ;;  %v1760_v33 = vcvt.f32.s32 %v1759_v9  ;;  %2428 = vmatmul.f32.vlgmr.msrb.gmra.mxu2 %v6785_v60  ;;  %v8440_v9 = vld [vmem:[#allocation26_spill] sm:$0xff] }
 0x3d8   :  { %3386 = vmatpush.msk.msra.mxu2 %vm2213_vm1, %v8197_v29 }
 0x3d9   :  { %v6793_v35 = vadd.s32 %v2028_v0, %v2026_v53  ;;  %v6795_v17 = vadd.s32 %v1762_v8, %v1760_v33  ;;  %v8441_v33 = vld [vmem:[#allocation186_spill] sm:$0xff] }
 0x3da   :  { %3387 = vmatpush.msk.msra.mxu2 %vm2212_vm7, %v8197_v29 }
 0x3db   :  { %vm2230_vm1 = vcmp.eq.s32.totalorder %v4111_v4, %v6795_v17  ;;  %vm2249_vm7 = vcmp.eq.s32.totalorder %v4111_v4, %v6793_v35  ;;  %v8495_v17 = vld [vmem:[#allocation158_spill] sm:$0xff]  ;;  %v8501_v35 = vld [vmem:[#allocation253_spill] sm:$0xff] }
 0x3dc   :  { %3388 = vmatpush.msk.msra.mxu2 %vm2211_vm10, %v8197_v29  ;;  %3369 = vmatpush.xpose.msk.msrb.mxu3 %vm2230_vm1, %v8197_v29  ;;  %vm8397_vm10 = vcmp.eq.s32.totalorder %v4111_v4, %v6378_v5  ;;  %v8412_v5 = vld [vmem:[#allocation29_spill] sm:$0xff] }
 0x3dd   :  { %3382 = vmatpush.xpose.msk.msra.mxu1 %vm2249_vm7, %v8197_v29 }
 0x3de   :  { %3389 = vmatpush.msk.msra.mxu2 %vm2210_vm14, %v8197_v29  ;;  %v2011_v51 = vpop.xlane.xlu1 %2010  ;;  %vm8398_vm14 = vcmp.eq.s32.totalorder %v4111_v4, %v6524_v31  ;;  %v8423_v31 = vld [vmem:[#allocation176_spill] sm:$0xff] }
 0x3df   :  { %v2012_v11 = vcvt.f32.s32 %v2011_v51  ;;  %2448 = vmatmul.f32.vlgmr.msrb.gmra.mxu3 %v6785_v60 }
 0x3e0   :  { %3390 = vmatpush.msk.msra.mxu2 %vm2209_vm15, %v8197_v29  ;;  %3402 = vmatpush.msk.msra.mxu3 %vm2229_vm6, %v8197_v29  ;;  %vm8400_vm15 = vcmp.eq.s32.totalorder %v4111_v4, %v6550_v6  ;;  %v8424_v6 = vld [vmem:[#allocation255_spill] sm:$0xff] }
 0x3e1   :  { %v6835_v7 = vadd.s32 %v2014_v20, %v2012_v11  ;;  %v8446_v20 = vld [vmem:[#allocation246_spill] sm:$0xff] }
 0x3e2   :  { %3391 = vmatpush.msk.msra.mxu2 %vm2208_vm5, %v8197_v29  ;;  %3403 = vmatpush.msk.msra.mxu3 %vm2228_vm8, %v8197_v29  ;;  %vm8395_vm8 = vcmp.eq.s32.totalorder %v4111_v4, %v6365_v30  ;;  %vm8401_vm5 = vcmp.eq.s32.totalorder %v4111_v4, %v6412_v58  ;;  %v8416_v58 = vld [vmem:[#allocation159_spill] sm:$0xff] }
 0x3e3   :  { %vm2248_vm6 = vcmp.eq.s32.totalorder %v4111_v4, %v6835_v7  ;;  %v8505_v7 = vld [vmem:[#allocation24_spill] sm:$0xff] }
 0x3e4   :  { %3392 = vmatpush.msk.msra.mxu2 %vm2207_vm9, %v8197_v29  ;;  %3404 = vmatpush.msk.msra.mxu3 %vm2227_vm0, %v8197_v29  ;;  %vm8396_vm0 = vcmp.eq.s32.totalorder %v4111_v4, %v6504_v10  ;;  %vm8402_vm9 = vcmp.eq.s32.totalorder %v4111_v4, %v6577_v1  ;;  %v8421_v10 = vld [vmem:[#allocation127_spill] sm:$0xff]  ;;  %v8425_v1 = vld [vmem:[#allocation234_spill] sm:$0xff] }
 0x3e5   :  { %3383 = vmatpush.xpose.msk.msra.mxu1 %vm2248_vm6, %v8197_v29 }
 0x3e6   :  { %3393 = vmatpush.msk.msra.mxu2 %vm2206_vm12, %v8197_v29  ;;  %3405 = vmatpush.msk.msra.mxu3 %vm2226_vm2, %v8197_v29  ;;  %v1997_v50 = vpop.xlane.xlu2 %1996  ;;  %vm8399_vm12 = vcmp.eq.s32.totalorder %v4111_v4, %v6393_v26  ;;  %v8414_v26 = vld [vmem:[#allocation154_spill] sm:$0xff] }
 0x3e7   :  { %v1998_v34 = vcvt.f32.s32 %v1997_v50  ;;  %3783 = vrcp.f32 %v8414_v26  ;;  %v8453_v26 = vld [vmem:[#allocation191_spill] sm:$0xff] }
 0x3e8   :  { %3394 = vmatpush.msk.msra.mxu2 %vm8395_vm8, %v8197_v29  ;;  %3406 = vmatpush.msk.msra.mxu3 %vm8396_vm0, %v8197_v29  ;;  %vm8403_vm8 = vcmp.eq.s32.totalorder %v4111_v4, %v6425_v45  ;;  %vm8404_vm0 = vcmp.eq.s32.totalorder %v4111_v4, %v6600_v63  ;;  %3785 = vrcp.f32 %v8416_v58  ;;  %v8417_v45 = vld [vmem:[#allocation231_spill] sm:$0xff] }
 0x3e9   :  { %v6876_v30 = vadd.s32 %v2000_v13, %v1998_v34  ;;  %v8451_v13 = vld [vmem:[#allocation243_spill] sm:$0xff]  ;;  %v8452_v34 = vld [vmem:[#allocation114_spill] sm:$0xff] }
 0x3ea   :  { %3395 = vmatpush.msk.msra.mxu2 %vm8397_vm10, %v8197_v29  ;;  %3407 = vmatpush.msk.msra.mxu3 %vm8398_vm14, %v8197_v29  ;;  %vm8405_vm10 = vcmp.eq.s32.totalorder %v4111_v4, %v6439_v52  ;;  %vm8406_vm14 = vcmp.eq.s32.totalorder %v4111_v4, %v6627_v55  ;;  %v8419_v52 = vld [vmem:[#allocation160_spill] sm:$0xff]  ;;  %v8427_v55 = vld [vmem:[#allocation177_spill] sm:$0xff] }
 0x3eb   :  { %vm2247_vm2 = vcmp.eq.s32.totalorder %v4111_v4, %v6876_v30  ;;  %3787 = vrcp.f32 %v8419_v52  ;;  %v8510_v30 = vld [vmem:[#allocation153_spill] sm:$0xff] }
 0x3ec   :  { %3396 = vmatpush.msk.msra.mxu2 %vm8399_vm12, %v8197_v29  ;;  %3408 = vmatpush.msk.msra.mxu3 %vm8400_vm15, %v8197_v29  ;;  %vm8407_vm12 = vcmp.eq.s32.totalorder %v4111_v4, %v6448_v22  ;;  %vm8408_vm15 = vcmp.eq.s32.totalorder %v4111_v4, %v6649_v48  ;;  %v8420_v22 = vld [vmem:[#allocation168_spill] sm:$0xff] }
 0x3ed   :  { %3384 = vmatpush.xpose.msk.msra.mxu1 %vm2247_vm2, %v8197_v29  ;;  %3789 = vrcp.f32 %v8420_v22  ;;  %v6967_v63 = vpop.eup %3783  ;;  %v8428_v48 = vld [vmem:[#allocation32_spill] sm:$0xff]  ;;  %v8458_v22 = vld [vmem:[#allocation195_spill] sm:$0xff] }
 0x3ee   :  { %3397 = vmatpush.msk.msra.mxu2 %vm8401_vm5, %v8197_v29  ;;  %3409 = vmatpush.msk.msra.mxu3 %vm8402_vm9, %v8197_v29  ;;  %vm8410_vm5 = vcmp.eq.s32.totalorder %v4111_v4, %v8409_v46  ;;  %vm8411_vm9 = vcmp.eq.s32.totalorder %v4111_v4, %v6674_v19  ;;  %3791 = vrcp.f32 %v8423_v31  ;;  %v1985_v19 = vcvt.f32.s32 %v8428_v48  ;;  %v8461_v31 = vld [vmem:[#allocation237_spill] sm:$0xff] }
 0x3ef   :  { %3793 = vrcp.f32 %v8424_v6  ;;  %v8464_v48 = vld [vmem:[#allocation197_spill] sm:$0xff] }
 0x3f0   :  { %3398 = vmatpush.msk.msra.mxu2 %vm8403_vm8, %v8197_v29  ;;  %3410 = vmatpush.msk.msra.mxu3 %vm8404_vm0, %v8197_v29  ;;  %vm8413_vm8 = vcmp.eq.s32.totalorder %v4111_v4, %v8412_v5  ;;  %vm8415_vm0 = vcmp.eq.s32.totalorder %v4111_v4, %v6697_v44  ;;  %3795 = vrcp.f32 %v8427_v55  ;;  %v6975_v44 = vpop.eup %3785  ;;  %v1986_v8 = vshll.u32 %v1985_v19, 16  ;;  %v8462_v55 = vld [vmem:[#allocation73_spill] sm:$0xff] }
 0x3f1   :  { %3797 = vrcp.f32 %v8429_v56  ;;  %v6986_v21 = vpop.eup %3787  ;;  %v8466_v19 = vld [vmem:[#allocation213_spill] sm:$0xff] }
 0x3f2   :  { %3399 = vmatpush.msk.msra.mxu2 %vm8405_vm10, %v8197_v29  ;;  %3411 = vmatpush.msk.msra.mxu3 %vm8406_vm14, %v8197_v29  ;;  %vm8418_vm10 = vcmp.eq.s32.totalorder %v4111_v4, %v8417_v45  ;;  %vm8422_vm14 = vcmp.eq.s32.totalorder %v4111_v4, %v8421_v10  ;;  %3799 = vrcp.f32 %v8434_v37  ;;  %v8456_v45 = vld [vmem:[#allocation115_spill] sm:$0xff] }
 0x3f3   :  { %v6990_v25 = vpop.eup %3789  ;;  %3801 = vrcp.f32 %v8435_v42  ;;  %v8459_v10 = vld [vmem:[#allocation199_spill] sm:$0xff] }
 0x3f4   :  { %3400 = vmatpush.msk.msra.mxu2 %vm8407_vm12, %v8197_v29  ;;  %3412 = vmatpush.msk.msra.mxu3 %vm8408_vm15, %v8197_v29  ;;  %vm8433_vm12 = vcmp.eq.s32.totalorder %v4111_v4, %v8432_v47  ;;  %vm8439_vm15 = vcmp.eq.s32.totalorder %v4111_v4, %v8438_v54  ;;  %v7001_v2 = vpop.eup %3791  ;;  %3803 = vrcp.f32 %v8440_v9  ;;  %v8467_v47 = vld [vmem:[#allocation143_spill] sm:$0xff] }
 0x3f5   :  { %v3794_v53 = vpop.eup %3793  ;;  %3805 = vrcp.f32 %v8441_v33 }
 0x3f6   :  { %3401 = vmatpush.msk.msra.mxu2 %vm8410_vm5, %v8197_v29  ;;  %3413 = vmatpush.msk.msra.mxu3 %vm8411_vm9, %v8197_v29  ;;  %vm8443_vm5 = vcmp.eq.s32.totalorder %v4111_v4, %v8442_v24  ;;  %vm8445_vm9 = vcmp.eq.s32.totalorder %v4111_v4, %v8444_v12  ;;  %v7013_v51 = vpop.eup %3795  ;;  %3807 = vrcp.f32 %v8446_v20  ;;  %v933_v46 = vmul.f32 %v3794_v53, %v8452_v34  ;;  %v8482_v24 = vld [vmem:[#allocation226_spill] sm:$0xff]  ;;  %v8484_v12 = vld [vmem:[#allocation119_spill] sm:$0xff] }
 0x3f7   :  { %2848 = vmatmul.f32.vlgmr.msra.gmra.mxu2 %v8197_v29  ;;  %v7018_v49 = vpop.eup %3797  ;;  %3809 = vrcp.f32 %v8447_v40  ;;  %v8489_v34 = vld [vmem:[#allocation27_spill] sm:$0xff] }
 0x3f8   :  { %3418 = vmatpush.msk.msrb.mxu2 %vm8413_vm8, %v8197_v29  ;;  %3414 = vmatpush.msk.msra.mxu3 %vm8415_vm0, %v8197_v29  ;;  %vm8449_vm8 = vcmp.eq.s32.totalorder %v4111_v4, %v8448_v62  ;;  %vm8450_vm0 = vcmp.eq.s32.totalorder %v4111_v4, %v6518_v16  ;;  %v3800_v50 = vpop.eup %3799  ;;  %3811 = vrcp.f32 %v8451_v13  ;;  %v8454_v16 = vld [vmem:[#allocation80_spill] sm:$0xff] }
 0x3f9   :  { %v7033_v5 = vpop.eup %3801  ;;  %3813 = vrcp.f32 %v8453_v26  ;;  %v932_v6 = vmul.f32 %v3800_v50, %v8461_v31  ;;  %v8486_v62 = vld [vmem:[#allocation20_spill] sm:$0xff]  ;;  %v8496_v31 = vld [vmem:[#allocation221_spill] sm:$0xff] }
 0x3fa   :  { %3419 = vmatpush.msk.msrb.mxu2 %vm8418_vm10, %v8197_v29  ;;  %3415 = vmatpush.msk.msra.mxu3 %vm2216_vm3, %v8197_v29  ;;  %vm8426_vm3 = vcmp.eq.s32.totalorder %v4111_v4, %v8425_v1  ;;  %v3804_v58 = vpop.eup %3803  ;;  %3815 = vrcp.f32 %v8456_v45  ;;  %v8494_v45 = vld [vmem:[#allocation169_spill] sm:$0xff] }
 0x3fb   :  { %v7049_v52 = vpop.eup %3805  ;;  %3817 = vrcp.f32 %v8458_v22  ;;  %v931_v56 = vmul.f32 %v3804_v58, %v8466_v19 }
 0x3fc   :  { %3420 = vmatpush.msk.msrb.mxu2 %vm8422_vm14, %v8197_v29  ;;  %3416 = vmatpush.msk.msra.mxu3 %vm2215_vm13, %v8197_v29  ;;  %vm8431_vm13 = vcmp.eq.s32.totalorder %v4111_v4, %v8430_v59  ;;  %vm8455_vm14 = vcmp.eq.s32.totalorder %v4111_v4, %v8454_v16  ;;  %v3808_v1 = vpop.eup %3807  ;;  %3819 = vrcp.f32 %v8462_v55  ;;  %v8491_v16 = vld [vmem:[#allocation216_spill] sm:$0xff] }
 0x3fd   :  { %3821 = vrcp.f32 %v8464_v48  ;;  %v8499_v55 = vld [vmem:[#allocation156_spill] sm:$0xff] }
 0x3fe   :  { %3421 = vmatpush.msk.msrb.mxu2 %vm8426_vm3, %v8197_v29  ;;  %3417 = vmatpush.msk.msra.mxu3 %vm2214_vm11, %v8197_v29  ;;  %v1983_v28 = vpop.xlane.xlu0 %1982  ;;  %vm8437_vm11 = vcmp.eq.s32.totalorder %v4111_v4, %v8436_v41  ;;  %vm8457_vm3 = vcmp.eq.s32.totalorder %v4111_v4, %v6543_v32  ;;  %v7063_v32 = vpop.eup %3809  ;;  %3823 = vrcp.f32 %v8467_v47  ;;  %v8474_v41 = vld [vmem:[#allocation209_spill] sm:$0xff] }
 0x3ff   :  { %2868 = vmatmul.f32.vlgmr.msra.gmra.mxu3 %v8197_v29  ;;  %v1984_v0 = vcvt.f32.s32 %v1983_v28  ;;  %v3812_v59 = vpop.eup %3811  ;;  %v8472_v28 = vld [vmem:[#allocation232_spill] sm:$0xff] }
 0x400   :  { %3422 = vmatpush.msk.msrb.mxu2 %vm8431_vm13, %v8197_v29  ;;  %3434 = vmatpush.msk.msrb.mxu3 %vm8433_vm12, %v8197_v29  ;;  %vm8460_vm13 = vcmp.eq.s32.totalorder %v4111_v4, %v8459_v10  ;;  %vm8463_vm12 = vcmp.eq.s32.totalorder %v4111_v4, %v6571_v36  ;;  %v7076_v36 = vpop.eup %3813 }
 0x401   :  { %v7016_v11 = vadd.s32 %v1986_v8, %v1984_v0  ;;  %v3816_v42 = vpop.eup %3815  ;;  %v8477_v8 = vld [vmem:[#allocation69_spill] sm:$0xff] }
 0x402   :  { %3423 = vmatpush.msk.msrb.mxu2 %vm8437_vm11, %v8197_v29  ;;  %3435 = vmatpush.msk.msrb.mxu3 %vm8439_vm15, %v8197_v29  ;;  %vm8465_vm11 = vcmp.eq.s32.totalorder %v4111_v4, %v6591_v3  ;;  %vm8468_vm15 = vcmp.eq.s32.totalorder %v4111_v4, %v6594_v61  ;;  %v8471_v3 = vld [vmem:[#allocation223_spill] sm:$0xff]  ;;  %v7089_v61 = vpop.eup %3817  ;;  %v8479_v0 = vld [vmem:[#allocation257_spill] sm:$0xff] }
 0x403   :  { %vm2246_vm10 = vcmp.eq.s32.totalorder %v4111_v4, %v7016_v11  ;;  %v930_v37 = vmul.f32 %v3808_v1, %v8471_v3  ;;  %v3820_v9 = vpop.eup %3819  ;;  %v8498_v1 = vld [vmem:[#allocation72_spill] sm:$0xff] }
 0x404   :  { %3424 = vmatpush.msk.msrb.mxu2 %vm8443_vm5, %v8197_v29  ;;  %3436 = vmatpush.msk.msrb.mxu3 %vm8445_vm9, %v8197_v29  ;;  %vm8470_vm5 = vcmp.eq.s32.totalorder %v4111_v4, %v6642_v18  ;;  %vm8473_vm9 = vcmp.eq.s32.totalorder %v4111_v4, %v6622_v57  ;;  %v8476_v18 = vld [vmem:[#allocation45_spill] sm:$0xff]  ;;  %v3822_v57 = vpop.eup %3821 }
 0x405   :  { %3385 = vmatpush.xpose.msk.msra.mxu1 %vm2246_vm10, %v8197_v29  ;;  %v929_v54 = vmul.f32 %v3812_v59, %v8476_v18  ;;  %v3824_v33 = vpop.eup %3823  ;;  %v8506_v18 = vld [vmem:[#allocation83_spill] sm:$0xff] }
 0x406   :  { %3425 = vmatpush.msk.msrb.mxu2 %vm8449_vm8, %v8197_v29  ;;  %3437 = vmatpush.msk.msrb.mxu3 %vm8450_vm0, %v8197_v29  ;;  %vm8475_vm8 = vcmp.eq.s32.totalorder %v4111_v4, %v6689_v43  ;;  %vm8478_vm0 = vcmp.eq.s32.totalorder %v4111_v4, %v6645_v39  ;;  %v8481_v43 = vld [vmem:[#allocation188_spill] sm:$0xff] }
 0x407   :  { %v928_v53 = vmul.f32 %v3816_v42, %v8481_v43  ;;  %v8504_v42 = vld [vmem:[#allocation37_spill] sm:$0xff] }
 0x408   :  { %3426 = vmatpush.msk.msrb.mxu2 %vm8455_vm14, %v8197_v29  ;;  %3438 = vmatpush.msk.msrb.mxu3 %vm8457_vm3, %v8197_v29  ;;  %vm8480_vm14 = vcmp.eq.s32.totalorder %v4111_v4, %v6733_v14  ;;  %vm8483_vm3 = vcmp.eq.s32.totalorder %v4111_v4, %v6670_v15  ;;  %v8485_v14 = vld [vmem:[#allocation198_spill] sm:$0xff]  ;;  %v8488_v15 = vld [vmem:[#allocation84_spill] sm:$0xff] }
 0x409   :  { %2913 = vmatpush.msrb.mxu1 %v933_v46  ;;  %v927_v20 = vmul.f32 %v3820_v9, %v8485_v14  ;;  %v949_v50 = vmul.f32 %v7013_v51, %v8488_v15  ;;  %v926_v46 = vmul.f32 %v3824_v33, %v8490_v23  ;;  %v8512_v14 = vld [vmem:[#allocation109_spill] sm:$0xff]  ;;  %v8514_v15 = vld [vmem:[#allocation227_spill] sm:$0xff]  ;;  %v8517_v23 = vld [vmem:[#allocation90_spill] sm:$0xff] }
 0x40a   :  { %3427 = vmatpush.msk.msrb.mxu2 %vm8460_vm13, %v8197_v29  ;;  %3439 = vmatpush.msk.msrb.mxu3 %vm8463_vm12, %v8197_v29  ;;  %vm8487_vm13 = vcmp.eq.s32.totalorder %v4111_v4, %v6693_v27  ;;  %v8493_v27 = vld [vmem:[#allocation82_spill] sm:$0xff]  ;;  %vm2481_vm12 = vcmask 1042434  }
 0x40b   :  { %2468 = vmatmul.f32.vlgmr.msra.gmra.mxu1 %v6785_v60  ;;  %v8469_v60 = vld [vmem:[#allocation205_spill] sm:$0xff]  ;;  %v948_v51 = vmul.f32 %v7001_v2, %v8493_v27  ;;  %v8519_v27 = vld [vmem:[#allocation124_spill] sm:$0xff] }
 0x40c   :  { %2914 = vmatpush.msrb.mxu1 %v932_v6  ;;  %3428 = vmatpush.msk.msrb.mxu2 %vm8465_vm11, %v8197_v29  ;;  %3825 = vrcp.f32 %v8469_v60  ;;  %v8502_v60 = vld [vmem:[#allocation137_spill] sm:$0xff]  ;;  %vm2483_vm11 = vcmask 1041408  }
 0x40d   :  { %3440 = vmatpush.msk.msrb.mxu3 %vm8468_vm15, %v8197_v29  ;;  %3827 = vrcp.f32 %v8472_v28 }
 0x40e   :  { %2915 = vmatpush.msrb.mxu1 %v931_v56  ;;  %3429 = vmatpush.msk.msrb.mxu2 %vm8470_vm5, %v8197_v29  ;;  %3829 = vrcp.f32 %v8474_v41  ;;  %v8500_v56 = vld [vmem:[#allocation222_spill] sm:$0xff] }
 0x40f   :  { %3441 = vmatpush.msk.msrb.mxu3 %vm8473_vm9, %v8197_v29  ;;  %3831 = vrcp.f32 %v8477_v8  ;;  %v8508_v8 = vld [vmem:[#allocation178_spill] sm:$0xff] }
 0x410   :  { %2916 = vmatpush.msrb.mxu1 %v930_v37  ;;  %3430 = vmatpush.msk.msrb.mxu2 %vm8475_vm8, %v8197_v29  ;;  %3833 = vrcp.f32 %v8479_v0 }
 0x411   :  { %3442 = vmatpush.msk.msrb.mxu3 %vm8478_vm0, %v8197_v29  ;;  %3835 = vrcp.f32 %v8482_v24 }
 0x412   :  { %2917 = vmatpush.msrb.mxu1 %v929_v54  ;;  %3431 = vmatpush.msk.msrb.mxu2 %vm8480_vm14, %v8197_v29  ;;  %v7113_v39 = vpop.eup %3825  ;;  %3837 = vrcp.f32 %v8484_v12  ;;  %v8507_v54 = vld [vmem:[#allocation111_spill] sm:$0xff] }
 0x413   :  { %3443 = vmatpush.msk.msrb.mxu3 %vm8483_vm3, %v8197_v29  ;;  %v3828_v40 = vpop.eup %3827  ;;  %3839 = vrcp.f32 %v8486_v62  ;;  %v922_v9 = vmul.f32 %v3822_v57, %v8507_v54  ;;  %v8511_v12 = vld [vmem:[#allocation55_spill] sm:$0xff]  ;;  %v921_v57 = vmul.f32 %v7089_v61, %v8512_v14  ;;  %v8536_v54 = vld [vmem:[#allocation170_spill] sm:$0xff] }
 0x414   :  { %2918 = vmatpush.msrb.mxu1 %v928_v53  ;;  %3432 = vmatpush.msk.msrb.mxu2 %vm2231_vm4, %v8197_v29  ;;  %v7128_v13 = vpop.eup %3829  ;;  %3841 = vrcp.f32 %v8489_v34  ;;  %vm8492_vm4 = vcmp.eq.s32.totalorder %v4111_v4, %v6731_v38  ;;  %v925_v22 = vmul.f32 %v3828_v40, %v8495_v17  ;;  %v8497_v38 = vld [vmem:[#allocation54_spill] sm:$0xff]  ;;  %v8509_v53 = vld [vmem:[#allocation85_spill] sm:$0xff]  ;;  %v8516_v34 = vld [vmem:[#allocation52_spill] sm:$0xff] }
 0x415   :  { %3444 = vmatpush.msk.msrb.mxu3 %vm8487_vm13, %v8197_v29  ;;  %v3832_v26 = vpop.eup %3831  ;;  %3843 = vrcp.f32 %v8491_v16  ;;  %v947_v2 = vmul.f32 %v6967_v63, %v8497_v38  ;;  %v8503_v63 = vld [vmem:[#allocation150_spill] sm:$0xff]  ;;  %v8515_v4 = vld [vmem:[#allocation193_spill] sm:$0xff] }
 0x416   :  { %2919 = vmatpush.msrb.mxu1 %v927_v20  ;;  %3433 = vmatpush.msk.msrb.mxu2 %vm2230_vm1, %v8197_v29  ;;  %v3834_v58 = vpop.eup %3833  ;;  %3845 = vrcp.f32 %v8494_v45  ;;  %v924_v48 = vmul.f32 %v3832_v26, %v8499_v55  ;;  %v8513_v20 = vld [vmem:[#allocation139_spill] sm:$0xff]  ;;  %v8518_v26 = vld [vmem:[#allocation144_spill] sm:$0xff]  ;;  %v8521_v17 = vld [vmem:[#allocation218_spill] sm:$0xff] }
 0x417   :  { %3445 = vmatpush.msk.msrb.mxu3 %vm8492_vm4, %v8197_v29  ;;  %2888 = vmatmul.f32.vlgmr.msrb.gmra.mxu2 %v8197_v29  ;;  %v3836_v10 = vpop.eup %3835  ;;  %3847 = vrcp.f32 %v8496_v31  ;;  %v946_v59 = vmul.f32 %v3834_v58, %v8501_v35  ;;  %v8523_v31 = vld [vmem:[#allocation122_spill] sm:$0xff] }
 0x418   :  { %2933 = vmatpush.msra.mxu2 %v949_v50  ;;  %2920 = vmatpush.msrb.mxu1 %v926_v46  ;;  %v3838_v6 = vpop.eup %3837  ;;  %3849 = vrcp.f32 %v8498_v1  ;;  %v923_v3 = vmul.f32 %v3836_v10, %v8503_v63  ;;  %v920_v46 = vmul.f32 %v7018_v49, %v8517_v23  ;;  %v962_v38 = vmul.f32 %v7113_v39, %v8523_v31  ;;  %v8528_v35 = vld [vmem:[#allocation98_spill] sm:$0xff]  ;;  %v8531_v63 = vld [vmem:[#allocation107_spill] sm:$0xff] }
 0x419   :  { %3446 = vmatpush.msk.msrb.mxu3 %vm2249_vm7, %v8197_v29  ;;  %v3840_v19 = vpop.eup %3839  ;;  %3851 = vrcp.f32 %v8500_v56  ;;  %v945_v28 = vmul.f32 %v3838_v6, %v8505_v7  ;;  %v8525_v6 = vld [vmem:[#allocation40_spill] sm:$0xff]  ;;  %v8530_v39 = vld [vmem:[#allocation194_spill] sm:$0xff] }
 0x41a   :  { %2934 = vmatpush.msra.mxu2 %v948_v51  ;;  %2921 = vmatpush.msrb.mxu1 %v925_v22  ;;  %v3842_v47 = vpop.eup %3841  ;;  %3853 = vrcp.f32 %v8502_v60  ;;  %v965_v0 = vmul.f32 %v3840_v19, %v8508_v8  ;;  %v8520_v51 = vld [vmem:[#allocation25_spill] sm:$0xff]  ;;  %v8522_v22 = vld [vmem:[#allocation70_spill] sm:$0xff]  ;;  %v8527_v19 = vld [vmem:[#allocation60_spill] sm:$0xff] }
 0x41b   :  { %3447 = vmatpush.msk.msrb.mxu3 %vm2248_vm6, %v8197_v29  ;;  %v3844_v37 = vpop.eup %3843  ;;  %3855 = vrcp.f32 %v8504_v42  ;;  %v944_v33 = vmul.f32 %v3842_v47, %v8510_v30  ;;  %v919_v10 = vmul.f32 %v6990_v25, %v8522_v22  ;;  %v918_v56 = vmul.f32 %v6975_v44, %v8527_v19  ;;  %v8529_v47 = vld [vmem:[#allocation165_spill] sm:$0xff]  ;;  %v8532_v42 = vld [vmem:[#allocation167_spill] sm:$0xff]  ;;  %v8533_v7 = vld [vmem:[#allocation96_spill] sm:$0xff] }
 0x41c   :  { %2935 = vmatpush.msra.mxu2 %v947_v2  ;;  %2922 = vmatpush.msrb.mxu1 %v924_v48  ;;  %v3846_v41 = vpop.eup %3845  ;;  %3857 = vrcp.f32 %v8506_v18  ;;  %v964_v40 = vmul.f32 %v3844_v37, %v8513_v20  ;;  %v8524_v2 = vld [vmem:[#allocation175_spill] sm:$0xff]  ;;  %v8526_v48 = vld [vmem:[#allocation224_spill] sm:$0xff]  ;;  %v961_v25 = vmul.f32 %v7049_v52, %v8528_v35  ;;  %v8542_v20 = vld [vmem:[#allocation166_spill] sm:$0xff] }
 0x41d   :  { %3448 = vmatpush.msk.msrb.mxu3 %vm2247_vm2, %v8197_v29  ;;  %v3848_v43 = vpop.eup %3847  ;;  %3859 = vrcp.f32 %v8509_v53  ;;  %v943_v11 = vmul.f32 %v3846_v41, %v8515_v4  ;;  %v8534_v41 = vld [vmem:[#allocation117_spill] sm:$0xff]  ;;  %v8535_v52 = vld [vmem:[#allocation184_spill] sm:$0xff]  ;;  %v8553_v31 = vld [vmem:[#allocation202_spill] sm:$0xff] }
 0x41e   :  { %2936 = vmatpush.msra.mxu2 %v946_v59  ;;  %2923 = vmatpush.msrb.mxu1 %v923_v3  ;;  %v3850_v24 = vpop.eup %3849  ;;  %3861 = vrcp.f32 %v8511_v12  ;;  %v963_v61 = vmul.f32 %v3848_v43, %v8518_v26  ;;  %v8538_v43 = vld [vmem:[#allocation61_spill] sm:$0xff]  ;;  %v8541_v12 = vld [vmem:[#allocation43_spill] sm:$0xff]  ;;  %v8547_v26 = vld [vmem:[#allocation248_spill] sm:$0xff] }
 0x41f   :  { %3449 = vmatpush.msk.msrb.mxu3 %vm2246_vm10, %v8197_v29  ;;  %v3852_v62 = vpop.eup %3851  ;;  %3863 = vrcp.f32 %v8514_v15  ;;  %v942_v58 = vmul.f32 %v3850_v24, %v8520_v51  ;;  %v959_v53 = vmul.f32 %v6986_v21, %v8538_v43  ;;  %v8545_v21 = vld [vmem:[#allocation151_spill] sm:$0xff]  ;;  %v8550_v51 = vld [vmem:[#allocation128_spill] sm:$0xff]  ;;  %v8568_v43 = vld [vmem:[#allocation77_spill] sm:$0xff]  ;;  %vm2479_vm10 = vcmask 1040384  }
 0x420   :  { %2937 = vmatpush.msra.mxu2 %v945_v28  ;;  %2924 = vmatpush.msrb.mxu1 %v922_v9  ;;  %v3854_v50 = vpop.eup %3853  ;;  %3865 = vrcp.f32 %v8516_v34  ;;  %v960_v28 = vmul.f32 %v7033_v5, %v8533_v7  ;;  %v8539_v5 = vld [vmem:[#allocation95_spill] sm:$0xff] }
 0x421   :  { %2953 = vmatpush.msra.mxu3 %v965_v0  ;;  %v3856_v16 = vpop.eup %3855  ;;  %3867 = vrcp.f32 %v8519_v27  ;;  %v941_v1 = vmul.f32 %v3854_v50, %v8525_v6  ;;  %v8537_v0 = vld [vmem:[#allocation251_spill] sm:$0xff]  ;;  %v8555_v6 = vld [vmem:[#allocation104_spill] sm:$0xff] }
 0x422   :  { %2938 = vmatpush.msra.mxu2 %v944_v33  ;;  %2908 = vmatmul.f32.vlgmr.msrb.gmra.mxu3 %v8197_v29  ;;  %v3858_v45 = vpop.eup %3857  ;;  %3869 = vrcp.f32 %v8521_v17  ;;  %v981_v60 = vmul.f32 %v3856_v16, %v8530_v39  ;;  %v8540_v33 = vld [vmem:[#allocation145_spill] sm:$0xff]  ;;  %v8546_v34 = vld [vmem:[#allocation75_spill] sm:$0xff] }
 0x423   :  { %2925 = vmatpush.msrb.mxu1 %v921_v57  ;;  %2954 = vmatpush.msra.mxu3 %v964_v40  ;;  %v3860_v49 = vpop.eup %3859  ;;  %3871 = vrcp.f32 %v8524_v2  ;;  %v940_v3 = vmul.f32 %v3858_v45, %v8531_v63  ;;  %v979_v24 = vmul.f32 %v3852_v62, %v8540_v33  ;;  %v8543_v40 = vld [vmem:[#allocation200_spill] sm:$0xff]  ;;  %v8549_v27 = vld [vmem:[#allocation207_spill] sm:$0xff]  ;;  %v8554_v2 = vld [vmem:[#allocation210_spill] sm:$0xff] }
 0x424   :  { %2939 = vmatpush.msra.mxu2 %v943_v11  ;;  %v3862_v55 = vpop.eup %3861  ;;  %3873 = vrcp.f32 %v8526_v48  ;;  %v980_v18 = vmul.f32 %v3860_v49, %v8535_v52  ;;  %v8544_v11 = vld [vmem:[#allocation121_spill] sm:$0xff]  ;;  %v8548_v62 = vld [vmem:[#allocation208_spill] sm:$0xff]  ;;  %v8551_v45 = vld [vmem:[#allocation91_spill] sm:$0xff] }
 0x425   :  { %2926 = vmatpush.msrb.mxu1 %v920_v46  ;;  %2955 = vmatpush.msra.mxu3 %v963_v61  ;;  %v3864_v59 = vpop.eup %3863  ;;  %3875 = vrcp.f32 %v8529_v47  ;;  %v939_v9 = vmul.f32 %v3862_v55, %v8536_v54  ;;  %v8556_v55 = vld [vmem:[#allocation240_spill] sm:$0xff]  ;;  %v8560_v47 = vld [vmem:[#allocation103_spill] sm:$0xff] }
 0x426   :  { %2940 = vmatpush.msra.mxu2 %v942_v58  ;;  %v3866_v37 = vpop.eup %3865  ;;  %3877 = vrcp.f32 %v8532_v42  ;;  %v978_v50 = vmul.f32 %v3864_v59, %v8545_v21  ;;  %v977_v58 = vmul.f32 %v7128_v13, %v8550_v51  ;;  %v8557_v13 = vld [vmem:[#allocation134_spill] sm:$0xff]  ;;  %v8559_v59 = vld [vmem:[#allocation196_spill] sm:$0xff]  ;;  %v975_v39 = vmul.f32 %v7063_v32, %v8560_v47 }
 0x427   :  { %2927 = vmatpush.msrb.mxu1 %v919_v10  ;;  %2956 = vmatpush.msra.mxu3 %v962_v38  ;;  %v3868_v44 = vpop.eup %3867  ;;  %3879 = vrcp.f32 %v8534_v41  ;;  %v938_v14 = vmul.f32 %v3866_v37, %v8541_v12  ;;  %v8552_v10 = vld [vmem:[#allocation157_spill] sm:$0xff]  ;;  %v8563_v37 = vld [vmem:[#allocation179_spill] sm:$0xff]  ;;  %v8565_v52 = vld [vmem:[#allocation244_spill] sm:$0xff] }
 0x428   :  { %2941 = vmatpush.msra.mxu2 %v941_v1  ;;  %v3870_v8 = vpop.eup %3869  ;;  %3881 = vrcp.f32 %v8537_v0  ;;  %v958_v15 = vmul.f32 %v3868_v44, %v8543_v40  ;;  %v976_v1 = vmul.f32 %v7076_v36, %v8555_v6  ;;  %v8562_v36 = vld [vmem:[#allocation130_spill] sm:$0xff]  ;;  %v8570_v33 = vld [vmem:[#allocation76_spill] sm:$0xff]  ;;  %v8573_v40 = vld [vmem:[#allocation23_spill] sm:$0xff] }
 0x429   :  { %2928 = vmatpush.msrb.mxu1 %v918_v56  ;;  %2957 = vmatpush.msra.mxu3 %v961_v25  ;;  %v3872_v30 = vpop.eup %3871  ;;  %3883 = vrcp.f32 %v8539_v5  ;;  %v937_v23 = vmul.f32 %v3870_v8, %v8546_v34  ;;  %v8558_v56 = vld [vmem:[#allocation171_spill] sm:$0xff]  ;;  %v8575_v21 = vld [vmem:[#allocation108_spill] sm:$0xff] }
 0x42a   :  { %2942 = vmatpush.msra.mxu2 %v940_v3  ;;  %2929 = vmatmul.f32.vlgmr.msrb.gmra.mxu1 %v8197_v29  ;;  %v3874_v57 = vpop.eup %3873  ;;  %3885 = vrcp.f32 %v8542_v20  ;;  %v957_v61 = vmul.f32 %v3872_v30, %v8548_v62  ;;  %v8576_v34 = vld [vmem:[#allocation204_spill] sm:$0xff] }
 0x42b   :  { %2973 = vmatpush.msra.mxu1 %v981_v60  ;;  %2958 = vmatpush.msra.mxu3 %v960_v28  ;;  %v3876_v4 = vpop.eup %3875  ;;  %3887 = vrcp.f32 %v8544_v11  ;;  %v936_v17 = vmul.f32 %v3874_v57, %v8551_v45  ;;  %v8561_v60 = vld [vmem:[#allocation238_spill] sm:$0xff]  ;;  %v8564_v28 = vld [vmem:[#allocation67_spill] sm:$0xff]  ;;  %v8572_v57 = vld [vmem:[#allocation129_spill] sm:$0xff] }
 0x42c   :  { %2943 = vmatpush.msra.mxu2 %v939_v9  ;;  %v3878_v46 = vpop.eup %3877  ;;  %3889 = vrcp.f32 %v8547_v26  ;;  %v956_v38 = vmul.f32 %v3876_v4, %v8553_v31  ;;  %v8567_v9 = vld [vmem:[#allocation230_spill] sm:$0xff]  ;;  %v8577_v26 = vld [vmem:[#allocation217_spill] sm:$0xff] }
 0x42d   :  { %2974 = vmatpush.msra.mxu1 %v980_v18  ;;  %2959 = vmatpush.msra.mxu3 %v959_v53  ;;  %v3880_v16 = vpop.eup %3879  ;;  %3891 = vrcp.f32 %v8549_v27  ;;  %v935_v48 = vmul.f32 %v3878_v46, %v8556_v55  ;;  %v8566_v18 = vld [vmem:[#allocation174_spill] sm:$0xff]  ;;  %v8569_v53 = vld [vmem:[#allocation123_spill] sm:$0xff] }
 0x42e   :  { %2944 = vmatpush.msra.mxu2 %v938_v14  ;;  %v3882_v22 = vpop.eup %3881  ;;  %3893 = vrcp.f32 %v8552_v10  ;;  %v955_v35 = vmul.f32 %v3880_v16, %v8558_v56  ;;  %v8571_v14 = vld [vmem:[#allocation239_spill] sm:$0xff]  ;;  %v8574_v11 = vld [vmem:[#allocation138_spill] sm:$0xff] }
 0x42f   :  { %2975 = vmatpush.msra.mxu1 %v979_v24  ;;  %2960 = vmatpush.msra.mxu3 %v958_v15  ;;  %v3884_v49 = vpop.eup %3883  ;;  %3895 = vrcp.f32 %v8554_v2  ;;  %v934_v63 = vmul.f32 %v3882_v22, %v8561_v60  ;;  %v8578_v16 = vld [vmem:[#allocation31_spill] sm:$0xff] }
 0x430   :  { %2945 = vmatpush.msra.mxu2 %v937_v23  ;;  %v3886_v19 = vpop.eup %3885  ;;  %3897 = vrcp.f32 %v8557_v13  ;;  %v954_v42 = vmul.f32 %v3884_v49, %v8563_v37 }
 0x431   :  { %2976 = vmatpush.msra.mxu1 %v978_v50  ;;  %2961 = vmatpush.msra.mxu3 %v957_v61  ;;  %v3888_v25 = vpop.eup %3887  ;;  %3899 = vrcp.f32 %v8559_v59  ;;  %v974_v44 = vmul.f32 %v3886_v19, %v8564_v28 }
 0x432   :  { %2946 = vmatpush.msra.mxu2 %v936_v17  ;;  %v3890_v3 = vpop.eup %3889  ;;  %3901 = vrcp.f32 %v8562_v36  ;;  %v953_v54 = vmul.f32 %v3888_v25, %v8566_v18  ;;  %v8580_v17 = vld [vmem:[#allocation187_spill] sm:$0xff] }
 0x433   :  { %2977 = vmatpush.msra.mxu1 %v977_v58  ;;  %2962 = vmatpush.msra.mxu3 %v956_v38  ;;  %v3892_v7 = vpop.eup %3891  ;;  %3903 = vrcp.f32 %v8565_v52  ;;  %v973_v8 = vmul.f32 %v3890_v3, %v8567_v9  ;;  %v8579_v58 = vld [vmem:[#allocation180_spill] sm:$0xff] }
 0x434   :  { %2947 = vmatpush.msra.mxu2 %v935_v48  ;;  %v3894_v41 = vpop.eup %3893  ;;  %3905 = vrcp.f32 %v8568_v43  ;;  %v952_v30 = vmul.f32 %v3892_v7, %v8569_v53 }
 0x435   :  { %2978 = vmatpush.msra.mxu1 %v976_v1  ;;  %2963 = vmatpush.msra.mxu3 %v955_v35  ;;  %v3896_v32 = vpop.eup %3895  ;;  %v972_v24 = vmul.f32 %v3894_v41, %v8570_v33  ;;  %3907 = vrcp.f32 %v8571_v14 }
 0x436   :  { %2948 = vmatpush.msra.mxu2 %v934_v63  ;;  %v3898_v0 = vpop.eup %3897  ;;  %v951_v20 = vmul.f32 %v3896_v32, %v8572_v57  ;;  %3909 = vrcp.f32 %v8574_v11 }
 0x437   :  { %2979 = vmatpush.msra.mxu1 %v975_v39  ;;  %2964 = vmatpush.msra.mxu3 %v954_v42  ;;  %v3900_v5 = vpop.eup %3899  ;;  %v971_v15 = vmul.f32 %v3898_v0, %v8573_v40  ;;  %v8581_v42 = vlaneseq }
 0x438   :  { %2949 = vmatmul.f32.vlgmr.msra.gmra.mxu2 %v8197_v29  ;;  %v3902_v12 = vpop.eup %3901  ;;  %v950_v50 = vmul.f32 %v3900_v5, %v8575_v21 }
 0x439   :  { %2980 = vmatpush.msra.mxu1 %v974_v44  ;;  %2965 = vmatpush.msra.mxu3 %v953_v54  ;;  %v3904_v4 = vpop.eup %3903  ;;  %v970_v23 = vmul.f32 %v3902_v12, %v8576_v34  ;;  %vm2487_vm15 = vcmp.lt.s32.totalorder %v8581_v42, 512 }
 0x43a   :  { %v3906_v46 = vpop.eup %3905  ;;  %v969_v62 = vmul.f32 %v3904_v4, %v8577_v26 }
 0x43b   :  { %2981 = vmatpush.msra.mxu1 %v973_v8  ;;  %2966 = vmatpush.msra.mxu3 %v952_v30  ;;  %v3908_v61 = vpop.eup %3907  ;;  %v968_v27 = vmul.f32 %v3906_v46, %v8578_v16 }
 0x43c   :  { %v3910_v51 = vpop.eup %3909  ;;  %v967_v45 = vmul.f32 %v3908_v61, %v8579_v58 }
 0x43d   :  { %2982 = vmatpush.msra.mxu1 %v972_v24  ;;  %2967 = vmatpush.msra.mxu3 %v951_v20  ;;  %v966_v22 = vmul.f32 %v3910_v51, %v8580_v17 }
 0x43f   :  { %2983 = vmatpush.msra.mxu1 %v971_v15  ;;  %2968 = vmatpush.msra.mxu3 %v950_v50 }
 0x440   :  { %2969 = vmatmul.f32.vlgmr.msra.gmra.mxu3 %v8197_v29 }
 0x441   :  { %2984 = vmatpush.msra.mxu1 %v970_v23 }
 0x443   :  { %2985 = vmatpush.msra.mxu1 %v969_v62 }
 0x445   :  { %2986 = vmatpush.msra.mxu1 %v968_v27 }
 0x447   :  { %2987 = vmatpush.msra.mxu1 %v967_v45 }
 0x449   :  { %2988 = vmatpush.msra.mxu1 %v966_v22 }
 0x44a   :  { %2989 = vmatmul.f32.vlgmr.msra.gmra.mxu1 %v8197_v29  ;;  %v2409_v10 = vpop.f32.mrf.mxu1 }
 0x44b   :  { %v3499_v55 = vceil.f32 %v2409_v10  ;;  %v3500_v29 = vfloor.f32 %v2409_v10  ;;  %vm3498_vm6 = vcmp.lt.s32.totalorder %v2409_v10, 0 }
 0x44d   :  { %v3501_v35 = vsel %vm3498_vm6, %v3499_v55, %v3500_v29 }
 0x44e   :  { %v3502_v60 = vcvt.f32.s32 %v3501_v35 }
 0x45a   :  { %v2429_v31 = vpop.f32.mrf.mxu2 }
 0x45b   :  { %v3504_v49 = vceil.f32 %v2429_v31  ;;  %v3505_v2 = vfloor.f32 %v2429_v31  ;;  %vm3503_vm1 = vcmp.lt.s32.totalorder %v2429_v31, 0 }
 0x45d   :  { %v3506_v48 = vsel %vm3503_vm1, %v3504_v49, %v3505_v2 }
 0x45e   :  { %v3507_v13 = vcvt.f32.s32 %v3506_v48 }
 0x460   :  { %v2476_v63 = vrot.slane %v3507_v13, 7 }
 0x462   :  { %v2449_v38 = vpop.f32.mrf.mxu3  ;;  %v2480_v7 = vsel %vm2479_vm10, %v3502_v60, %v2476_v63 }
 0x463   :  { %v3509_v6 = vceil.f32 %v2449_v38  ;;  %v3510_v1 = vfloor.f32 %v2449_v38  ;;  %vm3508_vm7 = vcmp.lt.s32.totalorder %v2449_v38, 0 }
 0x465   :  { %v3511_v19 = vsel %vm3508_vm7, %v3509_v6, %v3510_v1 }
 0x466   :  { %v3512_v47 = vcvt.f32.s32 %v3511_v19 }
 0x468   :  { %v2477_v36 = vrot.slane %v3512_v47, 6 }
 0x47a   :  { %v2849_v41 = vpop.f32.mrf.mxu2 }
 0x482   :  { %v2869_v52 = vpop.f32.mrf.mxu3 }
 0x483   :  { %v2870_v18 = vadd.f32 %v2869_v52, %v2849_v41 }
 0x488   :  { %v2469_v56 = vpop.f32.mrf.mxu1 }
 0x489   :  { %vm3513_vm2 = vcmp.lt.s32.totalorder %v2469_v56, 0  ;;  %v3514_v25 = vceil.f32 %v2469_v56  ;;  %v3515_v59 = vfloor.f32 %v2469_v56 }
 0x48b   :  { %v3516_v39 = vsel %vm3513_vm2, %v3514_v25, %v3515_v59 }
 0x48c   :  { %v3517_v3 = vcvt.f32.s32 %v3516_v39 }
 0x48e   :  { %v2478_v37 = vrot.slane %v3517_v3, 5 }
 0x490   :  { %v2482_v28 = vsel %vm2481_vm12, %v2477_v36, %v2478_v37 }
 0x491   :  { %v2484_v44 = vsel %vm2483_vm11, %v2480_v7, %v2482_v28 }
 0x492   :  { %2489 = vst.msk [vmem:[#allocation7] sm:$0xf] %vm2487_vm15, %v2484_v44 }
 0x493   :  { %3203 = dma.vmem_to_hbm [thread:$0]  %s3199_s8, 64, %s3201_s11, [#allocation4]  }
 0x49a   :  { %v2889_v54 = vpop.f32.mrf.mxu2 }
 0x49b   :  { %v2890_v32 = vadd.f32 %v2889_v54, %v2870_v18 }
 0x4a5   :  { %v2909_v9 = vpop.f32.mrf.mxu3 }
 0x4a6   :  { %v2910_v8 = vadd.f32 %v2909_v9, %v2890_v32 }
 0x4a7   :  { %v2930_v0 = vpop.f32.mrf.mxu1 }
 0x4a8   :  { %2912 = vst [vmem:[#allocation8] sm:$0x1] %v2910_v8 }
 0x4a9   :  { %3214 = dma.vmem_to_hbm [thread:$0]  %s3210_s13, 16, %s3212_s15, [#allocation9]  }
 0x4bb   :  { %v2950_v43 = vpop.f32.mrf.mxu2 }
 0x4bc   :  { %v2951_v53 = vadd.f32 %v2950_v43, %v2930_v0 }
 0x4c3   :  { %v2970_v30 = vpop.f32.mrf.mxu3 }
 0x4c4   :  { %v2971_v5 = vadd.f32 %v2970_v30, %v2951_v53 }
 0x4c7   :  { %v2990_v33 = vpop.f32.mrf.mxu1 }
 0x4c8   :  { %v2991_v24 = vadd.f32 %v2990_v33, %v2971_v5 }
 0x4ca   :  { %2993 = vst [vmem:[#allocation10] sm:$0x1] %v2991_v24 }
 0x4cb   :  { %3225 = dma.vmem_to_hbm [thread:$0]  %s3221_s17, 16, %s3223_s20, [#allocation9]  }
 0x4cc   :  { %4059 = dma.done.wait [#allocation4], 64  }
 0x4cd   :  { %4060 = vsyncadd [#allocation4], 4294967232 }
 0x4ce   :  { %4061 = dma.done.wait [#allocation9], 32  }
 0x4cf   :  { %4062 = vsyncadd [#allocation9], 4294967264 }
 0x4d0   :  { %4063 = dma.done.wait [#allocation12], 16  }
 0x4d1   :  { %4064 = vsyncadd [#allocation12], 4294967280 }
 0x4d2   :  { %3253 = vsyncpa [#allocation3], 1 }
 0x4d3   :  { %3254 = vsyncpa [#allocation6], 1 }
 0x4d4   :  { %3255 = vsyncpa [#allocation4], 1 }
 0x4d5   :  { %3256 = vsyncpa [#allocation9], 1 }
 0x4d6   :  { %3257 = vsyncpa [#allocation12], 1 }

</bundles_post_ra>
